<compile_context>
chip_gen: v7x
topology: tpu7x:2x2x1
jax: 0.10.0
libtpu: 0.0.40
codegen_flags: <defaults>
</compile_context>

<pallas_src>
import functools

import jax
import jax.numpy as jnp
from jax.experimental import pallas as pl
from jax.experimental.pallas import tpu as pltpu


def _rup128(n):
    return ((n + 127) // 128) * 128


# ----------------------------------------------------------------------------
# In-kernel helpers
# ----------------------------------------------------------------------------
def _zero_halos(buf_ref, pad, n_seg, pitch, H, W):
    """Zero only the halo strips of a lane-packed (2*pad+H, width) buffer."""
    width = buf_ref.shape[1]
    zrow = jnp.zeros((pad, width), jnp.float32)
    buf_ref[0:pad, :] = zrow                                  # top rows
    buf_ref[pad + H:pad + H + pad, :] = zrow                  # bottom rows
    # column halos inside the data rows: leading halo, the contiguous
    # (right halo of seg c | left halo of seg c+1) strips, and the trailing
    # halo + lane-padding tail.
    buf_ref[pad:pad + H, 0:pad] = jnp.zeros((H, pad), jnp.float32)
    for c in range(n_seg - 1):
        s = c * pitch + pad + W
        buf_ref[pad:pad + H, s:s + 2 * pad] = jnp.zeros((H, 2 * pad), jnp.float32)
    s = (n_seg - 1) * pitch + pad + W
    buf_ref[pad:pad + H, s:width] = jnp.zeros((H, width - s), jnp.float32)


def _packed_stencil(buf_ref, wl_ref, K, dil, H, out_w):
    """Depthwise KxK stencil over lane-packed segments.

    buf_ref : (2*pad+H, width) zero-padded, segment-packed input.
    wl_ref  : (K*K, width) per-lane tap weights (weight of lane p's segment).
    Returns (H, out_w); segment c's valid result sits at lanes
    [c*pitch, c*pitch+W).
    """
    acc = None
    for i in range(K):
        strip = buf_ref[i * dil:i * dil + H, :]      # 1 VMEM read per kernel row
        for j in range(K):
            s = j * dil
            t = i * K + j
            tap = strip[:, s:s + out_w]              # register lane shift, no reload
            w_row = wl_ref[t:t + 1, 0:out_w]         # (1, out_w)
            term = tap * w_row
            acc = term if acc is None else acc + term
    return acc


# ----------------------------------------------------------------------------
# Fully fused per-batch kernel
# ----------------------------------------------------------------------------
def _lsk_fused_kernel(x_ref,
                      w0l_ref, wspl_ref, wsql_ref,
                      b0_ref, bsp_ref,
                      w1_ref, b1_ref, w2_ref, b2_ref,
                      bsq_ref, wc_ref, bc_ref,
                      out_ref,
                      xpad_ref, sppad_ref, aggpad_ref,
                      *, C, H, W):
    C2 = C // 2
    P0 = W + 4      # conv0 segment pitch       (5x5, pad 2)
    P1 = W + 18     # conv_spatial segment pitch (7x7 dil 3, pad 9)
    P2 = W + 6      # conv_squeeze segment pitch (7x7, pad 3)
    OW0 = xpad_ref.shape[1] - 4
    OW1 = sppad_ref.shape[1] - 18
    OW2 = aggpad_ref.shape[1] - 6

    # ---- pack x (with per-segment halos) and run depthwise 5x5, pad=2 ------
    _zero_halos(xpad_ref, 2, C, P0, H, W)
    for c in range(C):
        xpad_ref[2:2 + H, c * P0 + 2:c * P0 + 2 + W] = x_ref[0, c]
    attn1 = _packed_stencil(xpad_ref, w0l_ref, 5, 1, H, OW0)

    # ---- consume attn1 immediately: repack (pad=9) for conv_spatial and do
    # ---- the 1x1 conv1, so the per-channel planes don't stay live ----------
    _zero_halos(sppad_ref, 9, C, P1, H, W)
    a1 = [jnp.full((H, W), b1_ref[o], jnp.float32) for o in range(C2)]
    for c in range(C):
        attn1_c = attn1[:, c * P0:c * P0 + W] + b0_ref[c]
        sppad_ref[9:9 + H, c * P1 + 9:c * P1 + 9 + W] = attn1_c
        for o in range(C2):
            a1[o] = a1[o] + attn1_c * w1_ref[o * C + c]

    # ---- depthwise 7x7, dilation=3, pad=9, then the 1x1 conv2 --------------
    attn2 = _packed_stencil(sppad_ref, wspl_ref, 7, 3, H, OW1)
    a2 = [jnp.full((H, W), b2_ref[o], jnp.float32) for o in range(C2)]
    for c in range(C):
        attn2_c = attn2[:, c * P1:c * P1 + W] + bsp_ref[c]
        for o in range(C2):
            a2[o] = a2[o] + attn2_c * w2_ref[o * C + c]

    # ---- channel mean / max over concat([a1, a2]) (in registers) -----------
    ssum = a1[0] + a2[0]
    smax = jnp.maximum(a1[0], a2[0])
    for o in range(1, C2):
        ssum = ssum + a1[o] + a2[o]
        smax = jnp.maximum(smax, jnp.maximum(a1[o], a2[o]))
    avg = ssum * (1.0 / (2.0 * C2))

    # ---- conv_squeeze: dense 2->2 7x7, pad=3, done as 4 packed segments ----
    # segment order: [(o0,avg), (o0,max), (o1,avg), (o1,max)]; output channel
    # o is the sum of segments 2o and 2o+1.
    _zero_halos(aggpad_ref, 3, 4, P2, H, W)
    planes = (avg, smax, avg, smax)
    for s in range(4):
        aggpad_ref[3:3 + H, s * P2 + 3:s * P2 + 3 + W] = planes[s]
    sq = _packed_stencil(aggpad_ref, wsql_ref, 7, 1, H, OW2)
    sig = []
    for o in range(2):
        part = (sq[:, (2 * o) * P2:(2 * o) * P2 + W]
                + sq[:, (2 * o + 1) * P2:(2 * o + 1) * P2 + W]
                + bsq_ref[o])
        sig.append(jax.nn.sigmoid(part))      # EUP

    # ---- weighted fusion + final 1x1 conv (C//2 -> C) + input gating -------
    attn = [a1[o] * sig[0] + a2[o] * sig[1] for o in range(C2)]
    for c in range(C):
        y = jnp.full((H, W), bc_ref[c], jnp.float32)
        for o in range(C2):
            y = y + attn[o] * wc_ref[c * C2 + o]
        # TODO(synk): a lane-dense (H, C*W) output slab would replace these
        # masked 16-lane stores once the tail is also lane-packed.
        out_ref[0, c] = x_ref[0, c] * y


# ----------------------------------------------------------------------------
# Wrapper
# ----------------------------------------------------------------------------
def _lane_weights(w_seg_taps, pitch, width):
    """(n_seg, n_taps) -> (n_taps, width): per-lane tap weights (segment-wise)."""
    n_seg, _ = w_seg_taps.shape
    lw = jnp.repeat(jnp.transpose(w_seg_taps), pitch, axis=1)
    return jnp.pad(lw, ((0, 0), (0, width - n_seg * pitch)))


def lsk_block_sa(x, p):
    B, C, H, W = x.shape
    P0, P1, P2 = W + 4, W + 18, W + 6
    XW = _rup128(C * P0)        # 128 for C=4, W=16
    SW = _rup128(C * P1)        # 256
    AW = _rup128(4 * P2)        # 128

    # Per-lane tap weights: pure layout plumbing, tiny arrays (in a model
    # these would be precomputed once from the parameters).
    w0l = _lane_weights(p['conv0_w'].reshape(C, 25), P0, XW)
    wspl = _lane_weights(p['convsp_w'].reshape(C, 49), P1, SW)
    wsql = _lane_weights(p['convsq_w'].reshape(4, 49), P2, AW)

    kern = functools.partial(_lsk_fused_kernel, C=C, H=H, W=W)
    smem = pl.BlockSpec(memory_space=pltpu.MemorySpace.SMEM)
    return pl.pallas_call(
        kern,
        out_shape=jax.ShapeDtypeStruct((B, C, H, W), jnp.float32),
        grid=(B,),
        in_specs=[
            pl.BlockSpec((1, C, H, W), lambda b: (b, 0, 0, 0)),
            pl.BlockSpec((25, XW), lambda b: (0, 0)),   # conv0 lane weights
            pl.BlockSpec((49, SW), lambda b: (0, 0)),   # conv_spatial lane weights
            pl.BlockSpec((49, AW), lambda b: (0, 0)),   # conv_squeeze lane weights
            smem, smem,   # conv0 b, conv_spatial b
            smem, smem,   # conv1 w/b
            smem, smem,   # conv2 w/b
            smem,         # conv_squeeze b
            smem, smem,   # conv w/b
        ],
        out_specs=pl.BlockSpec((1, C, H, W), lambda b: (b, 0, 0, 0)),
        scratch_shapes=[
            pltpu.VMEM((H + 4, XW), jnp.float32),    # 5x5 pad=2 packed halo buf
            pltpu.VMEM((H + 18, SW), jnp.float32),   # 7x7 dil=3 pad=9 packed halo buf
            pltpu.VMEM((H + 6, AW), jnp.float32),    # 7x7 pad=3 packed halo buf
        ],
        compiler_params=pltpu.CompilerParams(
            dimension_semantics=("parallel",)),
    )(x,
      w0l, wspl, wsql,
      p['conv0_b'], p['convsp_b'],
      p['conv1_w'].reshape(-1), p['conv1_b'],
      p['conv2_w'].reshape(-1), p['conv2_b'],
      p['convsq_b'],
      p['conv_w'].reshape(-1), p['conv_b'])


# ----------------------------------------------------------------------------
# Pure-JAX reference (mirrors the PyTorch forward) for correctness check
# ----------------------------------------------------------------------------
def _torch_conv2d(x, w, b, *, padding=0, dilation=1, groups=1):
    out = jax.lax.conv_general_dilated(
        x, w, window_strides=(1, 1),
        padding=[(padding, padding), (padding, padding)],
        rhs_dilation=(dilation, dilation),
        dimension_numbers=('NCHW', 'OIHW', 'NCHW'),
        feature_group_count=groups)
    return out + b.reshape(1, -1, 1, 1)


def reference_forward(x, p):
    dim = x.shape[1]
    attn1 = _torch_conv2d(x, p['conv0_w'], p['conv0_b'], padding=2, groups=dim)
    attn2 = _torch_conv2d(attn1, p['convsp_w'], p['convsp_b'],
                          padding=9, dilation=3, groups=dim)
    a1 = _torch_conv2d(attn1, p['conv1_w'], p['conv1_b'])
    a2 = _torch_conv2d(attn2, p['conv2_w'], p['conv2_b'])
    attn = jnp.concatenate([a1, a2], axis=1)
    avg = jnp.mean(attn, axis=1, keepdims=True)
    mx = jnp.max(attn, axis=1, keepdims=True)
    agg = jnp.concatenate([avg, mx], axis=1)
    sig = jax.nn.sigmoid(_torch_conv2d(agg, p['convsq_w'], p['convsq_b'], padding=3))
    attn = a1 * sig[:, 0:1] + a2 * sig[:, 1:2]
    attn = _torch_conv2d(attn, p['conv_w'], p['conv_b'])
    return x * attn


if __name__ == "__main__":
    dim, B, H, W = 4, 2, 16, 16
    keys = jax.random.split(jax.random.PRNGKey(0), 13)
    p = {
        'conv0_w':  0.1 * jax.random.normal(keys[0], (dim, 1, 5, 5), jnp.float32),
        'conv0_b':  0.05 * jax.random.normal(keys[1], (dim,), jnp.float32),
        'convsp_w': 0.1 * jax.random.normal(keys[2], (dim, 1, 7, 7), jnp.float32),
        'convsp_b': 0.05 * jax.random.normal(keys[3], (dim,), jnp.float32),
        'conv1_w':  0.2 * jax.random.normal(keys[4], (dim // 2, dim, 1, 1), jnp.float32),
        'conv1_b':  0.05 * jax.random.normal(keys[5], (dim // 2,), jnp.float32),
        'conv2_w':  0.2 * jax.random.normal(keys[6], (dim // 2, dim, 1, 1), jnp.float32),
        'conv2_b':  0.05 * jax.random.normal(keys[7], (dim // 2,), jnp.float32),
        'convsq_w': 0.1 * jax.random.normal(keys[8], (2, 2, 7, 7), jnp.float32),
        'convsq_b': 0.05 * jax.random.normal(keys[9], (2,), jnp.float32),
        'conv_w':   0.2 * jax.random.normal(keys[10], (dim, dim // 2, 1, 1), jnp.float32),
        'conv_b':   0.05 * jax.random.normal(keys[11], (dim,), jnp.float32),
    }
    x = jax.random.normal(keys[12], (B, dim, H, W), jnp.float32)

    out = jax.block_until_ready(lsk_block_sa(x, p))
    ref = jax.block_until_ready(reference_forward(x, p))
    if not jnp.allclose(out, ref, rtol=2e-3, atol=2e-3):
        raise AssertionError(
            f"mismatch vs reference: max abs err = {float(jnp.max(jnp.abs(out - ref)))}")
    print("KERNEL_OK")
</pallas_src>

<mosaic_0001>
module attributes {stable_mosaic.version = 11 : i64} {
  func.func @_lsk_fused_kernel(%arg0: i32, %arg1: memref<1x4x16x16xf32, #tpu.memory_space<vmem>>, %arg2: memref<25x128xf32, #tpu.memory_space<vmem>>, %arg3: memref<49x256xf32, #tpu.memory_space<vmem>>, %arg4: memref<49x128xf32, #tpu.memory_space<vmem>>, %arg5: memref<4xf32, #tpu.memory_space<smem>>, %arg6: memref<4xf32, #tpu.memory_space<smem>>, %arg7: memref<8xf32, #tpu.memory_space<smem>>, %arg8: memref<2xf32, #tpu.memory_space<smem>>, %arg9: memref<8xf32, #tpu.memory_space<smem>>, %arg10: memref<2xf32, #tpu.memory_space<smem>>, %arg11: memref<2xf32, #tpu.memory_space<smem>>, %arg12: memref<8xf32, #tpu.memory_space<smem>>, %arg13: memref<4xf32, #tpu.memory_space<smem>>, %arg14: memref<1x4x16x16xf32, #tpu.memory_space<vmem>>, %arg15: memref<20x128xf32, #tpu.memory_space<vmem>>, %arg16: memref<34x256xf32, #tpu.memory_space<vmem>>, %arg17: memref<22x128xf32, #tpu.memory_space<vmem>>) attributes {dimension_semantics = [#tpu.dimension_semantics<parallel>], iteration_bounds = array<i64: 2>, scalar_prefetch = 0 : i64, scratch_operands = 3 : i64, tpu.core_type = #tpu.core_type<tc>, window_params = [{transform_indices = @transform_0, window_bounds = array<i64: 1, 4, 16, 16>}, {pipeline_mode = #tpu.pipeline_mode<synchronous>, transform_indices = @transform_1, window_bounds = array<i64: 25, 128>}, {pipeline_mode = #tpu.pipeline_mode<synchronous>, transform_indices = @transform_2, window_bounds = array<i64: 49, 256>}, {pipeline_mode = #tpu.pipeline_mode<synchronous>, transform_indices = @transform_3, window_bounds = array<i64: 49, 128>}, {transform_indices = @transform_4, window_bounds = array<i64: 4>}, {transform_indices = @transform_5, window_bounds = array<i64: 4>}, {transform_indices = @transform_6, window_bounds = array<i64: 8>}, {transform_indices = @transform_7, window_bounds = array<i64: 2>}, {transform_indices = @transform_8, window_bounds = array<i64: 8>}, {transform_indices = @transform_9, window_bounds = array<i64: 2>}, {transform_indices = @transform_10, window_bounds = array<i64: 2>}, {transform_indices = @transform_11, window_bounds = array<i64: 8>}, {transform_indices = @transform_12, window_bounds = array<i64: 4>}, {transform_indices = @transform_13, window_bounds = array<i64: 1, 4, 16, 16>}]} {
    %cst = arith.constant 0.000000e+00 : f32
    %0 = vector.broadcast %cst : f32 to vector<2x128xf32>
    %c0 = arith.constant 0 : index
    %c0_0 = arith.constant 0 : index
    %1 = vector.load %arg15[%c0, %c0_0] : memref<20x128xf32, #tpu.memory_space<vmem>>, vector<2x128xf32>
    tpu.vector_store %arg15[%c0, %c0_0], %0 {strides = array<i32>} : memref<20x128xf32, #tpu.memory_space<vmem>>, vector<2x128xf32>,
    %c18 = arith.constant 18 : index
    %c0_1 = arith.constant 0 : index
    %2 = vector.load %arg15[%c18, %c0_1] : memref<20x128xf32, #tpu.memory_space<vmem>>, vector<2x128xf32>
    tpu.vector_store %arg15[%c18, %c0_1], %0 {strides = array<i32>} : memref<20x128xf32, #tpu.memory_space<vmem>>, vector<2x128xf32>,
    %cst_2 = arith.constant 0.000000e+00 : f32
    %3 = vector.broadcast %cst_2 : f32 to vector<16x2xf32>
    %c2 = arith.constant 2 : index
    %c0_3 = arith.constant 0 : index
    %4 = vector.load %arg15[%c2, %c0_3] : memref<20x128xf32, #tpu.memory_space<vmem>>, vector<16x2xf32>
    tpu.vector_store %arg15[%c2, %c0_3], %3 {strides = array<i32>} : memref<20x128xf32, #tpu.memory_space<vmem>>, vector<16x2xf32>,
    %cst_4 = arith.constant 0.000000e+00 : f32
    %5 = vector.broadcast %cst_4 : f32 to vector<16x4xf32>
    %c2_5 = arith.constant 2 : index
    %c18_6 = arith.constant 18 : index
    %6 = vector.load %arg15[%c2_5, %c18_6] : memref<20x128xf32, #tpu.memory_space<vmem>>, vector<16x4xf32>
    tpu.vector_store %arg15[%c2_5, %c18_6], %5 {strides = array<i32>} : memref<20x128xf32, #tpu.memory_space<vmem>>, vector<16x4xf32>,
    %cst_7 = arith.constant 0.000000e+00 : f32
    %7 = vector.broadcast %cst_7 : f32 to vector<16x4xf32>
    %c2_8 = arith.constant 2 : index
    %c38 = arith.constant 38 : index
    %8 = vector.load %arg15[%c2_8, %c38] : memref<20x128xf32, #tpu.memory_space<vmem>>, vector<16x4xf32>
    tpu.vector_store %arg15[%c2_8, %c38], %7 {strides = array<i32>} : memref<20x128xf32, #tpu.memory_space<vmem>>, vector<16x4xf32>,
    %cst_9 = arith.constant 0.000000e+00 : f32
    %9 = vector.broadcast %cst_9 : f32 to vector<16x4xf32>
    %c2_10 = arith.constant 2 : index
    %c58 = arith.constant 58 : index
    %10 = vector.load %arg15[%c2_10, %c58] : memref<20x128xf32, #tpu.memory_space<vmem>>, vector<16x4xf32>
    tpu.vector_store %arg15[%c2_10, %c58], %9 {strides = array<i32>} : memref<20x128xf32, #tpu.memory_space<vmem>>, vector<16x4xf32>,
    %cst_11 = arith.constant 0.000000e+00 : f32
    %11 = vector.broadcast %cst_11 : f32 to vector<16x50xf32>
    %c2_12 = arith.constant 2 : index
    %c78 = arith.constant 78 : index
    %12 = vector.load %arg15[%c2_12, %c78] : memref<20x128xf32, #tpu.memory_space<vmem>>, vector<16x50xf32>
    tpu.vector_store %arg15[%c2_12, %c78], %11 {strides = array<i32>} : memref<20x128xf32, #tpu.memory_space<vmem>>, vector<16x50xf32>,
    %c0_13 = arith.constant 0 : index
    %c0_14 = arith.constant 0 : index
    %c0_15 = arith.constant 0 : index
    %c0_16 = arith.constant 0 : index
    %13 = vector.load %arg1[%c0_13, %c0_14, %c0_15, %c0_16] : memref<1x4x16x16xf32, #tpu.memory_space<vmem>>, vector<1x1x16x16xf32>
    %14 = vector.shape_cast %13 : vector<1x1x16x16xf32> to vector<16x16xf32>
    %c2_17 = arith.constant 2 : index
    %c2_18 = arith.constant 2 : index
    %15 = vector.load %arg15[%c2_17, %c2_18] : memref<20x128xf32, #tpu.memory_space<vmem>>, vector<16x16xf32>
    tpu.vector_store %arg15[%c2_17, %c2_18], %14 {strides = array<i32>} : memref<20x128xf32, #tpu.memory_space<vmem>>, vector<16x16xf32>,
    %c0_19 = arith.constant 0 : index
    %c1 = arith.constant 1 : index
    %c0_20 = arith.constant 0 : index
    %c0_21 = arith.constant 0 : index
    %16 = vector.load %arg1[%c0_19, %c1, %c0_20, %c0_21] : memref<1x4x16x16xf32, #tpu.memory_space<vmem>>, vector<1x1x16x16xf32>
    %17 = vector.shape_cast %16 : vector<1x1x16x16xf32> to vector<16x16xf32>
    %c2_22 = arith.constant 2 : index
    %c22 = arith.constant 22 : index
    %18 = vector.load %arg15[%c2_22, %c22] : memref<20x128xf32, #tpu.memory_space<vmem>>, vector<16x16xf32>
    tpu.vector_store %arg15[%c2_22, %c22], %17 {strides = array<i32>} : memref<20x128xf32, #tpu.memory_space<vmem>>, vector<16x16xf32>,
    %c0_23 = arith.constant 0 : index
    %c2_24 = arith.constant 2 : index
    %c0_25 = arith.constant 0 : index
    %c0_26 = arith.constant 0 : index
    %19 = vector.load %arg1[%c0_23, %c2_24, %c0_25, %c0_26] : memref<1x4x16x16xf32, #tpu.memory_space<vmem>>, vector<1x1x16x16xf32>
    %20 = vector.shape_cast %19 : vector<1x1x16x16xf32> to vector<16x16xf32>
    %c2_27 = arith.constant 2 : index
    %c42 = arith.constant 42 : index
    %21 = vector.load %arg15[%c2_27, %c42] : memref<20x128xf32, #tpu.memory_space<vmem>>, vector<16x16xf32>
    tpu.vector_store %arg15[%c2_27, %c42], %20 {strides = array<i32>} : memref<20x128xf32, #tpu.memory_space<vmem>>, vector<16x16xf32>,
    %c0_28 = arith.constant 0 : index
    %c3 = arith.constant 3 : index
    %c0_29 = arith.constant 0 : index
    %c0_30 = arith.constant 0 : index
    %22 = vector.load %arg1[%c0_28, %c3, %c0_29, %c0_30] : memref<1x4x16x16xf32, #tpu.memory_space<vmem>>, vector<1x1x16x16xf32>
    %23 = vector.shape_cast %22 : vector<1x1x16x16xf32> to vector<16x16xf32>
    %c2_31 = arith.constant 2 : index
    %c62 = arith.constant 62 : index
    %24 = vector.load %arg15[%c2_31, %c62] : memref<20x128xf32, #tpu.memory_space<vmem>>, vector<16x16xf32>
    tpu.vector_store %arg15[%c2_31, %c62], %23 {strides = array<i32>} : memref<20x128xf32, #tpu.memory_space<vmem>>, vector<16x16xf32>,
    %c0_32 = arith.constant 0 : index
    %c0_33 = arith.constant 0 : index
    %25 = vector.load %arg15[%c0_32, %c0_33] : memref<20x128xf32, #tpu.memory_space<vmem>>, vector<16x128xf32>
    %26 = vector.extract_strided_slice %25 {offsets = [0, 0], sizes = [16, 124], strides = [1, 1]} : vector<16x128xf32> to vector<16x124xf32>
    %c0_34 = arith.constant 0 : index
    %c0_35 = arith.constant 0 : index
    %27 = vector.load %arg2[%c0_34, %c0_35] : memref<25x128xf32, #tpu.memory_space<vmem>>, vector<1x124xf32>
    %28 = vector.broadcast %27 : vector<1x124xf32> to vector<16x124xf32>
    %29 = arith.mulf %26, %28 : vector<16x124xf32>
    %30 = vector.extract_strided_slice %25 {offsets = [0, 1], sizes = [16, 124], strides = [1, 1]} : vector<16x128xf32> to vector<16x124xf32>
    %c1_36 = arith.constant 1 : index
    %c0_37 = arith.constant 0 : index
    %31 = vector.load %arg2[%c1_36, %c0_37] : memref<25x128xf32, #tpu.memory_space<vmem>>, vector<1x124xf32>
    %32 = vector.broadcast %31 : vector<1x124xf32> to vector<16x124xf32>
    %33 = arith.mulf %30, %32 : vector<16x124xf32>
    %34 = arith.addf %29, %33 : vector<16x124xf32>
    %35 = vector.extract_strided_slice %25 {offsets = [0, 2], sizes = [16, 124], strides = [1, 1]} : vector<16x128xf32> to vector<16x124xf32>
    %c2_38 = arith.constant 2 : index
    %c0_39 = arith.constant 0 : index
    %36 = vector.load %arg2[%c2_38, %c0_39] : memref<25x128xf32, #tpu.memory_space<vmem>>, vector<1x124xf32>
    %37 = vector.broadcast %36 : vector<1x124xf32> to vector<16x124xf32>
    %38 = arith.mulf %35, %37 : vector<16x124xf32>
    %39 = arith.addf %34, %38 : vector<16x124xf32>
    %40 = vector.extract_strided_slice %25 {offsets = [0, 3], sizes = [16, 124], strides = [1, 1]} : vector<16x128xf32> to vector<16x124xf32>
    %c3_40 = arith.constant 3 : index
    %c0_41 = arith.constant 0 : index
    %41 = vector.load %arg2[%c3_40, %c0_41] : memref<25x128xf32, #tpu.memory_space<vmem>>, vector<1x124xf32>
    %42 = vector.broadcast %41 : vector<1x124xf32> to vector<16x124xf32>
    %43 = arith.mulf %40, %42 : vector<16x124xf32>
    %44 = arith.addf %39, %43 : vector<16x124xf32>
    %45 = vector.extract_strided_slice %25 {offsets = [0, 4], sizes = [16, 124], strides = [1, 1]} : vector<16x128xf32> to vector<16x124xf32>
    %c4 = arith.constant 4 : index
    %c0_42 = arith.constant 0 : index
    %46 = vector.load %arg2[%c4, %c0_42] : memref<25x128xf32, #tpu.memory_space<vmem>>, vector<1x124xf32>
    %47 = vector.broadcast %46 : vector<1x124xf32> to vector<16x124xf32>
    %48 = arith.mulf %45, %47 : vector<16x124xf32>
    %49 = arith.addf %44, %48 : vector<16x124xf32>
    %c1_43 = arith.constant 1 : index
    %c0_44 = arith.constant 0 : index
    %50 = vector.load %arg15[%c1_43, %c0_44] : memref<20x128xf32, #tpu.memory_space<vmem>>, vector<16x128xf32>
    %51 = vector.extract_strided_slice %50 {offsets = [0, 0], sizes = [16, 124], strides = [1, 1]} : vector<16x128xf32> to vector<16x124xf32>
    %c5 = arith.constant 5 : index
    %c0_45 = arith.constant 0 : index
    %52 = vector.load %arg2[%c5, %c0_45] : memref<25x128xf32, #tpu.memory_space<vmem>>, vector<1x124xf32>
    %53 = vector.broadcast %52 : vector<1x124xf32> to vector<16x124xf32>
    %54 = arith.mulf %51, %53 : vector<16x124xf32>
    %55 = arith.addf %49, %54 : vector<16x124xf32>
    %56 = vector.extract_strided_slice %50 {offsets = [0, 1], sizes = [16, 124], strides = [1, 1]} : vector<16x128xf32> to vector<16x124xf32>
    %c6 = arith.constant 6 : index
    %c0_46 = arith.constant 0 : index
    %57 = vector.load %arg2[%c6, %c0_46] : memref<25x128xf32, #tpu.memory_space<vmem>>, vector<1x124xf32>
    %58 = vector.broadcast %57 : vector<1x124xf32> to vector<16x124xf32>
    %59 = arith.mulf %56, %58 : vector<16x124xf32>
    %60 = arith.addf %55, %59 : vector<16x124xf32>
    %61 = vector.extract_strided_slice %50 {offsets = [0, 2], sizes = [16, 124], strides = [1, 1]} : vector<16x128xf32> to vector<16x124xf32>
    %c7 = arith.constant 7 : index
    %c0_47 = arith.constant 0 : index
    %62 = vector.load %arg2[%c7, %c0_47] : memref<25x128xf32, #tpu.memory_space<vmem>>, vector<1x124xf32>
    %63 = vector.broadcast %62 : vector<1x124xf32> to vector<16x124xf32>
    %64 = arith.mulf %61, %63 : vector<16x124xf32>
    %65 = arith.addf %60, %64 : vector<16x124xf32>
    %66 = vector.extract_strided_slice %50 {offsets = [0, 3], sizes = [16, 124], strides = [1, 1]} : vector<16x128xf32> to vector<16x124xf32>
    %c8 = arith.constant 8 : index
    %c0_48 = arith.constant 0 : index
    %67 = vector.load %arg2[%c8, %c0_48] : memref<25x128xf32, #tpu.memory_space<vmem>>, vector<1x124xf32>
    %68 = vector.broadcast %67 : vector<1x124xf32> to vector<16x124xf32>
    %69 = arith.mulf %66, %68 : vector<16x124xf32>
    %70 = arith.addf %65, %69 : vector<16x124xf32>
    %71 = vector.extract_strided_slice %50 {offsets = [0, 4], sizes = [16, 124], strides = [1, 1]} : vector<16x128xf32> to vector<16x124xf32>
    %c9 = arith.constant 9 : index
    %c0_49 = arith.constant 0 : index
    %72 = vector.load %arg2[%c9, %c0_49] : memref<25x128xf32, #tpu.memory_space<vmem>>, vector<1x124xf32>
    %73 = vector.broadcast %72 : vector<1x124xf32> to vector<16x124xf32>
    %74 = arith.mulf %71, %73 : vector<16x124xf32>
    %75 = arith.addf %70, %74 : vector<16x124xf32>
    %c2_50 = arith.constant 2 : index
    %c0_51 = arith.constant 0 : index
    %76 = vector.load %arg15[%c2_50, %c0_51] : memref<20x128xf32, #tpu.memory_space<vmem>>, vector<16x128xf32>
    %77 = vector.extract_strided_slice %76 {offsets = [0, 0], sizes = [16, 124], strides = [1, 1]} : vector<16x128xf32> to vector<16x124xf32>
    %c10 = arith.constant 10 : index
    %c0_52 = arith.constant 0 : index
    %78 = vector.load %arg2[%c10, %c0_52] : memref<25x128xf32, #tpu.memory_space<vmem>>, vector<1x124xf32>
    %79 = vector.broadcast %78 : vector<1x124xf32> to vector<16x124xf32>
    %80 = arith.mulf %77, %79 : vector<16x124xf32>
    %81 = arith.addf %75, %80 : vector<16x124xf32>
    %82 = vector.extract_strided_slice %76 {offsets = [0, 1], sizes = [16, 124], strides = [1, 1]} : vector<16x128xf32> to vector<16x124xf32>
    %c11 = arith.constant 11 : index
    %c0_53 = arith.constant 0 : index
    %83 = vector.load %arg2[%c11, %c0_53] : memref<25x128xf32, #tpu.memory_space<vmem>>, vector<1x124xf32>
    %84 = vector.broadcast %83 : vector<1x124xf32> to vector<16x124xf32>
    %85 = arith.mulf %82, %84 : vector<16x124xf32>
    %86 = arith.addf %81, %85 : vector<16x124xf32>
    %87 = vector.extract_strided_slice %76 {offsets = [0, 2], sizes = [16, 124], strides = [1, 1]} : vector<16x128xf32> to vector<16x124xf32>
    %c12 = arith.constant 12 : index
    %c0_54 = arith.constant 0 : index
    %88 = vector.load %arg2[%c12, %c0_54] : memref<25x128xf32, #tpu.memory_space<vmem>>, vector<1x124xf32>
    %89 = vector.broadcast %88 : vector<1x124xf32> to vector<16x124xf32>
    %90 = arith.mulf %87, %89 : vector<16x124xf32>
    %91 = arith.addf %86, %90 : vector<16x124xf32>
    %92 = vector.extract_strided_slice %76 {offsets = [0, 3], sizes = [16, 124], strides = [1, 1]} : vector<16x128xf32> to vector<16x124xf32>
    %c13 = arith.constant 13 : index
    %c0_55 = arith.constant 0 : index
    %93 = vector.load %arg2[%c13, %c0_55] : memref<25x128xf32, #tpu.memory_space<vmem>>, vector<1x124xf32>
    %94 = vector.broadcast %93 : vector<1x124xf32> to vector<16x124xf32>
    %95 = arith.mulf %92, %94 : vector<16x124xf32>
    %96 = arith.addf %91, %95 : vector<16x124xf32>
    %97 = vector.extract_strided_slice %76 {offsets = [0, 4], sizes = [16, 124], strides = [1, 1]} : vector<16x128xf32> to vector<16x124xf32>
    %c14 = arith.constant 14 : index
    %c0_56 = arith.constant 0 : index
    %98 = vector.load %arg2[%c14, %c0_56] : memref<25x128xf32, #tpu.memory_space<vmem>>, vector<1x124xf32>
    %99 = vector.broadcast %98 : vector<1x124xf32> to vector<16x124xf32>
    %100 = arith.mulf %97, %99 : vector<16x124xf32>
    %101 = arith.addf %96, %100 : vector<16x124xf32>
    %c3_57 = arith.constant 3 : index
    %c0_58 = arith.constant 0 : index
    %102 = vector.load %arg15[%c3_57, %c0_58] : memref<20x128xf32, #tpu.memory_space<vmem>>, vector<16x128xf32>
    %103 = vector.extract_strided_slice %102 {offsets = [0, 0], sizes = [16, 124], strides = [1, 1]} : vector<16x128xf32> to vector<16x124xf32>
    %c15 = arith.constant 15 : index
    %c0_59 = arith.constant 0 : index
    %104 = vector.load %arg2[%c15, %c0_59] : memref<25x128xf32, #tpu.memory_space<vmem>>, vector<1x124xf32>
    %105 = vector.broadcast %104 : vector<1x124xf32> to vector<16x124xf32>
    %106 = arith.mulf %103, %105 : vector<16x124xf32>
    %107 = arith.addf %101, %106 : vector<16x124xf32>
    %108 = vector.extract_strided_slice %102 {offsets = [0, 1], sizes = [16, 124], strides = [1, 1]} : vector<16x128xf32> to vector<16x124xf32>
    %c16 = arith.constant 16 : index
    %c0_60 = arith.constant 0 : index
    %109 = vector.load %arg2[%c16, %c0_60] : memref<25x128xf32, #tpu.memory_space<vmem>>, vector<1x124xf32>
    %110 = vector.broadcast %109 : vector<1x124xf32> to vector<16x124xf32>
    %111 = arith.mulf %108, %110 : vector<16x124xf32>
    %112 = arith.addf %107, %111 : vector<16x124xf32>
    %113 = vector.extract_strided_slice %102 {offsets = [0, 2], sizes = [16, 124], strides = [1, 1]} : vector<16x128xf32> to vector<16x124xf32>
    %c17 = arith.constant 17 : index
    %c0_61 = arith.constant 0 : index
    %114 = vector.load %arg2[%c17, %c0_61] : memref<25x128xf32, #tpu.memory_space<vmem>>, vector<1x124xf32>
    %115 = vector.broadcast %114 : vector<1x124xf32> to vector<16x124xf32>
    %116 = arith.mulf %113, %115 : vector<16x124xf32>
    %117 = arith.addf %112, %116 : vector<16x124xf32>
    %118 = vector.extract_strided_slice %102 {offsets = [0, 3], sizes = [16, 124], strides = [1, 1]} : vector<16x128xf32> to vector<16x124xf32>
    %c18_62 = arith.constant 18 : index
    %c0_63 = arith.constant 0 : index
    %119 = vector.load %arg2[%c18_62, %c0_63] : memref<25x128xf32, #tpu.memory_space<vmem>>, vector<1x124xf32>
    %120 = vector.broadcast %119 : vector<1x124xf32> to vector<16x124xf32>
    %121 = arith.mulf %118, %120 : vector<16x124xf32>
    %122 = arith.addf %117, %121 : vector<16x124xf32>
    %123 = vector.extract_strided_slice %102 {offsets = [0, 4], sizes = [16, 124], strides = [1, 1]} : vector<16x128xf32> to vector<16x124xf32>
    %c19 = arith.constant 19 : index
    %c0_64 = arith.constant 0 : index
    %124 = vector.load %arg2[%c19, %c0_64] : memref<25x128xf32, #tpu.memory_space<vmem>>, vector<1x124xf32>
    %125 = vector.broadcast %124 : vector<1x124xf32> to vector<16x124xf32>
    %126 = arith.mulf %123, %125 : vector<16x124xf32>
    %127 = arith.addf %122, %126 : vector<16x124xf32>
    %c4_65 = arith.constant 4 : index
    %c0_66 = arith.constant 0 : index
    %128 = vector.load %arg15[%c4_65, %c0_66] : memref<20x128xf32, #tpu.memory_space<vmem>>, vector<16x128xf32>
    %129 = vector.extract_strided_slice %128 {offsets = [0, 0], sizes = [16, 124], strides = [1, 1]} : vector<16x128xf32> to vector<16x124xf32>
    %c20 = arith.constant 20 : index
    %c0_67 = arith.constant 0 : index
    %130 = vector.load %arg2[%c20, %c0_67] : memref<25x128xf32, #tpu.memory_space<vmem>>, vector<1x124xf32>
    %131 = vector.broadcast %130 : vector<1x124xf32> to vector<16x124xf32>
    %132 = arith.mulf %129, %131 : vector<16x124xf32>
    %133 = arith.addf %127, %132 : vector<16x124xf32>
    %134 = vector.extract_strided_slice %128 {offsets = [0, 1], sizes = [16, 124], strides = [1, 1]} : vector<16x128xf32> to vector<16x124xf32>
    %c21 = arith.constant 21 : index
    %c0_68 = arith.constant 0 : index
    %135 = vector.load %arg2[%c21, %c0_68] : memref<25x128xf32, #tpu.memory_space<vmem>>, vector<1x124xf32>
    %136 = vector.broadcast %135 : vector<1x124xf32> to vector<16x124xf32>
    %137 = arith.mulf %134, %136 : vector<16x124xf32>
    %138 = arith.addf %133, %137 : vector<16x124xf32>
    %139 = vector.extract_strided_slice %128 {offsets = [0, 2], sizes = [16, 124], strides = [1, 1]} : vector<16x128xf32> to vector<16x124xf32>
    %c22_69 = arith.constant 22 : index
    %c0_70 = arith.constant 0 : index
    %140 = vector.load %arg2[%c22_69, %c0_70] : memref<25x128xf32, #tpu.memory_space<vmem>>, vector<1x124xf32>
    %141 = vector.broadcast %140 : vector<1x124xf32> to vector<16x124xf32>
    %142 = arith.mulf %139, %141 : vector<16x124xf32>
    %143 = arith.addf %138, %142 : vector<16x124xf32>
    %144 = vector.extract_strided_slice %128 {offsets = [0, 3], sizes = [16, 124], strides = [1, 1]} : vector<16x128xf32> to vector<16x124xf32>
    %c23 = arith.constant 23 : index
    %c0_71 = arith.constant 0 : index
    %145 = vector.load %arg2[%c23, %c0_71] : memref<25x128xf32, #tpu.memory_space<vmem>>, vector<1x124xf32>
    %146 = vector.broadcast %145 : vector<1x124xf32> to vector<16x124xf32>
    %147 = arith.mulf %144, %146 : vector<16x124xf32>
    %148 = arith.addf %143, %147 : vector<16x124xf32>
    %149 = vector.extract_strided_slice %128 {offsets = [0, 4], sizes = [16, 124], strides = [1, 1]} : vector<16x128xf32> to vector<16x124xf32>
    %c24 = arith.constant 24 : index
    %c0_72 = arith.constant 0 : index
    %150 = vector.load %arg2[%c24, %c0_72] : memref<25x128xf32, #tpu.memory_space<vmem>>, vector<1x124xf32>
    %151 = vector.broadcast %150 : vector<1x124xf32> to vector<16x124xf32>
    %152 = arith.mulf %149, %151 : vector<16x124xf32>
    %153 = arith.addf %148, %152 : vector<16x124xf32>
    %cst_73 = arith.constant 0.000000e+00 : f32
    %154 = vector.broadcast %cst_73 : f32 to vector<9x256xf32>
    %c0_74 = arith.constant 0 : index
    %c0_75 = arith.constant 0 : index
    %155 = vector.load %arg16[%c0_74, %c0_75] : memref<34x256xf32, #tpu.memory_space<vmem>>, vector<9x256xf32>
    tpu.vector_store %arg16[%c0_74, %c0_75], %154 {strides = array<i32>} : memref<34x256xf32, #tpu.memory_space<vmem>>, vector<9x256xf32>,
    %c25 = arith.constant 25 : index
    %c0_76 = arith.constant 0 : index
    %156 = vector.load %arg16[%c25, %c0_76] : memref<34x256xf32, #tpu.memory_space<vmem>>, vector<9x256xf32>
    tpu.vector_store %arg16[%c25, %c0_76], %154 {strides = array<i32>} : memref<34x256xf32, #tpu.memory_space<vmem>>, vector<9x256xf32>,
    %cst_77 = arith.constant 0.000000e+00 : f32
    %157 = vector.broadcast %cst_77 : f32 to vector<16x9xf32>
    %c9_78 = arith.constant 9 : index
    %c0_79 = arith.constant 0 : index
    %158 = vector.load %arg16[%c9_78, %c0_79] : memref<34x256xf32, #tpu.memory_space<vmem>>, vector<16x9xf32>
    tpu.vector_store %arg16[%c9_78, %c0_79], %157 {strides = array<i32>} : memref<34x256xf32, #tpu.memory_space<vmem>>, vector<16x9xf32>,
    %cst_80 = arith.constant 0.000000e+00 : f32
    %159 = vector.broadcast %cst_80 : f32 to vector<16x18xf32>
    %c9_81 = arith.constant 9 : index
    %c25_82 = arith.constant 25 : index
    %160 = vector.load %arg16[%c9_81, %c25_82] : memref<34x256xf32, #tpu.memory_space<vmem>>, vector<16x18xf32>
    tpu.vector_store %arg16[%c9_81, %c25_82], %159 {strides = array<i32>} : memref<34x256xf32, #tpu.memory_space<vmem>>, vector<16x18xf32>,
    %cst_83 = arith.constant 0.000000e+00 : f32
    %161 = vector.broadcast %cst_83 : f32 to vector<16x18xf32>
    %c9_84 = arith.constant 9 : index
    %c59 = arith.constant 59 : index
    %162 = vector.load %arg16[%c9_84, %c59] : memref<34x256xf32, #tpu.memory_space<vmem>>, vector<16x18xf32>
    tpu.vector_store %arg16[%c9_84, %c59], %161 {strides = array<i32>} : memref<34x256xf32, #tpu.memory_space<vmem>>, vector<16x18xf32>,
    %cst_85 = arith.constant 0.000000e+00 : f32
    %163 = vector.broadcast %cst_85 : f32 to vector<16x18xf32>
    %c9_86 = arith.constant 9 : index
    %c93 = arith.constant 93 : index
    %164 = vector.load %arg16[%c9_86, %c93] : memref<34x256xf32, #tpu.memory_space<vmem>>, vector<16x18xf32>
    tpu.vector_store %arg16[%c9_86, %c93], %163 {strides = array<i32>} : memref<34x256xf32, #tpu.memory_space<vmem>>, vector<16x18xf32>,
    %cst_87 = arith.constant 0.000000e+00 : f32
    %165 = vector.broadcast %cst_87 : f32 to vector<16x129xf32>
    %c9_88 = arith.constant 9 : index
    %c127 = arith.constant 127 : index
    %166 = vector.load %arg16[%c9_88, %c127] : memref<34x256xf32, #tpu.memory_space<vmem>>, vector<16x129xf32>
    tpu.vector_store %arg16[%c9_88, %c127], %165 {strides = array<i32>} : memref<34x256xf32, #tpu.memory_space<vmem>>, vector<16x129xf32>,
    %c0_89 = arith.constant 0 : index
    %167 = memref.load %arg8[%c0_89] : memref<2xf32, #tpu.memory_space<smem>>
    %168 = vector.broadcast %167 : f32 to vector<16x16xf32>
    %c1_90 = arith.constant 1 : index
    %169 = memref.load %arg8[%c1_90] : memref<2xf32, #tpu.memory_space<smem>>
    %170 = vector.broadcast %169 : f32 to vector<16x16xf32>
    %171 = vector.extract_strided_slice %153 {offsets = [0, 0], sizes = [16, 16], strides = [1, 1]} : vector<16x124xf32> to vector<16x16xf32>
    %c0_91 = arith.constant 0 : index
    %172 = memref.load %arg5[%c0_91] : memref<4xf32, #tpu.memory_space<smem>>
    %173 = vector.broadcast %172 : f32 to vector<16x16xf32>
    %174 = arith.addf %171, %173 : vector<16x16xf32>
    %c9_92 = arith.constant 9 : index
    %c9_93 = arith.constant 9 : index
    %175 = vector.load %arg16[%c9_92, %c9_93] : memref<34x256xf32, #tpu.memory_space<vmem>>, vector<16x16xf32>
    tpu.vector_store %arg16[%c9_92, %c9_93], %174 {strides = array<i32>} : memref<34x256xf32, #tpu.memory_space<vmem>>, vector<16x16xf32>,
    %c0_94 = arith.constant 0 : index
    %176 = memref.load %arg7[%c0_94] : memref<8xf32, #tpu.memory_space<smem>>
    %177 = vector.broadcast %176 : f32 to vector<16x16xf32>
    %178 = arith.mulf %174, %177 : vector<16x16xf32>
    %179 = arith.addf %168, %178 : vector<16x16xf32>
    %c4_95 = arith.constant 4 : index
    %180 = memref.load %arg7[%c4_95] : memref<8xf32, #tpu.memory_space<smem>>
    %181 = vector.broadcast %180 : f32 to vector<16x16xf32>
    %182 = arith.mulf %174, %181 : vector<16x16xf32>
    %183 = arith.addf %170, %182 : vector<16x16xf32>
    %184 = vector.extract_strided_slice %153 {offsets = [0, 20], sizes = [16, 16], strides = [1, 1]} : vector<16x124xf32> to vector<16x16xf32>
    %c1_96 = arith.constant 1 : index
    %185 = memref.load %arg5[%c1_96] : memref<4xf32, #tpu.memory_space<smem>>
    %186 = vector.broadcast %185 : f32 to vector<16x16xf32>
    %187 = arith.addf %184, %186 : vector<16x16xf32>
    %c9_97 = arith.constant 9 : index
    %c43 = arith.constant 43 : index
    %188 = vector.load %arg16[%c9_97, %c43] : memref<34x256xf32, #tpu.memory_space<vmem>>, vector<16x16xf32>
    tpu.vector_store %arg16[%c9_97, %c43], %187 {strides = array<i32>} : memref<34x256xf32, #tpu.memory_space<vmem>>, vector<16x16xf32>,
    %c1_98 = arith.constant 1 : index
    %189 = memref.load %arg7[%c1_98] : memref<8xf32, #tpu.memory_space<smem>>
    %190 = vector.broadcast %189 : f32 to vector<16x16xf32>
    %191 = arith.mulf %187, %190 : vector<16x16xf32>
    %192 = arith.addf %179, %191 : vector<16x16xf32>
    %c5_99 = arith.constant 5 : index
    %193 = memref.load %arg7[%c5_99] : memref<8xf32, #tpu.memory_space<smem>>
    %194 = vector.broadcast %193 : f32 to vector<16x16xf32>
    %195 = arith.mulf %187, %194 : vector<16x16xf32>
    %196 = arith.addf %183, %195 : vector<16x16xf32>
    %197 = vector.extract_strided_slice %153 {offsets = [0, 40], sizes = [16, 16], strides = [1, 1]} : vector<16x124xf32> to vector<16x16xf32>
    %c2_100 = arith.constant 2 : index
    %198 = memref.load %arg5[%c2_100] : memref<4xf32, #tpu.memory_space<smem>>
    %199 = vector.broadcast %198 : f32 to vector<16x16xf32>
    %200 = arith.addf %197, %199 : vector<16x16xf32>
    %c9_101 = arith.constant 9 : index
    %c77 = arith.constant 77 : index
    %201 = vector.load %arg16[%c9_101, %c77] : memref<34x256xf32, #tpu.memory_space<vmem>>, vector<16x16xf32>
    tpu.vector_store %arg16[%c9_101, %c77], %200 {strides = array<i32>} : memref<34x256xf32, #tpu.memory_space<vmem>>, vector<16x16xf32>,
    %c2_102 = arith.constant 2 : index
    %202 = memref.load %arg7[%c2_102] : memref<8xf32, #tpu.memory_space<smem>>
    %203 = vector.broadcast %202 : f32 to vector<16x16xf32>
    %204 = arith.mulf %200, %203 : vector<16x16xf32>
    %205 = arith.addf %192, %204 : vector<16x16xf32>
    %c6_103 = arith.constant 6 : index
    %206 = memref.load %arg7[%c6_103] : memref<8xf32, #tpu.memory_space<smem>>
    %207 = vector.broadcast %206 : f32 to vector<16x16xf32>
    %208 = arith.mulf %200, %207 : vector<16x16xf32>
    %209 = arith.addf %196, %208 : vector<16x16xf32>
    %210 = vector.extract_strided_slice %153 {offsets = [0, 60], sizes = [16, 16], strides = [1, 1]} : vector<16x124xf32> to vector<16x16xf32>
    %c3_104 = arith.constant 3 : index
    %211 = memref.load %arg5[%c3_104] : memref<4xf32, #tpu.memory_space<smem>>
    %212 = vector.broadcast %211 : f32 to vector<16x16xf32>
    %213 = arith.addf %210, %212 : vector<16x16xf32>
    %c9_105 = arith.constant 9 : index
    %c111 = arith.constant 111 : index
    %214 = vector.load %arg16[%c9_105, %c111] : memref<34x256xf32, #tpu.memory_space<vmem>>, vector<16x16xf32>
    tpu.vector_store %arg16[%c9_105, %c111], %213 {strides = array<i32>} : memref<34x256xf32, #tpu.memory_space<vmem>>, vector<16x16xf32>,
    %c3_106 = arith.constant 3 : index
    %215 = memref.load %arg7[%c3_106] : memref<8xf32, #tpu.memory_space<smem>>
    %216 = vector.broadcast %215 : f32 to vector<16x16xf32>
    %217 = arith.mulf %213, %216 : vector<16x16xf32>
    %218 = arith.addf %205, %217 : vector<16x16xf32>
    %c7_107 = arith.constant 7 : index
    %219 = memref.load %arg7[%c7_107] : memref<8xf32, #tpu.memory_space<smem>>
    %220 = vector.broadcast %219 : f32 to vector<16x16xf32>
    %221 = arith.mulf %213, %220 : vector<16x16xf32>
    %222 = arith.addf %209, %221 : vector<16x16xf32>
    %c0_108 = arith.constant 0 : index
    %c0_109 = arith.constant 0 : index
    %223 = vector.load %arg16[%c0_108, %c0_109] : memref<34x256xf32, #tpu.memory_space<vmem>>, vector<16x256xf32>
    %224 = vector.extract_strided_slice %223 {offsets = [0, 0], sizes = [16, 238], strides = [1, 1]} : vector<16x256xf32> to vector<16x238xf32>
    %c0_110 = arith.constant 0 : index
    %c0_111 = arith.constant 0 : index
    %225 = vector.load %arg3[%c0_110, %c0_111] : memref<49x256xf32, #tpu.memory_space<vmem>>, vector<1x238xf32>
    %226 = vector.broadcast %225 : vector<1x238xf32> to vector<16x238xf32>
    %227 = arith.mulf %224, %226 : vector<16x238xf32>
    %228 = vector.extract_strided_slice %223 {offsets = [0, 3], sizes = [16, 238], strides = [1, 1]} : vector<16x256xf32> to vector<16x238xf32>
    %c1_112 = arith.constant 1 : index
    %c0_113 = arith.constant 0 : index
    %229 = vector.load %arg3[%c1_112, %c0_113] : memref<49x256xf32, #tpu.memory_space<vmem>>, vector<1x238xf32>
    %230 = vector.broadcast %229 : vector<1x238xf32> to vector<16x238xf32>
    %231 = arith.mulf %228, %230 : vector<16x238xf32>
    %232 = arith.addf %227, %231 : vector<16x238xf32>
    %233 = vector.extract_strided_slice %223 {offsets = [0, 6], sizes = [16, 238], strides = [1, 1]} : vector<16x256xf32> to vector<16x238xf32>
    %c2_114 = arith.constant 2 : index
    %c0_115 = arith.constant 0 : index
    %234 = vector.load %arg3[%c2_114, %c0_115] : memref<49x256xf32, #tpu.memory_space<vmem>>, vector<1x238xf32>
    %235 = vector.broadcast %234 : vector<1x238xf32> to vector<16x238xf32>
    %236 = arith.mulf %233, %235 : vector<16x238xf32>
    %237 = arith.addf %232, %236 : vector<16x238xf32>
    %238 = vector.extract_strided_slice %223 {offsets = [0, 9], sizes = [16, 238], strides = [1, 1]} : vector<16x256xf32> to vector<16x238xf32>
    %c3_116 = arith.constant 3 : index
    %c0_117 = arith.constant 0 : index
    %239 = vector.load %arg3[%c3_116, %c0_117] : memref<49x256xf32, #tpu.memory_space<vmem>>, vector<1x238xf32>
    %240 = vector.broadcast %239 : vector<1x238xf32> to vector<16x238xf32>
    %241 = arith.mulf %238, %240 : vector<16x238xf32>
    %242 = arith.addf %237, %241 : vector<16x238xf32>
    %243 = vector.extract_strided_slice %223 {offsets = [0, 12], sizes = [16, 238], strides = [1, 1]} : vector<16x256xf32> to vector<16x238xf32>
    %c4_118 = arith.constant 4 : index
    %c0_119 = arith.constant 0 : index
    %244 = vector.load %arg3[%c4_118, %c0_119] : memref<49x256xf32, #tpu.memory_space<vmem>>, vector<1x238xf32>
    %245 = vector.broadcast %244 : vector<1x238xf32> to vector<16x238xf32>
    %246 = arith.mulf %243, %245 : vector<16x238xf32>
    %247 = arith.addf %242, %246 : vector<16x238xf32>
    %248 = vector.extract_strided_slice %223 {offsets = [0, 15], sizes = [16, 238], strides = [1, 1]} : vector<16x256xf32> to vector<16x238xf32>
    %c5_120 = arith.constant 5 : index
    %c0_121 = arith.constant 0 : index
    %249 = vector.load %arg3[%c5_120, %c0_121] : memref<49x256xf32, #tpu.memory_space<vmem>>, vector<1x238xf32>
    %250 = vector.broadcast %249 : vector<1x238xf32> to vector<16x238xf32>
    %251 = arith.mulf %248, %250 : vector<16x238xf32>
    %252 = arith.addf %247, %251 : vector<16x238xf32>
    %253 = vector.extract_strided_slice %223 {offsets = [0, 18], sizes = [16, 238], strides = [1, 1]} : vector<16x256xf32> to vector<16x238xf32>
    %c6_122 = arith.constant 6 : index
    %c0_123 = arith.constant 0 : index
    %254 = vector.load %arg3[%c6_122, %c0_123] : memref<49x256xf32, #tpu.memory_space<vmem>>, vector<1x238xf32>
    %255 = vector.broadcast %254 : vector<1x238xf32> to vector<16x238xf32>
    %256 = arith.mulf %253, %255 : vector<16x238xf32>
    %257 = arith.addf %252, %256 : vector<16x238xf32>
    %c3_124 = arith.constant 3 : index
    %c0_125 = arith.constant 0 : index
    %258 = vector.load %arg16[%c3_124, %c0_125] : memref<34x256xf32, #tpu.memory_space<vmem>>, vector<16x256xf32>
    %259 = vector.extract_strided_slice %258 {offsets = [0, 0], sizes = [16, 238], strides = [1, 1]} : vector<16x256xf32> to vector<16x238xf32>
    %c7_126 = arith.constant 7 : index
    %c0_127 = arith.constant 0 : index
    %260 = vector.load %arg3[%c7_126, %c0_127] : memref<49x256xf32, #tpu.memory_space<vmem>>, vector<1x238xf32>
    %261 = vector.broadcast %260 : vector<1x238xf32> to vector<16x238xf32>
    %262 = arith.mulf %259, %261 : vector<16x238xf32>
    %263 = arith.addf %257, %262 : vector<16x238xf32>
    %264 = vector.extract_strided_slice %258 {offsets = [0, 3], sizes = [16, 238], strides = [1, 1]} : vector<16x256xf32> to vector<16x238xf32>
    %c8_128 = arith.constant 8 : index
    %c0_129 = arith.constant 0 : index
    %265 = vector.load %arg3[%c8_128, %c0_129] : memref<49x256xf32, #tpu.memory_space<vmem>>, vector<1x238xf32>
    %266 = vector.broadcast %265 : vector<1x238xf32> to vector<16x238xf32>
    %267 = arith.mulf %264, %266 : vector<16x238xf32>
    %268 = arith.addf %263, %267 : vector<16x238xf32>
    %269 = vector.extract_strided_slice %258 {offsets = [0, 6], sizes = [16, 238], strides = [1, 1]} : vector<16x256xf32> to vector<16x238xf32>
    %c9_130 = arith.constant 9 : index
    %c0_131 = arith.constant 0 : index
    %270 = vector.load %arg3[%c9_130, %c0_131] : memref<49x256xf32, #tpu.memory_space<vmem>>, vector<1x238xf32>
    %271 = vector.broadcast %270 : vector<1x238xf32> to vector<16x238xf32>
    %272 = arith.mulf %269, %271 : vector<16x238xf32>
    %273 = arith.addf %268, %272 : vector<16x238xf32>
    %274 = vector.extract_strided_slice %258 {offsets = [0, 9], sizes = [16, 238], strides = [1, 1]} : vector<16x256xf32> to vector<16x238xf32>
    %c10_132 = arith.constant 10 : index
    %c0_133 = arith.constant 0 : index
    %275 = vector.load %arg3[%c10_132, %c0_133] : memref<49x256xf32, #tpu.memory_space<vmem>>, vector<1x238xf32>
    %276 = vector.broadcast %275 : vector<1x238xf32> to vector<16x238xf32>
    %277 = arith.mulf %274, %276 : vector<16x238xf32>
    %278 = arith.addf %273, %277 : vector<16x238xf32>
    %279 = vector.extract_strided_slice %258 {offsets = [0, 12], sizes = [16, 238], strides = [1, 1]} : vector<16x256xf32> to vector<16x238xf32>
    %c11_134 = arith.constant 11 : index
    %c0_135 = arith.constant 0 : index
    %280 = vector.load %arg3[%c11_134, %c0_135] : memref<49x256xf32, #tpu.memory_space<vmem>>, vector<1x238xf32>
    %281 = vector.broadcast %280 : vector<1x238xf32> to vector<16x238xf32>
    %282 = arith.mulf %279, %281 : vector<16x238xf32>
    %283 = arith.addf %278, %282 : vector<16x238xf32>
    %284 = vector.extract_strided_slice %258 {offsets = [0, 15], sizes = [16, 238], strides = [1, 1]} : vector<16x256xf32> to vector<16x238xf32>
    %c12_136 = arith.constant 12 : index
    %c0_137 = arith.constant 0 : index
    %285 = vector.load %arg3[%c12_136, %c0_137] : memref<49x256xf32, #tpu.memory_space<vmem>>, vector<1x238xf32>
    %286 = vector.broadcast %285 : vector<1x238xf32> to vector<16x238xf32>
    %287 = arith.mulf %284, %286 : vector<16x238xf32>
    %288 = arith.addf %283, %287 : vector<16x238xf32>
    %289 = vector.extract_strided_slice %258 {offsets = [0, 18], sizes = [16, 238], strides = [1, 1]} : vector<16x256xf32> to vector<16x238xf32>
    %c13_138 = arith.constant 13 : index
    %c0_139 = arith.constant 0 : index
    %290 = vector.load %arg3[%c13_138, %c0_139] : memref<49x256xf32, #tpu.memory_space<vmem>>, vector<1x238xf32>
    %291 = vector.broadcast %290 : vector<1x238xf32> to vector<16x238xf32>
    %292 = arith.mulf %289, %291 : vector<16x238xf32>
    %293 = arith.addf %288, %292 : vector<16x238xf32>
    %c6_140 = arith.constant 6 : index
    %c0_141 = arith.constant 0 : index
    %294 = vector.load %arg16[%c6_140, %c0_141] : memref<34x256xf32, #tpu.memory_space<vmem>>, vector<16x256xf32>
    %295 = vector.extract_strided_slice %294 {offsets = [0, 0], sizes = [16, 238], strides = [1, 1]} : vector<16x256xf32> to vector<16x238xf32>
    %c14_142 = arith.constant 14 : index
    %c0_143 = arith.constant 0 : index
    %296 = vector.load %arg3[%c14_142, %c0_143] : memref<49x256xf32, #tpu.memory_space<vmem>>, vector<1x238xf32>
    %297 = vector.broadcast %296 : vector<1x238xf32> to vector<16x238xf32>
    %298 = arith.mulf %295, %297 : vector<16x238xf32>
    %299 = arith.addf %293, %298 : vector<16x238xf32>
    %300 = vector.extract_strided_slice %294 {offsets = [0, 3], sizes = [16, 238], strides = [1, 1]} : vector<16x256xf32> to vector<16x238xf32>
    %c15_144 = arith.constant 15 : index
    %c0_145 = arith.constant 0 : index
    %301 = vector.load %arg3[%c15_144, %c0_145] : memref<49x256xf32, #tpu.memory_space<vmem>>, vector<1x238xf32>
    %302 = vector.broadcast %301 : vector<1x238xf32> to vector<16x238xf32>
    %303 = arith.mulf %300, %302 : vector<16x238xf32>
    %304 = arith.addf %299, %303 : vector<16x238xf32>
    %305 = vector.extract_strided_slice %294 {offsets = [0, 6], sizes = [16, 238], strides = [1, 1]} : vector<16x256xf32> to vector<16x238xf32>
    %c16_146 = arith.constant 16 : index
    %c0_147 = arith.constant 0 : index
    %306 = vector.load %arg3[%c16_146, %c0_147] : memref<49x256xf32, #tpu.memory_space<vmem>>, vector<1x238xf32>
    %307 = vector.broadcast %306 : vector<1x238xf32> to vector<16x238xf32>
    %308 = arith.mulf %305, %307 : vector<16x238xf32>
    %309 = arith.addf %304, %308 : vector<16x238xf32>
    %310 = vector.extract_strided_slice %294 {offsets = [0, 9], sizes = [16, 238], strides = [1, 1]} : vector<16x256xf32> to vector<16x238xf32>
    %c17_148 = arith.constant 17 : index
    %c0_149 = arith.constant 0 : index
    %311 = vector.load %arg3[%c17_148, %c0_149] : memref<49x256xf32, #tpu.memory_space<vmem>>, vector<1x238xf32>
    %312 = vector.broadcast %311 : vector<1x238xf32> to vector<16x238xf32>
    %313 = arith.mulf %310, %312 : vector<16x238xf32>
    %314 = arith.addf %309, %313 : vector<16x238xf32>
    %315 = vector.extract_strided_slice %294 {offsets = [0, 12], sizes = [16, 238], strides = [1, 1]} : vector<16x256xf32> to vector<16x238xf32>
    %c18_150 = arith.constant 18 : index
    %c0_151 = arith.constant 0 : index
    %316 = vector.load %arg3[%c18_150, %c0_151] : memref<49x256xf32, #tpu.memory_space<vmem>>, vector<1x238xf32>
    %317 = vector.broadcast %316 : vector<1x238xf32> to vector<16x238xf32>
    %318 = arith.mulf %315, %317 : vector<16x238xf32>
    %319 = arith.addf %314, %318 : vector<16x238xf32>
    %320 = vector.extract_strided_slice %294 {offsets = [0, 15], sizes = [16, 238], strides = [1, 1]} : vector<16x256xf32> to vector<16x238xf32>
    %c19_152 = arith.constant 19 : index
    %c0_153 = arith.constant 0 : index
    %321 = vector.load %arg3[%c19_152, %c0_153] : memref<49x256xf32, #tpu.memory_space<vmem>>, vector<1x238xf32>
    %322 = vector.broadcast %321 : vector<1x238xf32> to vector<16x238xf32>
    %323 = arith.mulf %320, %322 : vector<16x238xf32>
    %324 = arith.addf %319, %323 : vector<16x238xf32>
    %325 = vector.extract_strided_slice %294 {offsets = [0, 18], sizes = [16, 238], strides = [1, 1]} : vector<16x256xf32> to vector<16x238xf32>
    %c20_154 = arith.constant 20 : index
    %c0_155 = arith.constant 0 : index
    %326 = vector.load %arg3[%c20_154, %c0_155] : memref<49x256xf32, #tpu.memory_space<vmem>>, vector<1x238xf32>
    %327 = vector.broadcast %326 : vector<1x238xf32> to vector<16x238xf32>
    %328 = arith.mulf %325, %327 : vector<16x238xf32>
    %329 = arith.addf %324, %328 : vector<16x238xf32>
    %c9_156 = arith.constant 9 : index
    %c0_157 = arith.constant 0 : index
    %330 = vector.load %arg16[%c9_156, %c0_157] : memref<34x256xf32, #tpu.memory_space<vmem>>, vector<16x256xf32>
    %331 = vector.extract_strided_slice %330 {offsets = [0, 0], sizes = [16, 238], strides = [1, 1]} : vector<16x256xf32> to vector<16x238xf32>
    %c21_158 = arith.constant 21 : index
    %c0_159 = arith.constant 0 : index
    %332 = vector.load %arg3[%c21_158, %c0_159] : memref<49x256xf32, #tpu.memory_space<vmem>>, vector<1x238xf32>
    %333 = vector.broadcast %332 : vector<1x238xf32> to vector<16x238xf32>
    %334 = arith.mulf %331, %333 : vector<16x238xf32>
    %335 = arith.addf %329, %334 : vector<16x238xf32>
    %336 = vector.extract_strided_slice %330 {offsets = [0, 3], sizes = [16, 238], strides = [1, 1]} : vector<16x256xf32> to vector<16x238xf32>
    %c22_160 = arith.constant 22 : index
    %c0_161 = arith.constant 0 : index
    %337 = vector.load %arg3[%c22_160, %c0_161] : memref<49x256xf32, #tpu.memory_space<vmem>>, vector<1x238xf32>
    %338 = vector.broadcast %337 : vector<1x238xf32> to vector<16x238xf32>
    %339 = arith.mulf %336, %338 : vector<16x238xf32>
    %340 = arith.addf %335, %339 : vector<16x238xf32>
    %341 = vector.extract_strided_slice %330 {offsets = [0, 6], sizes = [16, 238], strides = [1, 1]} : vector<16x256xf32> to vector<16x238xf32>
    %c23_162 = arith.constant 23 : index
    %c0_163 = arith.constant 0 : index
    %342 = vector.load %arg3[%c23_162, %c0_163] : memref<49x256xf32, #tpu.memory_space<vmem>>, vector<1x238xf32>
    %343 = vector.broadcast %342 : vector<1x238xf32> to vector<16x238xf32>
    %344 = arith.mulf %341, %343 : vector<16x238xf32>
    %345 = arith.addf %340, %344 : vector<16x238xf32>
    %346 = vector.extract_strided_slice %330 {offsets = [0, 9], sizes = [16, 238], strides = [1, 1]} : vector<16x256xf32> to vector<16x238xf32>
    %c24_164 = arith.constant 24 : index
    %c0_165 = arith.constant 0 : index
    %347 = vector.load %arg3[%c24_164, %c0_165] : memref<49x256xf32, #tpu.memory_space<vmem>>, vector<1x238xf32>
    %348 = vector.broadcast %347 : vector<1x238xf32> to vector<16x238xf32>
    %349 = arith.mulf %346, %348 : vector<16x238xf32>
    %350 = arith.addf %345, %349 : vector<16x238xf32>
    %351 = vector.extract_strided_slice %330 {offsets = [0, 12], sizes = [16, 238], strides = [1, 1]} : vector<16x256xf32> to vector<16x238xf32>
    %c25_166 = arith.constant 25 : index
    %c0_167 = arith.constant 0 : index
    %352 = vector.load %arg3[%c25_166, %c0_167] : memref<49x256xf32, #tpu.memory_space<vmem>>, vector<1x238xf32>
    %353 = vector.broadcast %352 : vector<1x238xf32> to vector<16x238xf32>
    %354 = arith.mulf %351, %353 : vector<16x238xf32>
    %355 = arith.addf %350, %354 : vector<16x238xf32>
    %356 = vector.extract_strided_slice %330 {offsets = [0, 15], sizes = [16, 238], strides = [1, 1]} : vector<16x256xf32> to vector<16x238xf32>
    %c26 = arith.constant 26 : index
    %c0_168 = arith.constant 0 : index
    %357 = vector.load %arg3[%c26, %c0_168] : memref<49x256xf32, #tpu.memory_space<vmem>>, vector<1x238xf32>
    %358 = vector.broadcast %357 : vector<1x238xf32> to vector<16x238xf32>
    %359 = arith.mulf %356, %358 : vector<16x238xf32>
    %360 = arith.addf %355, %359 : vector<16x238xf32>
    %361 = vector.extract_strided_slice %330 {offsets = [0, 18], sizes = [16, 238], strides = [1, 1]} : vector<16x256xf32> to vector<16x238xf32>
    %c27 = arith.constant 27 : index
    %c0_169 = arith.constant 0 : index
    %362 = vector.load %arg3[%c27, %c0_169] : memref<49x256xf32, #tpu.memory_space<vmem>>, vector<1x238xf32>
    %363 = vector.broadcast %362 : vector<1x238xf32> to vector<16x238xf32>
    %364 = arith.mulf %361, %363 : vector<16x238xf32>
    %365 = arith.addf %360, %364 : vector<16x238xf32>
    %c12_170 = arith.constant 12 : index
    %c0_171 = arith.constant 0 : index
    %366 = vector.load %arg16[%c12_170, %c0_171] : memref<34x256xf32, #tpu.memory_space<vmem>>, vector<16x256xf32>
    %367 = vector.extract_strided_slice %366 {offsets = [0, 0], sizes = [16, 238], strides = [1, 1]} : vector<16x256xf32> to vector<16x238xf32>
    %c28 = arith.constant 28 : index
    %c0_172 = arith.constant 0 : index
    %368 = vector.load %arg3[%c28, %c0_172] : memref<49x256xf32, #tpu.memory_space<vmem>>, vector<1x238xf32>
    %369 = vector.broadcast %368 : vector<1x238xf32> to vector<16x238xf32>
    %370 = arith.mulf %367, %369 : vector<16x238xf32>
    %371 = arith.addf %365, %370 : vector<16x238xf32>
    %372 = vector.extract_strided_slice %366 {offsets = [0, 3], sizes = [16, 238], strides = [1, 1]} : vector<16x256xf32> to vector<16x238xf32>
    %c29 = arith.constant 29 : index
    %c0_173 = arith.constant 0 : index
    %373 = vector.load %arg3[%c29, %c0_173] : memref<49x256xf32, #tpu.memory_space<vmem>>, vector<1x238xf32>
    %374 = vector.broadcast %373 : vector<1x238xf32> to vector<16x238xf32>
    %375 = arith.mulf %372, %374 : vector<16x238xf32>
    %376 = arith.addf %371, %375 : vector<16x238xf32>
    %377 = vector.extract_strided_slice %366 {offsets = [0, 6], sizes = [16, 238], strides = [1, 1]} : vector<16x256xf32> to vector<16x238xf32>
    %c30 = arith.constant 30 : index
    %c0_174 = arith.constant 0 : index
    %378 = vector.load %arg3[%c30, %c0_174] : memref<49x256xf32, #tpu.memory_space<vmem>>, vector<1x238xf32>
    %379 = vector.broadcast %378 : vector<1x238xf32> to vector<16x238xf32>
    %380 = arith.mulf %377, %379 : vector<16x238xf32>
    %381 = arith.addf %376, %380 : vector<16x238xf32>
    %382 = vector.extract_strided_slice %366 {offsets = [0, 9], sizes = [16, 238], strides = [1, 1]} : vector<16x256xf32> to vector<16x238xf32>
    %c31 = arith.constant 31 : index
    %c0_175 = arith.constant 0 : index
    %383 = vector.load %arg3[%c31, %c0_175] : memref<49x256xf32, #tpu.memory_space<vmem>>, vector<1x238xf32>
    %384 = vector.broadcast %383 : vector<1x238xf32> to vector<16x238xf32>
    %385 = arith.mulf %382, %384 : vector<16x238xf32>
    %386 = arith.addf %381, %385 : vector<16x238xf32>
    %387 = vector.extract_strided_slice %366 {offsets = [0, 12], sizes = [16, 238], strides = [1, 1]} : vector<16x256xf32> to vector<16x238xf32>
    %c32 = arith.constant 32 : index
    %c0_176 = arith.constant 0 : index
    %388 = vector.load %arg3[%c32, %c0_176] : memref<49x256xf32, #tpu.memory_space<vmem>>, vector<1x238xf32>
    %389 = vector.broadcast %388 : vector<1x238xf32> to vector<16x238xf32>
    %390 = arith.mulf %387, %389 : vector<16x238xf32>
    %391 = arith.addf %386, %390 : vector<16x238xf32>
    %392 = vector.extract_strided_slice %366 {offsets = [0, 15], sizes = [16, 238], strides = [1, 1]} : vector<16x256xf32> to vector<16x238xf32>
    %c33 = arith.constant 33 : index
    %c0_177 = arith.constant 0 : index
    %393 = vector.load %arg3[%c33, %c0_177] : memref<49x256xf32, #tpu.memory_space<vmem>>, vector<1x238xf32>
    %394 = vector.broadcast %393 : vector<1x238xf32> to vector<16x238xf32>
    %395 = arith.mulf %392, %394 : vector<16x238xf32>
    %396 = arith.addf %391, %395 : vector<16x238xf32>
    %397 = vector.extract_strided_slice %366 {offsets = [0, 18], sizes = [16, 238], strides = [1, 1]} : vector<16x256xf32> to vector<16x238xf32>
    %c34 = arith.constant 34 : index
    %c0_178 = arith.constant 0 : index
    %398 = vector.load %arg3[%c34, %c0_178] : memref<49x256xf32, #tpu.memory_space<vmem>>, vector<1x238xf32>
    %399 = vector.broadcast %398 : vector<1x238xf32> to vector<16x238xf32>
    %400 = arith.mulf %397, %399 : vector<16x238xf32>
    %401 = arith.addf %396, %400 : vector<16x238xf32>
    %c15_179 = arith.constant 15 : index
    %c0_180 = arith.constant 0 : index
    %402 = vector.load %arg16[%c15_179, %c0_180] : memref<34x256xf32, #tpu.memory_space<vmem>>, vector<16x256xf32>
    %403 = vector.extract_strided_slice %402 {offsets = [0, 0], sizes = [16, 238], strides = [1, 1]} : vector<16x256xf32> to vector<16x238xf32>
    %c35 = arith.constant 35 : index
    %c0_181 = arith.constant 0 : index
    %404 = vector.load %arg3[%c35, %c0_181] : memref<49x256xf32, #tpu.memory_space<vmem>>, vector<1x238xf32>
    %405 = vector.broadcast %404 : vector<1x238xf32> to vector<16x238xf32>
    %406 = arith.mulf %403, %405 : vector<16x238xf32>
    %407 = arith.addf %401, %406 : vector<16x238xf32>
    %408 = vector.extract_strided_slice %402 {offsets = [0, 3], sizes = [16, 238], strides = [1, 1]} : vector<16x256xf32> to vector<16x238xf32>
    %c36 = arith.constant 36 : index
    %c0_182 = arith.constant 0 : index
    %409 = vector.load %arg3[%c36, %c0_182] : memref<49x256xf32, #tpu.memory_space<vmem>>, vector<1x238xf32>
    %410 = vector.broadcast %409 : vector<1x238xf32> to vector<16x238xf32>
    %411 = arith.mulf %408, %410 : vector<16x238xf32>
    %412 = arith.addf %407, %411 : vector<16x238xf32>
    %413 = vector.extract_strided_slice %402 {offsets = [0, 6], sizes = [16, 238], strides = [1, 1]} : vector<16x256xf32> to vector<16x238xf32>
    %c37 = arith.constant 37 : index
    %c0_183 = arith.constant 0 : index
    %414 = vector.load %arg3[%c37, %c0_183] : memref<49x256xf32, #tpu.memory_space<vmem>>, vector<1x238xf32>
    %415 = vector.broadcast %414 : vector<1x238xf32> to vector<16x238xf32>
    %416 = arith.mulf %413, %415 : vector<16x238xf32>
    %417 = arith.addf %412, %416 : vector<16x238xf32>
    %418 = vector.extract_strided_slice %402 {offsets = [0, 9], sizes = [16, 238], strides = [1, 1]} : vector<16x256xf32> to vector<16x238xf32>
    %c38_184 = arith.constant 38 : index
    %c0_185 = arith.constant 0 : index
    %419 = vector.load %arg3[%c38_184, %c0_185] : memref<49x256xf32, #tpu.memory_space<vmem>>, vector<1x238xf32>
    %420 = vector.broadcast %419 : vector<1x238xf32> to vector<16x238xf32>
    %421 = arith.mulf %418, %420 : vector<16x238xf32>
    %422 = arith.addf %417, %421 : vector<16x238xf32>
    %423 = vector.extract_strided_slice %402 {offsets = [0, 12], sizes = [16, 238], strides = [1, 1]} : vector<16x256xf32> to vector<16x238xf32>
    %c39 = arith.constant 39 : index
    %c0_186 = arith.constant 0 : index
    %424 = vector.load %arg3[%c39, %c0_186] : memref<49x256xf32, #tpu.memory_space<vmem>>, vector<1x238xf32>
    %425 = vector.broadcast %424 : vector<1x238xf32> to vector<16x238xf32>
    %426 = arith.mulf %423, %425 : vector<16x238xf32>
    %427 = arith.addf %422, %426 : vector<16x238xf32>
    %428 = vector.extract_strided_slice %402 {offsets = [0, 15], sizes = [16, 238], strides = [1, 1]} : vector<16x256xf32> to vector<16x238xf32>
    %c40 = arith.constant 40 : index
    %c0_187 = arith.constant 0 : index
    %429 = vector.load %arg3[%c40, %c0_187] : memref<49x256xf32, #tpu.memory_space<vmem>>, vector<1x238xf32>
    %430 = vector.broadcast %429 : vector<1x238xf32> to vector<16x238xf32>
    %431 = arith.mulf %428, %430 : vector<16x238xf32>
    %432 = arith.addf %427, %431 : vector<16x238xf32>
    %433 = vector.extract_strided_slice %402 {offsets = [0, 18], sizes = [16, 238], strides = [1, 1]} : vector<16x256xf32> to vector<16x238xf32>
    %c41 = arith.constant 41 : index
    %c0_188 = arith.constant 0 : index
    %434 = vector.load %arg3[%c41, %c0_188] : memref<49x256xf32, #tpu.memory_space<vmem>>, vector<1x238xf32>
    %435 = vector.broadcast %434 : vector<1x238xf32> to vector<16x238xf32>
    %436 = arith.mulf %433, %435 : vector<16x238xf32>
    %437 = arith.addf %432, %436 : vector<16x238xf32>
    %c18_189 = arith.constant 18 : index
    %c0_190 = arith.constant 0 : index
    %438 = vector.load %arg16[%c18_189, %c0_190] : memref<34x256xf32, #tpu.memory_space<vmem>>, vector<16x256xf32>
    %439 = vector.extract_strided_slice %438 {offsets = [0, 0], sizes = [16, 238], strides = [1, 1]} : vector<16x256xf32> to vector<16x238xf32>
    %c42_191 = arith.constant 42 : index
    %c0_192 = arith.constant 0 : index
    %440 = vector.load %arg3[%c42_191, %c0_192] : memref<49x256xf32, #tpu.memory_space<vmem>>, vector<1x238xf32>
    %441 = vector.broadcast %440 : vector<1x238xf32> to vector<16x238xf32>
    %442 = arith.mulf %439, %441 : vector<16x238xf32>
    %443 = arith.addf %437, %442 : vector<16x238xf32>
    %444 = vector.extract_strided_slice %438 {offsets = [0, 3], sizes = [16, 238], strides = [1, 1]} : vector<16x256xf32> to vector<16x238xf32>
    %c43_193 = arith.constant 43 : index
    %c0_194 = arith.constant 0 : index
    %445 = vector.load %arg3[%c43_193, %c0_194] : memref<49x256xf32, #tpu.memory_space<vmem>>, vector<1x238xf32>
    %446 = vector.broadcast %445 : vector<1x238xf32> to vector<16x238xf32>
    %447 = arith.mulf %444, %446 : vector<16x238xf32>
    %448 = arith.addf %443, %447 : vector<16x238xf32>
    %449 = vector.extract_strided_slice %438 {offsets = [0, 6], sizes = [16, 238], strides = [1, 1]} : vector<16x256xf32> to vector<16x238xf32>
    %c44 = arith.constant 44 : index
    %c0_195 = arith.constant 0 : index
    %450 = vector.load %arg3[%c44, %c0_195] : memref<49x256xf32, #tpu.memory_space<vmem>>, vector<1x238xf32>
    %451 = vector.broadcast %450 : vector<1x238xf32> to vector<16x238xf32>
    %452 = arith.mulf %449, %451 : vector<16x238xf32>
    %453 = arith.addf %448, %452 : vector<16x238xf32>
    %454 = vector.extract_strided_slice %438 {offsets = [0, 9], sizes = [16, 238], strides = [1, 1]} : vector<16x256xf32> to vector<16x238xf32>
    %c45 = arith.constant 45 : index
    %c0_196 = arith.constant 0 : index
    %455 = vector.load %arg3[%c45, %c0_196] : memref<49x256xf32, #tpu.memory_space<vmem>>, vector<1x238xf32>
    %456 = vector.broadcast %455 : vector<1x238xf32> to vector<16x238xf32>
    %457 = arith.mulf %454, %456 : vector<16x238xf32>
    %458 = arith.addf %453, %457 : vector<16x238xf32>
    %459 = vector.extract_strided_slice %438 {offsets = [0, 12], sizes = [16, 238], strides = [1, 1]} : vector<16x256xf32> to vector<16x238xf32>
    %c46 = arith.constant 46 : index
    %c0_197 = arith.constant 0 : index
    %460 = vector.load %arg3[%c46, %c0_197] : memref<49x256xf32, #tpu.memory_space<vmem>>, vector<1x238xf32>
    %461 = vector.broadcast %460 : vector<1x238xf32> to vector<16x238xf32>
    %462 = arith.mulf %459, %461 : vector<16x238xf32>
    %463 = arith.addf %458, %462 : vector<16x238xf32>
    %464 = vector.extract_strided_slice %438 {offsets = [0, 15], sizes = [16, 238], strides = [1, 1]} : vector<16x256xf32> to vector<16x238xf32>
    %c47 = arith.constant 47 : index
    %c0_198 = arith.constant 0 : index
    %465 = vector.load %arg3[%c47, %c0_198] : memref<49x256xf32, #tpu.memory_space<vmem>>, vector<1x238xf32>
    %466 = vector.broadcast %465 : vector<1x238xf32> to vector<16x238xf32>
    %467 = arith.mulf %464, %466 : vector<16x238xf32>
    %468 = arith.addf %463, %467 : vector<16x238xf32>
    %469 = vector.extract_strided_slice %438 {offsets = [0, 18], sizes = [16, 238], strides = [1, 1]} : vector<16x256xf32> to vector<16x238xf32>
    %c48 = arith.constant 48 : index
    %c0_199 = arith.constant 0 : index
    %470 = vector.load %arg3[%c48, %c0_199] : memref<49x256xf32, #tpu.memory_space<vmem>>, vector<1x238xf32>
    %471 = vector.broadcast %470 : vector<1x238xf32> to vector<16x238xf32>
    %472 = arith.mulf %469, %471 : vector<16x238xf32>
    %473 = arith.addf %468, %472 : vector<16x238xf32>
    %c0_200 = arith.constant 0 : index
    %474 = memref.load %arg10[%c0_200] : memref<2xf32, #tpu.memory_space<smem>>
    %475 = vector.broadcast %474 : f32 to vector<16x16xf32>
    %c1_201 = arith.constant 1 : index
    %476 = memref.load %arg10[%c1_201] : memref<2xf32, #tpu.memory_space<smem>>
    %477 = vector.broadcast %476 : f32 to vector<16x16xf32>
    %478 = vector.extract_strided_slice %473 {offsets = [0, 0], sizes = [16, 16], strides = [1, 1]} : vector<16x238xf32> to vector<16x16xf32>
    %c0_202 = arith.constant 0 : index
    %479 = memref.load %arg6[%c0_202] : memref<4xf32, #tpu.memory_space<smem>>
    %480 = vector.broadcast %479 : f32 to vector<16x16xf32>
    %481 = arith.addf %478, %480 : vector<16x16xf32>
    %c0_203 = arith.constant 0 : index
    %482 = memref.load %arg9[%c0_203] : memref<8xf32, #tpu.memory_space<smem>>
    %483 = vector.broadcast %482 : f32 to vector<16x16xf32>
    %484 = arith.mulf %481, %483 : vector<16x16xf32>
    %485 = arith.addf %475, %484 : vector<16x16xf32>
    %c4_204 = arith.constant 4 : index
    %486 = memref.load %arg9[%c4_204] : memref<8xf32, #tpu.memory_space<smem>>
    %487 = vector.broadcast %486 : f32 to vector<16x16xf32>
    %488 = arith.mulf %481, %487 : vector<16x16xf32>
    %489 = arith.addf %477, %488 : vector<16x16xf32>
    %490 = vector.extract_strided_slice %473 {offsets = [0, 34], sizes = [16, 16], strides = [1, 1]} : vector<16x238xf32> to vector<16x16xf32>
    %c1_205 = arith.constant 1 : index
    %491 = memref.load %arg6[%c1_205] : memref<4xf32, #tpu.memory_space<smem>>
    %492 = vector.broadcast %491 : f32 to vector<16x16xf32>
    %493 = arith.addf %490, %492 : vector<16x16xf32>
    %c1_206 = arith.constant 1 : index
    %494 = memref.load %arg9[%c1_206] : memref<8xf32, #tpu.memory_space<smem>>
    %495 = vector.broadcast %494 : f32 to vector<16x16xf32>
    %496 = arith.mulf %493, %495 : vector<16x16xf32>
    %497 = arith.addf %485, %496 : vector<16x16xf32>
    %c5_207 = arith.constant 5 : index
    %498 = memref.load %arg9[%c5_207] : memref<8xf32, #tpu.memory_space<smem>>
    %499 = vector.broadcast %498 : f32 to vector<16x16xf32>
    %500 = arith.mulf %493, %499 : vector<16x16xf32>
    %501 = arith.addf %489, %500 : vector<16x16xf32>
    %502 = vector.extract_strided_slice %473 {offsets = [0, 68], sizes = [16, 16], strides = [1, 1]} : vector<16x238xf32> to vector<16x16xf32>
    %c2_208 = arith.constant 2 : index
    %503 = memref.load %arg6[%c2_208] : memref<4xf32, #tpu.memory_space<smem>>
    %504 = vector.broadcast %503 : f32 to vector<16x16xf32>
    %505 = arith.addf %502, %504 : vector<16x16xf32>
    %c2_209 = arith.constant 2 : index
    %506 = memref.load %arg9[%c2_209] : memref<8xf32, #tpu.memory_space<smem>>
    %507 = vector.broadcast %506 : f32 to vector<16x16xf32>
    %508 = arith.mulf %505, %507 : vector<16x16xf32>
    %509 = arith.addf %497, %508 : vector<16x16xf32>
    %c6_210 = arith.constant 6 : index
    %510 = memref.load %arg9[%c6_210] : memref<8xf32, #tpu.memory_space<smem>>
    %511 = vector.broadcast %510 : f32 to vector<16x16xf32>
    %512 = arith.mulf %505, %511 : vector<16x16xf32>
    %513 = arith.addf %501, %512 : vector<16x16xf32>
    %514 = vector.extract_strided_slice %473 {offsets = [0, 102], sizes = [16, 16], strides = [1, 1]} : vector<16x238xf32> to vector<16x16xf32>
    %c3_211 = arith.constant 3 : index
    %515 = memref.load %arg6[%c3_211] : memref<4xf32, #tpu.memory_space<smem>>
    %516 = vector.broadcast %515 : f32 to vector<16x16xf32>
    %517 = arith.addf %514, %516 : vector<16x16xf32>
    %c3_212 = arith.constant 3 : index
    %518 = memref.load %arg9[%c3_212] : memref<8xf32, #tpu.memory_space<smem>>
    %519 = vector.broadcast %518 : f32 to vector<16x16xf32>
    %520 = arith.mulf %517, %519 : vector<16x16xf32>
    %521 = arith.addf %509, %520 : vector<16x16xf32>
    %c7_213 = arith.constant 7 : index
    %522 = memref.load %arg9[%c7_213] : memref<8xf32, #tpu.memory_space<smem>>
    %523 = vector.broadcast %522 : f32 to vector<16x16xf32>
    %524 = arith.mulf %517, %523 : vector<16x16xf32>
    %525 = arith.addf %513, %524 : vector<16x16xf32>
    %526 = arith.addf %218, %521 : vector<16x16xf32>
    %527 = arith.maximumf %218, %521 : vector<16x16xf32>
    %528 = arith.addf %526, %222 : vector<16x16xf32>
    %529 = arith.addf %528, %525 : vector<16x16xf32>
    %530 = arith.maximumf %222, %525 : vector<16x16xf32>
    %531 = arith.maximumf %527, %530 : vector<16x16xf32>
    %cst_214 = arith.constant 2.500000e-01 : f32
    %532 = vector.broadcast %cst_214 : f32 to vector<16x16xf32>
    %533 = arith.mulf %529, %532 : vector<16x16xf32>
    %cst_215 = arith.constant 0.000000e+00 : f32
    %534 = vector.broadcast %cst_215 : f32 to vector<3x128xf32>
    %c0_216 = arith.constant 0 : index
    %c0_217 = arith.constant 0 : index
    %535 = vector.load %arg17[%c0_216, %c0_217] : memref<22x128xf32, #tpu.memory_space<vmem>>, vector<3x128xf32>
    tpu.vector_store %arg17[%c0_216, %c0_217], %534 {strides = array<i32>} : memref<22x128xf32, #tpu.memory_space<vmem>>, vector<3x128xf32>,
    %c19_218 = arith.constant 19 : index
    %c0_219 = arith.constant 0 : index
    %536 = vector.load %arg17[%c19_218, %c0_219] : memref<22x128xf32, #tpu.memory_space<vmem>>, vector<3x128xf32>
    tpu.vector_store %arg17[%c19_218, %c0_219], %534 {strides = array<i32>} : memref<22x128xf32, #tpu.memory_space<vmem>>, vector<3x128xf32>,
    %cst_220 = arith.constant 0.000000e+00 : f32
    %537 = vector.broadcast %cst_220 : f32 to vector<16x3xf32>
    %c3_221 = arith.constant 3 : index
    %c0_222 = arith.constant 0 : index
    %538 = vector.load %arg17[%c3_221, %c0_222] : memref<22x128xf32, #tpu.memory_space<vmem>>, vector<16x3xf32>
    tpu.vector_store %arg17[%c3_221, %c0_222], %537 {strides = array<i32>} : memref<22x128xf32, #tpu.memory_space<vmem>>, vector<16x3xf32>,
    %cst_223 = arith.constant 0.000000e+00 : f32
    %539 = vector.broadcast %cst_223 : f32 to vector<16x6xf32>
    %c3_224 = arith.constant 3 : index
    %c19_225 = arith.constant 19 : index
    %540 = vector.load %arg17[%c3_224, %c19_225] : memref<22x128xf32, #tpu.memory_space<vmem>>, vector<16x6xf32>
    tpu.vector_store %arg17[%c3_224, %c19_225], %539 {strides = array<i32>} : memref<22x128xf32, #tpu.memory_space<vmem>>, vector<16x6xf32>,
    %cst_226 = arith.constant 0.000000e+00 : f32
    %541 = vector.broadcast %cst_226 : f32 to vector<16x6xf32>
    %c3_227 = arith.constant 3 : index
    %c41_228 = arith.constant 41 : index
    %542 = vector.load %arg17[%c3_227, %c41_228] : memref<22x128xf32, #tpu.memory_space<vmem>>, vector<16x6xf32>
    tpu.vector_store %arg17[%c3_227, %c41_228], %541 {strides = array<i32>} : memref<22x128xf32, #tpu.memory_space<vmem>>, vector<16x6xf32>,
    %cst_229 = arith.constant 0.000000e+00 : f32
    %543 = vector.broadcast %cst_229 : f32 to vector<16x6xf32>
    %c3_230 = arith.constant 3 : index
    %c63 = arith.constant 63 : index
    %544 = vector.load %arg17[%c3_230, %c63] : memref<22x128xf32, #tpu.memory_space<vmem>>, vector<16x6xf32>
    tpu.vector_store %arg17[%c3_230, %c63], %543 {strides = array<i32>} : memref<22x128xf32, #tpu.memory_space<vmem>>, vector<16x6xf32>,
    %cst_231 = arith.constant 0.000000e+00 : f32
    %545 = vector.broadcast %cst_231 : f32 to vector<16x43xf32>
    %c3_232 = arith.constant 3 : index
    %c85 = arith.constant 85 : index
    %546 = vector.load %arg17[%c3_232, %c85] : memref<22x128xf32, #tpu.memory_space<vmem>>, vector<16x43xf32>
    tpu.vector_store %arg17[%c3_232, %c85], %545 {strides = array<i32>} : memref<22x128xf32, #tpu.memory_space<vmem>>, vector<16x43xf32>,
    %c3_233 = arith.constant 3 : index
    %c3_234 = arith.constant 3 : index
    %547 = vector.load %arg17[%c3_233, %c3_234] : memref<22x128xf32, #tpu.memory_space<vmem>>, vector<16x16xf32>
    tpu.vector_store %arg17[%c3_233, %c3_234], %533 {strides = array<i32>} : memref<22x128xf32, #tpu.memory_space<vmem>>, vector<16x16xf32>,
    %c3_235 = arith.constant 3 : index
    %c25_236 = arith.constant 25 : index
    %548 = vector.load %arg17[%c3_235, %c25_236] : memref<22x128xf32, #tpu.memory_space<vmem>>, vector<16x16xf32>
    tpu.vector_store %arg17[%c3_235, %c25_236], %531 {strides = array<i32>} : memref<22x128xf32, #tpu.memory_space<vmem>>, vector<16x16xf32>,
    %c3_237 = arith.constant 3 : index
    %c47_238 = arith.constant 47 : index
    %549 = vector.load %arg17[%c3_237, %c47_238] : memref<22x128xf32, #tpu.memory_space<vmem>>, vector<16x16xf32>
    tpu.vector_store %arg17[%c3_237, %c47_238], %533 {strides = array<i32>} : memref<22x128xf32, #tpu.memory_space<vmem>>, vector<16x16xf32>,
    %c3_239 = arith.constant 3 : index
    %c69 = arith.constant 69 : index
    %550 = vector.load %arg17[%c3_239, %c69] : memref<22x128xf32, #tpu.memory_space<vmem>>, vector<16x16xf32>
    tpu.vector_store %arg17[%c3_239, %c69], %531 {strides = array<i32>} : memref<22x128xf32, #tpu.memory_space<vmem>>, vector<16x16xf32>,
    %c0_240 = arith.constant 0 : index
    %c0_241 = arith.constant 0 : index
    %551 = vector.load %arg17[%c0_240, %c0_241] : memref<22x128xf32, #tpu.memory_space<vmem>>, vector<16x128xf32>
    %552 = vector.extract_strided_slice %551 {offsets = [0, 0], sizes = [16, 122], strides = [1, 1]} : vector<16x128xf32> to vector<16x122xf32>
    %c0_242 = arith.constant 0 : index
    %c0_243 = arith.constant 0 : index
    %553 = vector.load %arg4[%c0_242, %c0_243] : memref<49x128xf32, #tpu.memory_space<vmem>>, vector<1x122xf32>
    %554 = vector.broadcast %553 : vector<1x122xf32> to vector<16x122xf32>
    %555 = arith.mulf %552, %554 : vector<16x122xf32>
    %556 = vector.extract_strided_slice %551 {offsets = [0, 1], sizes = [16, 122], strides = [1, 1]} : vector<16x128xf32> to vector<16x122xf32>
    %c1_244 = arith.constant 1 : index
    %c0_245 = arith.constant 0 : index
    %557 = vector.load %arg4[%c1_244, %c0_245] : memref<49x128xf32, #tpu.memory_space<vmem>>, vector<1x122xf32>
    %558 = vector.broadcast %557 : vector<1x122xf32> to vector<16x122xf32>
    %559 = arith.mulf %556, %558 : vector<16x122xf32>
    %560 = arith.addf %555, %559 : vector<16x122xf32>
    %561 = vector.extract_strided_slice %551 {offsets = [0, 2], sizes = [16, 122], strides = [1, 1]} : vector<16x128xf32> to vector<16x122xf32>
    %c2_246 = arith.constant 2 : index
    %c0_247 = arith.constant 0 : index
    %562 = vector.load %arg4[%c2_246, %c0_247] : memref<49x128xf32, #tpu.memory_space<vmem>>, vector<1x122xf32>
    %563 = vector.broadcast %562 : vector<1x122xf32> to vector<16x122xf32>
    %564 = arith.mulf %561, %563 : vector<16x122xf32>
    %565 = arith.addf %560, %564 : vector<16x122xf32>
    %566 = vector.extract_strided_slice %551 {offsets = [0, 3], sizes = [16, 122], strides = [1, 1]} : vector<16x128xf32> to vector<16x122xf32>
    %c3_248 = arith.constant 3 : index
    %c0_249 = arith.constant 0 : index
    %567 = vector.load %arg4[%c3_248, %c0_249] : memref<49x128xf32, #tpu.memory_space<vmem>>, vector<1x122xf32>
    %568 = vector.broadcast %567 : vector<1x122xf32> to vector<16x122xf32>
    %569 = arith.mulf %566, %568 : vector<16x122xf32>
    %570 = arith.addf %565, %569 : vector<16x122xf32>
    %571 = vector.extract_strided_slice %551 {offsets = [0, 4], sizes = [16, 122], strides = [1, 1]} : vector<16x128xf32> to vector<16x122xf32>
    %c4_250 = arith.constant 4 : index
    %c0_251 = arith.constant 0 : index
    %572 = vector.load %arg4[%c4_250, %c0_251] : memref<49x128xf32, #tpu.memory_space<vmem>>, vector<1x122xf32>
    %573 = vector.broadcast %572 : vector<1x122xf32> to vector<16x122xf32>
    %574 = arith.mulf %571, %573 : vector<16x122xf32>
    %575 = arith.addf %570, %574 : vector<16x122xf32>
    %576 = vector.extract_strided_slice %551 {offsets = [0, 5], sizes = [16, 122], strides = [1, 1]} : vector<16x128xf32> to vector<16x122xf32>
    %c5_252 = arith.constant 5 : index
    %c0_253 = arith.constant 0 : index
    %577 = vector.load %arg4[%c5_252, %c0_253] : memref<49x128xf32, #tpu.memory_space<vmem>>, vector<1x122xf32>
    %578 = vector.broadcast %577 : vector<1x122xf32> to vector<16x122xf32>
    %579 = arith.mulf %576, %578 : vector<16x122xf32>
    %580 = arith.addf %575, %579 : vector<16x122xf32>
    %581 = vector.extract_strided_slice %551 {offsets = [0, 6], sizes = [16, 122], strides = [1, 1]} : vector<16x128xf32> to vector<16x122xf32>
    %c6_254 = arith.constant 6 : index
    %c0_255 = arith.constant 0 : index
    %582 = vector.load %arg4[%c6_254, %c0_255] : memref<49x128xf32, #tpu.memory_space<vmem>>, vector<1x122xf32>
    %583 = vector.broadcast %582 : vector<1x122xf32> to vector<16x122xf32>
    %584 = arith.mulf %581, %583 : vector<16x122xf32>
    %585 = arith.addf %580, %584 : vector<16x122xf32>
    %c1_256 = arith.constant 1 : index
    %c0_257 = arith.constant 0 : index
    %586 = vector.load %arg17[%c1_256, %c0_257] : memref<22x128xf32, #tpu.memory_space<vmem>>, vector<16x128xf32>
    %587 = vector.extract_strided_slice %586 {offsets = [0, 0], sizes = [16, 122], strides = [1, 1]} : vector<16x128xf32> to vector<16x122xf32>
    %c7_258 = arith.constant 7 : index
    %c0_259 = arith.constant 0 : index
    %588 = vector.load %arg4[%c7_258, %c0_259] : memref<49x128xf32, #tpu.memory_space<vmem>>, vector<1x122xf32>
    %589 = vector.broadcast %588 : vector<1x122xf32> to vector<16x122xf32>
    %590 = arith.mulf %587, %589 : vector<16x122xf32>
    %591 = arith.addf %585, %590 : vector<16x122xf32>
    %592 = vector.extract_strided_slice %586 {offsets = [0, 1], sizes = [16, 122], strides = [1, 1]} : vector<16x128xf32> to vector<16x122xf32>
    %c8_260 = arith.constant 8 : index
    %c0_261 = arith.constant 0 : index
    %593 = vector.load %arg4[%c8_260, %c0_261] : memref<49x128xf32, #tpu.memory_space<vmem>>, vector<1x122xf32>
    %594 = vector.broadcast %593 : vector<1x122xf32> to vector<16x122xf32>
    %595 = arith.mulf %592, %594 : vector<16x122xf32>
    %596 = arith.addf %591, %595 : vector<16x122xf32>
    %597 = vector.extract_strided_slice %586 {offsets = [0, 2], sizes = [16, 122], strides = [1, 1]} : vector<16x128xf32> to vector<16x122xf32>
    %c9_262 = arith.constant 9 : index
    %c0_263 = arith.constant 0 : index
    %598 = vector.load %arg4[%c9_262, %c0_263] : memref<49x128xf32, #tpu.memory_space<vmem>>, vector<1x122xf32>
    %599 = vector.broadcast %598 : vector<1x122xf32> to vector<16x122xf32>
    %600 = arith.mulf %597, %599 : vector<16x122xf32>
    %601 = arith.addf %596, %600 : vector<16x122xf32>
    %602 = vector.extract_strided_slice %586 {offsets = [0, 3], sizes = [16, 122], strides = [1, 1]} : vector<16x128xf32> to vector<16x122xf32>
    %c10_264 = arith.constant 10 : index
    %c0_265 = arith.constant 0 : index
    %603 = vector.load %arg4[%c10_264, %c0_265] : memref<49x128xf32, #tpu.memory_space<vmem>>, vector<1x122xf32>
    %604 = vector.broadcast %603 : vector<1x122xf32> to vector<16x122xf32>
    %605 = arith.mulf %602, %604 : vector<16x122xf32>
    %606 = arith.addf %601, %605 : vector<16x122xf32>
    %607 = vector.extract_strided_slice %586 {offsets = [0, 4], sizes = [16, 122], strides = [1, 1]} : vector<16x128xf32> to vector<16x122xf32>
    %c11_266 = arith.constant 11 : index
    %c0_267 = arith.constant 0 : index
    %608 = vector.load %arg4[%c11_266, %c0_267] : memref<49x128xf32, #tpu.memory_space<vmem>>, vector<1x122xf32>
    %609 = vector.broadcast %608 : vector<1x122xf32> to vector<16x122xf32>
    %610 = arith.mulf %607, %609 : vector<16x122xf32>
    %611 = arith.addf %606, %610 : vector<16x122xf32>
    %612 = vector.extract_strided_slice %586 {offsets = [0, 5], sizes = [16, 122], strides = [1, 1]} : vector<16x128xf32> to vector<16x122xf32>
    %c12_268 = arith.constant 12 : index
    %c0_269 = arith.constant 0 : index
    %613 = vector.load %arg4[%c12_268, %c0_269] : memref<49x128xf32, #tpu.memory_space<vmem>>, vector<1x122xf32>
    %614 = vector.broadcast %613 : vector<1x122xf32> to vector<16x122xf32>
    %615 = arith.mulf %612, %614 : vector<16x122xf32>
    %616 = arith.addf %611, %615 : vector<16x122xf32>
    %617 = vector.extract_strided_slice %586 {offsets = [0, 6], sizes = [16, 122], strides = [1, 1]} : vector<16x128xf32> to vector<16x122xf32>
    %c13_270 = arith.constant 13 : index
    %c0_271 = arith.constant 0 : index
    %618 = vector.load %arg4[%c13_270, %c0_271] : memref<49x128xf32, #tpu.memory_space<vmem>>, vector<1x122xf32>
    %619 = vector.broadcast %618 : vector<1x122xf32> to vector<16x122xf32>
    %620 = arith.mulf %617, %619 : vector<16x122xf32>
    %621 = arith.addf %616, %620 : vector<16x122xf32>
    %c2_272 = arith.constant 2 : index
    %c0_273 = arith.constant 0 : index
    %622 = vector.load %arg17[%c2_272, %c0_273] : memref<22x128xf32, #tpu.memory_space<vmem>>, vector<16x128xf32>
    %623 = vector.extract_strided_slice %622 {offsets = [0, 0], sizes = [16, 122], strides = [1, 1]} : vector<16x128xf32> to vector<16x122xf32>
    %c14_274 = arith.constant 14 : index
    %c0_275 = arith.constant 0 : index
    %624 = vector.load %arg4[%c14_274, %c0_275] : memref<49x128xf32, #tpu.memory_space<vmem>>, vector<1x122xf32>
    %625 = vector.broadcast %624 : vector<1x122xf32> to vector<16x122xf32>
    %626 = arith.mulf %623, %625 : vector<16x122xf32>
    %627 = arith.addf %621, %626 : vector<16x122xf32>
    %628 = vector.extract_strided_slice %622 {offsets = [0, 1], sizes = [16, 122], strides = [1, 1]} : vector<16x128xf32> to vector<16x122xf32>
    %c15_276 = arith.constant 15 : index
    %c0_277 = arith.constant 0 : index
    %629 = vector.load %arg4[%c15_276, %c0_277] : memref<49x128xf32, #tpu.memory_space<vmem>>, vector<1x122xf32>
    %630 = vector.broadcast %629 : vector<1x122xf32> to vector<16x122xf32>
    %631 = arith.mulf %628, %630 : vector<16x122xf32>
    %632 = arith.addf %627, %631 : vector<16x122xf32>
    %633 = vector.extract_strided_slice %622 {offsets = [0, 2], sizes = [16, 122], strides = [1, 1]} : vector<16x128xf32> to vector<16x122xf32>
    %c16_278 = arith.constant 16 : index
    %c0_279 = arith.constant 0 : index
    %634 = vector.load %arg4[%c16_278, %c0_279] : memref<49x128xf32, #tpu.memory_space<vmem>>, vector<1x122xf32>
    %635 = vector.broadcast %634 : vector<1x122xf32> to vector<16x122xf32>
    %636 = arith.mulf %633, %635 : vector<16x122xf32>
    %637 = arith.addf %632, %636 : vector<16x122xf32>
    %638 = vector.extract_strided_slice %622 {offsets = [0, 3], sizes = [16, 122], strides = [1, 1]} : vector<16x128xf32> to vector<16x122xf32>
    %c17_280 = arith.constant 17 : index
    %c0_281 = arith.constant 0 : index
    %639 = vector.load %arg4[%c17_280, %c0_281] : memref<49x128xf32, #tpu.memory_space<vmem>>, vector<1x122xf32>
    %640 = vector.broadcast %639 : vector<1x122xf32> to vector<16x122xf32>
    %641 = arith.mulf %638, %640 : vector<16x122xf32>
    %642 = arith.addf %637, %641 : vector<16x122xf32>
    %643 = vector.extract_strided_slice %622 {offsets = [0, 4], sizes = [16, 122], strides = [1, 1]} : vector<16x128xf32> to vector<16x122xf32>
    %c18_282 = arith.constant 18 : index
    %c0_283 = arith.constant 0 : index
    %644 = vector.load %arg4[%c18_282, %c0_283] : memref<49x128xf32, #tpu.memory_space<vmem>>, vector<1x122xf32>
    %645 = vector.broadcast %644 : vector<1x122xf32> to vector<16x122xf32>
    %646 = arith.mulf %643, %645 : vector<16x122xf32>
    %647 = arith.addf %642, %646 : vector<16x122xf32>
    %648 = vector.extract_strided_slice %622 {offsets = [0, 5], sizes = [16, 122], strides = [1, 1]} : vector<16x128xf32> to vector<16x122xf32>
    %c19_284 = arith.constant 19 : index
    %c0_285 = arith.constant 0 : index
    %649 = vector.load %arg4[%c19_284, %c0_285] : memref<49x128xf32, #tpu.memory_space<vmem>>, vector<1x122xf32>
    %650 = vector.broadcast %649 : vector<1x122xf32> to vector<16x122xf32>
    %651 = arith.mulf %648, %650 : vector<16x122xf32>
    %652 = arith.addf %647, %651 : vector<16x122xf32>
    %653 = vector.extract_strided_slice %622 {offsets = [0, 6], sizes = [16, 122], strides = [1, 1]} : vector<16x128xf32> to vector<16x122xf32>
    %c20_286 = arith.constant 20 : index
    %c0_287 = arith.constant 0 : index
    %654 = vector.load %arg4[%c20_286, %c0_287] : memref<49x128xf32, #tpu.memory_space<vmem>>, vector<1x122xf32>
    %655 = vector.broadcast %654 : vector<1x122xf32> to vector<16x122xf32>
    %656 = arith.mulf %653, %655 : vector<16x122xf32>
    %657 = arith.addf %652, %656 : vector<16x122xf32>
    %c3_288 = arith.constant 3 : index
    %c0_289 = arith.constant 0 : index
    %658 = vector.load %arg17[%c3_288, %c0_289] : memref<22x128xf32, #tpu.memory_space<vmem>>, vector<16x128xf32>
    %659 = vector.extract_strided_slice %658 {offsets = [0, 0], sizes = [16, 122], strides = [1, 1]} : vector<16x128xf32> to vector<16x122xf32>
    %c21_290 = arith.constant 21 : index
    %c0_291 = arith.constant 0 : index
    %660 = vector.load %arg4[%c21_290, %c0_291] : memref<49x128xf32, #tpu.memory_space<vmem>>, vector<1x122xf32>
    %661 = vector.broadcast %660 : vector<1x122xf32> to vector<16x122xf32>
    %662 = arith.mulf %659, %661 : vector<16x122xf32>
    %663 = arith.addf %657, %662 : vector<16x122xf32>
    %664 = vector.extract_strided_slice %658 {offsets = [0, 1], sizes = [16, 122], strides = [1, 1]} : vector<16x128xf32> to vector<16x122xf32>
    %c22_292 = arith.constant 22 : index
    %c0_293 = arith.constant 0 : index
    %665 = vector.load %arg4[%c22_292, %c0_293] : memref<49x128xf32, #tpu.memory_space<vmem>>, vector<1x122xf32>
    %666 = vector.broadcast %665 : vector<1x122xf32> to vector<16x122xf32>
    %667 = arith.mulf %664, %666 : vector<16x122xf32>
    %668 = arith.addf %663, %667 : vector<16x122xf32>
    %669 = vector.extract_strided_slice %658 {offsets = [0, 2], sizes = [16, 122], strides = [1, 1]} : vector<16x128xf32> to vector<16x122xf32>
    %c23_294 = arith.constant 23 : index
    %c0_295 = arith.constant 0 : index
    %670 = vector.load %arg4[%c23_294, %c0_295] : memref<49x128xf32, #tpu.memory_space<vmem>>, vector<1x122xf32>
    %671 = vector.broadcast %670 : vector<1x122xf32> to vector<16x122xf32>
    %672 = arith.mulf %669, %671 : vector<16x122xf32>
    %673 = arith.addf %668, %672 : vector<16x122xf32>
    %674 = vector.extract_strided_slice %658 {offsets = [0, 3], sizes = [16, 122], strides = [1, 1]} : vector<16x128xf32> to vector<16x122xf32>
    %c24_296 = arith.constant 24 : index
    %c0_297 = arith.constant 0 : index
    %675 = vector.load %arg4[%c24_296, %c0_297] : memref<49x128xf32, #tpu.memory_space<vmem>>, vector<1x122xf32>
    %676 = vector.broadcast %675 : vector<1x122xf32> to vector<16x122xf32>
    %677 = arith.mulf %674, %676 : vector<16x122xf32>
    %678 = arith.addf %673, %677 : vector<16x122xf32>
    %679 = vector.extract_strided_slice %658 {offsets = [0, 4], sizes = [16, 122], strides = [1, 1]} : vector<16x128xf32> to vector<16x122xf32>
    %c25_298 = arith.constant 25 : index
    %c0_299 = arith.constant 0 : index
    %680 = vector.load %arg4[%c25_298, %c0_299] : memref<49x128xf32, #tpu.memory_space<vmem>>, vector<1x122xf32>
    %681 = vector.broadcast %680 : vector<1x122xf32> to vector<16x122xf32>
    %682 = arith.mulf %679, %681 : vector<16x122xf32>
    %683 = arith.addf %678, %682 : vector<16x122xf32>
    %684 = vector.extract_strided_slice %658 {offsets = [0, 5], sizes = [16, 122], strides = [1, 1]} : vector<16x128xf32> to vector<16x122xf32>
    %c26_300 = arith.constant 26 : index
    %c0_301 = arith.constant 0 : index
    %685 = vector.load %arg4[%c26_300, %c0_301] : memref<49x128xf32, #tpu.memory_space<vmem>>, vector<1x122xf32>
    %686 = vector.broadcast %685 : vector<1x122xf32> to vector<16x122xf32>
    %687 = arith.mulf %684, %686 : vector<16x122xf32>
    %688 = arith.addf %683, %687 : vector<16x122xf32>
    %689 = vector.extract_strided_slice %658 {offsets = [0, 6], sizes = [16, 122], strides = [1, 1]} : vector<16x128xf32> to vector<16x122xf32>
    %c27_302 = arith.constant 27 : index
    %c0_303 = arith.constant 0 : index
    %690 = vector.load %arg4[%c27_302, %c0_303] : memref<49x128xf32, #tpu.memory_space<vmem>>, vector<1x122xf32>
    %691 = vector.broadcast %690 : vector<1x122xf32> to vector<16x122xf32>
    %692 = arith.mulf %689, %691 : vector<16x122xf32>
    %693 = arith.addf %688, %692 : vector<16x122xf32>
    %c4_304 = arith.constant 4 : index
    %c0_305 = arith.constant 0 : index
    %694 = vector.load %arg17[%c4_304, %c0_305] : memref<22x128xf32, #tpu.memory_space<vmem>>, vector<16x128xf32>
    %695 = vector.extract_strided_slice %694 {offsets = [0, 0], sizes = [16, 122], strides = [1, 1]} : vector<16x128xf32> to vector<16x122xf32>
    %c28_306 = arith.constant 28 : index
    %c0_307 = arith.constant 0 : index
    %696 = vector.load %arg4[%c28_306, %c0_307] : memref<49x128xf32, #tpu.memory_space<vmem>>, vector<1x122xf32>
    %697 = vector.broadcast %696 : vector<1x122xf32> to vector<16x122xf32>
    %698 = arith.mulf %695, %697 : vector<16x122xf32>
    %699 = arith.addf %693, %698 : vector<16x122xf32>
    %700 = vector.extract_strided_slice %694 {offsets = [0, 1], sizes = [16, 122], strides = [1, 1]} : vector<16x128xf32> to vector<16x122xf32>
    %c29_308 = arith.constant 29 : index
    %c0_309 = arith.constant 0 : index
    %701 = vector.load %arg4[%c29_308, %c0_309] : memref<49x128xf32, #tpu.memory_space<vmem>>, vector<1x122xf32>
    %702 = vector.broadcast %701 : vector<1x122xf32> to vector<16x122xf32>
    %703 = arith.mulf %700, %702 : vector<16x122xf32>
    %704 = arith.addf %699, %703 : vector<16x122xf32>
    %705 = vector.extract_strided_slice %694 {offsets = [0, 2], sizes = [16, 122], strides = [1, 1]} : vector<16x128xf32> to vector<16x122xf32>
    %c30_310 = arith.constant 30 : index
    %c0_311 = arith.constant 0 : index
    %706 = vector.load %arg4[%c30_310, %c0_311] : memref<49x128xf32, #tpu.memory_space<vmem>>, vector<1x122xf32>
    %707 = vector.broadcast %706 : vector<1x122xf32> to vector<16x122xf32>
    %708 = arith.mulf %705, %707 : vector<16x122xf32>
    %709 = arith.addf %704, %708 : vector<16x122xf32>
    %710 = vector.extract_strided_slice %694 {offsets = [0, 3], sizes = [16, 122], strides = [1, 1]} : vector<16x128xf32> to vector<16x122xf32>
    %c31_312 = arith.constant 31 : index
    %c0_313 = arith.constant 0 : index
    %711 = vector.load %arg4[%c31_312, %c0_313] : memref<49x128xf32, #tpu.memory_space<vmem>>, vector<1x122xf32>
    %712 = vector.broadcast %711 : vector<1x122xf32> to vector<16x122xf32>
    %713 = arith.mulf %710, %712 : vector<16x122xf32>
    %714 = arith.addf %709, %713 : vector<16x122xf32>
    %715 = vector.extract_strided_slice %694 {offsets = [0, 4], sizes = [16, 122], strides = [1, 1]} : vector<16x128xf32> to vector<16x122xf32>
    %c32_314 = arith.constant 32 : index
    %c0_315 = arith.constant 0 : index
    %716 = vector.load %arg4[%c32_314, %c0_315] : memref<49x128xf32, #tpu.memory_space<vmem>>, vector<1x122xf32>
    %717 = vector.broadcast %716 : vector<1x122xf32> to vector<16x122xf32>
    %718 = arith.mulf %715, %717 : vector<16x122xf32>
    %719 = arith.addf %714, %718 : vector<16x122xf32>
    %720 = vector.extract_strided_slice %694 {offsets = [0, 5], sizes = [16, 122], strides = [1, 1]} : vector<16x128xf32> to vector<16x122xf32>
    %c33_316 = arith.constant 33 : index
    %c0_317 = arith.constant 0 : index
    %721 = vector.load %arg4[%c33_316, %c0_317] : memref<49x128xf32, #tpu.memory_space<vmem>>, vector<1x122xf32>
    %722 = vector.broadcast %721 : vector<1x122xf32> to vector<16x122xf32>
    %723 = arith.mulf %720, %722 : vector<16x122xf32>
    %724 = arith.addf %719, %723 : vector<16x122xf32>
    %725 = vector.extract_strided_slice %694 {offsets = [0, 6], sizes = [16, 122], strides = [1, 1]} : vector<16x128xf32> to vector<16x122xf32>
    %c34_318 = arith.constant 34 : index
    %c0_319 = arith.constant 0 : index
    %726 = vector.load %arg4[%c34_318, %c0_319] : memref<49x128xf32, #tpu.memory_space<vmem>>, vector<1x122xf32>
    %727 = vector.broadcast %726 : vector<1x122xf32> to vector<16x122xf32>
    %728 = arith.mulf %725, %727 : vector<16x122xf32>
    %729 = arith.addf %724, %728 : vector<16x122xf32>
    %c5_320 = arith.constant 5 : index
    %c0_321 = arith.constant 0 : index
    %730 = vector.load %arg17[%c5_320, %c0_321] : memref<22x128xf32, #tpu.memory_space<vmem>>, vector<16x128xf32>
    %731 = vector.extract_strided_slice %730 {offsets = [0, 0], sizes = [16, 122], strides = [1, 1]} : vector<16x128xf32> to vector<16x122xf32>
    %c35_322 = arith.constant 35 : index
    %c0_323 = arith.constant 0 : index
    %732 = vector.load %arg4[%c35_322, %c0_323] : memref<49x128xf32, #tpu.memory_space<vmem>>, vector<1x122xf32>
    %733 = vector.broadcast %732 : vector<1x122xf32> to vector<16x122xf32>
    %734 = arith.mulf %731, %733 : vector<16x122xf32>
    %735 = arith.addf %729, %734 : vector<16x122xf32>
    %736 = vector.extract_strided_slice %730 {offsets = [0, 1], sizes = [16, 122], strides = [1, 1]} : vector<16x128xf32> to vector<16x122xf32>
    %c36_324 = arith.constant 36 : index
    %c0_325 = arith.constant 0 : index
    %737 = vector.load %arg4[%c36_324, %c0_325] : memref<49x128xf32, #tpu.memory_space<vmem>>, vector<1x122xf32>
    %738 = vector.broadcast %737 : vector<1x122xf32> to vector<16x122xf32>
    %739 = arith.mulf %736, %738 : vector<16x122xf32>
    %740 = arith.addf %735, %739 : vector<16x122xf32>
    %741 = vector.extract_strided_slice %730 {offsets = [0, 2], sizes = [16, 122], strides = [1, 1]} : vector<16x128xf32> to vector<16x122xf32>
    %c37_326 = arith.constant 37 : index
    %c0_327 = arith.constant 0 : index
    %742 = vector.load %arg4[%c37_326, %c0_327] : memref<49x128xf32, #tpu.memory_space<vmem>>, vector<1x122xf32>
    %743 = vector.broadcast %742 : vector<1x122xf32> to vector<16x122xf32>
    %744 = arith.mulf %741, %743 : vector<16x122xf32>
    %745 = arith.addf %740, %744 : vector<16x122xf32>
    %746 = vector.extract_strided_slice %730 {offsets = [0, 3], sizes = [16, 122], strides = [1, 1]} : vector<16x128xf32> to vector<16x122xf32>
    %c38_328 = arith.constant 38 : index
    %c0_329 = arith.constant 0 : index
    %747 = vector.load %arg4[%c38_328, %c0_329] : memref<49x128xf32, #tpu.memory_space<vmem>>, vector<1x122xf32>
    %748 = vector.broadcast %747 : vector<1x122xf32> to vector<16x122xf32>
    %749 = arith.mulf %746, %748 : vector<16x122xf32>
    %750 = arith.addf %745, %749 : vector<16x122xf32>
    %751 = vector.extract_strided_slice %730 {offsets = [0, 4], sizes = [16, 122], strides = [1, 1]} : vector<16x128xf32> to vector<16x122xf32>
    %c39_330 = arith.constant 39 : index
    %c0_331 = arith.constant 0 : index
    %752 = vector.load %arg4[%c39_330, %c0_331] : memref<49x128xf32, #tpu.memory_space<vmem>>, vector<1x122xf32>
    %753 = vector.broadcast %752 : vector<1x122xf32> to vector<16x122xf32>
    %754 = arith.mulf %751, %753 : vector<16x122xf32>
    %755 = arith.addf %750, %754 : vector<16x122xf32>
    %756 = vector.extract_strided_slice %730 {offsets = [0, 5], sizes = [16, 122], strides = [1, 1]} : vector<16x128xf32> to vector<16x122xf32>
    %c40_332 = arith.constant 40 : index
    %c0_333 = arith.constant 0 : index
    %757 = vector.load %arg4[%c40_332, %c0_333] : memref<49x128xf32, #tpu.memory_space<vmem>>, vector<1x122xf32>
    %758 = vector.broadcast %757 : vector<1x122xf32> to vector<16x122xf32>
    %759 = arith.mulf %756, %758 : vector<16x122xf32>
    %760 = arith.addf %755, %759 : vector<16x122xf32>
    %761 = vector.extract_strided_slice %730 {offsets = [0, 6], sizes = [16, 122], strides = [1, 1]} : vector<16x128xf32> to vector<16x122xf32>
    %c41_334 = arith.constant 41 : index
    %c0_335 = arith.constant 0 : index
    %762 = vector.load %arg4[%c41_334, %c0_335] : memref<49x128xf32, #tpu.memory_space<vmem>>, vector<1x122xf32>
    %763 = vector.broadcast %762 : vector<1x122xf32> to vector<16x122xf32>
    %764 = arith.mulf %761, %763 : vector<16x122xf32>
    %765 = arith.addf %760, %764 : vector<16x122xf32>
    %c6_336 = arith.constant 6 : index
    %c0_337 = arith.constant 0 : index
    %766 = vector.load %arg17[%c6_336, %c0_337] : memref<22x128xf32, #tpu.memory_space<vmem>>, vector<16x128xf32>
    %767 = vector.extract_strided_slice %766 {offsets = [0, 0], sizes = [16, 122], strides = [1, 1]} : vector<16x128xf32> to vector<16x122xf32>
    %c42_338 = arith.constant 42 : index
    %c0_339 = arith.constant 0 : index
    %768 = vector.load %arg4[%c42_338, %c0_339] : memref<49x128xf32, #tpu.memory_space<vmem>>, vector<1x122xf32>
    %769 = vector.broadcast %768 : vector<1x122xf32> to vector<16x122xf32>
    %770 = arith.mulf %767, %769 : vector<16x122xf32>
    %771 = arith.addf %765, %770 : vector<16x122xf32>
    %772 = vector.extract_strided_slice %766 {offsets = [0, 1], sizes = [16, 122], strides = [1, 1]} : vector<16x128xf32> to vector<16x122xf32>
    %c43_340 = arith.constant 43 : index
    %c0_341 = arith.constant 0 : index
    %773 = vector.load %arg4[%c43_340, %c0_341] : memref<49x128xf32, #tpu.memory_space<vmem>>, vector<1x122xf32>
    %774 = vector.broadcast %773 : vector<1x122xf32> to vector<16x122xf32>
    %775 = arith.mulf %772, %774 : vector<16x122xf32>
    %776 = arith.addf %771, %775 : vector<16x122xf32>
    %777 = vector.extract_strided_slice %766 {offsets = [0, 2], sizes = [16, 122], strides = [1, 1]} : vector<16x128xf32> to vector<16x122xf32>
    %c44_342 = arith.constant 44 : index
    %c0_343 = arith.constant 0 : index
    %778 = vector.load %arg4[%c44_342, %c0_343] : memref<49x128xf32, #tpu.memory_space<vmem>>, vector<1x122xf32>
    %779 = vector.broadcast %778 : vector<1x122xf32> to vector<16x122xf32>
    %780 = arith.mulf %777, %779 : vector<16x122xf32>
    %781 = arith.addf %776, %780 : vector<16x122xf32>
    %782 = vector.extract_strided_slice %766 {offsets = [0, 3], sizes = [16, 122], strides = [1, 1]} : vector<16x128xf32> to vector<16x122xf32>
    %c45_344 = arith.constant 45 : index
    %c0_345 = arith.constant 0 : index
    %783 = vector.load %arg4[%c45_344, %c0_345] : memref<49x128xf32, #tpu.memory_space<vmem>>, vector<1x122xf32>
    %784 = vector.broadcast %783 : vector<1x122xf32> to vector<16x122xf32>
    %785 = arith.mulf %782, %784 : vector<16x122xf32>
    %786 = arith.addf %781, %785 : vector<16x122xf32>
    %787 = vector.extract_strided_slice %766 {offsets = [0, 4], sizes = [16, 122], strides = [1, 1]} : vector<16x128xf32> to vector<16x122xf32>
    %c46_346 = arith.constant 46 : index
    %c0_347 = arith.constant 0 : index
    %788 = vector.load %arg4[%c46_346, %c0_347] : memref<49x128xf32, #tpu.memory_space<vmem>>, vector<1x122xf32>
    %789 = vector.broadcast %788 : vector<1x122xf32> to vector<16x122xf32>
    %790 = arith.mulf %787, %789 : vector<16x122xf32>
    %791 = arith.addf %786, %790 : vector<16x122xf32>
    %792 = vector.extract_strided_slice %766 {offsets = [0, 5], sizes = [16, 122], strides = [1, 1]} : vector<16x128xf32> to vector<16x122xf32>
    %c47_348 = arith.constant 47 : index
    %c0_349 = arith.constant 0 : index
    %793 = vector.load %arg4[%c47_348, %c0_349] : memref<49x128xf32, #tpu.memory_space<vmem>>, vector<1x122xf32>
    %794 = vector.broadcast %793 : vector<1x122xf32> to vector<16x122xf32>
    %795 = arith.mulf %792, %794 : vector<16x122xf32>
    %796 = arith.addf %791, %795 : vector<16x122xf32>
    %797 = vector.extract_strided_slice %766 {offsets = [0, 6], sizes = [16, 122], strides = [1, 1]} : vector<16x128xf32> to vector<16x122xf32>
    %c48_350 = arith.constant 48 : index
    %c0_351 = arith.constant 0 : index
    %798 = vector.load %arg4[%c48_350, %c0_351] : memref<49x128xf32, #tpu.memory_space<vmem>>, vector<1x122xf32>
    %799 = vector.broadcast %798 : vector<1x122xf32> to vector<16x122xf32>
    %800 = arith.mulf %797, %799 : vector<16x122xf32>
    %801 = arith.addf %796, %800 : vector<16x122xf32>
    %802 = vector.extract_strided_slice %801 {offsets = [0, 0], sizes = [16, 16], strides = [1, 1]} : vector<16x122xf32> to vector<16x16xf32>
    %803 = vector.extract_strided_slice %801 {offsets = [0, 22], sizes = [16, 16], strides = [1, 1]} : vector<16x122xf32> to vector<16x16xf32>
    %804 = arith.addf %802, %803 : vector<16x16xf32>
    %c0_352 = arith.constant 0 : index
    %805 = memref.load %arg11[%c0_352] : memref<2xf32, #tpu.memory_space<smem>>
    %806 = vector.broadcast %805 : f32 to vector<16x16xf32>
    %807 = arith.addf %804, %806 : vector<16x16xf32>
    %808 = arith.negf %807 : vector<16x16xf32>
    %809 = math.exp %808 : vector<16x16xf32>
    %cst_353 = arith.constant 1.000000e+00 : f32
    %810 = vector.broadcast %cst_353 : f32 to vector<16x16xf32>
    %811 = arith.addf %810, %809 : vector<16x16xf32>
    %812 = arith.divf %810, %811 : vector<16x16xf32>
    %813 = vector.extract_strided_slice %801 {offsets = [0, 44], sizes = [16, 16], strides = [1, 1]} : vector<16x122xf32> to vector<16x16xf32>
    %814 = vector.extract_strided_slice %801 {offsets = [0, 66], sizes = [16, 16], strides = [1, 1]} : vector<16x122xf32> to vector<16x16xf32>
    %815 = arith.addf %813, %814 : vector<16x16xf32>
    %c1_354 = arith.constant 1 : index
    %816 = memref.load %arg11[%c1_354] : memref<2xf32, #tpu.memory_space<smem>>
    %817 = vector.broadcast %816 : f32 to vector<16x16xf32>
    %818 = arith.addf %815, %817 : vector<16x16xf32>
    %819 = arith.negf %818 : vector<16x16xf32>
    %820 = math.exp %819 : vector<16x16xf32>
    %cst_355 = arith.constant 1.000000e+00 : f32
    %821 = vector.broadcast %cst_355 : f32 to vector<16x16xf32>
    %822 = arith.addf %821, %820 : vector<16x16xf32>
    %823 = arith.divf %821, %822 : vector<16x16xf32>
    %824 = arith.mulf %218, %812 : vector<16x16xf32>
    %825 = arith.mulf %521, %823 : vector<16x16xf32>
    %826 = arith.addf %824, %825 : vector<16x16xf32>
    %827 = arith.mulf %222, %812 : vector<16x16xf32>
    %828 = arith.mulf %525, %823 : vector<16x16xf32>
    %829 = arith.addf %827, %828 : vector<16x16xf32>
    %c0_356 = arith.constant 0 : index
    %830 = memref.load %arg13[%c0_356] : memref<4xf32, #tpu.memory_space<smem>>
    %831 = vector.broadcast %830 : f32 to vector<16x16xf32>
    %c0_357 = arith.constant 0 : index
    %832 = memref.load %arg12[%c0_357] : memref<8xf32, #tpu.memory_space<smem>>
    %833 = vector.broadcast %832 : f32 to vector<16x16xf32>
    %834 = arith.mulf %826, %833 : vector<16x16xf32>
    %835 = arith.addf %831, %834 : vector<16x16xf32>
    %c1_358 = arith.constant 1 : index
    %836 = memref.load %arg12[%c1_358] : memref<8xf32, #tpu.memory_space<smem>>
    %837 = vector.broadcast %836 : f32 to vector<16x16xf32>
    %838 = arith.mulf %829, %837 : vector<16x16xf32>
    %839 = arith.addf %835, %838 : vector<16x16xf32>
    %c0_359 = arith.constant 0 : index
    %c0_360 = arith.constant 0 : index
    %c0_361 = arith.constant 0 : index
    %c0_362 = arith.constant 0 : index
    %840 = vector.load %arg1[%c0_359, %c0_360, %c0_361, %c0_362] : memref<1x4x16x16xf32, #tpu.memory_space<vmem>>, vector<1x1x16x16xf32>
    %841 = vector.shape_cast %840 : vector<1x1x16x16xf32> to vector<16x16xf32>
    %842 = arith.mulf %841, %839 : vector<16x16xf32>
    %c0_363 = arith.constant 0 : index
    %c0_364 = arith.constant 0 : index
    %c0_365 = arith.constant 0 : index
    %c0_366 = arith.constant 0 : index
    %843 = vector.load %arg14[%c0_363, %c0_364, %c0_365, %c0_366] : memref<1x4x16x16xf32, #tpu.memory_space<vmem>>, vector<1x1x16x16xf32>
    %844 = vector.shape_cast %843 : vector<1x1x16x16xf32> to vector<16x16xf32>
    %845 = vector.shape_cast %842 : vector<16x16xf32> to vector<1x1x16x16xf32>
    tpu.vector_store %arg14[%c0_363, %c0_364, %c0_365, %c0_366], %845 {strides = array<i32>} : memref<1x4x16x16xf32, #tpu.memory_space<vmem>>, vector<1x1x16x16xf32>,
    %c1_367 = arith.constant 1 : index
    %846 = memref.load %arg13[%c1_367] : memref<4xf32, #tpu.memory_space<smem>>
    %847 = vector.broadcast %846 : f32 to vector<16x16xf32>
    %c2_368 = arith.constant 2 : index
    %848 = memref.load %arg12[%c2_368] : memref<8xf32, #tpu.memory_space<smem>>
    %849 = vector.broadcast %848 : f32 to vector<16x16xf32>
    %850 = arith.mulf %826, %849 : vector<16x16xf32>
    %851 = arith.addf %847, %850 : vector<16x16xf32>
    %c3_369 = arith.constant 3 : index
    %852 = memref.load %arg12[%c3_369] : memref<8xf32, #tpu.memory_space<smem>>
    %853 = vector.broadcast %852 : f32 to vector<16x16xf32>
    %854 = arith.mulf %829, %853 : vector<16x16xf32>
    %855 = arith.addf %851, %854 : vector<16x16xf32>
    %c0_370 = arith.constant 0 : index
    %c1_371 = arith.constant 1 : index
    %c0_372 = arith.constant 0 : index
    %c0_373 = arith.constant 0 : index
    %856 = vector.load %arg1[%c0_370, %c1_371, %c0_372, %c0_373] : memref<1x4x16x16xf32, #tpu.memory_space<vmem>>, vector<1x1x16x16xf32>
    %857 = vector.shape_cast %856 : vector<1x1x16x16xf32> to vector<16x16xf32>
    %858 = arith.mulf %857, %855 : vector<16x16xf32>
    %c0_374 = arith.constant 0 : index
    %c1_375 = arith.constant 1 : index
    %c0_376 = arith.constant 0 : index
    %c0_377 = arith.constant 0 : index
    %859 = vector.load %arg14[%c0_374, %c1_375, %c0_376, %c0_377] : memref<1x4x16x16xf32, #tpu.memory_space<vmem>>, vector<1x1x16x16xf32>
    %860 = vector.shape_cast %859 : vector<1x1x16x16xf32> to vector<16x16xf32>
    %861 = vector.shape_cast %858 : vector<16x16xf32> to vector<1x1x16x16xf32>
    tpu.vector_store %arg14[%c0_374, %c1_375, %c0_376, %c0_377], %861 {strides = array<i32>} : memref<1x4x16x16xf32, #tpu.memory_space<vmem>>, vector<1x1x16x16xf32>,
    %c2_378 = arith.constant 2 : index
    %862 = memref.load %arg13[%c2_378] : memref<4xf32, #tpu.memory_space<smem>>
    %863 = vector.broadcast %862 : f32 to vector<16x16xf32>
    %c4_379 = arith.constant 4 : index
    %864 = memref.load %arg12[%c4_379] : memref<8xf32, #tpu.memory_space<smem>>
    %865 = vector.broadcast %864 : f32 to vector<16x16xf32>
    %866 = arith.mulf %826, %865 : vector<16x16xf32>
    %867 = arith.addf %863, %866 : vector<16x16xf32>
    %c5_380 = arith.constant 5 : index
    %868 = memref.load %arg12[%c5_380] : memref<8xf32, #tpu.memory_space<smem>>
    %869 = vector.broadcast %868 : f32 to vector<16x16xf32>
    %870 = arith.mulf %829, %869 : vector<16x16xf32>
    %871 = arith.addf %867, %870 : vector<16x16xf32>
    %c0_381 = arith.constant 0 : index
    %c2_382 = arith.constant 2 : index
    %c0_383 = arith.constant 0 : index
    %c0_384 = arith.constant 0 : index
    %872 = vector.load %arg1[%c0_381, %c2_382, %c0_383, %c0_384] : memref<1x4x16x16xf32, #tpu.memory_space<vmem>>, vector<1x1x16x16xf32>
    %873 = vector.shape_cast %872 : vector<1x1x16x16xf32> to vector<16x16xf32>
    %874 = arith.mulf %873, %871 : vector<16x16xf32>
    %c0_385 = arith.constant 0 : index
    %c2_386 = arith.constant 2 : index
    %c0_387 = arith.constant 0 : index
    %c0_388 = arith.constant 0 : index
    %875 = vector.load %arg14[%c0_385, %c2_386, %c0_387, %c0_388] : memref<1x4x16x16xf32, #tpu.memory_space<vmem>>, vector<1x1x16x16xf32>
    %876 = vector.shape_cast %875 : vector<1x1x16x16xf32> to vector<16x16xf32>
    %877 = vector.shape_cast %874 : vector<16x16xf32> to vector<1x1x16x16xf32>
    tpu.vector_store %arg14[%c0_385, %c2_386, %c0_387, %c0_388], %877 {strides = array<i32>} : memref<1x4x16x16xf32, #tpu.memory_space<vmem>>, vector<1x1x16x16xf32>,
    %c3_389 = arith.constant 3 : index
    %878 = memref.load %arg13[%c3_389] : memref<4xf32, #tpu.memory_space<smem>>
    %879 = vector.broadcast %878 : f32 to vector<16x16xf32>
    %c6_390 = arith.constant 6 : index
    %880 = memref.load %arg12[%c6_390] : memref<8xf32, #tpu.memory_space<smem>>
    %881 = vector.broadcast %880 : f32 to vector<16x16xf32>
    %882 = arith.mulf %826, %881 : vector<16x16xf32>
    %883 = arith.addf %879, %882 : vector<16x16xf32>
    %c7_391 = arith.constant 7 : index
    %884 = memref.load %arg12[%c7_391] : memref<8xf32, #tpu.memory_space<smem>>
    %885 = vector.broadcast %884 : f32 to vector<16x16xf32>
    %886 = arith.mulf %829, %885 : vector<16x16xf32>
    %887 = arith.addf %883, %886 : vector<16x16xf32>
    %c0_392 = arith.constant 0 : index
    %c3_393 = arith.constant 3 : index
    %c0_394 = arith.constant 0 : index
    %c0_395 = arith.constant 0 : index
    %888 = vector.load %arg1[%c0_392, %c3_393, %c0_394, %c0_395] : memref<1x4x16x16xf32, #tpu.memory_space<vmem>>, vector<1x1x16x16xf32>
    %889 = vector.shape_cast %888 : vector<1x1x16x16xf32> to vector<16x16xf32>
    %890 = arith.mulf %889, %887 : vector<16x16xf32>
    %c0_396 = arith.constant 0 : index
    %c3_397 = arith.constant 3 : index
    %c0_398 = arith.constant 0 : index
    %c0_399 = arith.constant 0 : index
    %891 = vector.load %arg14[%c0_396, %c3_397, %c0_398, %c0_399] : memref<1x4x16x16xf32, #tpu.memory_space<vmem>>, vector<1x1x16x16xf32>
    %892 = vector.shape_cast %891 : vector<1x1x16x16xf32> to vector<16x16xf32>
    %893 = vector.shape_cast %890 : vector<16x16xf32> to vector<1x1x16x16xf32>
    tpu.vector_store %arg14[%c0_396, %c3_397, %c0_398, %c0_399], %893 {strides = array<i32>} : memref<1x4x16x16xf32, #tpu.memory_space<vmem>>, vector<1x1x16x16xf32>,
    return
  }
  func.func @transform_0(%arg0: i32) -> (i32, i32, i32, i32) {
    %c0_i32 = arith.constant 0 : i32
    %c0_i32_0 = arith.constant 0 : i32
    %c0_i32_1 = arith.constant 0 : i32
    %c0_i32_2 = arith.constant 0 : i32
    return %arg0, %c0_i32, %c0_i32_0, %c0_i32_1 : i32, i32, i32, i32
  }
  func.func @transform_1(%arg0: i32) -> (i32, i32) {
    %c0_i32 = arith.constant 0 : i32
    %c0_i32_0 = arith.constant 0 : i32
    %c0_i32_1 = arith.constant 0 : i32
    return %c0_i32, %c0_i32_0 : i32, i32
  }
  func.func @transform_2(%arg0: i32) -> (i32, i32) {
    %c0_i32 = arith.constant 0 : i32
    %c0_i32_0 = arith.constant 0 : i32
    %c0_i32_1 = arith.constant 0 : i32
    return %c0_i32, %c0_i32_0 : i32, i32
  }
  func.func @transform_3(%arg0: i32) -> (i32, i32) {
    %c0_i32 = arith.constant 0 : i32
    %c0_i32_0 = arith.constant 0 : i32
    %c0_i32_1 = arith.constant 0 : i32
    return %c0_i32, %c0_i32_0 : i32, i32
  }
  func.func @transform_4(%arg0: i32) -> i32 {
    %c0_i32 = arith.constant 0 : i32
    %c0_i32_0 = arith.constant 0 : i32
    return %c0_i32 : i32
  }
  func.func @transform_5(%arg0: i32) -> i32 {
    %c0_i32 = arith.constant 0 : i32
    %c0_i32_0 = arith.constant 0 : i32
    return %c0_i32 : i32
  }
  func.func @transform_6(%arg0: i32) -> i32 {
    %c0_i32 = arith.constant 0 : i32
    %c0_i32_0 = arith.constant 0 : i32
    return %c0_i32 : i32
  }
  func.func @transform_7(%arg0: i32) -> i32 {
    %c0_i32 = arith.constant 0 : i32
    %c0_i32_0 = arith.constant 0 : i32
    return %c0_i32 : i32
  }
  func.func @transform_8(%arg0: i32) -> i32 {
    %c0_i32 = arith.constant 0 : i32
    %c0_i32_0 = arith.constant 0 : i32
    return %c0_i32 : i32
  }
  func.func @transform_9(%arg0: i32) -> i32 {
    %c0_i32 = arith.constant 0 : i32
    %c0_i32_0 = arith.constant 0 : i32
    return %c0_i32 : i32
  }
  func.func @transform_10(%arg0: i32) -> i32 {
    %c0_i32 = arith.constant 0 : i32
    %c0_i32_0 = arith.constant 0 : i32
    return %c0_i32 : i32
  }
  func.func @transform_11(%arg0: i32) -> i32 {
    %c0_i32 = arith.constant 0 : i32
    %c0_i32_0 = arith.constant 0 : i32
    return %c0_i32 : i32
  }
  func.func @transform_12(%arg0: i32) -> i32 {
    %c0_i32 = arith.constant 0 : i32
    %c0_i32_0 = arith.constant 0 : i32
    return %c0_i32 : i32
  }
  func.func @transform_13(%arg0: i32) -> (i32, i32, i32, i32) {
    %c0_i32 = arith.constant 0 : i32
    %c0_i32_0 = arith.constant 0 : i32
    %c0_i32_1 = arith.constant 0 : i32
    %c0_i32_2 = arith.constant 0 : i32
    return %arg0, %c0_i32, %c0_i32_0, %c0_i32_1 : i32, i32, i32, i32
  }
}

</mosaic_0001>

<bundles_post_ra>
// kernel: tpu_custom_call.1
= control target key start
LH: loop header
LB: loop body
LE: loop exit
PB: predicated region body
PF: predicated region fallthrough
CT: control target
= control target key end

     0   :  { %s9192_s0 = inlined_call_operand.hbm [shape: f32[2,4,16,16], index: 0, kind: input, shape index: {}]   ;;  %s9193_s1 = inlined_call_operand.hbm [shape: f32[25,128], index: 1, kind: input, shape index: {}]   ;;  %s9194_s2 = inlined_call_operand.hbm [shape: f32[49,256], index: 2, kind: input, shape index: {}]   ;;  %s9195_s3 = inlined_call_operand.hbm [shape: f32[49,128], index: 3, kind: input, shape index: {}]   ;;  %s9196_s4 = inlined_call_operand.vmem [shape: f32[4], index: 4, kind: input, shape index: {}]   ;;  %s9197_s5 = inlined_call_operand.vmem [shape: f32[4], index: 5, kind: input, shape index: {}]   ;;  %s9198_s6 = inlined_call_operand.vmem [shape: f32[8], index: 6, kind: input, shape index: {}]   ;;  %s9199_s7 = inlined_call_operand.vmem [shape: f32[2], index: 7, kind: input, shape index: {}]   ;;  %s9200_s8 = inlined_call_operand.vmem [shape: f32[8], index: 8, kind: input, shape index: {}]   ;;  %s9201_s9 = inlined_call_operand.vmem [shape: f32[2], index: 9, kind: input, shape index: {}]   ;;  %s9202_s10 = inlined_call_operand.vmem [shape: f32[2], index: 10, kind: input, shape index: {}]   ;;  %s9203_s11 = inlined_call_operand.vmem [shape: f32[8], index: 11, kind: input, shape index: {}]   ;;  %s9204_s12 = inlined_call_operand.vmem [shape: f32[4], index: 12, kind: input, shape index: {}]   ;;  %s9205_s13 = inlined_call_operand.hbm [shape: f32[2,4,16,16], index: 13, kind: output, shape index: {}]  }
   0x1   :  { %9309 = sst [smem:[#allocation97_spill]] %s9192_s0 }
   0x2   :  { %9310 = sst [smem:[#allocation98_spill]] %s9193_s1 }
   0x3   :  { %9311 = sst [smem:[#allocation99_spill]] %s9194_s2 }
   0x4   :  { %9312 = sst [smem:[#allocation100_spill]] %s9195_s3 }
   0x5   :  { %9313 = sst [smem:[#allocation101_spill]] %s9196_s4 }
   0x6   :  { %9314 = sst [smem:[#allocation102_spill]] %s9197_s5 }
   0x7   :  { %9315 = sst [smem:[#allocation103_spill]] %s9198_s6 }
   0x8   :  { %9316 = sst [smem:[#allocation104_spill]] %s9199_s7 }
   0x9   :  { %9317 = sst [smem:[#allocation105_spill]] %s9200_s8 }
   0xa   :  { %9318 = sst [smem:[#allocation106_spill]] %s9201_s9 }
   0xb   :  { %9319 = sst [smem:[#allocation107_spill]] %s9205_s13 }
   0xc   :  { %18 = vsyncpa [#allocation6], 0 }
   0xd   :  { %20 = vsyncpa [#allocation6 + $0x1], 0 }
   0xe   :  { %21 = vsyncpa [#allocation10], 0 }
   0xf   :  { %22 = vsyncpa [#allocation13], 0 }
  0x10   :  { %23 = vsyncpa [#allocation8], 0 }
  0x11   :  { %24 = vsyncpa [#allocation16], 0 }
  0x12   :  { %25 = vsyncpa [#allocation19], 0 }
  0x13   :  { %26 = vsyncpa [#allocation22], 0 }
  0x14   :  { %27 = vsyncpa [#allocation25], 0 }
  0x15   :  { %28 = vsyncpa [#allocation7], 0 }
  0x16   :  { %30 = vsyncpa [#allocation7 + $0x1], 0  ;;  %s6172_s25 = smov 0   ;;  %s6174_s26 = smov 0  }
  0x17   :  { %s6176_s27 = smov 0   ;;  %s6178_s28 = smov 0  }
  0x18 LB: > { %s6044_s29 = smov [#allocation9]   ;;  %s6193_s14 = sadd.s32 4294967295, %s6042_s28   ;;  %s6042_s28 = sphi %s6178_s28, %s9567_s28   ;;  %s6038_s27 = sphi %s6176_s27, %s9566_s27   ;;  %s6034_s26 = sphi %s6174_s26, %s9565_s26   ;;  %s6030_s25 = sphi %s6172_s25, %s9564_s25  }
  0x19   : > { %s357_s30 = sshll.u32 %s6044_s29, 4  ;;  %p5273_p0 = scmp.ge.s32.totalorder %s6042_s28, 1  ;;  %s6198_s30 = int_to_ptr.vmem [resolvable:$true] %s357_s30 }
  0x1a   : > { %p9209_p1 = scmp.eq.s32.totalorder %s6193_s14, 0  ;;  %p345_p2 = scmp.lt.s32.totalorder %s6042_s28, 3 }
  0x1b   : > { %s9322_s5 = sld [smem:[#allocation102_spill]]  ;;  %s9324_s7 = sld [smem:[#allocation104_spill]] }
  0x1c   : > { %p6200_p3 = pnand %p5273_p0, %p345_p2  ;;  %s9325_s9 = sld [smem:[#allocation106_spill]] }
  0x1d   : > { %s9326_s1 = sld [smem:[#allocation98_spill]] }
  0x1e   : > { %s9320_s15 = scalar_select %p6200_p3, 1, 0 }
  0x1f   : > { %p5493_p5 = pneg %p6200_p3 }
  0x20   : > { %9321 = sst [smem:[#allocation37_spill]] %s9320_s15 }
  0x21   : > { %s408_s18 = sshll.u32 %s9322_s5, 4  ;;  %p6214_p6 = pnand %p5493_p5, %p9209_p1  ;;  %s6210_s18 = int_to_ptr.vmem [resolvable:$true] %s408_s18 }
  0x22   : > { %s430_s22 = sshll.u32 %s9324_s7, 4  ;;  %s452_s29 = sshll.u32 %s9325_s9, 4  ;;  %s6221_s22 = int_to_ptr.vmem [resolvable:$true] %s430_s22  ;;  %s453_s29 = int_to_ptr.vmem [resolvable:$true] %s452_s29 }
  0x23   : > { %s5699_s5 = scalar_lea.hbm %s9326_s1, 512  ;;  %p6234_p8 = pneg %p6214_p6 }
  0x24   : > { %p5700_p7 = scmp.ne.s32.totalorder %s9326_s1, %s5699_s5  ;;  %p5706_p11 = scmp.lt.u32.totalorder %s5699_s5, %s9326_s1 }
  0x26   : > { %p5702_p9 = pnand %p6234_p8, %p5700_p7 }
  0x28   : > { %p5703_p10 = pneg %p5702_p9 }
  0x2a   : > { %p5708_p12 = pnand %p5706_p11, %p5703_p10 }
  0x2c   : > { %5711 = shalt.err (!%p5708_p12)
}
  0x2d   : > { %s5712_s13 = scalar_lea.vmem %s6198_s30, 512  ;;  %p5720_p5 = scmp.lt.s32.totalorder %s6198_s30, %s6198_s30 }
  0x2e   : > { %p5713_p13 = scmp.ne.s32.totalorder %s6198_s30, %s5712_s13  ;;  %p5721_p4 = scmp.lt.s32.totalorder %s5712_s13, %s5712_s13 }
  0x30   : > { %p5715_p0 = pnand %p5713_p13, %p6234_p8  ;;  %p5722_p7 = por %p5721_p4, %p5720_p5 }
  0x32   : > { %p5716_p2 = pneg %p5715_p0 }
  0x34   : > { %p5723_p9 = pnand %p5722_p7, %p5716_p2 }
  0x36   : > { %5726 = shalt.err (!%p5723_p9)
}
  0x37   : > { %s9211_s15 = smov 128   ;;  %s9213_s5 = smov 8  }
  0x38   : > { %5496 = dma.hbm_to_vmem [thread:$0]  (!%p6214_p6), %s9326_s1, 512, %s6198_s30, [#allocation10], %s9211_s15, %s9211_s15, %s9213_s5  }
  0x39   : > { %s5727_s16 = scalar_lea.vmem %s6210_s18, 16  ;;  %p5735_p12 = scmp.lt.s32.totalorder %s6210_s18, %s6210_s18 }
  0x3a   : > { %p5728_p4 = scmp.ne.s32.totalorder %s6210_s18, %s5727_s16  ;;  %p5736_p13 = scmp.lt.s32.totalorder %s5727_s16, %s5727_s16 }
  0x3c   : > { %p5730_p10 = pnand %p5728_p4, %p6234_p8  ;;  %p5737_p0 = por %p5736_p13, %p5735_p12 }
  0x3e   : > { %p5731_p11 = pneg %p5730_p10 }
  0x40   : > { %p5738_p2 = pnand %p5737_p0, %p5731_p11 }
  0x42   : > { %5741 = shalt.err (!%p5738_p2)
}
  0x43   : > { %s6047_s17 = smov [#allocation15]   ;;  %s5742_s30 = scalar_lea.vmem %s6221_s22, 16 }
  0x44   : > { %5508 = dma.vmem_to_smem (!%p6214_p6), %s6210_s18, 16, %s6047_s17, [#allocation16]  }
  0x45   : > { %p5743_p5 = scmp.ne.s32.totalorder %s6221_s22, %s5742_s30  ;;  %p5750_p4 = scmp.lt.s32.totalorder %s6221_s22, %s6221_s22 }
  0x46   : > { %p5751_p10 = scmp.lt.s32.totalorder %s5742_s30, %s5742_s30 }
  0x47   : > { %p5745_p7 = pnand %p5743_p5, %p6234_p8 }
  0x48   : > { %p5752_p12 = por %p5751_p10, %p5750_p4 }
  0x49   : > { %p5746_p9 = pneg %p5745_p7 }
  0x4b   : > { %p5753_p11 = pnand %p5752_p12, %p5746_p9 }
  0x4d   : > { %5756 = shalt.err (!%p5753_p11)
}
  0x4e   : > { %s6048_s20 = smov [#allocation18]   ;;  %s5757_s18 = scalar_lea.vmem %s453_s29, 16 }
  0x4f   : > { %5514 = dma.vmem_to_smem (!%p6214_p6), %s6221_s22, 16, %s6048_s20, [#allocation19]  }
  0x50   : > { %p5758_p13 = scmp.ne.s32.totalorder %s453_s29, %s5757_s18  ;;  %p5765_p5 = scmp.lt.s32.totalorder %s453_s29, %s453_s29 }
  0x51   : > { %p5766_p7 = scmp.lt.s32.totalorder %s5757_s18, %s5757_s18 }
  0x52   : > { %p5760_p0 = pnand %p5758_p13, %p6234_p8 }
  0x53   : > { %p5767_p9 = por %p5766_p7, %p5765_p5 }
  0x54   : > { %p5761_p2 = pneg %p5760_p0 }
  0x56   : > { %p5768_p4 = pnand %p5767_p9, %p5761_p2 }
  0x58   : > { %5771 = shalt.err (!%p5768_p4)
}
  0x59   : > { %s6049_s23 = smov [#allocation21]   ;;  %s474_s16 = sshll.u32 %s9203_s11, 4  ;;  %s475_s16 = int_to_ptr.vmem [resolvable:$true] %s474_s16 }
  0x5a   : > { %5520 = dma.vmem_to_smem (!%p6214_p6), %s453_s29, 16, %s6049_s23, [#allocation22]  }
  0x5b   : > { %s5772_s17 = scalar_lea.vmem %s475_s16, 16  ;;  %p5780_p13 = scmp.lt.s32.totalorder %s475_s16, %s475_s16 }
  0x5c   : > { %p5773_p10 = scmp.ne.s32.totalorder %s475_s16, %s5772_s17  ;;  %p5781_p0 = scmp.lt.s32.totalorder %s5772_s17, %s5772_s17 }
  0x5e   : > { %p5775_p12 = pnand %p5773_p10, %p6234_p8  ;;  %p5782_p5 = por %p5781_p0, %p5780_p13 }
  0x60   : > { %p5776_p11 = pneg %p5775_p12 }
  0x62   : > { %p5783_p2 = pnand %p5782_p5, %p5776_p11 }
  0x64   : > { %5786 = shalt.err (!%p5783_p2)
}
  0x65   : > { %s6050_s30 = smov [#allocation24]   ;;  %s6051_s29 = smov [#allocation11]  }
  0x66   : > { %5526 = dma.vmem_to_smem (!%p6214_p6), %s475_s16, 16, %s6050_s30, [#allocation25]  }
  0x67   : > { %s370_s20 = sshll.u32 %s6051_s29, 4  ;;  %s9328_s2 = sld [smem:[#allocation99_spill]]  ;;  %s371_s20 = int_to_ptr.vmem [resolvable:$true] %s370_s20 }
  0x6d   : > { %s5787_s18 = scalar_lea.hbm %s9328_s2, 1792 }
  0x6e   : > { %p5788_p7 = scmp.ne.s32.totalorder %s9328_s2, %s5787_s18  ;;  %p5794_p10 = scmp.lt.u32.totalorder %s5787_s18, %s9328_s2 }
  0x70   : > { %p5790_p9 = pnand %p5788_p7, %p6234_p8 }
  0x72   : > { %p5791_p4 = pneg %p5790_p9 }
  0x74   : > { %p5796_p12 = pnand %p5794_p10, %p5791_p4 }
  0x76   : > { %5799 = shalt.err (!%p5796_p12)
}
  0x77   : > { %s5800_s16 = scalar_lea.vmem %s371_s20, 1792  ;;  %p5808_p5 = scmp.lt.s32.totalorder %s371_s20, %s371_s20 }
  0x78   : > { %p5801_p11 = scmp.ne.s32.totalorder %s371_s20, %s5800_s16  ;;  %p5809_p2 = scmp.lt.s32.totalorder %s5800_s16, %s5800_s16 }
  0x7a   : > { %p5803_p13 = pnand %p5801_p11, %p6234_p8  ;;  %p5810_p1 = por %p5809_p2, %p5808_p5 }
  0x7c   : > { %p5804_p0 = pneg %p5803_p13 }
  0x7e   : > { %p5811_p3 = pnand %p5810_p1, %p5804_p0 }
  0x80   : > { %5814 = shalt.err (!%p5811_p3)
}
  0x81   : > { %s6052_s30 = smov 256   ;;  %s6053_s29 = smov 16  }
  0x82   : > { %5499 = dma.hbm_to_vmem [thread:$0]  (!%p6214_p6), %s9328_s2, 1792, %s371_s20, [#allocation10], %s6052_s30, %s6052_s30, %s6053_s29  }
  0x83   : > { %s9329_s4 = sld [smem:[#allocation101_spill]]  ;;  %s6054_s24 = smov [#allocation12]  }
  0x84   : > { %s383_s17 = sshll.u32 %s6054_s24, 4  ;;  %s9330_s3 = sld [smem:[#allocation100_spill]]  ;;  %s384_s17 = int_to_ptr.vmem [resolvable:$true] %s383_s17 }
  0x89   : > { %s397_s22 = sshll.u32 %s9329_s4, 4  ;;  %s6312_s22 = int_to_ptr.vmem [resolvable:$true] %s397_s22 }
  0x8a   : > { %s5815_s5 = scalar_lea.hbm %s9330_s3, 896 }
  0x8b   : > { %p5816_p1 = scmp.ne.s32.totalorder %s9330_s3, %s5815_s5  ;;  %p5822_p9 = scmp.lt.u32.totalorder %s5815_s5, %s9330_s3 }
  0x8d   : > { %p5818_p3 = pnand %p5816_p1, %p6234_p8 }
  0x8f   : > { %p5819_p7 = pneg %p5818_p3 }
  0x91   : > { %p5824_p4 = pnand %p5822_p9, %p5819_p7 }
  0x93   : > { %5827 = shalt.err (!%p5824_p4)
}
  0x94   : > { %s5828_s29 = scalar_lea.vmem %s384_s17, 896  ;;  %p5836_p13 = scmp.lt.s32.totalorder %s384_s17, %s384_s17 }
  0x95   : > { %p5829_p10 = scmp.ne.s32.totalorder %s384_s17, %s5828_s29  ;;  %p5837_p0 = scmp.lt.s32.totalorder %s5828_s29, %s5828_s29 }
  0x97   : > { %p5831_p12 = pnand %p5829_p10, %p6234_p8  ;;  %p5838_p5 = por %p5837_p0, %p5836_p13 }
  0x99   : > { %p5832_p11 = pneg %p5831_p12 }
  0x9b   : > { %p5839_p2 = pnand %p5838_p5, %p5832_p11 }
  0x9d   : > { %5842 = shalt.err (!%p5839_p2)
}
  0x9e   : > { %s9331_s1 = smov 8   ;;  %s9332_s7 = smov 128  }
  0x9f   : > { %5502 = dma.hbm_to_vmem [thread:$0]  (!%p6214_p6), %s9330_s3, 896, %s384_s17, [#allocation13], %s9332_s7, %s9332_s7, %s9331_s1  }
  0xa0   : > { %s5843_s21 = scalar_lea.vmem %s6312_s22, 16  ;;  %p5851_p9 = scmp.lt.s32.totalorder %s6312_s22, %s6312_s22 }
  0xa1   : > { %p5844_p1 = scmp.ne.s32.totalorder %s6312_s22, %s5843_s21  ;;  %p5852_p4 = scmp.lt.s32.totalorder %s5843_s21, %s5843_s21 }
  0xa3   : > { %p5846_p3 = pnand %p5844_p1, %p6234_p8  ;;  %p5853_p10 = por %p5852_p4, %p5851_p9 }
  0xa5   : > { %p5847_p7 = pneg %p5846_p3 }
  0xa7   : > { %p5854_p12 = pnand %p5853_p10, %p5847_p7 }
  0xa9   : > { %5857 = shalt.err (!%p5854_p12)
}
  0xaa   : > { %s6055_s13 = smov [#allocation14]   ;;  %s9333_s6 = sld [smem:[#allocation103_spill]] }
  0xab   : > { %5505 = dma.vmem_to_smem (!%p6214_p6), %s6312_s22, 16, %s6055_s13, [#allocation8]  }
  0xac   : > { %s9334_s8 = sld [smem:[#allocation105_spill]] }
  0xb0   : > { %s419_s24 = sshll.u32 %s9333_s6, 4  ;;  %s420_s24 = int_to_ptr.vmem [resolvable:$true] %s419_s24 }
  0xb1   : > { %s5858_s30 = scalar_lea.vmem %s420_s24, 16  ;;  %p5866_p5 = scmp.lt.s32.totalorder %s420_s24, %s420_s24 }
  0xb2   : > { %s441_s20 = sshll.u32 %s9334_s8, 4  ;;  %p5859_p11 = scmp.ne.s32.totalorder %s420_s24, %s5858_s30  ;;  %s442_s20 = int_to_ptr.vmem [resolvable:$true] %s441_s20 }
  0xb3   : > { %p5867_p2 = scmp.lt.s32.totalorder %s5858_s30, %s5858_s30 }
  0xb4   : > { %p5861_p13 = pnand %p5859_p11, %p6234_p8 }
  0xb5   : > { %p5868_p1 = por %p5867_p2, %p5866_p5 }
  0xb6   : > { %p5862_p0 = pneg %p5861_p13 }
  0xb8   : > { %p5869_p3 = pnand %p5868_p1, %p5862_p0 }
  0xba   : > { %5872 = shalt.err (!%p5869_p3)
}
  0xbb   : > { %s6056_s22 = smov [#allocation17]   ;;  %s5873_s29 = scalar_lea.vmem %s442_s20, 16 }
  0xbc   : > { %5511 = dma.vmem_to_smem (!%p6214_p6), %s420_s24, 16, %s6056_s22, [#allocation16]  }
  0xbd   : > { %p5874_p7 = scmp.ne.s32.totalorder %s442_s20, %s5873_s29  ;;  %p5881_p10 = scmp.lt.s32.totalorder %s442_s20, %s442_s20 }
  0xbe   : > { %p5882_p12 = scmp.lt.s32.totalorder %s5873_s29, %s5873_s29 }
  0xbf   : > { %p5876_p9 = pnand %p5874_p7, %p6234_p8 }
  0xc0   : > { %p5883_p11 = por %p5882_p12, %p5881_p10 }
  0xc1   : > { %p5877_p4 = pneg %p5876_p9 }
  0xc3   : > { %p5884_p13 = pnand %p5883_p11, %p5877_p4 }
  0xc5   : > { %5887 = shalt.err (!%p5884_p13)
}
  0xc6   : > { %s6057_s15 = smov [#allocation20]   ;;  %s463_s13 = sshll.u32 %s9202_s10, 4  ;;  %s464_s13 = int_to_ptr.vmem [resolvable:$true] %s463_s13 }
  0xc7   : > { %5517 = dma.vmem_to_smem (!%p6214_p6), %s442_s20, 16, %s6057_s15, [#allocation19]  }
  0xc8   : > { %s485_s24 = sshll.u32 %s9204_s12, 4  ;;  %s5888_s17 = scalar_lea.vmem %s464_s13, 16  ;;  %s486_s24 = int_to_ptr.vmem [resolvable:$true] %s485_s24 }
  0xc9   : > { %p5889_p0 = scmp.ne.s32.totalorder %s464_s13, %s5888_s17  ;;  %p5896_p1 = scmp.lt.s32.totalorder %s464_s13, %s464_s13 }
  0xca   : > { %p5897_p3 = scmp.lt.s32.totalorder %s5888_s17, %s5888_s17 }
  0xcb   : > { %p5891_p5 = pnand %p5889_p0, %p6234_p8 }
  0xcc   : > { %p5898_p7 = por %p5897_p3, %p5896_p1 }
  0xcd   : > { %p5892_p2 = pneg %p5891_p5 }
  0xcf   : > { %p5899_p9 = pnand %p5898_p7, %p5892_p2 }
  0xd1   : > { %5902 = shalt.err (!%p5899_p9)
}
  0xd2   : > { %s6058_s16 = smov [#allocation23]   ;;  %s5903_s20 = scalar_lea.vmem %s486_s24, 16 }
  0xd3   : > { %5523 = dma.vmem_to_smem (!%p6214_p6), %s464_s13, 16, %s6058_s16, [#allocation22]  }
  0xd4   : > { %p5904_p4 = scmp.ne.s32.totalorder %s486_s24, %s5903_s20  ;;  %p5911_p11 = scmp.lt.s32.totalorder %s486_s24, %s486_s24 }
  0xd5   : > { %p5912_p13 = scmp.lt.s32.totalorder %s5903_s20, %s5903_s20 }
  0xd6   : > { %p5906_p10 = pnand %p5904_p4, %p6234_p8 }
  0xd7   : > { %p5913_p0 = por %p5912_p13, %p5911_p11 }
  0xd8   : > { %p5907_p12 = pneg %p5906_p10 }
  0xda   : > { %p5914_p5 = pnand %p5913_p0, %p5907_p12 }
  0xdc   : > { %5917 = shalt.err (!%p5914_p5)
}
  0xdd   : > { %s6059_s30 = smov [#allocation26]   ;;  %s5272_s0 = sadd.s32 4294967294, %s6042_s28  }
  0xde   : > { %5529 = dma.vmem_to_smem (!%p6214_p6), %s486_s24, 16, %s6059_s30, [#allocation25]  }
  0xdf   : > { %s6374_s22 = sadd.s32 1, %s6042_s28   ;;  %s43_s29 = sadd.s32 1, %s6038_s27 }
  0xe0   : > { %s40_s19 = ssub.s32 %s6042_s28, %s6374_s22  ;;  %p50_p2 = scmp.ne.s32.totalorder %s6038_s27, %s6034_s26 }
  0xe1   : > { %p41_p8 = scmp.eq.s32.totalorder %s40_s19, 0  ;;  %p51_p1 = scmp.eq.s32.totalorder %s6042_s28, 0 }
  0xe2   : > { %p56_p3 = scmp.ne.s32.totalorder %s6034_s26, %s6030_s25  ;;  %p9336_p9 = scmp.eq.s32.totalorder %s6193_s14, 0 }
  0xe3   : > { %s6385_s15 = scalar_select %p41_p8, %s6038_s27, %s43_s29  }
  0xe4   : > { %p6387_p7 = por %p51_p1, %p50_p2  ;;  %p6393_p6 = por %p9336_p9, %p56_p3 }
  0xe5   : > { %p332_p4 = scmp.eq.s32.totalorder %s6193_s14, 1  ;;  %p338_p10 = scmp.eq.s32.totalorder %s5272_s0, 1 }
  0xe6   : > { %p5550_p12 = scmp.lt.s32.totalorder %s6042_s28, 2  ;;  %s496_s13 = sand.u32 1, %s6038_s27  }
  0xe7   : > { %p6400_p11 = por %p332_p4, %p50_p2  ;;  %p6404_p13 = por %p338_p10, %p56_p3 }
  0xe8   : > { %s5287_s24 = sshll.u32 %s496_s13, 6  ;;  %s5439_s17 = sshll.u32 %s6042_s28, 10 }
  0xe9   : > { %s9338_s18 = scalar_select %p6400_p11, 1, 0 }
  0xea   : > { %s9339_s23 = scalar_select %p6404_p13, 1, 0 }
  0xeb   : > { %s9340_s30 = sld [smem:[#allocation97_spill]]  ;;  %s500_s0 = scalar_lea.vmem [#allocation5], %s5287_s24 }
  0xec   : > { %s507_s29 = sshll.u32 %s500_s0, 4  ;;  %p6418_p0 = pnand %p5550_p12, %p6387_p7  ;;  %s6414_s29 = int_to_ptr.vmem [resolvable:$true] %s507_s29 }
  0xed   : > { %s6422_s3 = scalar_lea.sflag [#allocation6], %s496_s13 }
  0xee   : > { %p5920_p8 = pneg %p6418_p0 }
  0xf1   : > { %s6412_s19 = scalar_lea.hbm %s9340_s30, %s5439_s17  ;;  %s5923_s5 = scalar_lea.hbm %s9340_s30, 2048 }
  0xf2   : > { %s5918_s16 = scalar_lea.hbm %s6412_s19, 1024  ;;  %p5924_p3 = scmp.lt.u32.totalorder %s6412_s19, %s9340_s30 }
  0xf3   : > { %p5919_p5 = scmp.ne.s32.totalorder %s6412_s19, %s5918_s16  ;;  %p5925_p7 = scmp.lt.u32.totalorder %s5923_s5, %s5918_s16 }
  0xf4   : > { %p5927_p4 = scmp.lt.u32.totalorder %s5918_s16, %s6412_s19 }
  0xf5   : > { %p5921_p2 = pnand %p5920_p8, %p5919_p5  ;;  %p5926_p9 = por %p5925_p7, %p5924_p3 }
  0xf7   : > { %p5922_p1 = pneg %p5921_p2  ;;  %p5928_p10 = por %p5927_p4, %p5926_p9 }
  0xf9   : > { %p5929_p12 = pnand %p5928_p10, %p5922_p1 }
  0xfb   : > { %5932 = shalt.err (!%p5929_p12)
}
  0xfc   : > { %s5933_s13 = scalar_lea.vmem %s6414_s29, 1024  ;;  %s6060_s24 = smov [#allocation5]  }
  0xfd   : > { %p5934_p5 = scmp.ne.s32.totalorder %s6414_s29, %s5933_s13  ;;  %s5938_s17 = sshll.u32 %s6060_s24, 4  ;;  %s5939_s17 = int_to_ptr.vmem [resolvable:$false] %s5938_s17 }
  0xfe   : > { %s5940_s20 = scalar_lea.vmem %s5939_s17, 2048  ;;  %p5941_p11 = scmp.lt.s32.totalorder %s6414_s29, %s5939_s17 }
  0xff   : > { %p5936_p2 = pnand %p5934_p5, %p5920_p8  ;;  %p5942_p3 = scmp.lt.s32.totalorder %s5940_s20, %s5933_s13 }
 0x101   : > { %p5937_p13 = pneg %p5936_p2  ;;  %p5943_p7 = por %p5942_p3, %p5941_p11 }
 0x103   : > { %p5944_p9 = pnand %p5943_p7, %p5937_p13 }
 0x105   : > { %5947 = shalt.err (!%p5944_p9)
}
 0x106   : > { %5533 = dma.hbm_to_vmem [thread:$0]  (!%p6418_p0), %s6412_s19, 1024, %s6414_s29, %s6422_s3, %s9332_s7, %s9332_s7, %s9331_s1  }
 0x107   : > { %s9342_s16 = sld [smem:[#allocation37_spill]] }
 0x10d   : > { %p9343_p8 = scmp.ne.s32.totalorder %s9342_s16, 0 }
 0x10f   : > { %519 = sbr.rel (%p9343_p8) target bundleno = 3557 (0xde5), region = 72 }
 0x116   : > { %s6456_s5 = sand.u32 1, %s6034_s26  }
 0x117   : > { %s9216_s0 = sshll.u32 %s6456_s5, 6  ;;  %s522_s13 = scalar_lea.sflag [#allocation6], %s6456_s5 }
 0x118   : > { %s6462_s2 = scalar_lea.vmem [#allocation5], %s9216_s0 }
 0x119   : > { %5993 = dma.done.wait (%p6393_p6), %s522_s13, 1024  }
 0x11a   : > { %5995 = vsyncadd (%p6393_p6), %s522_s13, 4294966272  ;;  %p9344_p11 = scmp.eq.s32.totalorder %s6193_s14, 0 }
 0x11c   : > { %5997 = dma.done.wait (%p9344_p11), [#allocation10], 2304   ;;  %p9345_p13 = pmov %p9344_p11 }
 0x11d   : > { %p9346_p0 = pmov %p9344_p11 }
 0x11e   : > { %5999 = vsyncadd (%p9345_p13), [#allocation10], 4294964992 }
 0x11f   : > { %6001 = dma.done.wait (%p9346_p0), [#allocation13], 896   ;;  %p9347_p1 = pmov %p9346_p0 }
 0x120   : > { %p9348_p4 = pmov %p9346_p0 }
 0x121   : > { %6003 = vsyncadd (%p9347_p1), [#allocation13], 4294966400 }
 0x122   : > { %6005 = dma.done.wait (%p9348_p4), [#allocation8], 16   ;;  %p9349_p10 = pmov %p9346_p0 }
 0x123   : > { %p9350_p6 = pmov %p9346_p0 }
 0x124   : > { %6007 = vsyncadd (%p9349_p10), [#allocation8], 4294967280 }
 0x125   : > { %6009 = dma.done.wait (%p9350_p6), [#allocation16], 32   ;;  %p9351_p12 = pmov %p9346_p0 }
 0x126   : > { %p9352_p5 = pmov %p9346_p0 }
 0x127   : > { %6011 = vsyncadd (%p9351_p12), [#allocation16], 4294967264 }
 0x128   : > { %6013 = dma.done.wait (%p9352_p5), [#allocation19], 32   ;;  %p9353_p2 = pmov %p9346_p0 }
 0x129   : > { %p9354_p3 = pmov %p9346_p0 }
 0x12a   : > { %6015 = vsyncadd (%p9353_p2), [#allocation19], 4294967264 }
 0x12b   : > { %6017 = dma.done.wait (%p9354_p3), [#allocation22], 32   ;;  %p9355_p7 = pmov %p9346_p0 }
 0x12c   : > { %p9356_p9 = pmov %p9346_p0 }
 0x12d   : > { %6019 = vsyncadd (%p9355_p7), [#allocation22], 4294967264 }
 0x12e   : > { %6021 = dma.done.wait (%p9356_p9), [#allocation25], 32   ;;  %p9357_p8 = pmov %p9346_p0 }
 0x130   : > { %6023 = vsyncadd (%p9357_p8), [#allocation25], 4294967264 }
 0x131   : > { %578 = sfence }
 0x132   : > { %v5305_v0 = vld [vmem:[%s6462_s2 + $0x10] sm:$0xff]  ;;  %v634_v1 = vld [vmem:[%s6462_s2] sm:$0xff]  ;;  %s6061_s3 = smov 22   ;;  %s9225_s1 = smov 2   ;;  %v5306_v2 = vld [vmem:[%s6462_s2 + $0x18] sm:$0xff]  ;;  %v6063_v4 = vmov 0.0  }
 0x133   : > { %652 = vrot.lane.b32.xlu1 %v5305_v0, %s6061_s3  ;;  %638 = vrot.lane.b32.xlu0 %v634_v1, %s9225_s1  ;;  %v635_v3 = vld [vmem:[%s6462_s2 + $0x8] sm:$0xff]  ;;  %617 = vst [vmem:[#allocation2] sm:$0x3] %v6063_v4  ;;  %618 = vst [vmem:[#allocation2 + $0x12] sm:$0x3] %v6063_v4  ;;  %vm619_vm0 = vcmask 15360  }
 0x134   : > { %1162 = vst [vmem:[#allocation3] sm:$0xff] %v6063_v4  ;;  %1163 = vst [vmem:[#allocation3 + $0x8] sm:$0xff] %v6063_v4  ;;  %v5308_v5 = vld [vmem:[%s6462_s2 + $0x28] sm:$0xff]  ;;  %v5307_v6 = vld [vmem:[%s6462_s2 + $0x20] sm:$0xff]  ;;  %s6064_s7 = smov 42   ;;  %vm622_vm1 = vcmask 179344  }
 0x135   : > { %1164 = vst [vmem:[#allocation3 + $0x10] sm:$0x1] %v6063_v4  ;;  %1165 = vst [vmem:[#allocation3 + $0x18] sm:$0x1] %v6063_v4  ;;  %vm625_vm2 = vcmask 343344   ;;  %v5310_v7 = vld [vmem:[%s6462_s2 + $0x38] sm:$0xff] }
 0x136   : > { %1166 = vst [vmem:[#allocation3 + $0x30] sm:$0xfe] %v6063_v4  ;;  %1167 = vst [vmem:[#allocation3 + $0x38] sm:$0xfe] %v6063_v4  ;;  %v5309_v8 = vld [vmem:[%s6462_s2 + $0x30] sm:$0xff]  ;;  %vm628_vm3 = vcmask 507344  }
 0x137   : > { %1168 = vst [vmem:[#allocation3 + $0x40] sm:$0x3] %v6063_v4  ;;  %1169 = vst [vmem:[#allocation3 + $0x48] sm:$0x3] %v6063_v4  ;;  %654 = vrot.lane.b32.xlu1 %v5306_v2, %s6061_s3  ;;  %640 = vrot.lane.b32.xlu0 %v635_v3, %s9225_s1  ;;  %vm631_vm4 = vcmask 1048176   ;;  %s6065_s21 = smov 62  }
 0x138   : > { %1196 = vst [vmem:[#allocation3 + $0x18] sm:$0xfe] %v6063_v4  ;;  %1199 = vst [vmem:[#allocation3 + $0x28] sm:$0xff] %v6063_v4  ;;  %v5313_v9 = vld [vmem:[#allocation9 + $0x2] ss:$0 sm:$0xff]  ;;  %s9227_s19 = smov 1  }
 0x139   : > { %1202 = vst [vmem:[#allocation3 + $0x38] sm:$0x1] %v6063_v4  ;;  %3909 = vst [vmem:[#allocation4] sm:$0x7] %v6063_v4  ;;  %v5312_v10 = vld [vmem:[#allocation9 + $0x1] ss:$0 sm:$0xff] }
 0x13a   : > { %3910 = vst [vmem:[#allocation4 + $0x13] sm:$0x7] %v6063_v4  ;;  %620 = vst.msk [vmem:[#allocation2 + $0x2] sm:$0xff] %vm619_vm0, %v6063_v4  ;;  %v5315_v11 = vld [vmem:[#allocation9 + $0x4] ss:$0 sm:$0xff]  ;;  %s9223_s29 = smov 4  }
 0x13b   : > { %621 = vst.msk [vmem:[#allocation2 + $0xa] sm:$0xff] %vm619_vm0, %v6063_v4  ;;  %668 = vrot.lane.b32.xlu1 %v5308_v5, %s6064_s7  ;;  %666 = vrot.lane.b32.xlu0 %v5307_v6, %s6064_s7  ;;  %v5314_v12 = vld [vmem:[#allocation9 + $0x3] ss:$0 sm:$0xff]  ;;  %s9233_s24 = smov 3   ;;  %v5318_v13 = vld [vmem:[#allocation9 + $0x7] ss:$0 sm:$0xff] }
 0x13c   : > { %623 = vst.msk [vmem:[#allocation2 + $0x2] sm:$0xff] %vm622_vm1, %v6063_v4  ;;  %624 = vst.msk [vmem:[#allocation2 + $0xa] sm:$0xff] %vm622_vm1, %v6063_v4  ;;  %v5317_v14 = vld [vmem:[#allocation9 + $0x6] ss:$0 sm:$0xff]  ;;  %v5320_v15 = vld [vmem:[#allocation9 + $0x9] ss:$0 sm:$0xff] }
 0x13d   : > { %626 = vst.msk [vmem:[#allocation2 + $0x2] sm:$0xff] %vm625_vm2, %v6063_v4  ;;  %627 = vst.msk [vmem:[#allocation2 + $0xa] sm:$0xff] %vm625_vm2, %v6063_v4  ;;  %v5319_v16 = vld [vmem:[#allocation9 + $0x8] ss:$0 sm:$0xff]  ;;  %v5323_v17 = vld [vmem:[#allocation9 + $0xc] ss:$0 sm:$0xff] }
 0x13e   : > { %629 = vst.msk [vmem:[#allocation2 + $0x2] sm:$0xff] %vm628_vm3, %v6063_v4  ;;  %630 = vst.msk [vmem:[#allocation2 + $0xa] sm:$0xff] %vm628_vm3, %v6063_v4  ;;  %v5322_v18 = vld [vmem:[#allocation9 + $0xb] ss:$0 sm:$0xff]  ;;  %v5325_v19 = vld [vmem:[#allocation9 + $0xe] ss:$0 sm:$0xff] }
 0x13f   : > { %682 = vrot.lane.b32.xlu1 %v5310_v7, %s6065_s21  ;;  %680 = vrot.lane.b32.xlu0 %v5309_v8, %s6065_s21  ;;  %632 = vst.msk [vmem:[#allocation2 + $0x2] sm:$0xff] %vm631_vm4, %v6063_v4  ;;  %633 = vst.msk [vmem:[#allocation2 + $0xa] sm:$0xff] %vm631_vm4, %v6063_v4  ;;  %v5324_v20 = vld [vmem:[#allocation9 + $0xd] ss:$0 sm:$0xff]  ;;  %v5328_v21 = vld [vmem:[#allocation9 + $0x11] ss:$0 sm:$0xff] }
 0x140   : > { %v5327_v22 = vld [vmem:[#allocation9 + $0x10] ss:$0 sm:$0xff]  ;;  %v5330_v23 = vld [vmem:[#allocation9 + $0x13] ss:$0 sm:$0xff]  ;;  %v5329_v24 = vld [vmem:[#allocation9 + $0x12] ss:$0 sm:$0xff] }
 0x141   : > { %v5333_v25 = vld [vmem:[#allocation9 + $0x16] ss:$0 sm:$0xff]  ;;  %v5332_v26 = vld [vmem:[#allocation9 + $0x15] ss:$0 sm:$0xff]  ;;  %v5335_v27 = vld [vmem:[#allocation9 + $0x18] ss:$0 sm:$0xff] }
 0x142   : > { %v5334_v28 = vld [vmem:[#allocation9 + $0x17] ss:$0 sm:$0xff]  ;;  %vm644_vm5 = vcmask 146448   ;;  %vm658_vm6 = vcmask 310448   ;;  %vm672_vm7 = vcmask 474448   ;;  %vm686_vm8 = vcmask 638448  }
 0x143   : > { %725 = vrot.lane.b32.xlu1 %v5313_v9, %s9225_s1  ;;  %704 = vrot.lane.b32.xlu0 %v5312_v10, %s9227_s19  ;;  %s9221_s17 = smov 127   ;;  %s9219_s20 = smov 126   ;;  %vm1428_vm9 = vcmask 23552   ;;  %vm1172_vm10 = vcmask 72704   ;;  %vm1470_vm11 = vcmask 48128   ;;  %vm1553_vm12 = vcmask 97280  }
 0x144   : > { %s9229_s16 = smov 125   ;;  %s9217_s13 = smov 124   ;;  %3911 = vst.msk [vmem:[#allocation4 + $0x3] sm:$0xff] %vm1428_vm9, %v6063_v4  ;;  %3912 = vst.msk [vmem:[#allocation4 + $0xb] sm:$0xff] %vm1428_vm9, %v6063_v4  ;;  %vm9293_vm13 = vcmask 121856   ;;  %vm1170_vm14 = vcmask 72705  }
 0x145   : > { %s6673_s3 = sld [smem:[#allocation14 + $0x1]]  ;;  %s6675_s7 = sld [smem:[#allocation14 + $0x2]]  ;;  %1173 = vst.msk [vmem:[#allocation3 + $0x20] sm:$0xff] %vm1172_vm10, %v6063_v4  ;;  %vm1176_vm15 = vcmask 351433   ;;  %vm1182_vm0 = vcmask 630233   ;;  %vm1188_vm1 = vcmask 909033  }
 0x146   : > { %s6677_s21 = sld [smem:[#allocation14 + $0x3]]  ;;  %s6679_s0 = sld [smem:[#allocation17 + $0x1]]  ;;  %1171 = vst.msk [vmem:[#allocation3 + $0x10] sm:$0xfe] %vm1170_vm14, %v6063_v4  ;;  %vm1194_vm2 = vcmask 1048569   ;;  %vm1174_vm3 = vcmask 65536  }
 0x147   : > { %767 = vrot.lane.b32.xlu1 %v5315_v11, %s9223_s29  ;;  %746 = vrot.lane.b32.xlu0 %v5314_v12, %s9233_s24  ;;  %s9249_s4 = smov 15   ;;  %1177 = vst.msk [vmem:[#allocation3 + $0x10] sm:$0xfe] %vm1176_vm15, %v6063_v4  ;;  %vm1180_vm4 = vcmask 344264   ;;  %s9373_s6 = smov 12   ;;  %vm1213_vm14 = vcmask 1040384  }
 0x148   : > { %1183 = vst.msk [vmem:[#allocation3 + $0x10] sm:$0xfe] %vm1182_vm0, %v6063_v4  ;;  %vm1226_vm15 = vcmask 203849   ;;  %vm1230_vm0 = vcmask 196680   ;;  %s9392_s8 = smov 51   ;;  %s8651_s9 = sld [smem:[#allocation21 + $0x1]] }
 0x149   : > { %1189 = vst.msk [vmem:[#allocation3 + $0x10] sm:$0xfe] %vm1188_vm1, %v6063_v4  ;;  %vm1682_vm1 = vcmask 1044480   ;;  %p9561_p13 = scmp.ne.s32.totalorder %s9338_s18, 0 }
 0x14a   : > { %1195 = vst.msk [vmem:[#allocation3 + $0x10] sm:$0xfe] %vm1194_vm2, %v6063_v4  ;;  %vm1178_vm2 = vcmask 351432  }
 0x14b   : > { %820 = vrot.lane.b32.xlu1 %v5318_v13, %s9225_s1  ;;  %799 = vrot.lane.b32.xlu0 %v5317_v14, %s9227_s19  ;;  %1175 = vst.msk [vmem:[#allocation3 + $0x30] sm:$0x1] %vm1174_vm3, %v6063_v4  ;;  %vm1184_vm3 = vcmask 630232  }
 0x14c   : > { %1181 = vst.msk [vmem:[#allocation3 + $0x30] sm:$0x1] %vm1180_vm4, %v6063_v4  ;;  %vm1190_vm4 = vcmask 909032  }
 0x14f   : > { %862 = vrot.lane.b32.xlu1 %v5320_v15, %s9223_s29  ;;  %841 = vrot.lane.b32.xlu0 %v5319_v16, %s9233_s24 }
 0x153   : > { %915 = vrot.lane.b32.xlu1 %v5323_v17, %s9225_s1  ;;  %894 = vrot.lane.b32.xlu0 %v5322_v18, %s9227_s19 }
 0x157   : > { %957 = vrot.lane.b32.xlu1 %v5325_v19, %s9223_s29  ;;  %936 = vrot.lane.b32.xlu0 %v5324_v20, %s9233_s24 }
 0x15b   : > { %1010 = vrot.lane.b32.xlu1 %v5328_v21, %s9225_s1  ;;  %989 = vrot.lane.b32.xlu0 %v5327_v22, %s9227_s19 }
 0x15f   : > { %1052 = vrot.lane.b32.xlu1 %v5330_v23, %s9223_s29  ;;  %1031 = vrot.lane.b32.xlu0 %v5329_v24, %s9233_s24 }
 0x163   : > { %1105 = vrot.lane.b32.xlu1 %v5333_v25, %s9225_s1  ;;  %1084 = vrot.lane.b32.xlu0 %v5332_v26, %s9227_s19  ;;  %s6689_s1 = sld [smem:[#allocation17 + $0x7]]  ;;  %s9231_s19 = smov 6  }
 0x167   : > { %1147 = vrot.lane.b32.xlu1 %v5335_v27, %s9223_s29  ;;  %1126 = vrot.lane.b32.xlu0 %v5334_v28, %s9233_s24  ;;  %s6687_s29 = sld [smem:[#allocation17 + $0x3]] }
 0x1a5   : > { %v653_v29 = vpop.permute.xlu1 %652  ;;  %v639_v30 = vpop.permute.xlu0 %638 }
 0x1a6   : > { %645 = vst.msk [vmem:[#allocation2 + $0x2] sm:$0xff] %vm644_vm5, %v639_v30 }
 0x1a7   : > { %659 = vst.msk [vmem:[#allocation2 + $0x2] sm:$0xff] %vm658_vm6, %v653_v29 }
 0x1a9   : > { %v655_v31 = vpop.permute.xlu1 %654  ;;  %v641_v32 = vpop.permute.xlu0 %640 }
 0x1aa   : > { %646 = vst.msk [vmem:[#allocation2 + $0xa] sm:$0xff] %vm644_vm5, %v641_v32  ;;  %vm1186_vm5 = vcmask 623064  }
 0x1ab   : > { %660 = vst.msk [vmem:[#allocation2 + $0xa] sm:$0xff] %vm658_vm6, %v655_v31  ;;  %vm1192_vm6 = vcmask 901864  }
 0x1ac   : > { %1187 = vst.msk [vmem:[#allocation3 + $0x30] sm:$0x1] %vm1186_vm5, %v6063_v4  ;;  %vm1197_vm5 = vcmask 1048568  }
 0x1ad   : > { %v669_v33 = vpop.permute.xlu1 %668  ;;  %v667_v34 = vpop.permute.xlu0 %666  ;;  %1193 = vst.msk [vmem:[#allocation3 + $0x30] sm:$0x1] %vm1192_vm6, %v6063_v4  ;;  %vm1262_vm6 = vcmask 482649  }
 0x1ae   : > { %674 = vst.msk [vmem:[#allocation2 + $0xa] sm:$0xff] %vm672_vm7, %v669_v33  ;;  %673 = vst.msk [vmem:[#allocation2 + $0x2] sm:$0xff] %vm672_vm7, %v667_v34  ;;  %vm1200_vm7 = vcmask 1041400  }
 0x1af   : > { %1201 = vst.msk [vmem:[#allocation3 + $0x30] sm:$0x1] %vm1200_vm7, %v6063_v4  ;;  %vm1314_vm7 = vcmask 761449  }
 0x1b1   : > { %v683_v35 = vpop.permute.xlu1 %682  ;;  %v681_v36 = vpop.permute.xlu0 %680 }
 0x1b2   : > { %688 = vst.msk [vmem:[#allocation2 + $0xa] sm:$0xff] %vm686_vm8, %v683_v35  ;;  %687 = vst.msk [vmem:[#allocation2 + $0x2] sm:$0xff] %vm686_vm8, %v681_v36  ;;  %v1406_v36 = vlaneseq  ;;  %vm1637_vm8 = vcmask 146432  }
 0x1b5   : > { %v705_v39 = vpop.permute.xlu0 %704  ;;  %v726_v42 = vpop.permute.xlu1 %725 }
 0x1b9   : > { %v6551_v37 = vld [vmem:[#allocation2] sm:$0xff]  ;;  %v6553_v38 = vld [vmem:[#allocation2 + $0x8] sm:$0xff]  ;;  %v747_v45 = vpop.permute.xlu0 %746  ;;  %v768_v48 = vpop.permute.xlu1 %767 }
 0x1ba   : > { %v707_v40 = vmul.f32 %v705_v39, %v6551_v37  ;;  %v708_v41 = vmul.f32 %v705_v39, %v6553_v38  ;;  %v728_v43 = vmul.f32 %v726_v42, %v6551_v37  ;;  %v729_v44 = vmul.f32 %v726_v42, %v6553_v38  ;;  %v6571_v52 = vld [vmem:[#allocation2 + $0x1] sm:$0xff]  ;;  %v6573_v53 = vld [vmem:[#allocation2 + $0x9] sm:$0xff] }
 0x1bb   : > { %v749_v46 = vmul.f32 %v747_v45, %v6551_v37  ;;  %v750_v47 = vmul.f32 %v747_v45, %v6553_v38  ;;  %v770_v49 = vmul.f32 %v768_v48, %v6551_v37  ;;  %v771_v50 = vmul.f32 %v768_v48, %v6553_v38  ;;  %v6591_v2 = vld [vmem:[#allocation2 + $0x2] sm:$0xff]  ;;  %v6593_v3 = vld [vmem:[#allocation2 + $0xa] sm:$0xff] }
 0x1bc   : > { %713 = vrot.lane.b32.xlu0 %v708_v41, %s9221_s17  ;;  %711 = vrot.lane.b32.xlu1 %v707_v40, %s9221_s17  ;;  %v6611_v17 = vld [vmem:[#allocation2 + $0x3] sm:$0xff]  ;;  %v6613_v18 = vld [vmem:[#allocation2 + $0xb] sm:$0xff]  ;;  %v1407_v42 = vshrl.u32 %v1406_v36, 7 }
 0x1bd   : > { %v800_v51 = vpop.permute.xlu0 %799  ;;  %v821_v56 = vpop.permute.xlu1 %820  ;;  %v6631_v31 = vld [vmem:[#allocation2 + $0x4] sm:$0xff]  ;;  %v6633_v32 = vld [vmem:[#allocation2 + $0xc] sm:$0xff] }
 0x1be   : > { %v802_v54 = vmul.f32 %v800_v51, %v6571_v52  ;;  %v803_v55 = vmul.f32 %v800_v51, %v6573_v53  ;;  %v823_v57 = vmul.f32 %v821_v56, %v6571_v52  ;;  %v824_v58 = vmul.f32 %v821_v56, %v6573_v53  ;;  %v1414_v48 = vld [vmem:[#allocation11 + $0x1] ss:$8 sm:$0x3] }
 0x1c0   : > { %732 = vrot.lane.b32.xlu0 %v728_v43, %s9219_s20  ;;  %734 = vrot.lane.b32.xlu1 %v729_v44, %s9219_s20 }
 0x1c1   : > { %v842_v59 = vpop.permute.xlu0 %841  ;;  %v863_v62 = vpop.permute.xlu1 %862 }
 0x1c2   : > { %v844_v60 = vmul.f32 %v842_v59, %v6571_v52  ;;  %v845_v61 = vmul.f32 %v842_v59, %v6573_v53  ;;  %v865_v63 = vmul.f32 %v863_v62, %v6571_v52  ;;  %v866_v0 = vmul.f32 %v863_v62, %v6573_v53 }
 0x1c4   : > { %755 = vrot.lane.b32.xlu0 %v750_v47, %s9229_s16  ;;  %753 = vrot.lane.b32.xlu1 %v749_v46, %s9229_s16  ;;  %v6651_v46 = vsub.s32 0, %v1407_v42  ;;  %v6653_v47 = vsub.s32 1, %v1407_v42 }
 0x1c5   : > { %v895_v1 = vpop.permute.xlu0 %894  ;;  %v916_v7 = vpop.permute.xlu1 %915 }
 0x1c6   : > { %v897_v5 = vmul.f32 %v895_v1, %v6591_v2  ;;  %v898_v6 = vmul.f32 %v895_v1, %v6593_v3  ;;  %v918_v8 = vmul.f32 %v916_v7, %v6591_v2  ;;  %v919_v9 = vmul.f32 %v916_v7, %v6593_v3  ;;  %9358 = vst [vmem:[#allocation38_spill] sm:$0xff] %v6651_v46  ;;  %v5316_v7 = vld [vmem:[#allocation9 + $0x5] ss:$0 sm:$0xff] }
 0x1c7   : > { %v1419_v51 = vrot.slane %v1414_v48, %v6651_v46 }
 0x1c8   : > { %774 = vrot.lane.b32.xlu0 %v770_v49, %s9217_s13  ;;  %776 = vrot.lane.b32.xlu1 %v771_v50, %s9217_s13 }
 0x1c9   : > { %v937_v10 = vpop.permute.xlu0 %936  ;;  %v958_v13 = vpop.permute.xlu1 %957 }
 0x1ca   : > { %v939_v11 = vmul.f32 %v937_v10, %v6591_v2  ;;  %v940_v12 = vmul.f32 %v937_v10, %v6593_v3  ;;  %v960_v14 = vmul.f32 %v958_v13, %v6591_v2  ;;  %v961_v15 = vmul.f32 %v958_v13, %v6593_v3 }
 0x1cc   : > { %808 = vrot.lane.b32.xlu0 %v803_v55, %s9221_s17  ;;  %806 = vrot.lane.b32.xlu1 %v802_v54, %s9221_s17  ;;  %v1423_v54 = vrot.slane %v1414_v48, %v6653_v47 }
 0x1cd   : > { %v990_v16 = vpop.permute.xlu0 %989  ;;  %v1011_v21 = vpop.permute.xlu1 %1010 }
 0x1ce   : > { %v992_v19 = vmul.f32 %v990_v16, %v6611_v17  ;;  %v993_v20 = vmul.f32 %v990_v16, %v6613_v18  ;;  %v1013_v22 = vmul.f32 %v1011_v21, %v6611_v17  ;;  %v1014_v23 = vmul.f32 %v1011_v21, %v6613_v18 }
 0x1d0   : > { %827 = vrot.lane.b32.xlu0 %v823_v57, %s9219_s20  ;;  %829 = vrot.lane.b32.xlu1 %v824_v58, %s9219_s20  ;;  %v5311_v57 = vld [vmem:[#allocation9] ss:$0 sm:$0xff] }
 0x1d1   : > { %v1032_v24 = vpop.permute.xlu0 %1031  ;;  %v1053_v27 = vpop.permute.xlu1 %1052 }
 0x1d2   : > { %v1034_v25 = vmul.f32 %v1032_v24, %v6611_v17  ;;  %v1035_v26 = vmul.f32 %v1032_v24, %v6613_v18  ;;  %v1055_v28 = vmul.f32 %v1053_v27, %v6611_v17  ;;  %v1056_v29 = vmul.f32 %v1053_v27, %v6613_v18 }
 0x1d4   : > { %850 = vrot.lane.b32.xlu0 %v845_v61, %s9229_s16  ;;  %848 = vrot.lane.b32.xlu1 %v844_v60, %s9229_s16  ;;  %v697_v60 = vmul.f32 %v5311_v57, %v6553_v38  ;;  %v696_v61 = vmul.f32 %v5311_v57, %v6551_v37 }
 0x1d5   : > { %v1085_v30 = vpop.permute.xlu0 %1084  ;;  %v1106_v35 = vpop.permute.xlu1 %1105 }
 0x1d6   : > { %v1087_v33 = vmul.f32 %v1085_v30, %v6631_v31  ;;  %v1088_v34 = vmul.f32 %v1085_v30, %v6633_v32  ;;  %v1108_v39 = vmul.f32 %v1106_v35, %v6631_v31  ;;  %v1109_v40 = vmul.f32 %v1106_v35, %v6633_v32 }
 0x1d8   : > { %869 = vrot.lane.b32.xlu0 %v865_v63, %s9217_s13  ;;  %871 = vrot.lane.b32.xlu1 %v866_v0, %s9217_s13 }
 0x1d9   : > { %v1127_v41 = vpop.permute.xlu0 %1126  ;;  %v1148_v45 = vpop.permute.xlu1 %1147 }
 0x1da   : > { %v1129_v43 = vmul.f32 %v1127_v41, %v6631_v31  ;;  %v1130_v44 = vmul.f32 %v1127_v41, %v6633_v32  ;;  %v1150_v49 = vmul.f32 %v1148_v45, %v6631_v31  ;;  %v1151_v50 = vmul.f32 %v1148_v45, %v6633_v32 }
 0x1dc   : > { %903 = vrot.lane.b32.xlu0 %v898_v6, %s9221_s17  ;;  %901 = vrot.lane.b32.xlu1 %v897_v5, %s9221_s17 }
 0x1e0   : > { %922 = vrot.lane.b32.xlu0 %v918_v8, %s9219_s20  ;;  %924 = vrot.lane.b32.xlu1 %v919_v9, %s9219_s20 }
 0x1e4   : > { %945 = vrot.lane.b32.xlu0 %v940_v12, %s9229_s16  ;;  %943 = vrot.lane.b32.xlu1 %v939_v11, %s9229_s16 }
 0x1e8   : > { %964 = vrot.lane.b32.xlu0 %v960_v14, %s9217_s13  ;;  %966 = vrot.lane.b32.xlu1 %v961_v15, %s9217_s13  ;;  %v790_v14 = vmul.f32 %v5316_v7, %v6573_v53  ;;  %v789_v15 = vmul.f32 %v5316_v7, %v6571_v52 }
 0x1ec   : > { %998 = vrot.lane.b32.xlu0 %v993_v20, %s9221_s17  ;;  %996 = vrot.lane.b32.xlu1 %v992_v19, %s9221_s17 }
 0x1f0   : > { %1017 = vrot.lane.b32.xlu0 %v1013_v22, %s9219_s20  ;;  %1019 = vrot.lane.b32.xlu1 %v1014_v23, %s9219_s20 }
 0x1f4   : > { %1040 = vrot.lane.b32.xlu0 %v1035_v26, %s9229_s16  ;;  %1038 = vrot.lane.b32.xlu1 %v1034_v25, %s9229_s16 }
 0x1f8   : > { %1059 = vrot.lane.b32.xlu0 %v1055_v28, %s9217_s13  ;;  %1061 = vrot.lane.b32.xlu1 %v1056_v29, %s9217_s13  ;;  %v5321_v28 = vld [vmem:[#allocation9 + $0xa] ss:$0 sm:$0xff] }
 0x1f9   : > { %v885_v52 = vmul.f32 %v5321_v28, %v6593_v3  ;;  %v884_v36 = vmul.f32 %v5321_v28, %v6591_v2 }
 0x1fc   : > { %1093 = vrot.lane.b32.xlu0 %v1088_v34, %s9221_s17  ;;  %1091 = vrot.lane.b32.xlu1 %v1087_v33, %s9221_s17  ;;  %s6685_s17 = sld [smem:[#allocation17 + $0x6]] }
 0x200   : > { %1112 = vrot.lane.b32.xlu0 %v1108_v39, %s9219_s20  ;;  %1114 = vrot.lane.b32.xlu1 %v1109_v40, %s9219_s20  ;;  %s6683_s20 = sld [smem:[#allocation17 + $0x2]] }
 0x204   : > { %1135 = vrot.lane.b32.xlu0 %v1130_v44, %s9229_s16  ;;  %1133 = vrot.lane.b32.xlu1 %v1129_v43, %s9229_s16 }
 0x208   : > { %1154 = vrot.lane.b32.xlu0 %v1150_v49, %s9217_s13  ;;  %1156 = vrot.lane.b32.xlu1 %v1151_v50, %s9217_s13  ;;  %s6681_s13 = sld [smem:[#allocation17 + $0x5]] }
 0x20c   : > { %1424 = vrot.lane.b32.xlu0 %v1419_v51, %s9233_s24  ;;  %1426 = vrot.lane.b32.xlu1 %v1423_v54, %s9233_s24  ;;  %s9239_s24 = smov 119  }
 0x22e   : > { %v714_v55 = vpop.permute.xlu0 %713  ;;  %v712_v56 = vpop.permute.xlu1 %711 }
 0x22f   : > { %v718_v62 = vadd.f32 %v714_v55, %v697_v60  ;;  %v717_v63 = vadd.f32 %v712_v56, %v696_v61  ;;  %v5326_v55 = vld [vmem:[#allocation9 + $0xf] ss:$0 sm:$0xff] }
 0x230   : > { %v980_v2 = vmul.f32 %v5326_v55, %v6613_v18  ;;  %v979_v61 = vmul.f32 %v5326_v55, %v6611_v17  ;;  %v1269_v55 = vstv %s6679_s0  ;;  %s9260_s0 = smov 37  }
 0x232   : > { %v733_v58 = vpop.permute.xlu0 %732  ;;  %v735_v59 = vpop.permute.xlu1 %734 }
 0x233   : > { %v738_v5 = vadd.f32 %v733_v58, %v717_v63  ;;  %v739_v6 = vadd.f32 %v735_v59, %v718_v62 }
 0x236   : > { %v756_v0 = vpop.permute.xlu0 %755  ;;  %v754_v1 = vpop.permute.xlu1 %753 }
 0x237   : > { %v760_v8 = vadd.f32 %v756_v0, %v739_v6  ;;  %v759_v9 = vadd.f32 %v754_v1, %v738_v5 }
 0x23a   : > { %v775_v10 = vpop.permute.xlu0 %774  ;;  %v777_v11 = vpop.permute.xlu1 %776 }
 0x23b   : > { %v780_v12 = vadd.f32 %v775_v10, %v759_v9  ;;  %v781_v13 = vadd.f32 %v777_v11, %v760_v8 }
 0x23d   : > { %v792_v38 = vadd.f32 %v790_v14, %v781_v13  ;;  %v791_v16 = vadd.f32 %v789_v15, %v780_v12  ;;  %v5331_v13 = vld [vmem:[#allocation9 + $0x14] ss:$0 sm:$0xff] }
 0x23e   : > { %v809_v37 = vpop.permute.xlu0 %808  ;;  %v807_v19 = vpop.permute.xlu1 %806  ;;  %v1075_v17 = vmul.f32 %v5331_v13, %v6633_v32 }
 0x23f   : > { %v813_v22 = vadd.f32 %v809_v37, %v792_v38  ;;  %v812_v23 = vadd.f32 %v807_v19, %v791_v16  ;;  %v1074_v19 = vmul.f32 %v5331_v13, %v6631_v31 }
 0x242   : > { %v828_v20 = vpop.permute.xlu0 %827  ;;  %v830_v21 = vpop.permute.xlu1 %829 }
 0x243   : > { %v833_v26 = vadd.f32 %v828_v20, %v812_v23  ;;  %v834_v27 = vadd.f32 %v830_v21, %v813_v22 }
 0x246   : > { %v851_v24 = vpop.permute.xlu0 %850  ;;  %v849_v25 = vpop.permute.xlu1 %848 }
 0x247   : > { %v855_v29 = vadd.f32 %v851_v24, %v834_v27  ;;  %v854_v30 = vadd.f32 %v849_v25, %v833_v26 }
 0x24a   : > { %v870_v33 = vpop.permute.xlu0 %869  ;;  %v872_v34 = vpop.permute.xlu1 %871 }
 0x24b   : > { %v875_v53 = vadd.f32 %v870_v33, %v854_v30  ;;  %v876_v35 = vadd.f32 %v872_v34, %v855_v29 }
 0x24d   : > { %v887_v39 = vadd.f32 %v885_v52, %v876_v35  ;;  %v886_v40 = vadd.f32 %v884_v36, %v875_v53  ;;  %v1245_v52 = vstv %s6673_s3  ;;  %s6083_s3 = smov 108  }
 0x24e   : > { %v904_v41 = vpop.permute.xlu0 %903  ;;  %v902_v42 = vpop.permute.xlu1 %901 }
 0x24f   : > { %v908_v45 = vadd.f32 %v904_v41, %v887_v39  ;;  %v907_v48 = vadd.f32 %v902_v42, %v886_v40  ;;  %v1297_v39 = vstv %s6675_s7  ;;  %v1456_v42 = vld [vmem:[#allocation11 + $0x2] ss:$8 sm:$0x3]  ;;  %s9262_s7 = smov 68  }
 0x252   : > { %v923_v43 = vpop.permute.xlu0 %922  ;;  %v925_v44 = vpop.permute.xlu1 %924 }
 0x253   : > { %v928_v51 = vadd.f32 %v923_v43, %v907_v48  ;;  %v929_v54 = vadd.f32 %v925_v44, %v908_v45  ;;  %v1349_v43 = vstv %s6677_s21  ;;  %s9380_s21 = smov 125  }
 0x256   : > { %v946_v49 = vpop.permute.xlu0 %945  ;;  %v944_v50 = vpop.permute.xlu1 %943 }
 0x257   : > { %v950_v56 = vadd.f32 %v946_v49, %v929_v54  ;;  %v949_v57 = vadd.f32 %v944_v50, %v928_v51  ;;  %v6713_v51 = vld [vmem:[#allocation3 + $0x18] sm:$0xff]  ;;  %v1461_v54 = vrot.slane %v1456_v42, %v6651_v46 }
 0x25a   : > { %v965_v58 = vpop.permute.xlu0 %964  ;;  %v967_v59 = vpop.permute.xlu1 %966 }
 0x25b   : > { %v970_v3 = vadd.f32 %v965_v58, %v949_v57  ;;  %v971_v60 = vadd.f32 %v967_v59, %v950_v56  ;;  %v1283_v56 = vstv %s6681_s13  ;;  %v1321_v58 = vstv %s6683_s20  ;;  %s6085_s13 = smov 88   ;;  %s9264_s20 = smov 51  }
 0x25c   : > { %v1335_v59 = vstv %s6685_s17  ;;  %s9377_s17 = smov 18  }
 0x25d   : > { %v982_v62 = vadd.f32 %v980_v2, %v971_v60  ;;  %v981_v63 = vadd.f32 %v979_v61, %v970_v3  ;;  %v1373_v3 = vstv %s6687_s29  ;;  %v1387_v60 = vstv %s6689_s1  ;;  %s6087_s29 = smov 23   ;;  %s9376_s1 = smov 15  }
 0x25e   : > { %v999_v0 = vpop.permute.xlu0 %998  ;;  %v997_v1 = vpop.permute.xlu1 %996 }
 0x25f   : > { %v1003_v7 = vadd.f32 %v999_v0, %v982_v62  ;;  %v1002_v8 = vadd.f32 %v997_v1, %v981_v63  ;;  %v1465_v0 = vrot.slane %v1456_v42, %v6653_v47 }
 0x262   : > { %v1018_v5 = vpop.permute.xlu0 %1017  ;;  %v1020_v6 = vpop.permute.xlu1 %1019 }
 0x263   : > { %v1023_v11 = vadd.f32 %v1018_v5, %v1002_v8  ;;  %v1024_v12 = vadd.f32 %v1020_v6, %v1003_v7 }
 0x266   : > { %v1041_v9 = vpop.permute.xlu0 %1040  ;;  %v1039_v10 = vpop.permute.xlu1 %1038 }
 0x267   : > { %v1045_v14 = vadd.f32 %v1041_v9, %v1024_v12  ;;  %v1044_v15 = vadd.f32 %v1039_v10, %v1023_v11  ;;  %v1498_v10 = vld [vmem:[#allocation11 + $0x3] ss:$8 sm:$0x3] }
 0x268   : > { %v1503_v13 = vrot.slane %v1498_v10, %v6651_v46 }
 0x26a   : > { %v1060_v38 = vpop.permute.xlu0 %1059  ;;  %v1062_v16 = vpop.permute.xlu1 %1061 }
 0x26b   : > { %v1065_v18 = vadd.f32 %v1060_v38, %v1044_v15  ;;  %v1066_v37 = vadd.f32 %v1062_v16, %v1045_v14 }
 0x26d   : > { %v1077_v20 = vadd.f32 %v1075_v17, %v1066_v37  ;;  %v1076_v21 = vadd.f32 %v1074_v19, %v1065_v18  ;;  %v1507_v18 = vrot.slane %v1498_v10, %v6653_v47  ;;  %v1539_v19 = vld [vmem:[#allocation11 + $0x4] ss:$8 sm:$0x3] }
 0x26e   : > { %v1094_v22 = vpop.permute.xlu0 %1093  ;;  %v1092_v23 = vpop.permute.xlu1 %1091 }
 0x26f   : > { %v1098_v26 = vadd.f32 %v1094_v22, %v1077_v20  ;;  %v1097_v29 = vadd.f32 %v1092_v23, %v1076_v21  ;;  %v1544_v22 = vrot.slane %v1539_v19, %v6651_v46 }
 0x272   : > { %v1113_v24 = vpop.permute.xlu0 %1112  ;;  %v1115_v25 = vpop.permute.xlu1 %1114 }
 0x273   : > { %v1119_v32 = vadd.f32 %v1115_v25, %v1098_v26  ;;  %v1118_v31 = vadd.f32 %v1113_v24, %v1097_v29 }
 0x276   : > { %v1136_v27 = vpop.permute.xlu0 %1135  ;;  %v1134_v28 = vpop.permute.xlu1 %1133 }
 0x277   : > { %v1140_v30 = vadd.f32 %v1136_v27, %v1119_v32  ;;  %v1139_v53 = vadd.f32 %v1134_v28, %v1118_v31  ;;  %v1548_v28 = vrot.slane %v1539_v19, %v6653_v47  ;;  %v1581_v31 = vld [vmem:[#allocation11 + $0x5] ss:$8 sm:$0x3] }
 0x27a   : > { %v1155_v33 = vpop.permute.xlu0 %1154  ;;  %v1157_v34 = vpop.permute.xlu1 %1156 }
 0x27b   : > { %v6691_v35 = vadd.f32 %v1157_v34, %v1140_v30  ;;  %v6694_v36 = vadd.f32 %v1155_v33, %v1139_v53  ;;  %v1586_v33 = vrot.slane %v1581_v31, %v6651_v46 }
 0x27d   : > { %v6706_v48 = vadd.f32 %v1245_v52, %v6691_v35  ;;  %v6711_v50 = vadd.f32 %v1297_v39, %v6694_v36  ;;  %v6722_v57 = vadd.f32 %v1349_v43, %v6691_v35  ;;  %v6895_v4 = vadd.f32 %v1245_v52, %v6694_v36 }
 0x27e   : > { %v6697_v40 = vpop.permute.xlu0 %1424  ;;  %v1427_v41 = vpop.permute.xlu1 %1426 }
 0x27f   : > { %v1429_v44 = vsel %vm1428_vm9, %v6697_v40, %v1427_v41  ;;  %v1432_v45 = vmul.f32 0.0, %v6697_v40  ;;  %v6733_v61 = vmul.f32 %v1269_v55, %v6706_v48  ;;  %v6738_v62 = vmul.f32 %v1283_v56, %v6706_v48 }
 0x280   : > { %v1433_v49 = vmul.f32 0.0, %v1429_v44  ;;  %v1435_v2 = vmul.f32 %v1429_v44, %v6713_v51  ;;  %v6744_v63 = vmul.f32 %v1321_v58, %v6711_v50  ;;  %v6751_v1 = vmul.f32 %v1335_v59, %v6711_v50 }
 0x281   : > { %1440 = vrot.lane.b32.xlu0 %v1432_v45, %s9229_s16  ;;  %v6756_v5 = vmul.f32 %v1373_v3, %v6722_v57  ;;  %v6761_v6 = vmul.f32 %v1387_v60, %v6722_v57 }
 0x282   : > { %1442 = vrot.lane.b32.xlu1 %v1433_v49, %s9229_s16  ;;  %v1590_v49 = vrot.slane %v1581_v31, %v6653_v47  ;;  %v6858_v31 = vld [vmem:[#allocation11 + $0x12] ss:$8 sm:$0x3] }
 0x285   : > { %1466 = vrot.lane.b32.xlu0 %v1461_v54, %s9231_s19 }
 0x286   : > { %1446 = vrot.lane.b32.xlu1 %v1435_v2, %s9229_s16  ;;  %s9235_s16 = smov 122  }
 0x28a   : > { %1468 = vrot.lane.b32.xlu1 %v1465_v0, %s9231_s19  ;;  %s9237_s19 = smov 9   ;;  %v1623_v0 = vld [vmem:[#allocation11 + $0x6] ss:$8 sm:$0x3] }
 0x28b   : > { %v1632_v19 = vrot.slane %v1623_v0, %v6653_v47 }
 0x2f3   : > { %v6764_v7 = vpop.permute.xlu0 %1440 }
 0x2f4   : > { %9359 = vst [vmem:[#allocation39_spill] sm:$0xff] %v6764_v7  ;;  %v6766_v8 = vpop.permute.xlu1 %1442 }
 0x2f5   : > { %9360 = vst [vmem:[#allocation40_spill] sm:$0xff] %v6766_v8 }
 0x2f7   : > { %v6768_v9 = vpop.permute.xlu0 %1466 }
 0x2f8   : > { %v6770_v11 = vpop.permute.xlu1 %1446  ;;  %v1474_v12 = vmul.f32 0.0, %v6768_v9 }
 0x2fa   : > { %1482 = vrot.lane.b32.xlu0 %v1474_v12, %s9235_s16  ;;  %v1628_v12 = vrot.slane %v1623_v0, %v6651_v46 }
 0x2fc   : > { %v1469_v14 = vpop.permute.xlu1 %1468 }
 0x2fd   : > { %v1471_v15 = vsel %vm1470_vm11, %v6768_v9, %v1469_v14 }
 0x2fe   : > { %v1475_v38 = vmul.f32 0.0, %v1471_v15  ;;  %1508 = vrot.lane.b32.xlu0 %v1503_v13, %s9237_s19  ;;  %v1477_v16 = vmul.f32 %v1471_v15, %v6713_v51 }
 0x300   : > { %1484 = vrot.lane.b32.xlu1 %v1475_v38, %s9235_s16 }
 0x304   : > { %1488 = vrot.lane.b32.xlu1 %v1477_v16, %s9235_s16  ;;  %s9241_s16 = smov 12  }
 0x308   : > { %1510 = vrot.lane.b32.xlu1 %v1507_v18, %s9237_s19  ;;  %s9243_s19 = smov 116  }
 0x36c   : > { %v6785_v37 = vpop.permute.xlu0 %1482 }
 0x36d   : > { %9361 = vst [vmem:[#allocation41_spill] sm:$0xff] %v6785_v37 }
 0x370   : > { %v6787_v17 = vpop.permute.xlu0 %1508 }
 0x371   : > { %v1515_v20 = vmul.f32 0.0, %v6787_v17 }
 0x372   : > { %v6790_v21 = vpop.permute.xlu1 %1484 }
 0x373   : > { %9362 = vst [vmem:[#allocation42_spill] sm:$0xff] %v6790_v21  ;;  %1523 = vrot.lane.b32.xlu0 %v1515_v20, %s9239_s24 }
 0x376   : > { %v6794_v23 = vpop.permute.xlu1 %1488 }
 0x377   : > { %1549 = vrot.lane.b32.xlu0 %v1544_v22, %s9241_s16 }
 0x37a   : > { %v1511_v24 = vpop.permute.xlu1 %1510 }
 0x37b   : > { %v1512_v25 = vsel %vm1172_vm10, %v6787_v17, %v1511_v24  ;;  %v1693_v24 = vld [vmem:[#allocation11 + $0x10] ss:$8 sm:$0x3] }
 0x37c   : > { %v1516_v26 = vmul.f32 0.0, %v1512_v25  ;;  %v1518_v27 = vmul.f32 %v1512_v25, %v6713_v51 }
 0x37e   : > { %1525 = vrot.lane.b32.xlu1 %v1516_v26, %s9239_s24  ;;  %v1698_v26 = vrot.slane %v1693_v24, %v6651_v46 }
 0x382   : > { %1529 = vrot.lane.b32.xlu1 %v1518_v27, %s9239_s24  ;;  %s9245_s24 = smov 113   ;;  %v6849_v27 = vld [vmem:[#allocation11 + $0x11] ss:$8 sm:$0x3] }
 0x386   : > { %1551 = vrot.lane.b32.xlu1 %v1548_v28, %s9241_s16  ;;  %s9247_s16 = smov 18   ;;  %v1752_v28 = vrot.slane %v6849_v27, %v6651_v46 }
 0x3e5   : > { %v6804_v29 = vpop.permute.xlu0 %1523 }
 0x3e6   : > { %9363 = vst [vmem:[#allocation43_spill] sm:$0xff] %v6804_v29 }
 0x3e9   : > { %v6806_v32 = vpop.permute.xlu0 %1549 }
 0x3ea   : > { %v1557_v30 = vmul.f32 0.0, %v6806_v32 }
 0x3ec   : > { %1565 = vrot.lane.b32.xlu0 %v1557_v30, %s9243_s19  ;;  %v1806_v30 = vrot.slane %v6858_v31, %v6651_v46 }
 0x3f0   : > { %1591 = vrot.lane.b32.xlu0 %v1586_v33, %s9249_s4  ;;  %v6812_v34 = vpop.permute.xlu1 %1525  ;;  %v6867_v33 = vld [vmem:[#allocation11 + $0x13] ss:$8 sm:$0x3] }
 0x3f1   : > { %9364 = vst [vmem:[#allocation44_spill] sm:$0xff] %v6812_v34 }
 0x3f4   : > { %v6814_v53 = vpop.permute.xlu1 %1529 }
 0x3f8   : > { %v1552_v41 = vpop.permute.xlu1 %1551 }
 0x3f9   : > { %v1554_v42 = vsel %vm1553_vm12, %v6806_v32, %v1552_v41 }
 0x3fa   : > { %v1558_v44 = vmul.f32 0.0, %v1554_v42  ;;  %v1560_v45 = vmul.f32 %v1554_v42, %v6713_v51  ;;  %v1860_v42 = vrot.slane %v6867_v33, %v6651_v46 }
 0x3fc   : > { %1567 = vrot.lane.b32.xlu1 %v1558_v44, %s9243_s19 }
 0x400   : > { %1571 = vrot.lane.b32.xlu1 %v1560_v45, %s9243_s19  ;;  %s9251_s19 = smov 110  }
 0x404   : > { %1593 = vrot.lane.b32.xlu1 %v1590_v49, %s9249_s4  ;;  %s9369_s4 = smov 6  }
 0x45e   : > { %v6823_v54 = vpop.permute.xlu0 %1565 }
 0x45f   : > { %9365 = vst [vmem:[#allocation45_spill] sm:$0xff] %v6823_v54 }
 0x462   : > { %v6825_v2 = vpop.permute.xlu0 %1591 }
 0x463   : > { %v1599_v10 = vmul.f32 0.0, %v6825_v2 }
 0x465   : > { %1607 = vrot.lane.b32.xlu0 %v1599_v10, %s9245_s24 }
 0x469   : > { %1633 = vrot.lane.b32.xlu0 %v1628_v12, %s9247_s16 }
 0x46e   : > { %v6831_v13 = vpop.permute.xlu1 %1567 }
 0x46f   : > { %9366 = vst [vmem:[#allocation46_spill] sm:$0xff] %v6831_v13 }
 0x472   : > { %v6833_v14 = vpop.permute.xlu1 %1571 }
 0x476   : > { %v1594_v15 = vpop.permute.xlu1 %1593 }
 0x477   : > { %v1596_v38 = vsel %vm9293_vm13, %v6825_v2, %v1594_v15 }
 0x478   : > { %v1600_v16 = vmul.f32 0.0, %v1596_v38  ;;  %v1602_v18 = vmul.f32 %v1596_v38, %v6713_v51 }
 0x47a   : > { %1609 = vrot.lane.b32.xlu1 %v1600_v16, %s9245_s24 }
 0x47e   : > { %1613 = vrot.lane.b32.xlu1 %v1602_v18, %s9245_s24  ;;  %s6851_s24 = sld [smem:[#allocation14]]  ;;  %v1270_v18 = vmul.f32 %v1269_v55, %v6895_v4  ;;  %v6918_v55 = vadd.f32 %v1297_v39, %v6691_v35  ;;  %v6936_v39 = vadd.f32 %v1349_v43, %v6694_v36 }
 0x482   : > { %1635 = vrot.lane.b32.xlu1 %v1632_v19, %s9247_s16  ;;  %s9368_s16 = smov 3   ;;  %v1702_v19 = vrot.slane %v1693_v24, %v6653_v47  ;;  %v9254_v24 = vrot.slane %v6918_v55, 7 }
 0x484   : > { %v1208_v41 = vstv %s6851_s24  ;;  %s9375_s24 = smov 110  }
 0x485   : > { %v6878_v44 = vadd.f32 %v1208_v41, %v6694_v36  ;;  %v6884_v49 = vadd.f32 %v1208_v41, %v6691_v35  ;;  %v1323_v35 = vmul.f32 %v1321_v58, %v6918_v55  ;;  %v1388_v58 = vmul.f32 %v1387_v60, %v6936_v39  ;;  %v6952_v36 = vld [vmem:[#allocation11 + $0x14] ss:$8 sm:$0x3] }
 0x486   : > { %v9259_v41 = vrot.slane %v6706_v48, 7 }
 0x487   : > { %9371 = vst [vmem:[#allocation48_spill] sm:$0xff] %v6878_v44  ;;  %9374 = vst [vmem:[#allocation50_spill] sm:$0xff] %v6884_v49  ;;  %v9255_v10 = vrot.slane %v6878_v44, 7  ;;  %v9256_v15 = vrot.slane %v6884_v49, 7 }
 0x4d7   : > { %v6842_v20 = vpop.permute.xlu0 %1607 }
 0x4d8   : > { %9367 = vst [vmem:[#allocation47_spill] sm:$0xff] %v6842_v20 }
 0x4db   : > { %v6844_v22 = vpop.permute.xlu0 %1633 }
 0x4dc   : > { %v1641_v25 = vmul.f32 0.0, %v6844_v22 }
 0x4de   : > { %1649 = vrot.lane.b32.xlu0 %v1641_v25, %s9251_s19  ;;  %s9370_s19 = smov 9   ;;  %v1284_v25 = vmul.f32 %v1283_v56, %v6895_v4  ;;  %v1337_v56 = vmul.f32 %v1335_v59, %v6918_v55  ;;  %v1914_v59 = vrot.slane %v6952_v36, %v6651_v46 }
 0x4e2   : > { %1703 = vrot.lane.b32.xlu0 %v1698_v26, %s9368_s16  ;;  %v9253_v26 = vrot.slane %v6711_v50, 7 }
 0x4e6   : > { %1757 = vrot.lane.b32.xlu0 %v1752_v28, %s9369_s4  ;;  %v1374_v28 = vmul.f32 %v1373_v3, %v6936_v39  ;;  %v6962_v3 = vld [vmem:[#allocation11 + $0x15] ss:$8 sm:$0x3] }
 0x4e7   : > { %v1968_v60 = vrot.slane %v6962_v3, %v6651_v46  ;;  %v1972_v29 = vrot.slane %v6962_v3, %v6653_v47 }
 0x4ea   : > { %1811 = vrot.lane.b32.xlu0 %v1806_v30, %s9370_s19  ;;  %v9261_v30 = vrot.slane %v6895_v4, 7 }
 0x4ec   : > { %v6880_v45 = vpop.permute.xlu1 %1609  ;;  %v1252_v43 = vsel %vm1213_vm14, %v9261_v30, %v9259_v41  ;;  %v1756_v41 = vrot.slane %v6849_v27, %v6653_v47  ;;  %v1810_v30 = vrot.slane %v6858_v31, %v6653_v47 }
 0x4ed   : > { %9372 = vst [vmem:[#allocation49_spill] sm:$0xff] %v6880_v45 }
 0x4ee   : > { %1865 = vrot.lane.b32.xlu0 %v1860_v42, %s9373_s6  ;;  %v2045_v42 = vld [vmem:[#allocation11 + $0x17] ss:$8 sm:$0x3] }
 0x4f0   : > { %v6886_v0 = vpop.permute.xlu1 %1613 }
 0x4f2   : > { %1217 = vrot.lane.b32.xlu0 %v9255_v10, %s9370_s19 }
 0x4f4   : > { %v1636_v12 = vpop.permute.xlu1 %1635 }
 0x4f5   : > { %v1638_v38 = vsel %vm1637_vm8, %v6844_v22, %v1636_v12  ;;  %v2050_v12 = vrot.slane %v2045_v42, %v6651_v46 }
 0x4f6   : > { %v1642_v16 = vmul.f32 0.0, %v1638_v38  ;;  %1221 = vrot.lane.b32.xlu0 %v9256_v15, %s9370_s19  ;;  %v1644_v52 = vmul.f32 %v1638_v38, %v6713_v51  ;;  %v2099_v38 = vld [vmem:[#allocation11 + $0x20] ss:$8 sm:$0x3] }
 0x4f8   : > { %1651 = vrot.lane.b32.xlu1 %v1642_v16, %s9375_s24  ;;  %v2104_v16 = vrot.slane %v2099_v38, %v6651_v46 }
 0x4fa   : > { %1274 = vrot.lane.b32.xlu0 %v1270_v18, %s6083_s3  ;;  %v2153_v18 = vld [vmem:[#allocation11 + $0x21] ss:$8 sm:$0x3] }
 0x4fc   : > { %1655 = vrot.lane.b32.xlu1 %v1644_v52, %s9375_s24  ;;  %v2158_v52 = vrot.slane %v2153_v18, %v6651_v46 }
 0x4fe   : > { %1288 = vrot.lane.b32.xlu0 %v1284_v25, %s6083_s3 }
 0x500   : > { %1705 = vrot.lane.b32.xlu1 %v1702_v19, %s9368_s16  ;;  %v2207_v19 = vld [vmem:[#allocation11 + $0x22] ss:$8 sm:$0x3] }
 0x501   : > { %v2212_v25 = vrot.slane %v2207_v19, %v6651_v46 }
 0x502   : > { %1305 = vrot.lane.b32.xlu0 %v9253_v26, %s9260_s0 }
 0x506   : > { %1309 = vrot.lane.b32.xlu0 %v9254_v24, %s9260_s0  ;;  %s9383_s0 = smov 122  }
 0x50a   : > { %1328 = vrot.lane.b32.xlu0 %v1323_v35, %s6085_s13  ;;  %v2261_v35 = vld [vmem:[#allocation11 + $0x23] ss:$8 sm:$0x3] }
 0x50e   : > { %1342 = vrot.lane.b32.xlu0 %v1337_v56, %s6085_s13  ;;  %v2266_v56 = vrot.slane %v2261_v35, %v6651_v46  ;;  %v9257_v35 = vrot.slane %v6722_v57, 7 }
 0x512   : > { %1378 = vrot.lane.b32.xlu0 %v1374_v28, %s9262_s7  ;;  %v2315_v28 = vld [vmem:[#allocation11 + $0x24] ss:$8 sm:$0x3] }
 0x516   : > { %1392 = vrot.lane.b32.xlu0 %v1388_v58, %s9262_s7  ;;  %v2320_v58 = vrot.slane %v2315_v28, %v6651_v46  ;;  %s9386_s7 = smov 119  }
 0x51a   : > { %1255 = vrot.lane.b32.xlu0 %v1252_v43, %s6087_s29  ;;  %v2399_v43 = vld [vmem:[#allocation11 + $0x26] ss:$8 sm:$0x3] }
 0x51e   : > { %1919 = vrot.lane.b32.xlu0 %v1914_v59, %s9376_s1  ;;  %v2404_v59 = vrot.slane %v2399_v43, %v6651_v46 }
 0x522   : > { %1973 = vrot.lane.b32.xlu0 %v1968_v60, %s9377_s17  ;;  %v2453_v60 = vld [vmem:[#allocation11 + $0x27] ss:$8 sm:$0x3] }
 0x523   : > { %v2458_v42 = vrot.slane %v2453_v60, %v6651_v46 }
 0x526   : > { %2055 = vrot.lane.b32.xlu0 %v2050_v12, %s9368_s16  ;;  %v2507_v12 = vld [vmem:[#allocation11 + $0x30] ss:$8 sm:$0x3] }
 0x527   : > { %v2512_v38 = vrot.slane %v2507_v12, %v6651_v46 }
 0x52a   : > { %2109 = vrot.lane.b32.xlu0 %v2104_v16, %s9369_s4  ;;  %v2561_v16 = vld [vmem:[#allocation11 + $0x31] ss:$8 sm:$0x3] }
 0x52b   : > { %v2566_v18 = vrot.slane %v2561_v16, %v6651_v46 }
 0x52e   : > { %2163 = vrot.lane.b32.xlu0 %v2158_v52, %s9370_s19  ;;  %v2615_v52 = vld [vmem:[#allocation11 + $0x32] ss:$8 sm:$0x3] }
 0x52f   : > { %v2620_v19 = vrot.slane %v2615_v52, %v6651_v46  ;;  %v7014_v52 = vld [vmem:[#allocation3 + $0x28] sm:$0x7] }
 0x532   : > { %2217 = vrot.lane.b32.xlu0 %v2212_v25, %s9373_s6  ;;  %v9258_v25 = vrot.slane %v6936_v39, 7 }
 0x534   : > { %v1356_v28 = vsel %vm1213_vm14, %v9258_v25, %v9257_v35 }
 0x536   : > { %2271 = vrot.lane.b32.xlu0 %v2266_v56, %s9376_s1 }
 0x53a   : > { %2325 = vrot.lane.b32.xlu0 %v2320_v58, %s9377_s17 }
 0x53e   : > { %2409 = vrot.lane.b32.xlu0 %v2404_v59, %s9368_s16 }
 0x542   : > { %2463 = vrot.lane.b32.xlu0 %v2458_v42, %s9369_s4 }
 0x546   : > { %2517 = vrot.lane.b32.xlu0 %v2512_v38, %s9370_s19 }
 0x54a   : > { %2571 = vrot.lane.b32.xlu0 %v2566_v18, %s9373_s6  ;;  %v7012_v18 = vld [vmem:[#allocation3 + $0x8] sm:$0xf8] }
 0x54e   : > { %2625 = vrot.lane.b32.xlu0 %v2620_v19, %s9376_s1 }
 0x550   : > { %v6992_v56 = vpop.permute.xlu0 %1649 }
 0x551   : > { %9378 = vst [vmem:[#allocation51_spill] sm:$0xff] %v6992_v56 }
 0x552   : > { %1359 = vrot.lane.b32.xlu0 %v1356_v28, %s9264_s20  ;;  %s9389_s20 = smov 116  }
 0x554   : > { %v7000_v58 = vpop.permute.xlu0 %1703 }
 0x558   : > { %v7002_v43 = vpop.permute.xlu0 %1757 }
 0x55c   : > { %v7004_v59 = vpop.permute.xlu0 %1811 }
 0x560   : > { %v7006_v60 = vpop.permute.xlu0 %1865 }
 0x564   : > { %v1218_v42 = vpop.permute.xlu0 %1217 }
 0x565   : > { %1227 = vst.msk [vmem:[#allocation3 + $0x10] sm:$0xfe] %vm1226_vm15, %v1218_v42  ;;  %vm1266_vm15 = vcmask 475480  }
 0x568   : > { %v1222_v12 = vpop.permute.xlu0 %1221 }
 0x569   : > { %1231 = vst.msk [vmem:[#allocation3 + $0x30] sm:$0x1] %vm1230_vm0, %v1222_v12  ;;  %vm1318_vm0 = vcmask 754280  }
 0x56a   : > { %v7008_v38 = vpop.permute.xlu1 %1651 }
 0x56b   : > { %9379 = vst [vmem:[#allocation52_spill] sm:$0xff] %v7008_v38 }
 0x56e   : > { %v7010_v16 = vpop.permute.xlu1 %1655 }
 0x572   : > { %v1706_v19 = vpop.permute.xlu1 %1705 }
 0x573   : > { %v1707_v28 = vsel %vm1428_vm9, %v7000_v58, %v1706_v19 }
 0x574   : > { %v1711_v26 = vmul.f32 %v1707_v28, %v7012_v18  ;;  %v1713_v24 = vmul.f32 %v1707_v28, %v6713_v51  ;;  %v1715_v42 = vmul.f32 %v1707_v28, %v7014_v52 }
 0x576   : > { %v1725_v12 = vrot.slane %v1711_v26, 3  ;;  %v1726_v10 = vrot.slane %v1713_v24, 3  ;;  %v1730_v15 = vrot.slane %v1715_v42, 3 }
 0x578   : > { %v1727_v35 = vsel %vm1682_vm1, %v1725_v12, %v1726_v10  ;;  %v1731_v25 = vsel %vm1682_vm1, %v1726_v10, %v1730_v15 }
 0x579   : > { %1734 = vrot.lane.b32.xlu1 %v1727_v35, %s9380_s21 }
 0x57d   : > { %1738 = vrot.lane.b32.xlu1 %v1731_v25, %s9380_s21 }
 0x581   : > { %1759 = vrot.lane.b32.xlu1 %v1756_v41, %s9369_s4 }
 0x5eb   : > { %v7028_v19 = vpop.permute.xlu1 %1734 }
 0x5ec   : > { %9381 = vst [vmem:[#allocation53_spill] sm:$0xff] %v7028_v19 }
 0x5ef   : > { %v7030_v28 = vpop.permute.xlu1 %1738 }
 0x5f0   : > { %9382 = vst [vmem:[#allocation54_spill] sm:$0xff] %v7030_v28  ;;  %v2669_v28 = vld [vmem:[#allocation11 + $0x33] ss:$8 sm:$0x3] }
 0x5f3   : > { %v1760_v26 = vpop.permute.xlu1 %1759 }
 0x5f4   : > { %v1761_v24 = vsel %vm1470_vm11, %v7002_v43, %v1760_v26 }
 0x5f5   : > { %v1765_v42 = vmul.f32 %v1761_v24, %v7012_v18  ;;  %v1767_v35 = vmul.f32 %v1761_v24, %v6713_v51  ;;  %v1769_v10 = vmul.f32 %v1761_v24, %v7014_v52  ;;  %v2674_v24 = vrot.slane %v2669_v28, %v6651_v46 }
 0x5f7   : > { %v1779_v15 = vrot.slane %v1765_v42, 3  ;;  %v1780_v27 = vrot.slane %v1767_v35, 3  ;;  %v1784_v12 = vrot.slane %v1769_v10, 3  ;;  %2679 = vrot.lane.b32.xlu0 %v2674_v24, %s9377_s17  ;;  %v2751_v35 = vld [vmem:[#allocation11 + $0x35] ss:$8 sm:$0x3] }
 0x5f8   : > { %v2756_v10 = vrot.slane %v2751_v35, %v6651_v46 }
 0x5f9   : > { %v1781_v25 = vsel %vm1682_vm1, %v1779_v15, %v1780_v27  ;;  %v1785_v41 = vsel %vm1682_vm1, %v1780_v27, %v1784_v12 }
 0x5fa   : > { %1788 = vrot.lane.b32.xlu1 %v1781_v25, %s9383_s0 }
 0x5fb   : > { %2761 = vrot.lane.b32.xlu0 %v2756_v10, %s9368_s16  ;;  %v2859_v10 = vld [vmem:[#allocation11 + $0x37] ss:$8 sm:$0x3] }
 0x5fe   : > { %1792 = vrot.lane.b32.xlu1 %v1785_v41, %s9383_s0  ;;  %v2805_v41 = vld [vmem:[#allocation11 + $0x36] ss:$8 sm:$0x3] }
 0x5ff   : > { %v2810_v35 = vrot.slane %v2805_v41, %v6651_v46  ;;  %v3156_v41 = vld [vmem:[#allocation11 + $0x45] ss:$8 sm:$0x3] }
 0x601   : > { %2815 = vrot.lane.b32.xlu0 %v2810_v35, %s9369_s4  ;;  %v3210_v35 = vld [vmem:[#allocation11 + $0x46] ss:$8 sm:$0x3] }
 0x602   : > { %1813 = vrot.lane.b32.xlu1 %v1810_v30, %s9370_s19 }
 0x66c   : > { %v7044_v26 = vpop.permute.xlu1 %1788 }
 0x66d   : > { %9384 = vst [vmem:[#allocation55_spill] sm:$0xff] %v7044_v26 }
 0x670   : > { %v7047_v42 = vpop.permute.xlu1 %1792 }
 0x671   : > { %9385 = vst [vmem:[#allocation56_spill] sm:$0xff] %v7047_v42 }
 0x674   : > { %v1814_v15 = vpop.permute.xlu1 %1813 }
 0x675   : > { %v1815_v31 = vsel %vm1172_vm10, %v7004_v59, %v1814_v15  ;;  %v2864_v15 = vrot.slane %v2859_v10, %v6651_v46  ;;  %v3215_v10 = vrot.slane %v3210_v35, %v6651_v46 }
 0x676   : > { %v1819_v30 = vmul.f32 %v1815_v31, %v7012_v18  ;;  %v1821_v27 = vmul.f32 %v1815_v31, %v6713_v51  ;;  %v1823_v12 = vmul.f32 %v1815_v31, %v7014_v52  ;;  %v1864_v31 = vrot.slane %v6867_v33, %v6653_v47  ;;  %v3102_v33 = vld [vmem:[#allocation11 + $0x44] ss:$8 sm:$0x3] }
 0x677   : > { %2869 = vrot.lane.b32.xlu0 %v2864_v15, %s9370_s19  ;;  %v3264_v15 = vld [vmem:[#allocation11 + $0x47] ss:$8 sm:$0x3] }
 0x678   : > { %v1833_v28 = vrot.slane %v1819_v30, 3  ;;  %v1834_v25 = vrot.slane %v1821_v27, 3  ;;  %v1838_v42 = vrot.slane %v1823_v12, 3  ;;  %v2913_v30 = vld [vmem:[#allocation11 + $0x40] ss:$8 sm:$0x3] }
 0x679   : > { %v2918_v27 = vrot.slane %v2913_v30, %v6651_v46  ;;  %v2967_v12 = vld [vmem:[#allocation11 + $0x41] ss:$8 sm:$0x3]  ;;  %v3318_v30 = vld [vmem:[#allocation11 + $0x50] ss:$8 sm:$0x3] }
 0x67a   : > { %v1835_v24 = vsel %vm1682_vm1, %v1833_v28, %v1834_v25  ;;  %v1839_v26 = vsel %vm1682_vm1, %v1834_v25, %v1838_v42  ;;  %v2972_v28 = vrot.slane %v2967_v12, %v6651_v46  ;;  %v3021_v42 = vld [vmem:[#allocation11 + $0x42] ss:$8 sm:$0x3]  ;;  %v3107_v25 = vrot.slane %v3102_v33, %v6651_v46  ;;  %v3372_v12 = vld [vmem:[#allocation11 + $0x51] ss:$8 sm:$0x3] }
 0x67b   : > { %1842 = vrot.lane.b32.xlu1 %v1835_v24, %s9386_s7  ;;  %2923 = vrot.lane.b32.xlu0 %v2918_v27, %s9373_s6  ;;  %v3161_v24 = vrot.slane %v3156_v41, %v6651_v46  ;;  %v3323_v27 = vrot.slane %v3318_v30, %v6651_v46  ;;  %v9391_v30 = vrot.slane %v6706_v48, 7  ;;  %v7113_v48 = vld [vmem:[#allocation3] sm:$0xff] }
 0x67c   : > { %9394 = vst [vmem:[#allocation59_spill] sm:$0xff] %v7113_v48  ;;  %1179 = vst.msk [vmem:[#allocation3 + $0x20] sm:$0xff] %vm1178_vm2, %v7113_v48  ;;  %vm1366_vm2 = vcmask 1040249  }
 0x67d   : > { %1185 = vst.msk [vmem:[#allocation3 + $0x20] sm:$0xff] %vm1184_vm3, %v7113_v48  ;;  %vm1370_vm3 = vcmask 1033080  }
 0x67e   : > { %1191 = vst.msk [vmem:[#allocation3 + $0x20] sm:$0xff] %vm1190_vm4, %v7113_v48  ;;  %vm1228_vm4 = vcmask 203848  }
 0x67f   : > { %1846 = vrot.lane.b32.xlu1 %v1839_v26, %s9386_s7  ;;  %2977 = vrot.lane.b32.xlu0 %v2972_v28, %s9376_s1  ;;  %v3026_v26 = vrot.slane %v3021_v42, %v6651_v46  ;;  %v3377_v28 = vrot.slane %v3372_v12, %v6651_v46  ;;  %1198 = vst.msk [vmem:[#allocation3 + $0x20] sm:$0xff] %vm1197_vm5, %v7113_v48  ;;  %vm1264_vm5 = vcmask 482648  }
 0x683   : > { %1867 = vrot.lane.b32.xlu1 %v1864_v31, %s9373_s6  ;;  %3031 = vrot.lane.b32.xlu0 %v3026_v26, %s9377_s17  ;;  %v3269_v31 = vrot.slane %v3264_v15, %v6651_v46 }
 0x687   : > { %3112 = vrot.lane.b32.xlu0 %v3107_v25, %s9368_s16 }
 0x68b   : > { %3166 = vrot.lane.b32.xlu0 %v3161_v24, %s9369_s4 }
 0x68f   : > { %3220 = vrot.lane.b32.xlu0 %v3215_v10, %s9370_s19 }
 0x693   : > { %3274 = vrot.lane.b32.xlu0 %v3269_v31, %s9373_s6  ;;  %v9390_v31 = vrot.slane %v6895_v4, 7  ;;  %v9393_v4 = vrot.slane %v6936_v39, 7 }
 0x697   : > { %3328 = vrot.lane.b32.xlu0 %v3323_v27, %s9376_s1  ;;  %v9399_v27 = vrot.slane %v6884_v49, 7 }
 0x69b   : > { %3382 = vrot.lane.b32.xlu0 %v3377_v28, %s9377_s17 }
 0x6ed   : > { %v7086_v42 = vpop.permute.xlu1 %1842 }
 0x6ee   : > { %9387 = vst [vmem:[#allocation57_spill] sm:$0xff] %v7086_v42 }
 0x6f1   : > { %v7088_v26 = vpop.permute.xlu1 %1846 }
 0x6f2   : > { %9388 = vst [vmem:[#allocation58_spill] sm:$0xff] %v7088_v26 }
 0x6f5   : > { %v1868_v33 = vpop.permute.xlu1 %1867 }
 0x6f6   : > { %v1869_v25 = vsel %vm1553_vm12, %v7006_v60, %v1868_v33  ;;  %v9401_v33 = vrot.slane %v6918_v55, 7 }
 0x6f7   : > { %v1873_v41 = vmul.f32 %v1869_v25, %v7012_v18  ;;  %v1875_v24 = vmul.f32 %v1869_v25, %v6713_v51  ;;  %v1877_v39 = vmul.f32 %v1869_v25, %v7014_v52 }
 0x6f9   : > { %v1887_v35 = vrot.slane %v1873_v41, 3  ;;  %v1888_v10 = vrot.slane %v1875_v24, 3  ;;  %v1892_v28 = vrot.slane %v1877_v39, 3  ;;  %v1918_v24 = vrot.slane %v6952_v36, %v6653_v47 }
 0x6fb   : > { %v1889_v15 = vsel %vm1682_vm1, %v1887_v35, %v1888_v10  ;;  %v1893_v25 = vsel %vm1682_vm1, %v1888_v10, %v1892_v28 }
 0x6fc   : > { %1896 = vrot.lane.b32.xlu1 %v1889_v15, %s9389_s20 }
 0x700   : > { %1253 = vrot.lane.b32.xlu1 %v9390_v31, %s6087_s29 }
 0x704   : > { %1257 = vrot.lane.b32.xlu1 %v9391_v30, %s6087_s29  ;;  %s8607_s29 = sld [smem:[#allocation20 + $0x5]] }
 0x708   : > { %1276 = vrot.lane.b32.xlu1 %v6733_v61, %s6083_s3  ;;  %v7116_v61 = vpop.permute.xlu0 %1274 }
 0x709   : > { %9395 = vst [vmem:[#allocation60_spill] sm:$0xff] %v7116_v61 }
 0x70c   : > { %1290 = vrot.lane.b32.xlu1 %v6738_v62, %s6083_s3  ;;  %v9396_v62 = vrot.slane %v6722_v57, 7  ;;  %s9397_s3 = smov 68   ;;  %v9400_v57 = vrot.slane %v6878_v44, 7 }
 0x70e   : > { %v1216_v12 = vsel %vm1213_vm14, %v9400_v57, %v9399_v27 }
 0x710   : > { %1326 = vrot.lane.b32.xlu1 %v6744_v63, %s6085_s13  ;;  %v7126_v63 = vpop.permute.xlu0 %1288 }
 0x711   : > { %9398 = vst [vmem:[#allocation61_spill] sm:$0xff] %v7126_v63 }
 0x714   : > { %1340 = vrot.lane.b32.xlu1 %v6751_v1, %s6085_s13  ;;  %v1306_v1 = vpop.permute.xlu0 %1305  ;;  %s9419_s13 = smov 113  }
 0x718   : > { %1357 = vrot.lane.b32.xlu1 %v9393_v4, %s9392_s8 }
 0x71c   : > { %1361 = vrot.lane.b32.xlu1 %v9396_v62, %s9392_s8  ;;  %s9403_s8 = smov 37  }
 0x720   : > { %1380 = vrot.lane.b32.xlu1 %v6756_v5, %s9397_s3  ;;  %v9402_v5 = vrot.slane %v6711_v50, 7 }
 0x722   : > { %v1304_v41 = vsel %vm1213_vm14, %v9402_v5, %v9401_v33 }
 0x724   : > { %1394 = vrot.lane.b32.xlu1 %v6761_v6, %s9397_s3  ;;  %v1310_v6 = vpop.permute.xlu0 %1309  ;;  %s5354_s3 = sld [smem:[#allocation20 + $0x6]] }
 0x728   : > { %1219 = vrot.lane.b32.xlu1 %v1216_v12, %s9370_s19  ;;  %v7147_v35 = vpop.permute.xlu0 %1328 }
 0x729   : > { %9404 = vst [vmem:[#allocation62_spill] sm:$0xff] %v7147_v35 }
 0x72c   : > { %1307 = vrot.lane.b32.xlu1 %v1304_v41, %s9403_s8  ;;  %v7150_v15 = vpop.permute.xlu0 %1342  ;;  %s6090_s8 = smov 60  }
 0x72d   : > { %9405 = vst [vmem:[#allocation63_spill] sm:$0xff] %v7150_v15 }
 0x730   : > { %1900 = vrot.lane.b32.xlu1 %v1893_v25, %s9389_s20  ;;  %v7152_v55 = vpop.permute.xlu0 %1378 }
 0x731   : > { %9406 = vst [vmem:[#allocation64_spill] sm:$0xff] %v7152_v55 }
 0x734   : > { %1921 = vrot.lane.b32.xlu1 %v1918_v24, %s9376_s1  ;;  %v7154_v50 = vpop.permute.xlu0 %1392 }
 0x735   : > { %9407 = vst [vmem:[#allocation65_spill] sm:$0xff] %v7154_v50 }
 0x738   : > { %v1256_v31 = vpop.permute.xlu0 %1255 }
 0x73c   : > { %v7156_v30 = vpop.permute.xlu0 %1919 }
 0x740   : > { %v7158_v4 = vpop.permute.xlu0 %1973 }
 0x744   : > { %v7160_v10 = vpop.permute.xlu0 %2055 }
 0x748   : > { %v7162_v62 = vpop.permute.xlu0 %2109 }
 0x74c   : > { %v7164_v36 = vpop.permute.xlu0 %2163 }
 0x750   : > { %v7168_v27 = vpop.permute.xlu0 %2217 }
 0x754   : > { %v7170_v12 = vpop.permute.xlu0 %2271 }
 0x758   : > { %v7174_v5 = vpop.permute.xlu0 %2325 }
 0x759   : > { %9410 = vst [vmem:[#allocation68_spill] sm:$0xff] %v7174_v5 }
 0x75c   : > { %v7178_v25 = vpop.permute.xlu0 %2409 }
 0x76e   : > { %v7166_v39 = vpop.permute.xlu1 %1896 }
 0x76f   : > { %9408 = vst [vmem:[#allocation66_spill] sm:$0xff] %v7166_v39 }
 0x772   : > { %v1254_v57 = vpop.permute.xlu1 %1253 }
 0x773   : > { %1263 = vst.msk [vmem:[#allocation3 + $0x10] sm:$0xfe] %vm1262_vm6, %v1254_v57  ;;  %v7184_v57 = vpop.permute.xlu0 %2463  ;;  %vm2034_vm6 = vcmask 1041408  }
 0x774   : > { %1315 = vst.msk [vmem:[#allocation3 + $0x10] sm:$0xfe] %vm1314_vm7, %v1306_v1  ;;  %vm1316_vm7 = vcmask 761448  }
 0x776   : > { %v1258_v28 = vpop.permute.xlu1 %1257 }
 0x777   : > { %1267 = vst.msk [vmem:[#allocation3 + $0x30] sm:$0x1] %vm1266_vm15, %v1258_v28  ;;  %v7186_v28 = vpop.permute.xlu0 %2517  ;;  %vm1368_vm15 = vcmask 1040248  }
 0x778   : > { %1319 = vst.msk [vmem:[#allocation3 + $0x30] sm:$0x1] %vm1318_vm0, %v1310_v6  ;;  %vm2388_vm0 = vcmask 1046528  }
 0x77a   : > { %v7172_v33 = vpop.permute.xlu1 %1276 }
 0x77b   : > { %9409 = vst [vmem:[#allocation67_spill] sm:$0xff] %v7172_v33  ;;  %v7192_v55 = vpop.permute.xlu0 %2571 }
 0x77e   : > { %v7176_v41 = vpop.permute.xlu1 %1290 }
 0x77f   : > { %9411 = vst [vmem:[#allocation69_spill] sm:$0xff] %v7176_v41  ;;  %v7211_v63 = vpop.permute.xlu0 %2625 }
 0x780   : > { %9416 = vst [vmem:[#allocation74_spill] sm:$0xff] %v7211_v63 }
 0x782   : > { %v7180_v24 = vpop.permute.xlu1 %1326 }
 0x783   : > { %9412 = vst [vmem:[#allocation70_spill] sm:$0xff] %v7180_v24  ;;  %v1360_v19 = vpop.permute.xlu0 %1359 }
 0x786   : > { %v7182_v15 = vpop.permute.xlu1 %1340 }
 0x787   : > { %9413 = vst [vmem:[#allocation71_spill] sm:$0xff] %v7182_v15  ;;  %v7196_v15 = vld [vmem:[#allocation3] sm:$0xc0] }
 0x788   : > { %v2278_v33 = vmul.f32 %v7170_v12, %v7196_v15 }
 0x78a   : > { %v1358_v1 = vpop.permute.xlu1 %1357  ;;  %v2290_v26 = vrot.slane %v2278_v33, 6 }
 0x78b   : > { %1367 = vst.msk [vmem:[#allocation3 + $0x10] sm:$0xfe] %vm1366_vm2, %v1358_v1  ;;  %v2170_v1 = vmul.f32 %v7164_v36, %v7196_v15  ;;  %vm2740_vm2 = vcmask 1043456  }
 0x78d   : > { %v2182_v61 = vrot.slane %v2170_v1, 6 }
 0x78e   : > { %v1362_v6 = vpop.permute.xlu1 %1361 }
 0x78f   : > { %1371 = vst.msk [vmem:[#allocation3 + $0x30] sm:$0x1] %vm1370_vm3, %v1362_v6  ;;  %v2224_v6 = vmul.f32 %v7168_v27, %v7196_v15  ;;  %vm1448_vm3 = vcmask 1022976  }
 0x792   : > { %v7188_v35 = vld [vmem:[#allocation3 + $0x10] sm:$0xff]  ;;  %v7190_v50 = vpop.permute.xlu1 %1380 }
 0x793   : > { %9414 = vst [vmem:[#allocation72_spill] sm:$0xff] %v7190_v50  ;;  %v1434_v24 = vmul.f32 %v6697_v40, %v7188_v35  ;;  %v1476_v50 = vmul.f32 %v6768_v9, %v7188_v35  ;;  %v2332_v40 = vmul.f32 %v7174_v5, %v7196_v15  ;;  %v2236_v9 = vrot.slane %v2224_v6, 6 }
 0x794   : > { %v1517_v49 = vmul.f32 %v6787_v17, %v7188_v35  ;;  %v7222_v44 = vmul.f32 %v7168_v27, %v7188_v35  ;;  %v7231_v1 = vmul.f32 %v7174_v5, %v7188_v35  ;;  %v7291_v54 = vmul.f32 %v7004_v59, %v7188_v35 }
 0x795   : > { %1444 = vrot.lane.b32.xlu0 %v1434_v24, %s9380_s21  ;;  %v2344_v6 = vrot.slane %v2332_v40, 6  ;;  %v1559_v40 = vmul.f32 %v6806_v32, %v7188_v35  ;;  %v1601_v32 = vmul.f32 %v6825_v2, %v7188_v35  ;;  %v7277_v2 = vmul.f32 %v7002_v43, %v7188_v35 }
 0x796   : > { %v7199_v41 = vpop.permute.xlu1 %1394  ;;  %v9271_v17 = vrot.slane %v7222_v44, 6  ;;  %v2345_v33 = vrot.slane %v7231_v1, 6  ;;  %v7262_v1 = vld [vmem:[#allocation3] sm:$0xf8] }
 0x797   : > { %9415 = vst [vmem:[#allocation73_spill] sm:$0xff] %v7199_v41  ;;  %v7216_v41 = vmul.f32 %v7164_v36, %v7188_v35  ;;  %9418 = vst [vmem:[#allocation76_spill] sm:$0xff] %v7262_v1  ;;  %v1764_v45 = vmul.f32 %v7002_v43, %v7262_v1 }
 0x799   : > { %1486 = vrot.lane.b32.xlu0 %v1476_v50, %s9383_s0  ;;  %v7226_v50 = vmul.f32 %v7170_v12, %v7188_v35  ;;  %v9272_v39 = vrot.slane %v7216_v41, 6 }
 0x79a   : > { %v1220_v24 = vpop.permute.xlu1 %1219 }
 0x79b   : > { %1229 = vst.msk [vmem:[#allocation3 + $0x20] sm:$0xff] %vm1228_vm4, %v1220_v24  ;;  %v9270_v24 = vrot.slane %v7226_v50, 6  ;;  %vm1490_vm4 = vcmask 998400  }
 0x79c   : > { %1265 = vst.msk [vmem:[#allocation3 + $0x20] sm:$0xff] %vm1264_vm5, %v1256_v31  ;;  %v7239_v31 = vsel %vm2034_vm6, %v2182_v61, %v9272_v39  ;;  %v7255_v61 = vsel %vm2034_vm6, %v2344_v6, %v2345_v33  ;;  %v1669_v6 = vld [vmem:[#allocation11 + $0x7] ss:$8 sm:$0x3]  ;;  %vm1531_vm5 = vcmask 973824  }
 0x79d   : > { %1527 = vrot.lane.b32.xlu0 %v1517_v49, %s9386_s7  ;;  %v7247_v49 = vsel %vm2034_vm6, %v2236_v9, %v9271_v17  ;;  %v7252_v56 = vsel %vm2034_vm6, %v2290_v26, %v9270_v24  ;;  %v7266_v9 = vmul.f32 %v7000_v58, %v7188_v35  ;;  %v1643_v24 = vmul.f32 %v6844_v22, %v7188_v35 }
 0x79e   : > { %v1308_v42 = vpop.permute.xlu1 %1307  ;;  %v7285_v38 = vrot.slane %v1669_v6, %v6651_v46  ;;  %v9277_v6 = vrot.slane %v7277_v2, 3 }
 0x79f   : > { %1317 = vst.msk [vmem:[#allocation3 + $0x20] sm:$0xff] %vm1316_vm7, %v1308_v42  ;;  %vm1573_vm7 = vcmask 949248  }
 0x7a0   : > { %1369 = vst.msk [vmem:[#allocation3 + $0x20] sm:$0xff] %vm1368_vm15, %v1360_v19  ;;  %v1710_v19 = vmul.f32 %v7000_v58, %v7262_v1  ;;  %9420 = vst [vmem:[#allocation77_spill] sm:$0xff] %v7285_v38  ;;  %vm1615_vm15 = vcmask 924672  }
 0x7a1   : > { %1569 = vrot.lane.b32.xlu0 %v1559_v40, %s9389_s20 }
 0x7a2   : > { %v7258_v42 = vpop.permute.xlu1 %1900  ;;  %v1722_v22 = vrot.slane %v1710_v19, 3  ;;  %v1776_v19 = vrot.slane %v1764_v45, 3 }
 0x7a3   : > { %9417 = vst [vmem:[#allocation75_spill] sm:$0xff] %v7258_v42  ;;  %v9273_v42 = vrot.slane %v7266_v9, 3 }
 0x7a5   : > { %1611 = vrot.lane.b32.xlu0 %v1601_v32, %s9419_s13 }
 0x7a6   : > { %v1922_v26 = vpop.permute.xlu1 %1921 }
 0x7a7   : > { %v1923_v40 = vsel %vm9293_vm13, %v7156_v30, %v1922_v26  ;;  %v7298_v13 = vld [vmem:[#allocation3 + $0x20] sm:$0x7]  ;;  %vm1657_vm13 = vcmask 900096  }
 0x7a8   : > { %v1927_v17 = vmul.f32 %v1923_v40, %v7012_v18  ;;  %v1929_v39 = vmul.f32 %v1923_v40, %v6713_v51  ;;  %v1931_v32 = vmul.f32 %v1923_v40, %v7014_v52  ;;  %v1724_v40 = vsel %vm1682_vm1, %v1722_v22, %v9273_v42 }
 0x7a9   : > { %1653 = vrot.lane.b32.xlu0 %v1643_v24, %s9375_s24  ;;  %v1678_v22 = vmul.f32 %v7285_v38, %v7298_v13  ;;  %v9276_v42 = vrot.slane %v7291_v54, 3  ;;  %v1822_v21 = vmul.f32 %v7004_v59, %v7298_v13 }
 0x7aa   : > { %v1941_v26 = vrot.slane %v1927_v17, 3  ;;  %v1942_v20 = vrot.slane %v1929_v39, 3  ;;  %v1946_v51 = vrot.slane %v1931_v32, 3  ;;  %v7302_v39 = vld [vmem:[#allocation3 + $0x20] sm:$0x3f]  ;;  %v7306_v17 = vmul.f32 %v7285_v38, %v7188_v35 }
 0x7ab   : > { %v1818_v32 = vmul.f32 %v7004_v59, %v7262_v1  ;;  %v2336_v45 = vmul.f32 %v7174_v5, %v7302_v39  ;;  %v1686_v34 = vrot.slane %v1678_v22, 3  ;;  %v1836_v59 = vrot.slane %v1822_v21, 3 }
 0x7ac   : > { %v1943_v24 = vsel %vm1682_vm1, %v1941_v26, %v1942_v20  ;;  %9421 = vst [vmem:[#allocation78_spill] sm:$0xff] %v7306_v17  ;;  %v7312_v26 = vmul.f32 %v7006_v60, %v7188_v35  ;;  %v9275_v38 = vrot.slane %v7306_v17, 3 }
 0x7ad   : > { %1732 = vrot.lane.b32.xlu0 %v1724_v40, %s9380_s21  ;;  %1950 = vrot.lane.b32.xlu1 %v1943_v24, %s9419_s13  ;;  %v1778_v40 = vsel %vm1682_vm1, %v1776_v19, %v9277_v6  ;;  %v1947_v24 = vsel %vm1682_vm1, %v1942_v20, %v1946_v51  ;;  %v1830_v37 = vrot.slane %v1818_v32, 3  ;;  %v1872_v19 = vmul.f32 %v7006_v60, %v7262_v1 }
 0x7ae   : > { %v2350_v20 = vrot.slane %v2336_v45, 6  ;;  %v1926_v51 = vmul.f32 %v7156_v30, %v7262_v1  ;;  %v7343_v32 = vmul.f32 %v7156_v30, %v7188_v35  ;;  %v7358_v6 = vmul.f32 %v7158_v4, %v7188_v35 }
 0x7af   : > { %v1832_v3 = vsel %vm1682_vm1, %v1830_v37, %v9276_v42  ;;  %v1884_v45 = vrot.slane %v1872_v19, 3 }
 0x7b0   : > { %v7346_v22 = vsel %vm2034_vm6, %v2345_v33, %v2350_v20  ;;  %v9281_v42 = vrot.slane %v7343_v32, 3  ;;  %v7361_v33 = vpop.permute.xlu0 %2679 }
 0x7b1   : > { %1786 = vrot.lane.b32.xlu0 %v1778_v40, %s9383_s0  ;;  %1954 = vrot.lane.b32.xlu1 %v1947_v24, %s9419_s13  ;;  %v7335_v40 = vsel %vm1682_vm1, %v9275_v38, %v1686_v34  ;;  %v9278_v24 = vrot.slane %v7312_v26, 3  ;;  %v1980_v34 = vmul.f32 %v7158_v4, %v7262_v1  ;;  %v1938_v38 = vrot.slane %v1926_v51, 3  ;;  %9422 = vst [vmem:[#allocation79_spill] sm:$0xff] %v7361_v33 }
 0x7b2   : > { %v9282_v51 = vrot.slane %v7358_v6, 3 }
 0x7b3   : > { %v1886_v37 = vsel %vm1682_vm1, %v1884_v45, %v9278_v24  ;;  %v1940_v19 = vsel %vm1682_vm1, %v1938_v38, %v9281_v42  ;;  %v1992_v20 = vrot.slane %v1980_v34, 3  ;;  %v2021_v45 = vld [vmem:[#allocation11 + $0x16] ss:$8 sm:$0x3]  ;;  %v1714_v38 = vmul.f32 %v7000_v58, %v7298_v13 }
 0x7b4   : > { %v7381_v34 = vpop.permute.xlu0 %2761  ;;  %v9425_v58 = vrot.slane %v7266_v9, 3 }
 0x7b5   : > { %1840 = vrot.lane.b32.xlu0 %v1832_v3, %s9386_s7  ;;  %1975 = vrot.lane.b32.xlu1 %v1972_v29, %s9377_s17  ;;  %v2062_v29 = vmul.f32 %v7160_v10, %v7196_v15  ;;  %v7371_v3 = vmul.f32 %v7160_v10, %v7188_v35  ;;  %v1994_v24 = vsel %vm1682_vm1, %v1992_v20, %v9282_v51 }
 0x7b6   : > { %9423 = vst [vmem:[#allocation80_spill] sm:$0xff] %v7381_v34  ;;  %v1768_v20 = vmul.f32 %v7002_v43, %v7298_v13  ;;  %v1876_v43 = vmul.f32 %v7006_v60, %v7298_v13  ;;  %v1930_v60 = vmul.f32 %v7156_v30, %v7298_v13  ;;  %v7432_v30 = vld [vmem:[#allocation3 + $0x30] sm:$0xf] }
 0x7b7   : > { %v2074_v5 = vrot.slane %v2062_v29, 6  ;;  %v9284_v17 = vrot.slane %v7371_v3, 6 }
 0x7b8   : > { %v7391_v29 = vpop.permute.xlu0 %2815  ;;  %v1890_v21 = vrot.slane %v1876_v43, 3 }
 0x7b9   : > { %1894 = vrot.lane.b32.xlu0 %v1886_v37, %s9389_s20  ;;  %v2026_v37 = vrot.slane %v2021_v45, %v6651_v46  ;;  %v1728_v45 = vrot.slane %v1714_v38, 3  ;;  %9424 = vst [vmem:[#allocation81_spill] sm:$0xff] %v7391_v29 }
 0x7bb   : > { %v2028_v42 = vmul.f32 %v2026_v37, %v7196_v15  ;;  %v1729_v1 = vsel %vm1682_vm1, %v9425_v58, %v1728_v45  ;;  %v2029_v7 = vmul.f32 %v2026_v37, %v7188_v35  ;;  %v9426_v45 = vrot.slane %v7277_v2, 3  ;;  %v7407_v58 = vld [vmem:[#allocation3 + $0x10] sm:$0xfe] }
 0x7bc   : > { %v7412_v48 = vpop.permute.xlu0 %2869 }
 0x7bd   : > { %1948 = vrot.lane.b32.xlu0 %v1940_v19, %s9419_s13  ;;  %v2076_v19 = vsel %vm2034_vm6, %v2074_v5, %v9284_v17  ;;  %v2035_v51 = vrot.slane %v2028_v42, 6  ;;  %v2375_v5 = vld [vmem:[#allocation11 + $0x25] ss:$8 sm:$0x3]  ;;  %v2036_v38 = vrot.slane %v2029_v7, 6  ;;  %9428 = vst [vmem:[#allocation83_spill] sm:$0xff] %v7412_v48 }
 0x7be   : > { %v2727_v42 = vld [vmem:[#allocation11 + $0x34] ss:$8 sm:$0x3]  ;;  %v2380_v9 = vrot.slane %v2375_v5, %v6651_v46  ;;  %v3079_v17 = vld [vmem:[#allocation11 + $0x43] ss:$8 sm:$0x3] }
 0x7bf   : > { %v7410_v8 = vsel %vm2034_vm6, %v2035_v51, %v2036_v38  ;;  %v7414_v7 = vld [vmem:[#allocation3 + $0x20] sm:$0xff]  ;;  %v2732_v2 = vrot.slane %v2727_v42, %v6651_v46 }
 0x7c0   : > { %9427 = vst [vmem:[#allocation82_spill] sm:$0xff] %v7410_v8  ;;  %v2382_v5 = vmul.f32 %v2380_v9, %v7407_v58  ;;  %v7434_v8 = vld [vmem:[#allocation3 + $0x10] sm:$0x80]  ;;  %v2383_v43 = vmul.f32 %v2380_v9, %v7414_v7 }
 0x7c1   : > { %2002 = vrot.lane.b32.xlu0 %v1994_v24, %s9375_s24  ;;  %v1782_v24 = vrot.slane %v1768_v20, 3  ;;  %v2736_v33 = vmul.f32 %v2732_v2, %v7432_v30 }
 0x7c2   : > { %v2389_v48 = vrot.slane %v2382_v5, 1  ;;  %v2390_v29 = vrot.slane %v2383_v43, 1 }
 0x7c3   : > { %v1783_v20 = vsel %vm1682_vm1, %v9426_v45, %v1782_v24  ;;  %v7422_v24 = vld [vmem:[#allocation3 + $0x10] sm:$0xf0]  ;;  %v9431_v45 = vrot.slane %v7291_v54, 3  ;;  %v2744_v43 = vrot.slane %v2736_v33, 4 }
 0x7c4   : > { %9429 = vst [vmem:[#allocation84_spill] sm:$0xff] %v7422_v24  ;;  %v2734_v54 = vmul.f32 %v2732_v2, %v7422_v24  ;;  %v7453_v63 = vsel %vm2388_vm0, %v2389_v48, %v2390_v29 }
 0x7c5   : > { %2084 = vrot.lane.b32.xlu0 %v2076_v19, %s9380_s21  ;;  %v2030_v19 = vmul.f32 %v2026_v37, %v7302_v39  ;;  %v7419_v37 = vld [vmem:[#allocation3 + $0x30] sm:$0x1]  ;;  %9434 = vst [vmem:[#allocation87_spill] sm:$0xff] %v7453_v63 }
 0x7c6   : > { %v2384_v42 = vmul.f32 %v2380_v9, %v7419_v37  ;;  %v7448_v9 = vpop.permute.xlu0 %2923 }
 0x7c7   : > { %9433 = vst [vmem:[#allocation86_spill] sm:$0xff] %v7448_v9 }
 0x7c8   : > { %v2392_v34 = vrot.slane %v2384_v42, 1 }
 0x7c9   : > { %1736 = vrot.lane.b32.xlu0 %v1729_v1, %s9380_s21  ;;  %v2038_v1 = vrot.slane %v2030_v19, 6  ;;  %v3084_v19 = vrot.slane %v3079_v17, %v6651_v46  ;;  %v7441_v17 = vld [vmem:[#allocation3 + $0x30] sm:$0x7f] }
 0x7ca   : > { %v7456_v24 = vsel %vm2388_vm0, %v2390_v29, %v2392_v34  ;;  %v7478_v33 = vpop.permute.xlu0 %2977 }
 0x7cb   : > { %v7425_v51 = vsel %vm2034_vm6, %v2036_v38, %v2038_v1  ;;  %v1944_v38 = vrot.slane %v1930_v60, 3  ;;  %v1984_v1 = vmul.f32 %v7158_v4, %v7298_v13  ;;  %v3086_v13 = vmul.f32 %v3084_v19, %v7434_v8  ;;  %9435 = vst [vmem:[#allocation88_spill] sm:$0xff] %v7456_v24  ;;  %9441 = vst [vmem:[#allocation93_spill] sm:$0xff] %v7478_v33 }
 0x7cc   : > { %9430 = vst [vmem:[#allocation85_spill] sm:$0xff] %v7425_v51 }
 0x7cd   : > { %1790 = vrot.lane.b32.xlu0 %v1783_v20, %s9383_s0  ;;  %v1837_v20 = vsel %vm1682_vm1, %v9431_v45, %v1836_v59  ;;  %v2735_v59 = vmul.f32 %v2732_v2, %v7414_v7  ;;  %v9432_v45 = vrot.slane %v7312_v26, 3  ;;  %v3087_v26 = vmul.f32 %v3084_v19, %v7414_v7 }
 0x7ce   : > { %v3092_v42 = vrot.slane %v3086_v13, 7  ;;  %v1998_v29 = vrot.slane %v1984_v1, 3  ;;  %v7485_v1 = vld [vmem:[#allocation11 + $0x53] ss:$8 sm:$0x3]  ;;  %v9444_v13 = vrot.slane %v7371_v3, 6 }
 0x7cf   : > { %v1891_v51 = vsel %vm1682_vm1, %v9432_v45, %v1890_v21  ;;  %v2742_v60 = vrot.slane %v2735_v59, 4  ;;  %v3088_v21 = vmul.f32 %v3084_v19, %v7441_v17  ;;  %v3093_v2 = vrot.slane %v3087_v26, 7 }
 0x7d0   : > { %v9437_v59 = vrot.slane %v7343_v32, 3  ;;  %v2066_v19 = vmul.f32 %v7160_v10, %v7302_v39  ;;  %v9442_v32 = vrot.slane %v7358_v6, 3 }
 0x7d1   : > { %1844 = vrot.lane.b32.xlu0 %v1837_v20, %s9386_s7  ;;  %v2741_v20 = vrot.slane %v2734_v54, 4  ;;  %v3095_v54 = vrot.slane %v3088_v21, 7  ;;  %v7468_v34 = vsel %vm2740_vm2, %v2742_v60, %v2744_v43  ;;  %v3461_v21 = vrot.slane %v7485_v1, %v6651_v46  ;;  %v7495_v43 = vld [vmem:[#allocation11 + $0x54] ss:$8 sm:$0x3] }
 0x7d2   : > { %v1945_v48 = vsel %vm1682_vm1, %v9437_v59, %v1944_v38  ;;  %9438 = vst [vmem:[#allocation90_spill] sm:$0xff] %v7468_v34  ;;  %v1999_v38 = vsel %vm1682_vm1, %v9442_v32, %v1998_v29  ;;  %v7514_v29 = vld [vmem:[#allocation11 + $0x57] ss:$8 sm:$0x3]  ;;  %v2118_v32 = vmul.f32 %v7162_v62, %v7188_v35 }
 0x7d3   : > { %v7462_v5 = vsel %vm2740_vm2, %v2741_v20, %v2742_v60  ;;  %v7476_v45 = vsel %vm1213_vm14, %v3093_v2, %v3095_v54  ;;  %v2080_v20 = vrot.slane %v2066_v19, 6  ;;  %v7487_v60 = vpop.permute.xlu0 %3031  ;;  %v7507_v54 = vld [vmem:[#allocation11 + $0x56] ss:$8 sm:$0x3]  ;;  %v2116_v19 = vmul.f32 %v7162_v62, %v7196_v15 }
 0x7d4   : > { %9436 = vst [vmem:[#allocation89_spill] sm:$0xff] %v7462_v5  ;;  %9440 = vst [vmem:[#allocation92_spill] sm:$0xff] %v7476_v45  ;;  %v7532_v45 = vld [vmem:[#allocation11 + $0x60] ss:$8 sm:$0x3] }
 0x7d5   : > { %1898 = vrot.lane.b32.xlu0 %v1891_v51, %s9389_s20  ;;  %v7473_v51 = vsel %vm1213_vm14, %v3092_v42, %v3093_v2  ;;  %9443 = vst [vmem:[#allocation94_spill] sm:$0xff] %v7487_v60  ;;  %v2081_v26 = vsel %vm2034_vm6, %v9444_v13, %v2080_v20  ;;  %v3515_v42 = vrot.slane %v7495_v43, %v6651_v46  ;;  %v7502_v2 = vld [vmem:[#allocation11 + $0x55] ss:$8 sm:$0x3]  ;;  %v2128_v13 = vrot.slane %v2116_v19, 6 }
 0x7d6   : > { %9439 = vst [vmem:[#allocation91_spill] sm:$0xff] %v7473_v51  ;;  %v3569_v3 = vrot.slane %v7502_v2, %v6651_v46  ;;  %v3677_v20 = vrot.slane %v7514_v29, %v6651_v46  ;;  %v3731_v19 = vrot.slane %v7532_v45, %v6651_v46  ;;  %v1404_v34 = vld [vmem:[#allocation11] ss:$8 sm:$0x3] }
 0x7d7   : > { %v7497_v6 = vpop.permute.xlu0 %3112 }
 0x7d8   : > { %9445 = vst [vmem:[#allocation95_spill] sm:$0xff] %v7497_v6 }
 0x7d9   : > { %1952 = vrot.lane.b32.xlu0 %v1945_v48, %s9419_s13  ;;  %v3623_v48 = vrot.slane %v7507_v54, %v6651_v46 }
 0x7db   : > { %v7509_v59 = vpop.permute.xlu0 %3166 }
 0x7dc   : > { %9446 = vst [vmem:[#allocation96_spill] sm:$0xff] %v7509_v59 }
 0x7dd   : > { %2006 = vrot.lane.b32.xlu0 %v1999_v38, %s9375_s24 }
 0x7df   : > { %v7520_v38 = vpop.permute.xlu0 %3220 }
 0x7e1   : > { %2088 = vrot.lane.b32.xlu0 %v2081_v26, %s9380_s21  ;;  %v2129_v26 = vrot.slane %v2118_v32, 6  ;;  %v2174_v32 = vmul.f32 %v7164_v36, %v7302_v39 }
 0x7e3   : > { %v2130_v15 = vsel %vm2034_vm6, %v2128_v13, %v2129_v26  ;;  %v2188_v13 = vrot.slane %v2174_v32, 6  ;;  %v9448_v32 = vrot.slane %v7222_v44, 6 }
 0x7e5   : > { %3466 = vrot.lane.b32.xlu0 %v3461_v21, %s9368_s16  ;;  %v2120_v21 = vmul.f32 %v7162_v62, %v7302_v39 }
 0x7e9   : > { %3520 = vrot.lane.b32.xlu0 %v3515_v42, %s9369_s4  ;;  %v7528_v42 = vpop.permute.xlu0 %3274 }
 0x7ed   : > { %3574 = vrot.lane.b32.xlu0 %v3569_v3, %s9370_s19  ;;  %v2134_v3 = vrot.slane %v2120_v21, 6  ;;  %v7535_v51 = vpop.permute.xlu0 %3328 }
 0x7f1   : > { %3628 = vrot.lane.b32.xlu0 %v3623_v48, %s9373_s6  ;;  %v2135_v48 = vsel %vm2034_vm6, %v2129_v26, %v2134_v3  ;;  %v9447_v26 = vrot.slane %v7216_v41, 6  ;;  %v2228_v3 = vmul.f32 %v7168_v27, %v7302_v39 }
 0x7f3   : > { %v2242_v5 = vrot.slane %v2228_v3, 6 }
 0x7f5   : > { %3682 = vrot.lane.b32.xlu0 %v3677_v20, %s9376_s1  ;;  %v7543_v20 = vpop.permute.xlu0 %3382 }
 0x7f9   : > { %2138 = vrot.lane.b32.xlu0 %v2130_v15, %s9383_s0  ;;  %v2189_v15 = vsel %vm2034_vm6, %v9447_v26, %v2188_v13  ;;  %v2243_v13 = vsel %vm2034_vm6, %v9448_v32, %v2242_v5  ;;  %v2282_v26 = vmul.f32 %v7170_v12, %v7302_v39 }
 0x7fb   : > { %v2296_v44 = vrot.slane %v2282_v26, 6 }
 0x7fd   : > { %2142 = vrot.lane.b32.xlu0 %v2135_v48, %s9383_s0 }
 0x801   : > { %3736 = vrot.lane.b32.xlu0 %v3731_v19, %s9377_s17  ;;  %v7556_v19 = vrot.slane %v1404_v34, %v6651_v46 }
 0x805   : > { %2192 = vrot.lane.b32.xlu0 %v7239_v31, %s9386_s7 }
 0x807   : > { %v1445_v21 = vpop.permute.xlu0 %1444 }
 0x808   : > { %v1450_v41 = vsel %vm1448_vm3, %v1445_v21, %v6770_v11 }
 0x809   : > { %2196 = vrot.lane.b32.xlu0 %v2189_v15, %s9386_s7  ;;  %v1412_v15 = vmul.f32 %v7556_v19, %v7188_v35 }
 0x80b   : > { %v1487_v48 = vpop.permute.xlu0 %1486  ;;  %v1454_v34 = vadd.f32 %v1450_v41, %v1412_v15 }
 0x80d   : > { %2246 = vrot.lane.b32.xlu0 %v7247_v49, %s9389_s20  ;;  %v1492_v49 = vsel %vm1490_vm4, %v1487_v48, %v6794_v23  ;;  %v9449_v48 = vrot.slane %v7226_v50, 6 }
 0x80e   : > { %v1496_v5 = vadd.f32 %v1492_v49, %v1454_v34  ;;  %v2420_v49 = vmul.f32 %v7178_v25, %v7419_v37 }
 0x80f   : > { %v1528_v31 = vpop.permute.xlu0 %1527  ;;  %v2297_v41 = vsel %vm2034_vm6, %v9449_v48, %v2296_v44 }
 0x810   : > { %v1533_v11 = vsel %vm1531_vm5, %v1528_v31, %v6814_v53 }
 0x811   : > { %2250 = vrot.lane.b32.xlu0 %v2243_v13, %s9389_s20  ;;  %v1537_v39 = vadd.f32 %v1533_v11, %v1496_v5  ;;  %v2470_v11 = vmul.f32 %v7184_v57, %v7407_v58 }
 0x813   : > { %v1570_v3 = vpop.permute.xlu0 %1569 }
 0x814   : > { %v1575_v35 = vsel %vm1573_vm7, %v1570_v3, %v6833_v14  ;;  %v2418_v14 = vmul.f32 %v7178_v25, %v7414_v7  ;;  %v2472_v3 = vmul.f32 %v7184_v57, %v7414_v7 }
 0x815   : > { %2300 = vrot.lane.b32.xlu0 %v7252_v56, %s9419_s13  ;;  %v1579_v53 = vadd.f32 %v1575_v35, %v1537_v39 }
 0x816   : > { %v2429_v15 = vrot.slane %v2418_v14, 1  ;;  %v2483_v35 = vrot.slane %v2472_v3, 1 }
 0x817   : > { %v1612_v21 = vpop.permute.xlu0 %1611 }
 0x818   : > { %v1617_v23 = vsel %vm1615_vm15, %v1612_v21, %v6886_v0  ;;  %v2416_v0 = vmul.f32 %v7178_v25, %v7407_v58  ;;  %v7611_v21 = vld [vmem:[#allocation3 + $0x18] sm:$0xff] }
 0x819   : > { %2304 = vrot.lane.b32.xlu0 %v2297_v41, %s9419_s13  ;;  %v1621_v31 = vadd.f32 %v1617_v23, %v1579_v53  ;;  %v2482_v41 = vrot.slane %v2470_v11, 1  ;;  %v2474_v53 = vmul.f32 %v7184_v57, %v7419_v37 }
 0x81b   : > { %v1654_v32 = vpop.permute.xlu0 %1653 }
 0x81c   : > { %v1659_v56 = vsel %vm1657_vm13, %v1654_v32, %v7010_v16  ;;  %v2428_v16 = vrot.slane %v2416_v0, 1 }
 0x81d   : > { %v1663_v13 = vadd.f32 %v1659_v56, %v1621_v31  ;;  %2354 = vrot.lane.b32.xlu0 %v7255_v61, %s9375_s24  ;;  %v2526_v56 = vmul.f32 %v7186_v28, %v7414_v7 }
 0x81e   : > { %v2430_v61 = vsel %vm2388_vm0, %v2428_v16, %v2429_v15 }
 0x81f   : > { %v7591_v50 = vadd.f32 %v7335_v40, %v1663_v13  ;;  %v7593_v26 = vpop.permute.xlu1 %1950  ;;  %v2434_v40 = vrot.slane %v2420_v49, 1  ;;  %v2524_v13 = vmul.f32 %v7186_v28, %v7407_v58 }
 0x821   : > { %2358 = vrot.lane.b32.xlu0 %v7346_v22, %s9375_s24  ;;  %v2435_v5 = vsel %vm2388_vm0, %v2429_v15, %v2434_v40  ;;  %v2537_v15 = vrot.slane %v2526_v56, 1  ;;  %v2536_v49 = vrot.slane %v2524_v13, 1  ;;  %v2528_v40 = vmul.f32 %v7186_v28, %v7419_v37 }
 0x823   : > { %v7599_v34 = vpop.permute.xlu1 %1954  ;;  %v2538_v11 = vsel %vm2388_vm0, %v2536_v49, %v2537_v15 }
 0x825   : > { %2438 = vrot.lane.b32.xlu0 %v2430_v61, %s9380_s21  ;;  %v5670_v61 = vld [vmem:[#allocation11 + $0x17] ss:$8 sm:$0x3] }
 0x826   : > { %v2054_v3 = vrot.slane %v5670_v61, %v6653_v47 }
 0x827   : > { %v1976_v44 = vpop.permute.xlu1 %1975 }
 0x828   : > { %v1977_v22 = vsel %vm1637_vm8, %v7158_v4, %v1976_v44  ;;  %v2484_v4 = vsel %vm2388_vm0, %v2482_v41, %v2483_v35  ;;  %v2580_v44 = vmul.f32 %v7192_v55, %v7414_v7  ;;  %v2582_v41 = vmul.f32 %v7192_v55, %v7419_v37 }
 0x829   : > { %v1981_v39 = vmul.f32 %v1977_v22, %v7012_v18  ;;  %v1983_v23 = vmul.f32 %v7611_v21, %v1977_v22  ;;  %v1985_v48 = vmul.f32 %v1977_v22, %v7014_v52  ;;  %2442 = vrot.lane.b32.xlu0 %v2435_v5, %s9380_s21  ;;  %v2488_v52 = vrot.slane %v2474_v53, 1 }
 0x82a   : > { %v2542_v22 = vrot.slane %v2528_v40, 1  ;;  %v2578_v5 = vmul.f32 %v7192_v55, %v7407_v58 }
 0x82b   : > { %v1995_v31 = vrot.slane %v1981_v39, 3  ;;  %v1996_v32 = vrot.slane %v1983_v23, 3  ;;  %v2000_v18 = vrot.slane %v1985_v48, 3  ;;  %v2489_v0 = vsel %vm2388_vm0, %v2483_v35, %v2488_v52  ;;  %v7641_v23 = vpop.permute.xlu0 %1732 }
 0x82c   : > { %v2543_v35 = vsel %vm2388_vm0, %v2537_v15, %v2542_v22  ;;  %v2591_v39 = vrot.slane %v2580_v44, 1  ;;  %v2590_v48 = vrot.slane %v2578_v5, 1 }
 0x82d   : > { %2492 = vrot.lane.b32.xlu0 %v2484_v4, %s9383_s0  ;;  %v1997_v14 = vsel %vm1682_vm1, %v1995_v31, %v1996_v32  ;;  %v2001_v16 = vsel %vm1682_vm1, %v1996_v32, %v2000_v18  ;;  %v9450_v31 = vld [vmem:[#allocation74_spill] sm:$0xff]  ;;  %v2596_v4 = vrot.slane %v2582_v41, 1 }
 0x82e   : > { %2004 = vrot.lane.b32.xlu1 %v1997_v14, %s9375_s24  ;;  %v2592_v53 = vsel %vm2388_vm0, %v2590_v48, %v2591_v39  ;;  %v2634_v32 = vmul.f32 %v9450_v31, %v7414_v7  ;;  %v2632_v56 = vmul.f32 %v9450_v31, %v7407_v58  ;;  %v9452_v48 = vld [vmem:[#allocation80_spill] sm:$0xff] }
 0x82f   : > { %v7652_v18 = vpop.permute.xlu0 %1786  ;;  %v2597_v14 = vsel %vm2388_vm0, %v2591_v39, %v2596_v4  ;;  %v2770_v41 = vmul.f32 %v9452_v48, %v7414_v7 }
 0x830   : > { %v2645_v52 = vrot.slane %v2634_v32, 1  ;;  %v2644_v13 = vrot.slane %v2632_v56, 1 }
 0x831   : > { %2496 = vrot.lane.b32.xlu0 %v2489_v0, %s9383_s0  ;;  %v2636_v0 = vmul.f32 %v9450_v31, %v7419_v37  ;;  %v2781_v56 = vrot.slane %v2770_v41, 4  ;;  %v9455_v41 = vld [vmem:[#allocation83_spill] sm:$0xff] }
 0x832   : > { %2008 = vrot.lane.b32.xlu1 %v2001_v16, %s9375_s24  ;;  %v2646_v15 = vsel %vm2388_vm0, %v2644_v13, %v2645_v52  ;;  %v9451_v16 = vld [vmem:[#allocation79_spill] sm:$0xff] }
 0x833   : > { %v2688_v49 = vmul.f32 %v9451_v16, %v7414_v7  ;;  %v7661_v61 = vpop.permute.xlu0 %1840  ;;  %v2686_v40 = vmul.f32 %v9451_v16, %v7407_v58  ;;  %v2690_v5 = vmul.f32 %v9451_v16, %v7419_v37  ;;  %v9453_v58 = vld [vmem:[#allocation84_spill] sm:$0xff] }
 0x834   : > { %v2768_v32 = vmul.f32 %v9452_v48, %v9453_v58 }
 0x835   : > { %2546 = vrot.lane.b32.xlu0 %v2538_v11, %s9386_s7  ;;  %v2699_v44 = vrot.slane %v2688_v49, 1  ;;  %v2698_v22 = vrot.slane %v2686_v40, 1 }
 0x836   : > { %2057 = vrot.lane.b32.xlu1 %v2054_v3, %s9368_s16  ;;  %v2650_v3 = vrot.slane %v2636_v0, 1  ;;  %v2780_v37 = vrot.slane %v2768_v32, 4  ;;  %v9454_v0 = vld [vmem:[#allocation81_spill] sm:$0xff] }
 0x837   : > { %v2700_v39 = vsel %vm2388_vm0, %v2698_v22, %v2699_v44 }
 0x838   : > { %v2651_v11 = vsel %vm2388_vm0, %v2645_v52, %v2650_v3  ;;  %v2772_v52 = vmul.f32 %v9452_v48, %v7432_v30  ;;  %v2782_v13 = vsel %vm2740_vm2, %v2780_v37, %v2781_v56  ;;  %v2822_v3 = vmul.f32 %v9454_v0, %v9453_v58 }
 0x839   : > { %2550 = vrot.lane.b32.xlu0 %v2543_v35, %s9386_s7  ;;  %v7670_v35 = vpop.permute.xlu0 %1894 }
 0x83a   : > { %v2786_v49 = vrot.slane %v2772_v52, 4  ;;  %v2834_v22 = vrot.slane %v2822_v3, 4 }
 0x83d   : > { %2600 = vrot.lane.b32.xlu0 %v2592_v53, %s9389_s20  ;;  %v2704_v53 = vrot.slane %v2690_v5, 1  ;;  %v2826_v5 = vmul.f32 %v9454_v0, %v7432_v30 }
 0x83f   : > { %v2705_v4 = vsel %vm2388_vm0, %v2699_v44, %v2704_v53  ;;  %v2878_v53 = vmul.f32 %v9455_v41, %v7414_v7 }
 0x841   : > { %2604 = vrot.lane.b32.xlu0 %v2597_v14, %s9389_s20  ;;  %v7679_v14 = vpop.permute.xlu0 %1948  ;;  %v2889_v52 = vrot.slane %v2878_v53, 4 }
 0x845   : > { %2654 = vrot.lane.b32.xlu0 %v2646_v15, %s9419_s13  ;;  %v2824_v15 = vmul.f32 %v9454_v0, %v7414_v7  ;;  %v7690_v40 = vpop.permute.xlu0 %2002  ;;  %v9471_v0 = vld [vmem:[#allocation52_spill] sm:$0xff] }
 0x847   : > { %v2835_v44 = vrot.slane %v2824_v15, 4  ;;  %v2880_v15 = vmul.f32 %v9455_v41, %v7432_v30 }
 0x849   : > { %2658 = vrot.lane.b32.xlu0 %v2651_v11, %s9419_s13  ;;  %v2787_v11 = vsel %vm2740_vm2, %v2781_v56, %v2786_v49  ;;  %v7699_v32 = vpop.permute.xlu0 %2084  ;;  %v2876_v56 = vmul.f32 %v9455_v41, %v9453_v58 }
 0x84a   : > { %9456 = vst [vmem:[#allocation74_spill] sm:$0xff] %v7699_v32 }
 0x84d   : > { %2708 = vrot.lane.b32.xlu0 %v2700_v39, %s9375_s24  ;;  %v2836_v39 = vsel %vm2740_vm2, %v2834_v22, %v2835_v44  ;;  %v7708_v49 = vpop.permute.xlu0 %1736  ;;  %v2894_v22 = vrot.slane %v2880_v15, 4 }
 0x851   : > { %2712 = vrot.lane.b32.xlu0 %v2705_v4, %s9375_s24  ;;  %v2840_v4 = vrot.slane %v2826_v5, 4  ;;  %v2895_v5 = vsel %vm2740_vm2, %v2889_v52, %v2894_v22  ;;  %v7717_v53 = vpop.permute.xlu0 %1790 }
 0x853   : > { %v2841_v37 = vsel %vm2740_vm2, %v2835_v44, %v2840_v4  ;;  %v2930_v44 = vmul.f32 %v7448_v9, %v9453_v58 }
 0x855   : > { %2790 = vrot.lane.b32.xlu0 %v2782_v13, %s9380_s21  ;;  %v2888_v13 = vrot.slane %v2876_v56, 4  ;;  %v2942_v4 = vrot.slane %v2930_v44, 4  ;;  %v2934_v56 = vmul.f32 %v7448_v9, %v7432_v30 }
 0x857   : > { %v2890_v3 = vsel %vm2740_vm2, %v2888_v13, %v2889_v52  ;;  %v2986_v13 = vmul.f32 %v7478_v33, %v7414_v7  ;;  %v2948_v15 = vrot.slane %v2934_v56, 4  ;;  %v2984_v52 = vmul.f32 %v7478_v33, %v9453_v58 }
 0x859   : > { %2794 = vrot.lane.b32.xlu0 %v2787_v11, %s9380_s21  ;;  %v2932_v11 = vmul.f32 %v7448_v9, %v7414_v7  ;;  %v2997_v22 = vrot.slane %v2986_v13, 4  ;;  %v2996_v44 = vrot.slane %v2984_v52, 4  ;;  %v9464_v9 = vld [vmem:[#allocation43_spill] sm:$0xff] }
 0x85d   : > { %2844 = vrot.lane.b32.xlu0 %v2836_v39, %s9383_s0  ;;  %v2943_v39 = vrot.slane %v2932_v11, 4 }
 0x85f   : > { %v2949_v11 = vsel %vm2740_vm2, %v2943_v39, %v2948_v15 }
 0x861   : > { %2848 = vrot.lane.b32.xlu0 %v2841_v37, %s9383_s0  ;;  %v2944_v37 = vsel %vm2740_vm2, %v2942_v4, %v2943_v39  ;;  %v2998_v4 = vsel %vm2740_vm2, %v2996_v44, %v2997_v22  ;;  %v3038_v39 = vmul.f32 %v7487_v60, %v9453_v58 }
 0x863   : > { %v3050_v52 = vrot.slane %v3038_v39, 4  ;;  %v3123_v39 = vmul.f32 %v7497_v6, %v7441_v17 }
 0x865   : > { %2898 = vrot.lane.b32.xlu0 %v2890_v3, %s9386_s7  ;;  %v7728_v3 = vpop.permute.xlu0 %1844 }
 0x869   : > { %2902 = vrot.lane.b32.xlu0 %v2895_v5, %s9386_s7  ;;  %v2988_v5 = vmul.f32 %v7478_v33, %v7432_v30  ;;  %v7737_v56 = vpop.permute.xlu0 %1898  ;;  %v9463_v33 = vld [vmem:[#allocation44_spill] sm:$0xff] }
 0x86b   : > { %v3002_v46 = vrot.slane %v2988_v5, 4 }
 0x86d   : > { %2952 = vrot.lane.b32.xlu0 %v2944_v37, %s9389_s20  ;;  %v3040_v37 = vmul.f32 %v7487_v60, %v7414_v7  ;;  %v3003_v13 = vsel %vm2740_vm2, %v2997_v22, %v3002_v46  ;;  %v7746_v44 = vpop.permute.xlu0 %1952  ;;  %v3119_v46 = vmul.f32 %v7497_v6, %v7434_v8 }
 0x86f   : > { %v3051_v15 = vrot.slane %v3040_v37, 4 }
 0x871   : > { %2956 = vrot.lane.b32.xlu0 %v2949_v11, %s9389_s20  ;;  %v3042_v11 = vmul.f32 %v7487_v60, %v7432_v30  ;;  %v3052_v24 = vsel %vm2740_vm2, %v3050_v52, %v3051_v15  ;;  %v7755_v37 = vpop.permute.xlu0 %2006  ;;  %v3131_v30 = vrot.slane %v3119_v46, 7  ;;  %v9457_v52 = vld [vmem:[#allocation59_spill] sm:$0xff]  ;;  %v9462_v60 = vld [vmem:[#allocation41_spill] sm:$0xff] }
 0x873   : > { %v3056_v5 = vrot.slane %v3042_v11, 4  ;;  %v1411_v11 = vmul.f32 %v9457_v52, %v7556_v19  ;;  %v3177_v52 = vmul.f32 %v7509_v59, %v7441_v17 }
 0x875   : > { %3006 = vrot.lane.b32.xlu0 %v2998_v4, %s9419_s13  ;;  %v3121_v4 = vmul.f32 %v7497_v6, %v7414_v7  ;;  %v3057_v58 = vsel %vm2740_vm2, %v3051_v15, %v3056_v5  ;;  %v3137_v15 = vrot.slane %v3123_v39, 7  ;;  %v9458_v5 = vld [vmem:[#allocation40_spill] sm:$0xff]  ;;  %v7771_v63 = vpop.permute.xlu0 %2088  ;;  %v9461_v6 = vld [vmem:[#allocation42_spill] sm:$0xff] }
 0x876   : > { %9460 = vst [vmem:[#allocation79_spill] sm:$0xff] %v7771_v63  ;;  %v9466_v63 = vld [vmem:[#allocation77_spill] sm:$0xff] }
 0x877   : > { %v3132_v22 = vrot.slane %v3121_v4, 7  ;;  %v3173_v4 = vmul.f32 %v7509_v59, %v7434_v8 }
 0x879   : > { %3010 = vrot.lane.b32.xlu0 %v3003_v13, %s9419_s13  ;;  %v3133_v13 = vsel %vm1213_vm14, %v3131_v30, %v3132_v22  ;;  %v3138_v30 = vsel %vm1213_vm14, %v3132_v22, %v3137_v15  ;;  %v3185_v39 = vrot.slane %v3173_v4, 7  ;;  %v9468_v15 = vld [vmem:[#allocation45_spill] sm:$0xff]  ;;  %v7791_v4 = vpop.permute.xlu0 %3466 }
 0x87d   : > { %3060 = vrot.lane.b32.xlu0 %v3052_v24, %s9375_s24  ;;  %v3175_v24 = vmul.f32 %v7509_v59, %v7414_v7 }
 0x87f   : > { %v3186_v32 = vrot.slane %v3175_v24, 7 }
 0x881   : > { %3064 = vrot.lane.b32.xlu0 %v3057_v58, %s9375_s24  ;;  %v9459_v58 = vld [vmem:[#allocation39_spill] sm:$0xff]  ;;  %v3187_v24 = vsel %vm1213_vm14, %v3185_v39, %v3186_v32 }
 0x882   : > { %v1449_v46 = vsel %vm1448_vm3, %v9459_v58, %v9458_v5  ;;  %v1532_v5 = vsel %vm1531_vm5, %v9464_v9, %v9463_v33  ;;  %v9465_v58 = vld [vmem:[#allocation76_spill] sm:$0xff]  ;;  %v3227_v9 = vmul.f32 %v7520_v38, %v7434_v8  ;;  %v9470_v33 = vld [vmem:[#allocation47_spill] sm:$0xff] }
 0x883   : > { %v1453_v19 = vadd.f32 %v1449_v46, %v1411_v11  ;;  %v1676_v41 = vmul.f32 %v9466_v63, %v9465_v58  ;;  %v9469_v63 = vld [vmem:[#allocation49_spill] sm:$0xff] }
 0x885   : > { %3141 = vrot.lane.b32.xlu0 %v3133_v13, %s9380_s21  ;;  %v1491_v13 = vsel %vm1490_vm4, %v9462_v60, %v9461_v6  ;;  %v3229_v60 = vmul.f32 %v7520_v38, %v7414_v7  ;;  %v9467_v6 = vld [vmem:[#allocation46_spill] sm:$0xff] }
 0x886   : > { %v1495_v22 = vadd.f32 %v1491_v13, %v1453_v19  ;;  %v1574_v11 = vsel %vm1573_vm7, %v9468_v15, %v9467_v6  ;;  %v1616_v13 = vsel %vm1615_vm15, %v9470_v33, %v9469_v63  ;;  %v1683_v19 = vrot.slane %v1676_v41, 3  ;;  %v9472_v6 = vld [vmem:[#allocation51_spill] sm:$0xff]  ;;  %v7809_v41 = vpop.permute.xlu0 %3520 }
 0x887   : > { %v3240_v59 = vrot.slane %v3229_v60, 7  ;;  %v1658_v15 = vsel %vm1657_vm13, %v9472_v6, %v9471_v0  ;;  %v3283_v60 = vmul.f32 %v7528_v42, %v7414_v7  ;;  %v9475_v0 = vld [vmem:[#allocation53_spill] sm:$0xff]  ;;  %v3281_v33 = vmul.f32 %v7528_v42, %v7434_v8 }
 0x888   : > { %v1536_v46 = vadd.f32 %v1532_v5, %v1495_v22  ;;  %v3231_v22 = vmul.f32 %v7520_v38, %v7441_v17  ;;  %v9477_v6 = vld [vmem:[#allocation57_spill] sm:$0xff] }
 0x889   : > { %3145 = vrot.lane.b32.xlu0 %v3138_v30, %s9380_s21  ;;  %v3191_v30 = vrot.slane %v3177_v52, 7  ;;  %v3239_v52 = vrot.slane %v3227_v9, 7 }
 0x88a   : > { %v1578_v39 = vadd.f32 %v1574_v11, %v1536_v46  ;;  %v1740_v46 = vsel %vm1448_vm3, %v7641_v23, %v9475_v0  ;;  %v3245_v9 = vrot.slane %v3231_v22, 7  ;;  %v9478_v23 = vld [vmem:[#allocation54_spill] sm:$0xff]  ;;  %v3337_v0 = vmul.f32 %v7535_v51, %v7414_v7 }
 0x88b   : > { %v3192_v58 = vsel %vm1213_vm14, %v3186_v32, %v3191_v30  ;;  %v3241_v32 = vsel %vm1213_vm14, %v3239_v52, %v3240_v59  ;;  %v7830_v52 = vpop.permute.xlu0 %3574 }
 0x88c   : > { %v1620_v5 = vadd.f32 %v1616_v13, %v1578_v39  ;;  %v3246_v39 = vsel %vm1213_vm14, %v3240_v59, %v3245_v9 }
 0x88d   : > { %3195 = vrot.lane.b32.xlu0 %v3187_v24, %s9383_s0  ;;  %v9473_v24 = vld [vmem:[#allocation78_spill] sm:$0xff] }
 0x88e   : > { %v9474_v48 = vrot.slane %v9473_v24, 3  ;;  %v1662_v11 = vadd.f32 %v1658_v15, %v1620_v5  ;;  %v1848_v15 = vsel %vm1531_vm5, %v7661_v61, %v9477_v6  ;;  %v1741_v5 = vsel %vm1448_vm3, %v7708_v49, %v9478_v23 }
 0x88f   : > { %v3293_v24 = vrot.slane %v3281_v33, 7  ;;  %v1745_v49 = vadd.f32 %v1741_v5, %v7591_v50  ;;  %v3335_v50 = vmul.f32 %v7535_v51, %v7434_v8 }
 0x890   : > { %v1685_v63 = vsel %vm1682_vm1, %v1683_v19, %v9474_v48  ;;  %v9476_v48 = vld [vmem:[#allocation55_spill] sm:$0xff]  ;;  %vm9303_vm1 = vcmask 1045504  }
 0x891   : > { %3199 = vrot.lane.b32.xlu0 %v3192_v58, %s9383_s0  ;;  %v1690_v30 = vadd.f32 %v1685_v63, %v1662_v11  ;;  %v1794_v13 = vsel %vm1490_vm4, %v7652_v18, %v9476_v48  ;;  %v3294_v58 = vrot.slane %v3283_v60, 7  ;;  %v3285_v18 = vmul.f32 %v7528_v42, %v7441_v17  ;;  %v9479_v63 = vld [vmem:[#allocation66_spill] sm:$0xff]  ;;  %v9480_v11 = vld [vmem:[#allocation56_spill] sm:$0xff]  ;;  %v9482_v48 = vld [vmem:[#allocation75_spill] sm:$0xff] }
 0x892   : > { %v1902_v59 = vsel %vm1573_vm7, %v7670_v35, %v9479_v63  ;;  %v1795_v61 = vsel %vm1490_vm4, %v7717_v53, %v9480_v11  ;;  %v9484_v63 = vld [vmem:[#allocation82_spill] sm:$0xff] }
 0x893   : > { %v1744_v19 = vadd.f32 %v1740_v46, %v1690_v30  ;;  %v3295_v60 = vsel %vm1213_vm14, %v3293_v24, %v3294_v58  ;;  %v1956_v46 = vsel %vm1615_vm15, %v7679_v14, %v7593_v26  ;;  %v9481_v30 = vld [vmem:[#allocation58_spill] sm:$0xff]  ;;  %v1799_v53 = vadd.f32 %v1795_v61, %v1745_v49 }
 0x894   : > { %v1849_v35 = vsel %vm1531_vm5, %v7728_v3, %v9481_v30  ;;  %v3299_v33 = vrot.slane %v3285_v18, 7  ;;  %v3348_v3 = vrot.slane %v3337_v0, 7  ;;  %v3339_v24 = vmul.f32 %v7535_v51, %v7441_v17 }
 0x895   : > { %3249 = vrot.lane.b32.xlu0 %v3241_v32, %s9386_s7  ;;  %v1798_v22 = vadd.f32 %v1794_v13, %v1744_v19  ;;  %v1903_v13 = vsel %vm1573_vm7, %v7737_v56, %v9482_v48  ;;  %v7857_v19 = vpop.permute.xlu0 %3628  ;;  %v1853_v26 = vadd.f32 %v1849_v35, %v1799_v53  ;;  %v3347_v56 = vrot.slane %v3335_v50, 7 }
 0x896   : > { %9483 = vst [vmem:[#allocation84_spill] sm:$0xff] %v7857_v19  ;;  %v3300_v6 = vsel %vm1213_vm14, %v3294_v58, %v3299_v33  ;;  %v3391_v18 = vmul.f32 %v7543_v20, %v7414_v7  ;;  %v3389_v61 = vmul.f32 %v7543_v20, %v7434_v8  ;;  %v3353_v49 = vrot.slane %v3339_v24, 7  ;;  %v7881_v7 = vld [vmem:[#allocation3 + $0x8] sm:$0xc0] }
 0x897   : > { %v1852_v32 = vadd.f32 %v1848_v15, %v1798_v22  ;;  %v1957_v15 = vsel %vm1615_vm15, %v7746_v44, %v7599_v34  ;;  %v1907_v5 = vadd.f32 %v1903_v13, %v1853_v26  ;;  %v3349_v34 = vsel %vm1213_vm14, %v3347_v56, %v3348_v3  ;;  %v7900_v26 = vld [vmem:[#allocation3 + $0x20] sm:$0xfc] }
 0x898   : > { %v3402_v0 = vrot.slane %v3391_v18, 7  ;;  %v3401_v53 = vrot.slane %v3389_v61, 7  ;;  %v3393_v48 = vmul.f32 %v7543_v20, %v7441_v17 }
 0x899   : > { %3253 = vrot.lane.b32.xlu0 %v3246_v39, %s9386_s7  ;;  %v1906_v9 = vadd.f32 %v1902_v59, %v1852_v32  ;;  %v1961_v58 = vadd.f32 %v1957_v15, %v1907_v5  ;;  %v7874_v44 = vpop.permute.xlu0 %3682 }
 0x89a   : > { %9485 = vst [vmem:[#allocation59_spill] sm:$0xff] %v7874_v44  ;;  %v3407_v5 = vrot.slane %v3393_v48, 7 }
 0x89b   : > { %v1960_v39 = vadd.f32 %v1956_v46, %v1906_v9  ;;  %v9486_v46 = vld [vmem:[#allocation85_spill] sm:$0xff]  ;;  %v3354_v9 = vsel %vm1213_vm14, %v3348_v3, %v3353_v49  ;;  %v3473_v3 = vmul.f32 %v7791_v4, %v7900_v26  ;;  %v3527_v49 = vmul.f32 %v7809_v41, %v7900_v26 }
 0x89c   : > { %v3408_v56 = vsel %vm1213_vm14, %v3402_v0, %v3407_v5 }
 0x89d   : > { %3303 = vrot.lane.b32.xlu0 %v3295_v60, %s9389_s20  ;;  %v7883_v60 = vld [vmem:[#allocation3 + $0x28] sm:$0x3f]  ;;  %v7897_v13 = vpop.permute.xlu0 %2138  ;;  %v3485_v24 = vrot.slane %v3473_v3, 2 }
 0x8a0   : > { %v2005_v14 = vpop.permute.xlu1 %2004 }
 0x8a1   : > { %v2010_v23 = vsel %vm1657_vm13, %v7690_v40, %v2005_v14  ;;  %3307 = vrot.lane.b32.xlu0 %v3300_v6, %s9389_s20  ;;  %v7902_v14 = vld [vmem:[#allocation3 + $0x30] sm:$0xff] }
 0x8a2   : > { %v2014_v22 = vadd.f32 %v2010_v23, %v1960_v39  ;;  %v3403_v39 = vsel %vm1213_vm14, %v3401_v53, %v3402_v0  ;;  %v3475_v15 = vmul.f32 %v7791_v4, %v7902_v14  ;;  %v3529_v0 = vmul.f32 %v7809_v41, %v7902_v14 }
 0x8a3   : > { %v3539_v53 = vrot.slane %v3527_v49, 2  ;;  %v3583_v3 = vmul.f32 %v7830_v52, %v7902_v14  ;;  %v3637_v49 = vmul.f32 %v7857_v19, %v7902_v14 }
 0x8a4   : > { %v7871_v59 = vadd.f32 %v9484_v63, %v2014_v22  ;;  %v2009_v11 = vpop.permute.xlu1 %2008  ;;  %v7911_v22 = vld [vmem:[#allocation3 + $0x40] sm:$0x3]  ;;  %v3486_v18 = vrot.slane %v3475_v15, 2  ;;  %v7916_v63 = vpop.permute.xlu0 %2142 }
 0x8a5   : > { %v2011_v40 = vsel %vm1657_vm13, %v7755_v37, %v2009_v11  ;;  %3357 = vrot.lane.b32.xlu0 %v3349_v34, %s9419_s13  ;;  %v5671_v34 = vld [vmem:[#allocation11 + $0x20] ss:$8 sm:$0x3] }
 0x8a6   : > { %v2015_v32 = vadd.f32 %v2011_v40, %v1961_v58  ;;  %v3477_v58 = vmul.f32 %v7791_v4, %v7911_v22  ;;  %v2108_v40 = vrot.slane %v5671_v34, %v6653_v47  ;;  %v3487_v61 = vsel %vm9303_vm1, %v3485_v24, %v3486_v18 }
 0x8a7   : > { %v3594_v24 = vrot.slane %v3583_v3, 2  ;;  %v3691_v3 = vmul.f32 %v7874_v44, %v7902_v14 }
 0x8a8   : > { %v7886_v30 = vadd.f32 %v9486_v46, %v2015_v32  ;;  %v2058_v35 = vpop.permute.xlu1 %2057  ;;  %v3491_v32 = vrot.slane %v3477_v58, 2  ;;  %v7928_v46 = vpop.permute.xlu0 %3736 }
 0x8a9   : > { %v2059_v37 = vsel %vm1428_vm9, %v7160_v10, %v2058_v35  ;;  %3361 = vrot.lane.b32.xlu0 %v3354_v9, %s9419_s13  ;;  %9487 = vst [vmem:[#allocation40_spill] sm:$0xff] %v7928_v46  ;;  %v5672_v35 = vld [vmem:[#allocation11 + $0x21] ss:$8 sm:$0x3] }
 0x8aa   : > { %v2063_v8 = vmul.f32 %v2059_v37, %v7881_v7  ;;  %v2065_v33 = vmul.f32 %v7611_v21, %v2059_v37  ;;  %v2067_v50 = vmul.f32 %v2059_v37, %v7883_v60  ;;  %v2162_v9 = vrot.slane %v5672_v35, %v6653_v47 }
 0x8ab   : > { %v3492_v37 = vsel %vm9303_vm1, %v3486_v18, %v3491_v32  ;;  %v3585_v18 = vmul.f32 %v7830_v52, %v7911_v22  ;;  %v3635_v32 = vmul.f32 %v7857_v19, %v7900_v26 }
 0x8ac   : > { %v2077_v10 = vrot.slane %v2063_v8, 6  ;;  %v2078_v6 = vrot.slane %v2065_v33, 6  ;;  %v2082_v23 = vrot.slane %v2067_v50, 6  ;;  %v3540_v8 = vrot.slane %v3529_v0, 2  ;;  %v7943_v15 = vpop.permute.xlu0 %2192 }
 0x8ad   : > { %3411 = vrot.lane.b32.xlu0 %v3403_v39, %s9375_s24  ;;  %v3531_v33 = vmul.f32 %v7809_v41, %v7911_v22  ;;  %v5673_v50 = vld [vmem:[#allocation11 + $0x22] ss:$8 sm:$0x3]  ;;  %v5676_v0 = vld [vmem:[#allocation11 + $0x26] ss:$8 sm:$0x3] }
 0x8ae   : > { %v2079_v17 = vsel %vm2034_vm6, %v2077_v10, %v2078_v6  ;;  %v2083_v11 = vsel %vm2034_vm6, %v2078_v6, %v2082_v23  ;;  %v2216_v48 = vrot.slane %v5673_v50, %v6653_v47  ;;  %v3541_v39 = vsel %vm9303_vm1, %v3539_v53, %v3540_v8  ;;  %v5674_v23 = vld [vmem:[#allocation11 + $0x23] ss:$8 sm:$0x3]  ;;  %v5677_v50 = vld [vmem:[#allocation11 + $0x27] ss:$8 sm:$0x3] }
 0x8af   : > { %2086 = vrot.lane.b32.xlu1 %v2079_v17, %s9380_s21  ;;  %v3545_v10 = vrot.slane %v3531_v33, 2  ;;  %v3581_v6 = vmul.f32 %v7830_v52, %v7900_v26  ;;  %v2270_v17 = vrot.slane %v5674_v23, %v6653_v47  ;;  %v2408_v35 = vrot.slane %v5676_v0, %v6653_v47 }
 0x8b0   : > { %v7952_v58 = vpop.permute.xlu0 %2196  ;;  %v3648_v53 = vrot.slane %v3637_v49, 2  ;;  %v3743_v49 = vmul.f32 %v7928_v46, %v7900_v26  ;;  %v3745_v0 = vmul.f32 %v7928_v46, %v7902_v14  ;;  %v5681_v14 = vld [vmem:[#allocation11 + $0x33] ss:$8 sm:$0x3] }
 0x8b1   : > { %3415 = vrot.lane.b32.xlu0 %v3408_v56, %s9375_s24  ;;  %v3546_v5 = vsel %vm9303_vm1, %v3540_v8, %v3545_v10  ;;  %v3593_v56 = vrot.slane %v3581_v6, 2  ;;  %v3639_v8 = vmul.f32 %v7857_v19, %v7911_v22  ;;  %v3689_v6 = vmul.f32 %v7874_v44, %v7900_v26 }
 0x8b3   : > { %2090 = vrot.lane.b32.xlu1 %v2083_v11, %s9380_s21  ;;  %v5675_v11 = vld [vmem:[#allocation11 + $0x24] ss:$8 sm:$0x3]  ;;  %v3653_v10 = vrot.slane %v3639_v8, 2  ;;  %v3755_v8 = vrot.slane %v3743_v49, 2 }
 0x8b4   : > { %v2324_v34 = vrot.slane %v5675_v11, %v6653_v47  ;;  %v7967_v33 = vpop.permute.xlu0 %2246  ;;  %v3693_v11 = vmul.f32 %v7874_v44, %v7911_v22  ;;  %v5687_v49 = vld [vmem:[#allocation11 + $0x42] ss:$8 sm:$0x3] }
 0x8b5   : > { %3495 = vrot.lane.b32.xlu0 %v3487_v61, %s9380_s21  ;;  %v3599_v61 = vrot.slane %v3585_v18, 2  ;;  %v3702_v18 = vrot.slane %v3691_v3, 2  ;;  %v5682_v3 = vld [vmem:[#allocation11 + $0x35] ss:$8 sm:$0x3] }
 0x8b7   : > { %2111 = vrot.lane.b32.xlu1 %v2108_v40, %s9369_s4  ;;  %v3595_v40 = vsel %vm9303_vm1, %v3593_v56, %v3594_v24  ;;  %v3654_v56 = vsel %vm9303_vm1, %v3648_v53, %v3653_v10 }
 0x8b8   : > { %v7978_v23 = vpop.permute.xlu0 %2250 }
 0x8b9   : > { %3499 = vrot.lane.b32.xlu0 %v3492_v37, %s9380_s21  ;;  %v3647_v37 = vrot.slane %v3635_v32, 2  ;;  %v3707_v32 = vrot.slane %v3693_v11, 2 }
 0x8bb   : > { %2165 = vrot.lane.b32.xlu1 %v2162_v9, %s9370_s19  ;;  %v3600_v9 = vsel %vm9303_vm1, %v3594_v24, %v3599_v61  ;;  %v3701_v24 = vrot.slane %v3689_v6, 2 }
 0x8bd   : > { %3549 = vrot.lane.b32.xlu0 %v3541_v39, %s9383_s0  ;;  %v3649_v39 = vsel %vm9303_vm1, %v3647_v37, %v3648_v53  ;;  %v3703_v61 = vsel %vm9303_vm1, %v3701_v24, %v3702_v18  ;;  %v3708_v53 = vsel %vm9303_vm1, %v3702_v18, %v3707_v32  ;;  %v5684_v18 = vld [vmem:[#allocation11 + $0x37] ss:$8 sm:$0x3] }
 0x8be   : > { %v2868_v11 = vrot.slane %v5684_v18, %v6653_v47  ;;  %v3627_v18 = vrot.slane %v7507_v54, %v6653_v47 }
 0x8bf   : > { %2219 = vrot.lane.b32.xlu1 %v2216_v48, %s9373_s6  ;;  %v2462_v48 = vrot.slane %v5677_v50, %v6653_v47  ;;  %v3756_v50 = vrot.slane %v3745_v0, 2  ;;  %v3030_v0 = vrot.slane %v5687_v49, %v6653_v47 }
 0x8c1   : > { %3553 = vrot.lane.b32.xlu0 %v3546_v5, %s9383_s0  ;;  %v3757_v10 = vsel %vm9303_vm1, %v3755_v8, %v3756_v50 }
 0x8c3   : > { %2273 = vrot.lane.b32.xlu1 %v2270_v17, %s9376_s1  ;;  %v5678_v17 = vld [vmem:[#allocation11 + $0x30] ss:$8 sm:$0x3] }
 0x8c4   : > { %v2516_v5 = vrot.slane %v5678_v17, %v6653_v47  ;;  %v2760_v17 = vrot.slane %v5682_v3, %v6653_v47  ;;  %v5693_v3 = vld [vmem:[#allocation11 + $0x51] ss:$8 sm:$0x3] }
 0x8c5   : > { %3603 = vrot.lane.b32.xlu0 %v3595_v40, %s9386_s7 }
 0x8c7   : > { %2327 = vrot.lane.b32.xlu1 %v2324_v34, %s9377_s17  ;;  %v5679_v34 = vld [vmem:[#allocation11 + $0x31] ss:$8 sm:$0x3] }
 0x8c8   : > { %v2570_v40 = vrot.slane %v5679_v34, %v6653_v47  ;;  %v5685_v34 = vld [vmem:[#allocation11 + $0x40] ss:$8 sm:$0x3] }
 0x8c9   : > { %3607 = vrot.lane.b32.xlu0 %v3600_v9, %s9386_s7  ;;  %v5680_v9 = vld [vmem:[#allocation11 + $0x32] ss:$8 sm:$0x3] }
 0x8ca   : > { %v2624_v37 = vrot.slane %v5680_v9, %v6653_v47  ;;  %v5688_v9 = vld [vmem:[#allocation11 + $0x44] ss:$8 sm:$0x3] }
 0x8cb   : > { %2411 = vrot.lane.b32.xlu1 %v2408_v35, %s9368_s16  ;;  %v7993_v35 = vpop.permute.xlu0 %2300 }
 0x8cd   : > { %3657 = vrot.lane.b32.xlu0 %v3649_v39, %s9389_s20  ;;  %v2678_v39 = vrot.slane %v5681_v14, %v6653_v47  ;;  %v5691_v14 = vld [vmem:[#allocation11 + $0x47] ss:$8 sm:$0x3] }
 0x8cf   : > { %2465 = vrot.lane.b32.xlu1 %v2462_v48, %s9369_s4  ;;  %v3747_v48 = vmul.f32 %v7928_v46, %v7911_v22  ;;  %v8002_v26 = vpop.permute.xlu0 %2304 }
 0x8d1   : > { %3661 = vrot.lane.b32.xlu0 %v3654_v56, %s9389_s20  ;;  %v3761_v6 = vrot.slane %v3747_v48, 2  ;;  %v5683_v56 = vld [vmem:[#allocation11 + $0x36] ss:$8 sm:$0x3] }
 0x8d2   : > { %v2814_v24 = vrot.slane %v5683_v56, %v6653_v47  ;;  %v3519_v56 = vrot.slane %v7495_v43, %v6653_v47 }
 0x8d3   : > { %2519 = vrot.lane.b32.xlu1 %v2516_v5, %s9370_s19  ;;  %v3762_v22 = vsel %vm9303_vm1, %v3756_v50, %v3761_v6  ;;  %v8011_v5 = vpop.permute.xlu0 %2354  ;;  %v5690_v50 = vld [vmem:[#allocation11 + $0x46] ss:$8 sm:$0x3]  ;;  %vm9488_vm1 = vcmask 121856  }
 0x8d4   : > { %v3219_v48 = vrot.slane %v5690_v50, %v6653_v47 }
 0x8d5   : > { %3711 = vrot.lane.b32.xlu0 %v3703_v61, %s9419_s13  ;;  %v5686_v61 = vld [vmem:[#allocation11 + $0x41] ss:$8 sm:$0x3] }
 0x8d6   : > { %v2976_v32 = vrot.slane %v5686_v61, %v6653_v47 }
 0x8d7   : > { %2573 = vrot.lane.b32.xlu1 %v2570_v40, %s9373_s6  ;;  %v2922_v40 = vrot.slane %v5685_v34, %v6653_v47 }
 0x8d9   : > { %3715 = vrot.lane.b32.xlu0 %v3708_v53, %s9419_s13  ;;  %v5689_v53 = vld [vmem:[#allocation11 + $0x45] ss:$8 sm:$0x3] }
 0x8da   : > { %v3165_v8 = vrot.slane %v5689_v53, %v6653_v47 }
 0x8db   : > { %2627 = vrot.lane.b32.xlu1 %v2624_v37, %s9376_s1  ;;  %v3111_v37 = vrot.slane %v5688_v9, %v6653_v47 }
 0x8dd   : > { %3765 = vrot.lane.b32.xlu0 %v3757_v10, %s9375_s24  ;;  %v5692_v10 = vld [vmem:[#allocation11 + $0x50] ss:$8 sm:$0x3] }
 0x8de   : > { %v3327_v6 = vrot.slane %v5692_v10, %v6653_v47 }
 0x8df   : > { %2681 = vrot.lane.b32.xlu1 %v2678_v39, %s9377_s17  ;;  %v3273_v39 = vrot.slane %v5691_v14, %v6653_v47 }
 0x8e1   : > { %3769 = vrot.lane.b32.xlu0 %v3762_v22, %s9375_s24  ;;  %v3465_v22 = vrot.slane %v7485_v1, %v6653_v47  ;;  %v3681_v1 = vrot.slane %v7514_v29, %v6653_v47 }
 0x8e3   : > { %2763 = vrot.lane.b32.xlu1 %v2760_v17, %s9368_s16  ;;  %v3381_v17 = vrot.slane %v5693_v3, %v6653_v47 }
 0x8e7   : > { %2817 = vrot.lane.b32.xlu1 %v2814_v24, %s9369_s4  ;;  %v3573_v24 = vrot.slane %v7502_v2, %v6653_v47 }
 0x8eb   : > { %2871 = vrot.lane.b32.xlu1 %v2868_v11, %s9370_s19 }
 0x8ef   : > { %2925 = vrot.lane.b32.xlu1 %v2922_v40, %s9373_s6 }
 0x8f3   : > { %2979 = vrot.lane.b32.xlu1 %v2976_v32, %s9376_s1 }
 0x8f7   : > { %3033 = vrot.lane.b32.xlu1 %v3030_v0, %s9377_s17 }
 0x8fb   : > { %3114 = vrot.lane.b32.xlu1 %v3111_v37, %s9368_s16 }
 0x8ff   : > { %3168 = vrot.lane.b32.xlu1 %v3165_v8, %s9369_s4 }
 0x903   : > { %3222 = vrot.lane.b32.xlu1 %v3219_v48, %s9370_s19  ;;  %v3735_v48 = vrot.slane %v7532_v45, %v6653_v47 }
 0x907   : > { %3276 = vrot.lane.b32.xlu1 %v3273_v39, %s9373_s6 }
 0x90b   : > { %3330 = vrot.lane.b32.xlu1 %v3327_v6, %s9376_s1 }
 0x90f   : > { %3384 = vrot.lane.b32.xlu1 %v3381_v17, %s9377_s17 }
 0x913   : > { %3468 = vrot.lane.b32.xlu1 %v3465_v22, %s9368_s16 }
 0x917   : > { %3522 = vrot.lane.b32.xlu1 %v3519_v56, %s9369_s4 }
 0x91b   : > { %3576 = vrot.lane.b32.xlu1 %v3573_v24, %s9370_s19  ;;  %s8590_s19 = sld [smem:[#allocation20 + $0x1]] }
 0x91f   : > { %3630 = vrot.lane.b32.xlu1 %v3627_v18, %s9373_s6  ;;  %s8585_s6 = sld [smem:[#allocation15 + $0x1]] }
 0x921   : > { %v8051_v11 = vpop.permute.xlu1 %2086 }
 0x923   : > { %3684 = vrot.lane.b32.xlu1 %v3681_v1, %s9376_s1  ;;  %s8609_s1 = sld [smem:[#allocation15 + $0x3]] }
 0x925   : > { %v8054_v43 = vpop.permute.xlu1 %2090 }
 0x929   : > { %v2112_v34 = vpop.permute.xlu1 %2111 }
 0x92a   : > { %v2113_v2 = vsel %vm1470_vm11, %v7162_v62, %v2112_v34 }
 0x92b   : > { %v2117_v40 = vmul.f32 %v2113_v2, %v7881_v7  ;;  %v2119_v61 = vmul.f32 %v7611_v21, %v2113_v2  ;;  %v2121_v54 = vmul.f32 %v2113_v2, %v7883_v60 }
 0x92d   : > { %v2131_v32 = vrot.slane %v2117_v40, 6  ;;  %v2132_v49 = vrot.slane %v2119_v61, 6  ;;  %v2166_v0 = vpop.permute.xlu1 %2165  ;;  %v2136_v29 = vrot.slane %v2121_v54, 6 }
 0x92e   : > { %v2167_v37 = vsel %vm1172_vm10, %v7164_v36, %v2166_v0 }
 0x92f   : > { %v2133_v9 = vsel %vm2034_vm6, %v2131_v32, %v2132_v49  ;;  %v2171_v62 = vmul.f32 %v2167_v37, %v7881_v7  ;;  %v2173_v8 = vmul.f32 %v7611_v21, %v2167_v37  ;;  %v2137_v50 = vsel %vm2034_vm6, %v2132_v49, %v2136_v29 }
 0x930   : > { %2140 = vrot.lane.b32.xlu1 %v2133_v9, %s9383_s0  ;;  %v2175_v39 = vmul.f32 %v2167_v37, %v7883_v60 }
 0x931   : > { %v2220_v53 = vpop.permute.xlu1 %2219  ;;  %v2185_v10 = vrot.slane %v2171_v62, 6  ;;  %v2186_v6 = vrot.slane %v2173_v8, 6 }
 0x932   : > { %v2221_v36 = vsel %vm1553_vm12, %v7168_v27, %v2220_v53  ;;  %v2190_v17 = vrot.slane %v2175_v39, 6 }
 0x933   : > { %v2225_v22 = vmul.f32 %v2221_v36, %v7881_v7  ;;  %v2227_v56 = vmul.f32 %v7611_v21, %v2221_v36  ;;  %v2187_v24 = vsel %vm2034_vm6, %v2185_v10, %v2186_v6  ;;  %v2229_v45 = vmul.f32 %v2221_v36, %v7883_v60 }
 0x934   : > { %2144 = vrot.lane.b32.xlu1 %v2137_v50, %s9383_s0  ;;  %v2191_v34 = vsel %vm2034_vm6, %v2186_v6, %v2190_v17  ;;  %v8101_v17 = vld [vmem:[#allocation3 + $0x18] sm:$0xfe] }
 0x935   : > { %v2274_v14 = vpop.permute.xlu1 %2273  ;;  %v2239_v18 = vrot.slane %v2225_v22, 6  ;;  %v2240_v1 = vrot.slane %v2227_v56, 6  ;;  %v2244_v40 = vrot.slane %v2229_v45, 6 }
 0x936   : > { %v2275_v27 = vsel %vm9488_vm1, %v7170_v12, %v2274_v14  ;;  %v9489_v12 = vld [vmem:[#allocation68_spill] sm:$0xff] }
 0x937   : > { %v2279_v61 = vmul.f32 %v2275_v27, %v7881_v7  ;;  %v2281_v54 = vmul.f32 %v7611_v21, %v2275_v27  ;;  %v2241_v32 = vsel %vm2034_vm6, %v2239_v18, %v2240_v1  ;;  %v2283_v0 = vmul.f32 %v2275_v27, %v7883_v60  ;;  %v8113_v18 = vld [vmem:[#allocation3 + $0x38] sm:$0x1] }
 0x938   : > { %3738 = vrot.lane.b32.xlu1 %v3735_v48, %s9377_s17  ;;  %v2245_v37 = vsel %vm2034_vm6, %v2240_v1, %v2244_v40  ;;  %s5356_s17 = sld [smem:[#allocation20 + $0x3]] }
 0x939   : > { %v2328_v3 = vpop.permute.xlu1 %2327  ;;  %v2293_v29 = vrot.slane %v2279_v61, 6  ;;  %v2294_v9 = vrot.slane %v2281_v54, 6  ;;  %v2298_v8 = vrot.slane %v2283_v0, 6 }
 0x93a   : > { %v2329_v53 = vsel %vm1637_vm8, %v9489_v12, %v2328_v3 }
 0x93b   : > { %v2333_v50 = vmul.f32 %v2329_v53, %v7881_v7  ;;  %v2335_v48 = vmul.f32 %v7611_v21, %v2329_v53  ;;  %v2295_v14 = vsel %vm2034_vm6, %v2293_v29, %v2294_v9  ;;  %v2337_v10 = vmul.f32 %v2329_v53, %v7883_v60 }
 0x93c   : > { %2194 = vrot.lane.b32.xlu1 %v2187_v24, %s9386_s7  ;;  %v2299_v3 = vsel %vm2034_vm6, %v2294_v9, %v2298_v8  ;;  %v8109_v24 = vld [vmem:[#allocation3] sm:$0xff] }
 0x93d   : > { %v2412_v47 = vpop.permute.xlu1 %2411  ;;  %v2347_v6 = vrot.slane %v2333_v50, 6  ;;  %v2348_v36 = vrot.slane %v2335_v48, 6  ;;  %v2352_v7 = vrot.slane %v2337_v10, 6 }
 0x93e   : > { %v2413_v22 = vsel %vm1428_vm9, %v7178_v25, %v2412_v47 }
 0x93f   : > { %v2417_v56 = vmul.f32 %v2413_v22, %v8101_v17  ;;  %v2419_v60 = vmul.f32 %v8109_v24, %v2413_v22  ;;  %v2349_v45 = vsel %vm2034_vm6, %v2347_v6, %v2348_v36  ;;  %v2421_v25 = vmul.f32 %v2413_v22, %v8113_v18 }
 0x940   : > { %2198 = vrot.lane.b32.xlu1 %v2191_v34, %s9386_s7  ;;  %v2353_v27 = vsel %vm2034_vm6, %v2348_v36, %v2352_v7  ;;  %vm9490_vm6 = vmmov %vm9488_vm1 }
 0x941   : > { %v2466_v2 = vpop.permute.xlu1 %2465  ;;  %v2431_v47 = vrot.slane %v2417_v56, 1  ;;  %v2432_v34 = vrot.slane %v2419_v60, 1  ;;  %v2436_v54 = vrot.slane %v2421_v25, 1  ;;  %v8151_v56 = vpop.permute.xlu0 %2358 }
 0x942   : > { %v2467_v40 = vsel %vm1470_vm11, %v7184_v57, %v2466_v2 }
 0x943   : > { %v2473_v0 = vmul.f32 %v8109_v24, %v2467_v40  ;;  %v2433_v29 = vsel %vm2388_vm0, %v2431_v47, %v2432_v34  ;;  %v2437_v57 = vsel %vm2388_vm0, %v2432_v34, %v2436_v54 }
 0x944   : > { %2248 = vrot.lane.b32.xlu1 %v2241_v32, %s9389_s20  ;;  %v2471_v32 = vmul.f32 %v2467_v40, %v8101_v17 }
 0x945   : > { %v2520_v49 = vpop.permute.xlu1 %2519  ;;  %v2486_v53 = vrot.slane %v2473_v0, 1  ;;  %v8161_v54 = vpop.permute.xlu0 %2438 }
 0x946   : > { %v2485_v12 = vrot.slane %v2471_v32, 1  ;;  %v2521_v2 = vsel %vm1172_vm10, %v7186_v28, %v2520_v49 }
 0x947   : > { %v2525_v48 = vmul.f32 %v2521_v2, %v8101_v17  ;;  %v2529_v36 = vmul.f32 %v2521_v2, %v8113_v18 }
 0x948   : > { %2252 = vrot.lane.b32.xlu1 %v2245_v37, %s9389_s20  ;;  %v2475_v37 = vmul.f32 %v2467_v40, %v8113_v18  ;;  %v2487_v10 = vsel %vm2388_vm0, %v2485_v12, %v2486_v53 }
 0x949   : > { %v2574_v62 = vpop.permute.xlu1 %2573  ;;  %v2544_v60 = vrot.slane %v2529_v36, 1 }
 0x94a   : > { %v2490_v50 = vrot.slane %v2475_v37, 1  ;;  %v2575_v49 = vsel %vm1553_vm12, %v7192_v55, %v2574_v62 }
 0x94b   : > { %v2581_v25 = vmul.f32 %v8109_v24, %v2575_v49 }
 0x94c   : > { %2302 = vrot.lane.b32.xlu1 %v2295_v14, %s9419_s13  ;;  %v2527_v14 = vmul.f32 %v8109_v24, %v2521_v2  ;;  %v2491_v28 = vsel %vm2388_vm0, %v2486_v53, %v2490_v50  ;;  %v8175_v2 = vpop.permute.xlu0 %2442 }
 0x94d   : > { %v8097_v39 = vpop.permute.xlu1 %2627  ;;  %v2594_v62 = vrot.slane %v2581_v25, 1 }
 0x94e   : > { %v2540_v22 = vrot.slane %v2527_v14, 1  ;;  %v2629_v32 = vsel %vm9490_vm6, %v9450_v31, %v8097_v39 }
 0x94f   : > { %v2633_v37 = vmul.f32 %v2629_v32, %v8101_v17  ;;  %v2635_v12 = vmul.f32 %v8109_v24, %v2629_v32  ;;  %v2637_v50 = vmul.f32 %v2629_v32, %v8113_v18 }
 0x950   : > { %2306 = vrot.lane.b32.xlu1 %v2299_v3, %s9419_s13  ;;  %v2539_v3 = vrot.slane %v2525_v48, 1  ;;  %v2545_v40 = vsel %vm2388_vm0, %v2540_v22, %v2544_v60 }
 0x951   : > { %v8106_v21 = vpop.permute.xlu1 %2681  ;;  %v2647_v31 = vrot.slane %v2633_v37, 1  ;;  %v2648_v39 = vrot.slane %v2635_v12, 1  ;;  %v2652_v36 = vrot.slane %v2637_v50, 1  ;;  %v8208_v37 = vld [vmem:[#allocation3 + $0x38] sm:$0xf] }
 0x952   : > { %v2541_v47 = vsel %vm2388_vm0, %v2539_v3, %v2540_v22  ;;  %v2683_v14 = vsel %vm1637_vm8, %v9451_v16, %v8106_v21 }
 0x953   : > { %v2687_v3 = vmul.f32 %v2683_v14, %v8101_v17  ;;  %v2689_v22 = vmul.f32 %v8109_v24, %v2683_v14  ;;  %v2653_v25 = vsel %vm2388_vm0, %v2648_v39, %v2652_v36 }
 0x954   : > { %2356 = vrot.lane.b32.xlu1 %v2349_v45, %s9375_s24  ;;  %v2579_v45 = vmul.f32 %v2575_v49, %v8101_v17  ;;  %v9491_v17 = vld [vmem:[#allocation80_spill] sm:$0xff] }
 0x955   : > { %v8116_v1 = vpop.permute.xlu1 %2763  ;;  %v2701_v16 = vrot.slane %v2687_v3, 1  ;;  %v2702_v21 = vrot.slane %v2689_v22, 1 }
 0x956   : > { %v2593_v55 = vrot.slane %v2579_v45, 1  ;;  %v2691_v45 = vmul.f32 %v2683_v14, %v8113_v18 }
 0x958   : > { %2360 = vrot.lane.b32.xlu1 %v2353_v27, %s9375_s24  ;;  %v2583_v27 = vmul.f32 %v2575_v49, %v8113_v18  ;;  %v2595_v53 = vsel %vm2388_vm0, %v2593_v55, %v2594_v62  ;;  %v8188_v49 = vpop.permute.xlu0 %2492 }
 0x959   : > { %v8123_v61 = vpop.permute.xlu1 %2817 }
 0x95c   : > { %2440 = vrot.lane.b32.xlu1 %v2433_v29, %s9380_s21  ;;  %v2598_v29 = vrot.slane %v2583_v27, 1  ;;  %v2765_v27 = vsel %vm1428_vm9, %v9491_v17, %v8116_v1 }
 0x95d   : > { %v8129_v9 = vpop.permute.xlu1 %2871  ;;  %v2771_v18 = vmul.f32 %v8109_v24, %v2765_v27  ;;  %v2773_v1 = vmul.f32 %v2765_v27, %v8208_v37 }
 0x95e   : > { %v2599_v48 = vsel %vm2388_vm0, %v2594_v62, %v2598_v29  ;;  %v8203_v62 = vpop.permute.xlu0 %2496  ;;  %v2703_v29 = vsel %vm2388_vm0, %v2701_v16, %v2702_v21 }
 0x95f   : > { %v2784_v50 = vrot.slane %v2771_v18, 4  ;;  %v2788_v3 = vrot.slane %v2773_v1, 4 }
 0x960   : > { %2444 = vrot.lane.b32.xlu1 %v2437_v57, %s9380_s21 }
 0x961   : > { %v8136_v8 = vpop.permute.xlu1 %2925 }
 0x964   : > { %2494 = vrot.lane.b32.xlu1 %v2487_v10, %s9383_s0 }
 0x965   : > { %v8142_v6 = vpop.permute.xlu1 %2979 }
 0x968   : > { %2498 = vrot.lane.b32.xlu1 %v2491_v28, %s9383_s0  ;;  %v2649_v28 = vsel %vm2388_vm0, %v2647_v31, %v2648_v39  ;;  %v8215_v39 = vpop.permute.xlu0 %2546 }
 0x969   : > { %v8149_v7 = vpop.permute.xlu1 %3033 }
 0x96c   : > { %2548 = vrot.lane.b32.xlu1 %v2541_v47, %s9386_s7  ;;  %v8195_v47 = vld [vmem:[#allocation3 + $0x18] sm:$0xf0]  ;;  %v8227_v16 = vpop.permute.xlu0 %2550 }
 0x96d   : > { %v8157_v34 = vpop.permute.xlu1 %3114  ;;  %v2769_v32 = vmul.f32 %v2765_v27, %v8195_v47  ;;  %v9493_v27 = vld [vmem:[#allocation83_spill] sm:$0xff] }
 0x970   : > { %2552 = vrot.lane.b32.xlu1 %v2545_v40, %s9386_s7  ;;  %v2706_v40 = vrot.slane %v2691_v45, 1 }
 0x971   : > { %v8167_v0 = vpop.permute.xlu1 %3168 }
 0x972   : > { %v2707_v31 = vsel %vm2388_vm0, %v2702_v21, %v2706_v40  ;;  %v2873_v40 = vsel %vm1172_vm10, %v9493_v27, %v8129_v9  ;;  %vm9498_vm0 = vmmov %vm9488_vm1 }
 0x973   : > { %v2879_v1 = vmul.f32 %v8109_v24, %v2873_v40  ;;  %vm9523_vm6 = vmmov %vm9498_vm0 }
 0x974   : > { %2602 = vrot.lane.b32.xlu1 %v2595_v53, %s9389_s20  ;;  %v2783_v53 = vrot.slane %v2769_v32, 4 }
 0x975   : > { %v8173_v57 = vpop.permute.xlu1 %3222 }
 0x976   : > { %v2785_v45 = vsel %vm2740_vm2, %v2783_v53, %v2784_v50 }
 0x978   : > { %2606 = vrot.lane.b32.xlu1 %v2599_v48, %s9389_s20  ;;  %v9492_v48 = vld [vmem:[#allocation81_spill] sm:$0xff] }
 0x979   : > { %v8183_v10 = vpop.permute.xlu1 %3276  ;;  %v2819_v14 = vsel %vm1470_vm11, %v9492_v48, %v8123_v61  ;;  %v2789_v61 = vsel %vm2740_vm2, %v2784_v50, %v2788_v3  ;;  %v2881_v48 = vmul.f32 %v2873_v40, %v8208_v37 }
 0x97a   : > { %v2823_v22 = vmul.f32 %v2819_v14, %v8195_v47  ;;  %v2827_v21 = vmul.f32 %v2819_v14, %v8208_v37 }
 0x97c   : > { %2656 = vrot.lane.b32.xlu1 %v2649_v28, %s9419_s13  ;;  %v2825_v28 = vmul.f32 %v8109_v24, %v2819_v14  ;;  %v2842_v18 = vrot.slane %v2827_v21, 4  ;;  %v2892_v14 = vrot.slane %v2879_v1, 4  ;;  %v2896_v21 = vrot.slane %v2881_v48, 4 }
 0x97d   : > { %v8191_v60 = vpop.permute.xlu1 %3330 }
 0x97e   : > { %v2838_v17 = vrot.slane %v2825_v28, 4 }
 0x980   : > { %2660 = vrot.lane.b32.xlu1 %v2653_v25, %s9419_s13  ;;  %v2837_v25 = vrot.slane %v2823_v22, 4  ;;  %v2843_v3 = vsel %vm2740_vm2, %v2838_v17, %v2842_v18  ;;  %v9495_v22 = vld [vmem:[#allocation86_spill] sm:$0xff] }
 0x981   : > { %v8201_v55 = vpop.permute.xlu1 %3384  ;;  %v2927_v28 = vsel %vm1553_vm12, %v9495_v22, %v8136_v8  ;;  %v2897_v8 = vsel %vm2740_vm2, %v2892_v14, %v2896_v21 }
 0x982   : > { %v2839_v53 = vsel %vm2740_vm2, %v2837_v25, %v2838_v17  ;;  %v2931_v25 = vmul.f32 %v2927_v28, %v8195_v47  ;;  %v2935_v17 = vmul.f32 %v2927_v28, %v8208_v37 }
 0x984   : > { %2710 = vrot.lane.b32.xlu1 %v2703_v29, %s9375_s24  ;;  %v2877_v29 = vmul.f32 %v2873_v40, %v8195_v47  ;;  %v2945_v18 = vrot.slane %v2931_v25, 4 }
 0x985   : > { %v8211_v12 = vpop.permute.xlu1 %3468 }
 0x986   : > { %v2891_v9 = vrot.slane %v2877_v29, 4 }
 0x988   : > { %2714 = vrot.lane.b32.xlu1 %v2707_v31, %s9375_s24  ;;  %v8240_v31 = vpop.permute.xlu0 %2600  ;;  %v2893_v27 = vsel %vm2740_vm2, %v2891_v9, %v2892_v14  ;;  %v2950_v9 = vrot.slane %v2935_v17, 4 }
 0x989   : > { %v8221_v36 = vpop.permute.xlu1 %3522 }
 0x98c   : > { %2792 = vrot.lane.b32.xlu1 %v2785_v45, %s9380_s21  ;;  %v8251_v45 = vpop.permute.xlu0 %2604 }
 0x98d   : > { %v8235_v32 = vpop.permute.xlu1 %3576 }
 0x990   : > { %2796 = vrot.lane.b32.xlu1 %v2789_v61, %s9380_s21  ;;  %v2933_v61 = vmul.f32 %v8109_v24, %v2927_v28  ;;  %v8261_v1 = vpop.permute.xlu0 %2654 }
 0x991   : > { %v8243_v50 = vpop.permute.xlu1 %3630 }
 0x992   : > { %9494 = vst [vmem:[#allocation39_spill] sm:$0xff] %v8243_v50  ;;  %v2946_v29 = vrot.slane %v2933_v61, 4 }
 0x994   : > { %2846 = vrot.lane.b32.xlu1 %v2839_v53, %s9383_s0  ;;  %v9497_v53 = vld [vmem:[#allocation93_spill] sm:$0xff]  ;;  %v2947_v28 = vsel %vm2740_vm2, %v2945_v18, %v2946_v29  ;;  %v8271_v25 = vpop.permute.xlu0 %2658 }
 0x995   : > { %v8257_v40 = vpop.permute.xlu1 %3684  ;;  %v2981_v48 = vsel %vm9498_vm0, %v9497_v53, %v8142_v6  ;;  %v2951_v6 = vsel %vm2740_vm2, %v2946_v29, %v2950_v9 }
 0x996   : > { %9496 = vst [vmem:[#allocation42_spill] sm:$0xff] %v8257_v40  ;;  %v2985_v22 = vmul.f32 %v2981_v48, %v8195_v47  ;;  %v2989_v21 = vmul.f32 %v2981_v48, %v8208_v37 }
 0x998   : > { %2850 = vrot.lane.b32.xlu1 %v2843_v3, %s9383_s0  ;;  %v2999_v61 = vrot.slane %v2985_v22, 4  ;;  %v3004_v18 = vrot.slane %v2989_v21, 4  ;;  %v9501_v21 = vld [vmem:[#allocation95_spill] sm:$0xff] }
 0x99c   : > { %2900 = vrot.lane.b32.xlu1 %v2893_v27, %s9386_s7  ;;  %v2987_v27 = vmul.f32 %v8109_v24, %v2981_v48  ;;  %v8284_v48 = vpop.permute.xlu0 %2708 }
 0x99e   : > { %v3000_v46 = vrot.slane %v2987_v27, 4 }
 0x9a0   : > { %2904 = vrot.lane.b32.xlu1 %v2897_v8, %s9386_s7  ;;  %v9499_v8 = vld [vmem:[#allocation94_spill] sm:$0xff]  ;;  %v3001_v40 = vsel %vm2740_vm2, %v2999_v61, %v3000_v46  ;;  %v3005_v27 = vsel %vm2740_vm2, %v3000_v46, %v3004_v18  ;;  %v8295_v61 = vpop.permute.xlu0 %2712 }
 0x9a1   : > { %v3035_v17 = vsel %vm1637_vm8, %v9499_v8, %v8149_v7  ;;  %9502 = vst [vmem:[#allocation44_spill] sm:$0xff] %v8295_v61 }
 0x9a2   : > { %v2141_v3 = vpop.permute.xlu1 %2140  ;;  %v3041_v44 = vmul.f32 %v8109_v24, %v3035_v17  ;;  %v3043_v9 = vmul.f32 %v3035_v17, %v8208_v37 }
 0x9a4   : > { %2954 = vrot.lane.b32.xlu1 %v2947_v28, %s9389_s20  ;;  %v3039_v28 = vmul.f32 %v3035_v17, %v8195_v47  ;;  %v3054_v7 = vrot.slane %v3041_v44, 4  ;;  %v3116_v47 = vsel %vm1428_vm9, %v9501_v21, %v8157_v34  ;;  %v8305_v21 = vpop.permute.xlu0 %2790 }
 0x9a5   : > { %v3122_v44 = vmul.f32 %v8109_v24, %v3116_v47  ;;  %9503 = vst [vmem:[#allocation43_spill] sm:$0xff] %v8305_v21 }
 0x9a6   : > { %v2145_v14 = vpop.permute.xlu1 %2144  ;;  %v3053_v22 = vrot.slane %v3039_v28, 4 }
 0x9a7   : > { %v3135_v28 = vrot.slane %v3122_v44, 7 }
 0x9a8   : > { %2958 = vrot.lane.b32.xlu1 %v2951_v6, %s9389_s20  ;;  %v8289_v6 = vld [vmem:[#allocation3 + $0x18] sm:$0x80]  ;;  %v3055_v46 = vsel %vm2740_vm2, %v3053_v22, %v3054_v7  ;;  %v9505_v22 = vld [vmem:[#allocation74_spill] sm:$0xff] }
 0x9a9   : > { %v3120_v37 = vmul.f32 %v3116_v47, %v8289_v6 }
 0x9aa   : > { %v8279_v53 = vpop.permute.xlu1 %3738 }
 0x9ab   : > { %9500 = vst [vmem:[#allocation41_spill] sm:$0xff] %v8279_v53  ;;  %v3058_v53 = vrot.slane %v3043_v9, 4  ;;  %v3134_v34 = vrot.slane %v3120_v37, 7  ;;  %v9504_v9 = vld [vmem:[#allocation96_spill] sm:$0xff] }
 0x9ac   : > { %3008 = vrot.lane.b32.xlu1 %v3001_v40, %s9419_s13  ;;  %v8297_v40 = vld [vmem:[#allocation3 + $0x38] sm:$0x7f]  ;;  %v3170_v61 = vsel %vm1470_vm11, %v9504_v9, %v8167_v0  ;;  %v8320_v0 = vpop.permute.xlu0 %2794 }
 0x9ad   : > { %v3124_v17 = vmul.f32 %v3116_v47, %v8297_v40  ;;  %v3174_v47 = vmul.f32 %v3170_v61, %v8289_v6  ;;  %v3176_v37 = vmul.f32 %v8109_v24, %v3170_v61 }
 0x9ae   : > { %v2195_v29 = vpop.permute.xlu1 %2194 }
 0x9af   : > { %v3139_v19 = vrot.slane %v3124_v17, 7  ;;  %v9506_v17 = vld [vmem:[#allocation79_spill] sm:$0xff]  ;;  %v3188_v21 = vrot.slane %v3174_v47, 7 }
 0x9b0   : > { %3012 = vrot.lane.b32.xlu1 %v3005_v27, %s9419_s13  ;;  %v3059_v27 = vsel %vm2740_vm2, %v3054_v7, %v3058_v53  ;;  %v3136_v53 = vsel %vm1213_vm14, %v3134_v34, %v3135_v28  ;;  %v2146_v7 = vsel %vm1490_vm4, %v7897_v13, %v2141_v3  ;;  %v3189_v34 = vrot.slane %v3176_v37, 7  ;;  %vm9509_vm2 = vmmov %vm9498_vm0 }
 0x9b1   : > { %v2200_v13 = vsel %vm1531_vm5, %v7943_v15, %v2195_v29 }
 0x9b2   : > { %v2199_v8 = vpop.permute.xlu1 %2198 }
 0x9b3   : > { %v2201_v15 = vsel %vm1531_vm5, %v7952_v58, %v2199_v8 }
 0x9b4   : > { %3062 = vrot.lane.b32.xlu1 %v3055_v46, %s9375_s24  ;;  %v2092_v46 = vsel %vm1448_vm3, %v9505_v22, %v8051_v11  ;;  %v3178_v11 = vmul.f32 %v3170_v61, %v8297_v40  ;;  %v3140_v22 = vsel %vm1213_vm14, %v3135_v28, %v3139_v19 }
 0x9b5   : > { %v2096_v44 = vadd.f32 %v2092_v46, %v7871_v59  ;;  %v2147_v59 = vsel %vm1490_vm4, %v7916_v63, %v2145_v14  ;;  %v3190_v63 = vsel %vm1213_vm14, %v3188_v21, %v3189_v34  ;;  %v8346_v14 = vpop.permute.xlu0 %2844 }
 0x9b6   : > { %v2249_v18 = vpop.permute.xlu1 %2248  ;;  %v3193_v61 = vrot.slane %v3178_v11, 7 }
 0x9b7   : > { %v2150_v3 = vadd.f32 %v2146_v7, %v2096_v44 }
 0x9b8   : > { %3066 = vrot.lane.b32.xlu1 %v3059_v27, %s9375_s24  ;;  %v2093_v27 = vsel %vm1448_vm3, %v9506_v17, %v8054_v43  ;;  %v2254_v43 = vsel %vm1573_vm7, %v7967_v33, %v2249_v18  ;;  %v3194_v58 = vsel %vm1213_vm14, %v3189_v34, %v3193_v61 }
 0x9b9   : > { %v2097_v19 = vadd.f32 %v2093_v27, %v7886_v30  ;;  %v2204_v46 = vadd.f32 %v2200_v13, %v2150_v3  ;;  %v3278_v27 = vsel %vm1553_vm12, %v7528_v42, %v8183_v10  ;;  %v8361_v11 = vpop.permute.xlu0 %2848 }
 0x9ba   : > { %v2253_v50 = vpop.permute.xlu1 %2252  ;;  %v3286_v61 = vmul.f32 %v3278_v27, %v8297_v40 }
 0x9bb   : > { %v2151_v33 = vadd.f32 %v2147_v59, %v2097_v19  ;;  %v2258_v29 = vadd.f32 %v2254_v43, %v2204_v46  ;;  %v2255_v30 = vsel %vm1573_vm7, %v7978_v23, %v2253_v50  ;;  %v9508_v43 = vld [vmem:[#allocation88_spill] sm:$0xff] }
 0x9bc   : > { %3143 = vrot.lane.b32.xlu1 %v3136_v53, %s9380_s21  ;;  %v3224_v53 = vsel %vm1172_vm10, %v7520_v38, %v8173_v57 }
 0x9bd   : > { %v3228_v28 = vmul.f32 %v3224_v53, %v8289_v6  ;;  %v3230_v38 = vmul.f32 %v8109_v24, %v3224_v53  ;;  %v3232_v18 = vmul.f32 %v3224_v53, %v8297_v40  ;;  %v2205_v37 = vadd.f32 %v2201_v15, %v2151_v33  ;;  %v9507_v53 = vld [vmem:[#allocation87_spill] sm:$0xff] }
 0x9be   : > { %v2303_v9 = vpop.permute.xlu1 %2302 }
 0x9bf   : > { %v2308_v57 = vsel %vm1615_vm15, %v7993_v35, %v2303_v9  ;;  %v3242_v8 = vrot.slane %v3228_v28, 7  ;;  %v3243_v35 = vrot.slane %v3230_v38, 7  ;;  %v2259_v23 = vadd.f32 %v2255_v30, %v2205_v37  ;;  %v8377_v38 = vpop.permute.xlu0 %2898 }
 0x9c0   : > { %3147 = vrot.lane.b32.xlu1 %v3140_v22, %s9380_s21  ;;  %v2312_v7 = vadd.f32 %v2308_v57, %v2258_v29  ;;  %v3247_v9 = vrot.slane %v3232_v18, 7  ;;  %v3301_v57 = vrot.slane %v3286_v61, 7  ;;  %v3524_v61 = vsel %vm1470_vm11, %v7809_v41, %v8221_v36 }
 0x9c1   : > { %v3244_v42 = vsel %vm1213_vm14, %v3242_v8, %v3243_v35 }
 0x9c2   : > { %v2307_v47 = vpop.permute.xlu1 %2306 }
 0x9c3   : > { %v2309_v21 = vsel %vm1615_vm15, %v8002_v26, %v2307_v47  ;;  %v3282_v26 = vmul.f32 %v3278_v27, %v8289_v6  ;;  %v3248_v47 = vsel %vm1213_vm14, %v3243_v35, %v3247_v9  ;;  %v8389_v30 = vpop.permute.xlu0 %2902 }
 0x9c4   : > { %3197 = vrot.lane.b32.xlu1 %v3190_v63, %s9383_s0  ;;  %v2313_v22 = vadd.f32 %v2309_v21, %v2259_v23 }
 0x9c5   : > { %v3296_v28 = vrot.slane %v3282_v26, 7 }
 0x9c6   : > { %v2357_v44 = vpop.permute.xlu1 %2356 }
 0x9c7   : > { %v2362_v17 = vsel %vm1657_vm13, %v8011_v5, %v2357_v44  ;;  %v3284_v5 = vmul.f32 %v8109_v24, %v3278_v27  ;;  %v3386_v44 = vsel %vm1637_vm8, %v7543_v20, %v8201_v55  ;;  %v8400_v27 = vpop.permute.xlu0 %2952  ;;  %v8405_v55 = vld [vmem:[#allocation3 + $0x28] sm:$0xfc] }
 0x9c8   : > { %v2366_v50 = vadd.f32 %v2362_v17, %v2312_v7  ;;  %3201 = vrot.lane.b32.xlu1 %v3194_v58, %s9383_s0  ;;  %v3390_v35 = vmul.f32 %v3386_v44, %v8289_v6  ;;  %v3392_v21 = vmul.f32 %v8109_v24, %v3386_v44 }
 0x9c9   : > { %v3297_v46 = vrot.slane %v3284_v5, 7  ;;  %v8415_v5 = vld [vmem:[#allocation3 + $0x48] sm:$0x3] }
 0x9ca   : > { %v2361_v34 = vpop.permute.xlu1 %2360  ;;  %v8364_v13 = vadd.f32 %v9507_v53, %v2366_v50  ;;  %v3394_v50 = vmul.f32 %v3386_v44, %v8297_v40  ;;  %v3404_v9 = vrot.slane %v3390_v35, 7 }
 0x9cb   : > { %v2363_v3 = vsel %vm1657_vm13, %v8151_v56, %v2361_v34  ;;  %v3332_v56 = vsel %vm9509_vm2, %v7535_v51, %v8191_v60  ;;  %v3298_v29 = vsel %vm1213_vm14, %v3296_v28, %v3297_v46  ;;  %v3302_v60 = vsel %vm1213_vm14, %v3297_v46, %v3301_v57  ;;  %v8407_v34 = vld [vmem:[#allocation3 + $0x38] sm:$0xff] }
 0x9cc   : > { %v2367_v10 = vadd.f32 %v2363_v3, %v2313_v22  ;;  %3251 = vrot.lane.b32.xlu1 %v3244_v42, %s9386_s7  ;;  %v3336_v63 = vmul.f32 %v3332_v56, %v8289_v6  ;;  %v3338_v33 = vmul.f32 %v8109_v24, %v3332_v56  ;;  %v3340_v37 = vmul.f32 %v3332_v56, %v8297_v40  ;;  %v8413_v6 = vpop.permute.xlu0 %2956 }
 0x9cd   : > { %v3405_v22 = vrot.slane %v3392_v21, 7  ;;  %v3470_v24 = vsel %vm1428_vm9, %v7791_v4, %v8211_v12  ;;  %v3409_v26 = vrot.slane %v3394_v50, 7  ;;  %v3528_v56 = vmul.f32 %v3524_v61, %v8405_v55 }
 0x9ce   : > { %v2441_v59 = vpop.permute.xlu1 %2440  ;;  %v8373_v19 = vadd.f32 %v9508_v43, %v2367_v10  ;;  %v3350_v7 = vrot.slane %v3336_v63, 7  ;;  %v3351_v51 = vrot.slane %v3338_v33, 7  ;;  %v3355_v8 = vrot.slane %v3340_v37, 7 }
 0x9cf   : > { %v3474_v40 = vmul.f32 %v3470_v24, %v8405_v55  ;;  %v3476_v3 = vmul.f32 %v3470_v24, %v8407_v34  ;;  %v3406_v42 = vsel %vm1213_vm14, %v3404_v9, %v3405_v22  ;;  %v3478_v10 = vmul.f32 %v3470_v24, %v8415_v5 }
 0x9d0   : > { %3255 = vrot.lane.b32.xlu1 %v3248_v47, %s9386_s7  ;;  %v3352_v17 = vsel %vm1213_vm14, %v3350_v7, %v3351_v51  ;;  %v3356_v20 = vsel %vm1213_vm14, %v3351_v51, %v3355_v8  ;;  %v3410_v28 = vsel %vm1213_vm14, %v3405_v22, %v3409_v26  ;;  %v8426_v46 = vpop.permute.xlu0 %3006  ;;  %v3530_v63 = vmul.f32 %v3524_v61, %v8407_v34 }
 0x9d1   : > { %v3488_v4 = vrot.slane %v3474_v40, 2  ;;  %v3489_v12 = vrot.slane %v3476_v3, 2  ;;  %v3493_v47 = vrot.slane %v3478_v10, 2  ;;  %v2446_v33 = vsel %vm1448_vm3, %v8161_v54, %v2441_v59  ;;  %v9514_v3 = vld [vmem:[#allocation39_spill] sm:$0xff] }
 0x9d2   : > { %v8383_v15 = vpop.permute.xlu1 %2444  ;;  %vm9510_vm9 = vcmask 1045504   ;;  %v3532_v37 = vmul.f32 %v3524_v61, %v8415_v5  ;;  %v3542_v7 = vrot.slane %v3528_v56, 2  ;;  %v2450_v51 = vadd.f32 %v2446_v33, %v8364_v13 }
 0x9d3   : > { %vm9511_vm11 = vmmov %vm9510_vm9  ;;  %v3543_v8 = vrot.slane %v3530_v63, 2  ;;  %v3578_v54 = vsel %vm1172_vm10, %v7830_v52, %v8235_v32  ;;  %v2447_v59 = vsel %vm1448_vm3, %v8175_v2, %v8383_v15 }
 0x9d4   : > { %3305 = vrot.lane.b32.xlu1 %v3298_v29, %s9389_s20  ;;  %v3490_v29 = vsel %vm9510_vm9, %v3488_v4, %v3489_v12  ;;  %v8437_v36 = vpop.permute.xlu0 %3010  ;;  %v3494_v44 = vsel %vm9511_vm11, %v3489_v12, %v3493_v47  ;;  %v3547_v21 = vrot.slane %v3532_v37, 2  ;;  %v2451_v52 = vadd.f32 %v2447_v59, %v8373_v19  ;;  %vm9512_vm10 = vmmov %vm9510_vm9  ;;  %v9516_v47 = vld [vmem:[#allocation89_spill] sm:$0xff]  ;;  %v9519_v37 = vld [vmem:[#allocation90_spill] sm:$0xff] }
 0x9d5   : > { %v3584_v2 = vmul.f32 %v3578_v54, %v8407_v34  ;;  %v3586_v9 = vmul.f32 %v3578_v54, %v8415_v5  ;;  %vm9513_vm14 = vmmov %vm9510_vm9  ;;  %v9521_v59 = vld [vmem:[#allocation42_spill] sm:$0xff] }
 0x9d6   : > { %v2495_v18 = vpop.permute.xlu1 %2494  ;;  %vm9518_vm1 = vmmov %vm9510_vm9 }
 0x9d7   : > { %v2500_v41 = vsel %vm1490_vm4, %v8188_v49, %v2495_v18  ;;  %v3601_v12 = vrot.slane %v3586_v9, 2  ;;  %vm9524_vm0 = vmmov %vm9518_vm1 }
 0x9d8   : > { %3309 = vrot.lane.b32.xlu1 %v3302_v60, %s9389_s20  ;;  %v2504_v18 = vadd.f32 %v2500_v41, %v2450_v51  ;;  %vm9525_vm2 = vmmov %vm9524_vm0 }
 0x9d9   : > { %vm9528_vm9 = vmmov %vm9524_vm0 }
 0x9da   : > { %v2499_v58 = vpop.permute.xlu1 %2498  ;;  %vm9530_vm11 = vmmov %vm9524_vm0 }
 0x9db   : > { %v2501_v13 = vsel %vm1490_vm4, %v8203_v62, %v2499_v58  ;;  %v3544_v62 = vsel %vm9512_vm10, %v3542_v7, %v3543_v8  ;;  %v8463_v58 = vpop.permute.xlu0 %3060  ;;  %vm9531_vm10 = vmmov %vm9524_vm0 }
 0x9dc   : > { %3359 = vrot.lane.b32.xlu1 %v3352_v17, %s9419_s13  ;;  %v3582_v17 = vmul.f32 %v3578_v54, %v8405_v55 }
 0x9de   : > { %v2549_v23 = vpop.permute.xlu1 %2548 }
 0x9df   : > { %v2554_v49 = vsel %vm1531_vm5, %v8215_v39, %v2549_v23  ;;  %v8478_v4 = vpop.permute.xlu0 %3064 }
 0x9e0   : > { %3363 = vrot.lane.b32.xlu1 %v3356_v20, %s9419_s13  ;;  %v2558_v32 = vadd.f32 %v2554_v49, %v2504_v18  ;;  %v9522_v49 = vld [vmem:[#allocation59_spill] sm:$0xff] }
 0x9e1   : > { %v3686_v18 = vsel %vm9523_vm6, %v9522_v49, %v9521_v59  ;;  %vm3962_vm6 = vcmask 695848  }
 0x9e2   : > { %v2553_v53 = vpop.permute.xlu1 %2552 }
 0x9e3   : > { %v2555_v39 = vsel %vm1531_vm5, %v8227_v16, %v2553_v53  ;;  %v3548_v16 = vsel %vm9513_vm14, %v3543_v8, %v3547_v21  ;;  %v3596_v53 = vrot.slane %v3582_v17, 2  ;;  %v8490_v54 = vpop.permute.xlu0 %3141  ;;  %v3690_v21 = vmul.f32 %v3686_v18, %v8405_v55  ;;  %vm9536_vm14 = vmmov %vm9524_vm0 }
 0x9e4   : > { %3413 = vrot.lane.b32.xlu1 %v3406_v42, %s9375_s24  ;;  %v9515_v42 = vld [vmem:[#allocation84_spill] sm:$0xff]  ;;  %v3692_v17 = vmul.f32 %v3686_v18, %v8407_v34 }
 0x9e5   : > { %v3632_v10 = vsel %vm1553_vm12, %v9515_v42, %v9514_v3  ;;  %vm9520_vm12 = vmmov %vm9518_vm1 }
 0x9e6   : > { %v2603_v43 = vpop.permute.xlu1 %2602  ;;  %v3640_v51 = vmul.f32 %v3632_v10, %v8415_v5 }
 0x9e7   : > { %v2608_v35 = vsel %vm1573_vm7, %v8240_v31, %v2603_v43  ;;  %v2505_v31 = vadd.f32 %v2501_v13, %v2451_v52 }
 0x9e8   : > { %3417 = vrot.lane.b32.xlu1 %v3410_v28, %s9375_s24  ;;  %v2612_v23 = vadd.f32 %v2608_v35, %v2558_v32  ;;  %v3655_v35 = vrot.slane %v3640_v51, 2  ;;  %v8500_v32 = vpop.permute.xlu0 %3145 }
 0x9e9   : > { %v2559_v22 = vadd.f32 %v2555_v39, %v2505_v31  ;;  %v3704_v39 = vrot.slane %v3690_v21, 2  ;;  %v9526_v31 = vld [vmem:[#allocation41_spill] sm:$0xff] }
 0x9ea   : > { %v2607_v57 = vpop.permute.xlu1 %2606 }
 0x9eb   : > { %v2609_v19 = vsel %vm1573_vm7, %v8251_v45, %v2607_v57  ;;  %v3638_v57 = vmul.f32 %v3632_v10, %v8407_v34 }
 0x9ec   : > { %3497 = vrot.lane.b32.xlu1 %v3490_v29, %s9380_s21  ;;  %v2613_v45 = vadd.f32 %v2609_v19, %v2559_v22 }
 0x9ee   : > { %v2657_v60 = vpop.permute.xlu1 %2656 }
 0x9ef   : > { %v2662_v15 = vsel %vm1615_vm15, %v8261_v1, %v2657_v60  ;;  %v3597_v1 = vrot.slane %v3584_v2, 2  ;;  %v3694_v2 = vmul.f32 %v3686_v18, %v8415_v5 }
 0x9f0   : > { %3501 = vrot.lane.b32.xlu1 %v3494_v44, %s9380_s21  ;;  %v2666_v20 = vadd.f32 %v2662_v15, %v2612_v23  ;;  %v3651_v44 = vrot.slane %v3638_v57, 2  ;;  %v3705_v15 = vrot.slane %v3692_v17, 2  ;;  %v9527_v23 = vld [vmem:[#allocation40_spill] sm:$0xff] }
 0x9f1   : > { %v3598_v33 = vsel %vm9518_vm1, %v3596_v53, %v3597_v1  ;;  %v3602_v8 = vsel %vm9520_vm12, %v3597_v1, %v3601_v12  ;;  %v3740_v19 = vsel %vm1637_vm8, %v9527_v23, %v9526_v31  ;;  %v3709_v22 = vrot.slane %v3694_v2, 2  ;;  %v8511_v53 = vpop.permute.xlu0 %3195  ;;  %vm9529_vm8 = vmmov %vm9524_vm0 }
 0x9f2   : > { %v2661_v50 = vpop.permute.xlu1 %2660  ;;  %vm9537_vm1 = vmmov %vm9524_vm0  ;;  %vm3953_vm12 = vcmask 515448  }
 0x9f3   : > { %v2663_v26 = vsel %vm1615_vm15, %v8271_v25, %v2661_v50  ;;  %v3636_v25 = vmul.f32 %v3632_v10, %v8405_v55  ;;  %v3710_v42 = vsel %vm9529_vm8, %v3705_v15, %v3709_v22 }
 0x9f4   : > { %3551 = vrot.lane.b32.xlu1 %v3544_v62, %s9383_s0  ;;  %v2667_v61 = vadd.f32 %v2663_v26, %v2613_v45  ;;  %v3656_v62 = vsel %vm9525_vm2, %v3651_v44, %v3655_v35  ;;  %v3748_v26 = vmul.f32 %v3740_v19, %v8415_v5 }
 0x9f5   : > { %v3650_v60 = vrot.slane %v3636_v25, 2  ;;  %v8517_v10 = vpop.permute.xlu0 %3199 }
 0x9f6   : > { %v2711_v24 = vpop.permute.xlu1 %2710  ;;  %v3763_v45 = vrot.slane %v3748_v26, 2 }
 0x9f7   : > { %v2716_v40 = vsel %vm1657_vm13, %v8284_v48, %v2711_v24  ;;  %v9517_v48 = vld [vmem:[#allocation44_spill] sm:$0xff]  ;;  %v3652_v52 = vsel %vm9524_vm0, %v3650_v60, %v3651_v44  ;;  %v3746_v24 = vmul.f32 %v3740_v19, %v8407_v34  ;;  %vm5002_vm0 = vcmask 130048  }
 0x9f8   : > { %v2720_v43 = vadd.f32 %v2716_v40, %v2666_v20  ;;  %3555 = vrot.lane.b32.xlu1 %v3548_v16, %s9383_s0  ;;  %v3744_v20 = vmul.f32 %v3740_v19, %v8405_v55  ;;  %v3706_v16 = vsel %vm9528_vm9, %v3704_v39, %v3705_v15  ;;  %v9534_v15 = vld [vmem:[#allocation92_spill] sm:$0xff] }
 0x9f9   : > { %v3759_v3 = vrot.slane %v3746_v24, 2 }
 0x9fa   : > { %v2715_v28 = vpop.permute.xlu1 %2714  ;;  %v2748_v56 = vadd.f32 %v9516_v47, %v2720_v43  ;;  %v3758_v40 = vrot.slane %v3744_v20, 2 }
 0x9fb   : > { %v2717_v63 = vsel %vm1657_vm13, %v9517_v48, %v2715_v28  ;;  %v3764_v12 = vsel %vm9531_vm10, %v3759_v3, %v3763_v45  ;;  %v9532_v28 = vld [vmem:[#allocation43_spill] sm:$0xff] }
 0x9fc   : > { %v2721_v29 = vadd.f32 %v2717_v63, %v2667_v61  ;;  %3605 = vrot.lane.b32.xlu1 %v3598_v33, %s9386_s7  ;;  %v3760_v34 = vsel %vm9530_vm11, %v3758_v40, %v3759_v3  ;;  %v8522_v61 = vpop.permute.xlu0 %3249 }
 0x9fe   : > { %v2793_v41 = vpop.permute.xlu1 %2792  ;;  %v2749_v7 = vadd.f32 %v9519_v37, %v2721_v29 }
 0x9ff   : > { %v2798_v47 = vsel %vm1448_vm3, %v9532_v28, %v2793_v41 }
 0xa00   : > { %3609 = vrot.lane.b32.xlu1 %v3602_v8, %s9386_s7  ;;  %v8529_v57 = vpop.permute.xlu0 %3253  ;;  %v2802_v48 = vadd.f32 %v2798_v47, %v2748_v56  ;;  %s8598_s7 = sld [smem:[#allocation20 + $0x2]] }
 0xa02   : > { %v2797_v13 = vpop.permute.xlu1 %2796 }
 0xa03   : > { %v2799_v33 = vsel %vm1448_vm3, %v8320_v0, %v2797_v13 }
 0xa04   : > { %3659 = vrot.lane.b32.xlu1 %v3652_v52, %s9389_s20  ;;  %v2803_v60 = vadd.f32 %v2799_v33, %v2749_v7  ;;  %v3304_v0 = vpop.permute.xlu0 %3303  ;;  %v9533_v52 = vld [vmem:[#allocation91_spill] sm:$0xff] }
 0xa06   : > { %v2847_v50 = vpop.permute.xlu1 %2846 }
 0xa07   : > { %v2852_v25 = vsel %vm1490_vm4, %v8346_v14, %v2847_v50 }
 0xa08   : > { %3663 = vrot.lane.b32.xlu1 %v3656_v62, %s9389_s20  ;;  %v2856_v37 = vadd.f32 %v2852_v25, %v2802_v48  ;;  %v3308_v21 = vpop.permute.xlu0 %3307  ;;  %s6089_s20 = smov 94  }
 0xa0a   : > { %v2851_v9 = vpop.permute.xlu1 %2850 }
 0xa0b   : > { %v2853_v51 = vsel %vm1490_vm4, %v8361_v11, %v2851_v9 }
 0xa0c   : > { %3713 = vrot.lane.b32.xlu1 %v3706_v16, %s9419_s13  ;;  %v2857_v59 = vadd.f32 %v2853_v51, %v2803_v60  ;;  %v3358_v31 = vpop.permute.xlu0 %3357 }
 0xa0e   : > { %v2901_v1 = vpop.permute.xlu1 %2900 }
 0xa0f   : > { %v2906_v29 = vsel %vm1531_vm5, %v8377_v38, %v2901_v1 }
 0xa10   : > { %3717 = vrot.lane.b32.xlu1 %v3710_v42, %s9419_s13  ;;  %v2910_v44 = vadd.f32 %v2906_v29, %v2856_v37  ;;  %v3432_v37 = vld [vmem:[#allocation11 + $0x52] ss:$8 sm:$0x3]  ;;  %s5357_s13 = sld [smem:[#allocation20 + $0x7]] }
 0xa12   : > { %v2905_v55 = vpop.permute.xlu1 %2904 }
 0xa13   : > { %v2907_v56 = vsel %vm1531_vm5, %v8389_v30, %v2905_v55 }
 0xa14   : > { %3767 = vrot.lane.b32.xlu1 %v3760_v34, %s9375_s24  ;;  %v2911_v18 = vadd.f32 %v2907_v56, %v2857_v59 }
 0xa16   : > { %v2955_v43 = vpop.permute.xlu1 %2954 }
 0xa17   : > { %v2960_v41 = vsel %vm1573_vm7, %v8400_v27, %v2955_v43 }
 0xa18   : > { %3771 = vrot.lane.b32.xlu1 %v3764_v12, %s9375_s24  ;;  %v2964_v49 = vadd.f32 %v2960_v41, %v2910_v44  ;;  %s8592_s24 = sld [smem:[#allocation15 + $0x2]] }
 0xa1a   : > { %v2959_v5 = vpop.permute.xlu1 %2958 }
 0xa1b   : > { %v2961_v38 = vsel %vm1573_vm7, %v8413_v6, %v2959_v5 }
 0xa1c   : > { %v2965_v35 = vadd.f32 %v2961_v38, %v2911_v18 }
 0xa1e   : > { %v3009_v63 = vpop.permute.xlu1 %3008 }
 0xa1f   : > { %v3014_v8 = vsel %vm1615_vm15, %v8426_v46, %v3009_v63 }
 0xa20   : > { %v3018_v11 = vadd.f32 %v3014_v8, %v2964_v49 }
 0xa22   : > { %v3013_v14 = vpop.permute.xlu1 %3012 }
 0xa23   : > { %v3015_v27 = vsel %vm1615_vm15, %v8437_v36, %v3013_v14  ;;  %v3362_v36 = vpop.permute.xlu0 %3361 }
 0xa24   : > { %v3019_v17 = vadd.f32 %v3015_v27, %v2965_v35 }
 0xa26   : > { %v3063_v13 = vpop.permute.xlu1 %3062 }
 0xa27   : > { %v3068_v7 = vsel %vm1657_vm13, %v8463_v58, %v3063_v13  ;;  %v3412_v58 = vpop.permute.xlu0 %3411 }
 0xa28   : > { %v3072_v30 = vadd.f32 %v3068_v7, %v3018_v11  ;;  %v5695_v11 = vld [vmem:[#allocation3 + $0x20] sm:$0xfc] }
 0xa2a   : > { %v3067_v46 = vpop.permute.xlu1 %3066  ;;  %v3099_v50 = vadd.f32 %v9533_v52, %v3072_v30 }
 0xa2b   : > { %v3069_v2 = vsel %vm1657_vm13, %v8478_v4, %v3067_v46  ;;  %v3416_v20 = vpop.permute.xlu0 %3415 }
 0xa2c   : > { %v3073_v6 = vadd.f32 %v3069_v2, %v3019_v17  ;;  %v5697_v2 = vld [vmem:[#allocation3 + $0x40] sm:$0x3] }
 0xa2e   : > { %v3144_v39 = vpop.permute.xlu1 %3143  ;;  %v3100_v62 = vadd.f32 %v9534_v15, %v3073_v6 }
 0xa2f   : > { %v3496_v1 = vpop.permute.xlu0 %3495  ;;  %v3149_v48 = vsel %vm1448_vm3, %v8490_v54, %v3144_v39  ;;  %v9535_v54 = vld [vmem:[#allocation38_spill] sm:$0xff] }
 0xa30   : > { %v3153_v29 = vadd.f32 %v3149_v48, %v3099_v50  ;;  %v3437_v8 = vrot.slane %v3432_v37, %v9535_v54  ;;  %v3832_v54 = vstv %s8592_s24  ;;  %s9539_s24 = smov 2  }
 0xa32   : > { %v3148_v23 = vpop.permute.xlu1 %3147  ;;  %v3439_v13 = vmul.f32 %v5695_v11, %v3437_v8 }
 0xa33   : > { %v8553_v40 = vpop.permute.xlu0 %3499  ;;  %v3150_v41 = vsel %vm1448_vm3, %v8500_v32, %v3148_v23 }
 0xa34   : > { %v3154_v49 = vadd.f32 %v3150_v41, %v3100_v62  ;;  %v3446_v50 = vrot.slane %v3439_v13, 2  ;;  %v3836_v13 = vstv %s8598_s7  ;;  %s9540_s7 = smov 4  }
 0xa36   : > { %v3198_v19 = vpop.permute.xlu1 %3197 }
 0xa37   : > { %v3550_v42 = vpop.permute.xlu0 %3549  ;;  %v3203_v33 = vsel %vm1490_vm4, %v8511_v53, %v3198_v19 }
 0xa38   : > { %v3207_v44 = vadd.f32 %v3203_v33, %v3153_v29 }
 0xa3a   : > { %v3202_v9 = vpop.permute.xlu1 %3201 }
 0xa3b   : > { %v8555_v45 = vpop.permute.xlu0 %3553  ;;  %v3204_v14 = vsel %vm1490_vm4, %v8517_v10, %v3202_v9 }
 0xa3e   : > { %v3252_v22 = vpop.permute.xlu1 %3251 }
 0xa3f   : > { %v3604_v12 = vpop.permute.xlu0 %3603  ;;  %v3257_v60 = vsel %vm1531_vm5, %v8522_v61, %v3252_v22  ;;  %v3208_v61 = vadd.f32 %v3204_v14, %v3154_v49 }
 0xa40   : > { %v3261_v53 = vadd.f32 %v3257_v60, %v3207_v44  ;;  %v3800_v44 = vstv %s8585_s6  ;;  %s6091_s6 = smov 26  }
 0xa42   : > { %v3256_v24 = vpop.permute.xlu1 %3255 }
 0xa43   : > { %v8557_v28 = vpop.permute.xlu0 %3607  ;;  %v3258_v18 = vsel %vm1531_vm5, %v8529_v57, %v3256_v24  ;;  %v3441_v57 = vmul.f32 %v5697_v2, %v3437_v8 }
 0xa44   : > { %v3262_v30 = vadd.f32 %v3258_v18, %v3208_v61 }
 0xa46   : > { %v3306_v16 = vpop.permute.xlu1 %3305 }
 0xa47   : > { %v3658_v63 = vpop.permute.xlu0 %3657  ;;  %v3311_v56 = vsel %vm1573_vm7, %v3304_v0, %v3306_v16  ;;  %v5696_v0 = vld [vmem:[#allocation3 + $0x30] sm:$0xff] }
 0xa48   : > { %v3315_v27 = vadd.f32 %v3311_v56, %v3261_v53  ;;  %v3440_v35 = vmul.f32 %v5696_v0, %v3437_v8  ;;  %v3804_v56 = vstv %s8590_s19  ;;  %v3818_v0 = vstv %s8607_s29  ;;  %s9538_s19 = smov 1   ;;  %s9307_s29 = smov 5  }
 0xa4a   : > { %v3310_v26 = vpop.permute.xlu1 %3309 }
 0xa4b   : > { %v3662_v59 = vpop.permute.xlu0 %3661  ;;  %v3312_v7 = vsel %vm1573_vm7, %v3308_v21, %v3310_v26 }
 0xa4c   : > { %v3316_v39 = vadd.f32 %v3312_v7, %v3262_v30 }
 0xa4e   : > { %v3360_v3 = vpop.permute.xlu1 %3359 }
 0xa4f   : > { %v3365_v32 = vsel %vm1615_vm15, %v3358_v31, %v3360_v3  ;;  %v3712_v6 = vpop.permute.xlu0 %3711  ;;  %v3447_v31 = vrot.slane %v3440_v35, 2  ;;  %v3864_v35 = vstv %s8609_s1  ;;  %s3783_s1 = sld [smem:[#allocation15]] }
 0xa50   : > { %v3369_v17 = vadd.f32 %v3365_v32, %v3315_v27 }
 0xa51   : > { %v3448_v19 = vsel %vm9536_vm14, %v3446_v50, %v3447_v31 }
 0xa52   : > { %v3364_v4 = vpop.permute.xlu1 %3363 }
 0xa53   : > { %v3366_v52 = vsel %vm1615_vm15, %v3362_v36, %v3364_v4  ;;  %v3716_v16 = vpop.permute.xlu0 %3715 }
 0xa54   : > { %v3370_v23 = vadd.f32 %v3366_v52, %v3316_v39  ;;  %v3868_v52 = vstv %s5356_s17  ;;  %s1232_s17 = sld [smem:[#allocation17]] }
 0xa56   : > { %v3414_v55 = vpop.permute.xlu1 %3413 }
 0xa57   : > { %v3419_v10 = vsel %vm1657_vm13, %v3412_v58, %v3414_v55  ;;  %v3449_v58 = vrot.slane %v3441_v57, 2 }
 0xa58   : > { %v3423_v15 = vadd.f32 %v3419_v10, %v3369_v17 }
 0xa59   : > { %v3450_v4 = vsel %vm9537_vm1, %v3447_v31, %v3449_v58  ;;  %v5361_v58 = vld [vmem:[#allocation12 + $0x3] ss:$0 sm:$0xff] }
 0xa5a   : > { %v3418_v34 = vpop.permute.xlu1 %3417  ;;  %v3453_v24 = vadd.f32 %v3448_v19, %v3423_v15 }
 0xa5b   : > { %v3420_v62 = vsel %vm1657_vm13, %v3416_v20, %v3418_v34 }
 0xa5c   : > { %v3424_v22 = vadd.f32 %v3420_v62, %v3370_v23  ;;  %v3882_v62 = vstv %s5357_s13  ;;  %s8646_s13 = sld [smem:[#allocation18]] }
 0xa5e   : > { %v3498_v43 = vpop.permute.xlu1 %3497  ;;  %v3454_v34 = vadd.f32 %v3450_v4, %v3424_v22  ;;  %v5362_v22 = vld [vmem:[#allocation12 + $0x4] ss:$0 sm:$0xff]  ;;  %v5369_v4 = vld [vmem:[#allocation12 + $0xb] ss:$0 sm:$0xff] }
 0xa5f   : > { %v3503_v9 = vsel %vm1448_vm3, %v3496_v1, %v3498_v43 }
 0xa60   : > { %v3507_v26 = vadd.f32 %v3503_v9, %v3453_v24  ;;  %v5360_v9 = vld [vmem:[#allocation12 + $0x2] ss:$0 sm:$0xff]  ;;  %v5363_v24 = vld [vmem:[#allocation12 + $0x5] ss:$0 sm:$0xff] }
 0xa62   : > { %v3502_v5 = vpop.permute.xlu1 %3501 }
 0xa63   : > { %v3504_v20 = vsel %vm1448_vm3, %v8553_v40, %v3502_v5  ;;  %v3766_v5 = vpop.permute.xlu0 %3765  ;;  %vm3916_vm3 = vcmask 384328  }
 0xa66   : > { %v3552_v47 = vpop.permute.xlu1 %3551 }
 0xa67   : > { %v3557_v36 = vsel %vm1490_vm4, %v3550_v42, %v3552_v47  ;;  %v3508_v42 = vadd.f32 %v3504_v20, %v3454_v34  ;;  %v3770_v8 = vpop.permute.xlu0 %3769  ;;  %v5370_v20 = vld [vmem:[#allocation12 + $0xc] ss:$0 sm:$0xff]  ;;  %v5373_v34 = vld [vmem:[#allocation12 + $0xf] ss:$0 sm:$0xff] }
 0xa68   : > { %v3561_v48 = vadd.f32 %v3557_v36, %v3507_v26  ;;  %v5364_v36 = vld [vmem:[#allocation12 + $0x6] ss:$0 sm:$0xff]  ;;  %v5367_v26 = vld [vmem:[#allocation12 + $0x9] ss:$0 sm:$0xff] }
 0xa6a   : > { %v3556_v25 = vpop.permute.xlu1 %3555 }
 0xa6b   : > { %v3558_v1 = vsel %vm1490_vm4, %v8555_v45, %v3556_v25  ;;  %vm3919_vm4 = vcmask 564728  }
 0xa6c   : > { %v3562_v29 = vadd.f32 %v3558_v1, %v3508_v42  ;;  %v5375_v1 = vld [vmem:[#allocation12 + $0x11] ss:$0 sm:$0xff]  ;;  %v5378_v42 = vld [vmem:[#allocation12 + $0x14] ss:$0 sm:$0xff] }
 0xa6e   : > { %v3606_v51 = vpop.permute.xlu1 %3605 }
 0xa6f   : > { %v3611_v55 = vsel %vm1531_vm5, %v3604_v12, %v3606_v51 }
 0xa70   : > { %v3615_v47 = vadd.f32 %v3611_v55, %v3561_v48  ;;  %v5371_v55 = vld [vmem:[#allocation12 + $0xd] ss:$0 sm:$0xff]  ;;  %v5374_v48 = vld [vmem:[#allocation12 + $0x10] ss:$0 sm:$0xff] }
 0xa72   : > { %v3610_v38 = vpop.permute.xlu1 %3609 }
 0xa73   : > { %v3612_v40 = vsel %vm1531_vm5, %v8557_v28, %v3610_v38  ;;  %vm3922_vm5 = vcmask 1048232  }
 0xa76   : > { %v3660_v46 = vpop.permute.xlu1 %3659 }
 0xa77   : > { %v3665_v43 = vsel %vm1573_vm7, %v3658_v63, %v3660_v46  ;;  %v3616_v63 = vadd.f32 %v3612_v40, %v3562_v29 }
 0xa78   : > { %v3669_v45 = vadd.f32 %v3665_v43, %v3615_v47  ;;  %v5376_v43 = vld [vmem:[#allocation12 + $0x12] ss:$0 sm:$0xff]  ;;  %v5381_v47 = vld [vmem:[#allocation12 + $0x17] ss:$0 sm:$0xff] }
 0xa7a   : > { %v3664_v21 = vpop.permute.xlu1 %3663 }
 0xa7b   : > { %v3666_v25 = vsel %vm1573_vm7, %v3662_v59, %v3664_v21  ;;  %v5359_v21 = vld [vmem:[#allocation12 + $0x1] ss:$0 sm:$0xff]  ;;  %vm3933_vm7 = vcmask 154648  }
 0xa7c   : > { %v3670_v28 = vadd.f32 %v3666_v25, %v3616_v63  ;;  %v1233_v25 = vstv %s1232_s17  ;;  %s9555_s17 = smov 5  }
 0xa7e   : > { %v3714_v3 = vpop.permute.xlu1 %3713 }
 0xa7f   : > { %v3719_v12 = vsel %vm1615_vm15, %v3712_v6, %v3714_v3  ;;  %v3850_v6 = vstv %s5354_s3  ;;  %v5368_v3 = vld [vmem:[#allocation12 + $0xa] ss:$0 sm:$0xff]  ;;  %s5337_s3 = sld [smem:[#allocation17 + $0x4]] }
 0xa80   : > { %v3723_v37 = vadd.f32 %v3719_v12, %v3669_v45  ;;  %v3784_v12 = vstv %s3783_s1  ;;  %s6095_s1 = smov 47  }
 0xa82   : > { %v3718_v33 = vpop.permute.xlu1 %3717 }
 0xa83   : > { %v3720_v41 = vsel %vm1615_vm15, %v3716_v16, %v3718_v33  ;;  %v5366_v16 = vld [vmem:[#allocation12 + $0x8] ss:$0 sm:$0xff]  ;;  %v5383_v33 = vld [vmem:[#allocation12 + $0x19] ss:$0 sm:$0xff]  ;;  %vm3944_vm15 = vcmask 335048  }
 0xa84   : > { %v3724_v59 = vadd.f32 %v3720_v41, %v3670_v28 }
 0xa86   : > { %v3768_v51 = vpop.permute.xlu1 %3767 }
 0xa87   : > { %v3773_v60 = vsel %vm1657_vm13, %v3766_v5, %v3768_v51  ;;  %v9541_v51 = vld [vmem:[#allocation48_spill] sm:$0xff] }
 0xa88   : > { %v8603_v14 = vadd.f32 %v3773_v60, %v3723_v37  ;;  %v1239_v37 = vstv %s5337_s3  ;;  %v1234_v41 = vmul.f32 %v1233_v25, %v9541_v51  ;;  %s9080_s3 = sld [smem:[#allocation26]] }
 0xa8a   : > { %v3772_v49 = vpop.permute.xlu1 %3771  ;;  %v3801_v53 = vadd.f32 %v3800_v44, %v8603_v14  ;;  %v3833_v11 = vadd.f32 %v3832_v54, %v8603_v14  ;;  %v3865_v46 = vadd.f32 %v3864_v35, %v8603_v14  ;;  %v3785_v5 = vadd.f32 %v3784_v12, %v8603_v14 }
 0xa8b   : > { %v3774_v38 = vsel %vm1657_vm13, %v3770_v8, %v3772_v49  ;;  %v1240_v8 = vmul.f32 %v1239_v37, %v9541_v51  ;;  %vm3913_vm13 = vcmask 203928  }
 0xa8c   : > { %v8613_v18 = vadd.f32 %v3774_v38, %v3724_v59  ;;  %v3805_v32 = vmul.f32 %v3804_v56, %v3801_v53  ;;  %v3837_v27 = vmul.f32 %v3836_v13, %v3833_v11  ;;  %v3819_v30 = vmul.f32 %v3818_v0, %v3801_v53  ;;  %v9542_v53 = vld [vmem:[#allocation50_spill] sm:$0xff] }
 0xa8d   : > { %v3869_v50 = vmul.f32 %v3868_v52, %v3865_v46  ;;  %v3851_v39 = vmul.f32 %v3850_v6, %v3833_v11  ;;  %v3883_v31 = vmul.f32 %v3882_v62, %v3865_v46  ;;  %v1235_v38 = vmul.f32 %v1233_v25, %v9542_v53 }
 0xa8e   : > { %3809 = vrot.lane.b32.xlu0 %v3805_v32, %s6089_s20  ;;  %v3802_v61 = vadd.f32 %v3800_v44, %v8613_v18  ;;  %v3834_v10 = vadd.f32 %v3832_v54, %v8613_v18  ;;  %v3866_v57 = vadd.f32 %v3864_v35, %v8613_v18  ;;  %v1204_v54 = vstv %s8646_s13  ;;  %s9084_s13 = sld [smem:[#allocation24 + $0x1]] }
 0xa8f   : > { %v3786_v14 = vadd.f32 %v3784_v12, %v8613_v18  ;;  %v1241_v32 = vmul.f32 %v1239_v37, %v9542_v53  ;;  %v1237_v46 = vadd.f32 %v1235_v38, %v1204_v54 }
 0xa90   : > { %v3806_v7 = vmul.f32 %v3804_v56, %v3802_v61  ;;  %v3838_v17 = vmul.f32 %v3836_v13, %v3834_v10  ;;  %v3820_v2 = vmul.f32 %v3818_v0, %v3802_v61  ;;  %v3870_v15 = vmul.f32 %v3868_v52, %v3866_v57 }
 0xa91   : > { %v3852_v23 = vmul.f32 %v3850_v6, %v3834_v10  ;;  %v3884_v19 = vmul.f32 %v3882_v62, %v3866_v57  ;;  %v1236_v13 = vadd.f32 %v1234_v41, %v1204_v54  ;;  %v9546_v62 = vld [vmem:[#allocation69_spill] sm:$0xff] }
 0xa92   : > { %3841 = vrot.lane.b32.xlu0 %v3837_v27, %s6090_s8  ;;  %3811 = vrot.lane.b32.xlu1 %v3806_v7, %s6089_s20  ;;  %v3782_v27 = vstv %s8651_s9  ;;  %v9554_v54 = vld [vmem:[#allocation73_spill] sm:$0xff]  ;;  %s6093_s9 = smov 25  }
 0xa96   : > { %3823 = vrot.lane.b32.xlu0 %v3819_v30, %s6089_s20  ;;  %3843 = vrot.lane.b32.xlu1 %v3838_v17, %s6090_s8  ;;  %v9543_v30 = vld [vmem:[#allocation60_spill] sm:$0xff] }
 0xa97   : > { %v1280_v17 = vadd.f32 %v9543_v30, %v1236_v13  ;;  %v5385_v30 = vld [vmem:[#allocation12 + $0x1b] ss:$0 sm:$0xff] }
 0xa9a   : > { %3873 = vrot.lane.b32.xlu0 %v3869_v50, %s6091_s6  ;;  %3825 = vrot.lane.b32.xlu1 %v3820_v2, %s6089_s20  ;;  %s8642_s20 = sld [smem:[#allocation20]]  ;;  %v9544_v2 = vld [vmem:[#allocation61_spill] sm:$0xff] }
 0xa9e   : > { %3855 = vrot.lane.b32.xlu0 %v3851_v39, %s6090_s8  ;;  %3875 = vrot.lane.b32.xlu1 %v3870_v15, %s6091_s6  ;;  %v9545_v39 = vld [vmem:[#allocation67_spill] sm:$0xff] }
 0xa9f   : > { %v1281_v15 = vadd.f32 %v9545_v39, %v1237_v46  ;;  %v5388_v46 = vld [vmem:[#allocation12 + $0x1e] ss:$0 sm:$0xff]  ;;  %v5391_v39 = vld [vmem:[#allocation12 + $0x21] ss:$0 sm:$0xff] }
 0xaa0   : > { %v3788_v63 = vstv %s8642_s20  ;;  %s4932_s20 = sld [smem:[#allocation23]] }
 0xaa1   : > { %v3789_v60 = vmul.f32 %v3788_v63, %v3785_v5  ;;  %v3790_v35 = vmul.f32 %v3788_v63, %v3786_v14 }
 0xaa2   : > { %3887 = vrot.lane.b32.xlu0 %v3883_v31, %s6091_s6  ;;  %3857 = vrot.lane.b32.xlu1 %v3852_v23, %s6090_s8  ;;  %s8644_s8 = sld [smem:[#allocation20 + $0x4]]  ;;  %v9547_v23 = vld [vmem:[#allocation70_spill] sm:$0xff] }
 0xaa6   : > { %3889 = vrot.lane.b32.xlu1 %v3884_v19, %s6091_s6  ;;  %3980 = vrot.lane.b32.xlu0 %v5359_v21, %s9538_s19  ;;  %s8648_s6 = sld [smem:[#allocation21]]  ;;  %v1332_v21 = vadd.f32 %v9547_v23, %v1280_v17  ;;  %v5382_v17 = vld [vmem:[#allocation12 + $0x18] ss:$0 sm:$0xff]  ;;  %v5396_v23 = vld [vmem:[#allocation12 + $0x26] ss:$0 sm:$0xff] }
 0xaa8   : > { %v3794_v44 = vstv %s8644_s8  ;;  %s9082_s8 = sld [smem:[#allocation24]] }
 0xaa9   : > { %v3795_v11 = vmul.f32 %v3794_v44, %v3785_v5  ;;  %v3796_v6 = vmul.f32 %v3794_v44, %v3786_v14  ;;  %v9551_v5 = vld [vmem:[#allocation62_spill] sm:$0xff] }
 0xaaa   : > { %4001 = vrot.lane.b32.xlu1 %v5360_v9, %s9539_s24  ;;  %4022 = vrot.lane.b32.xlu0 %v5361_v58, %s9368_s16 }
 0xaab   : > { %v3797_v57 = vadd.f32 %v3795_v11, %v3782_v27 }
 0xaac   : > { %v3780_v59 = vstv %s8648_s6  ;;  %s9086_s6 = sld [smem:[#allocation26 + $0x1]] }
 0xaad   : > { %v3791_v61 = vadd.f32 %v3789_v60, %v3780_v59 }
 0xaae   : > { %4043 = vrot.lane.b32.xlu1 %v5362_v22, %s9540_s7  ;;  %4064 = vrot.lane.b32.xlu0 %v5363_v24, %s9307_s29  ;;  %v9548_v22 = vld [vmem:[#allocation71_spill] sm:$0xff] }
 0xab2   : > { %4085 = vrot.lane.b32.xlu1 %v5364_v36, %s9369_s4  ;;  %4117 = vrot.lane.b32.xlu0 %v5366_v16, %s9538_s19  ;;  %v3792_v36 = vadd.f32 %v3790_v35, %v3780_v59  ;;  %v5380_v35 = vld [vmem:[#allocation12 + $0x16] ss:$0 sm:$0xff] }
 0xab6   : > { %4138 = vrot.lane.b32.xlu1 %v5367_v26, %s9539_s24  ;;  %4159 = vrot.lane.b32.xlu0 %v5368_v3, %s9368_s16  ;;  %v5698_v3 = vld [vmem:[#allocation3] sm:$0xff] }
 0xab7   : > { %3914 = vst.msk [vmem:[#allocation4 + $0x3] sm:$0xff] %vm3913_vm13, %v5698_v3  ;;  %3915 = vst.msk [vmem:[#allocation4 + $0xb] sm:$0xff] %vm3913_vm13, %v5698_v3 }
 0xab8   : > { %3917 = vst.msk [vmem:[#allocation4 + $0x3] sm:$0xff] %vm3916_vm3, %v5698_v3  ;;  %3918 = vst.msk [vmem:[#allocation4 + $0xb] sm:$0xff] %vm3916_vm3, %v5698_v3 }
 0xab9   : > { %3920 = vst.msk [vmem:[#allocation4 + $0x3] sm:$0xff] %vm3919_vm4, %v5698_v3  ;;  %3921 = vst.msk [vmem:[#allocation4 + $0xb] sm:$0xff] %vm3919_vm4, %v5698_v3 }
 0xaba   : > { %4180 = vrot.lane.b32.xlu1 %v5369_v4, %s9540_s7  ;;  %4201 = vrot.lane.b32.xlu0 %v5370_v20, %s9307_s29  ;;  %s5336_s29 = sld [smem:[#allocation18 + $0x1]]  ;;  %v3798_v20 = vadd.f32 %v3796_v6, %v3782_v27  ;;  %3923 = vst.msk [vmem:[#allocation4 + $0x3] sm:$0xff] %vm3922_vm5, %v5698_v3  ;;  %3924 = vst.msk [vmem:[#allocation4 + $0xb] sm:$0xff] %vm3922_vm5, %v5698_v3  ;;  %v5395_v6 = vld [vmem:[#allocation12 + $0x25] ss:$0 sm:$0xff] }
 0xabb   : > { %v5405_v3 = vld [vmem:[#allocation12 + $0x2f] ss:$0 sm:$0xff] }
 0xabe   : > { %4222 = vrot.lane.b32.xlu1 %v5371_v55, %s9369_s4  ;;  %4254 = vrot.lane.b32.xlu0 %v5373_v34, %s9538_s19  ;;  %v9549_v34 = vld [vmem:[#allocation64_spill] sm:$0xff] }
 0xac0   : > { %v1206_v49 = vstv %s5336_s29  ;;  %s6094_s29 = smov 69  }
 0xac1   : > { %v1242_v0 = vadd.f32 %v1240_v8, %v1206_v49  ;;  %v1243_v52 = vadd.f32 %v1241_v32, %v1206_v49 }
 0xac2   : > { %4275 = vrot.lane.b32.xlu1 %v5374_v48, %s9539_s24  ;;  %4296 = vrot.lane.b32.xlu0 %v5375_v1, %s9368_s16  ;;  %v8672_v48 = vadd.f32 %v9549_v34, %v1332_v21  ;;  %v5402_v21 = vld [vmem:[#allocation12 + $0x2c] ss:$0 sm:$0xff] }
 0xac3   : > { %v1294_v18 = vadd.f32 %v9544_v2, %v1242_v0  ;;  %v1295_v31 = vadd.f32 %v9546_v62, %v1243_v52  ;;  %v5377_v0 = vld [vmem:[#allocation12 + $0x13] ss:$0 sm:$0xff]  ;;  %v5384_v52 = vld [vmem:[#allocation12 + $0x1a] ss:$0 sm:$0xff]  ;;  %v5387_v2 = vld [vmem:[#allocation12 + $0x1d] ss:$0 sm:$0xff] }
 0xac4   : > { %v5394_v62 = vld [vmem:[#allocation12 + $0x24] ss:$0 sm:$0xff] }
 0xac5   : > { %v1346_v24 = vadd.f32 %v9548_v22, %v1294_v18  ;;  %v5392_v18 = vld [vmem:[#allocation12 + $0x22] ss:$0 sm:$0xff]  ;;  %v5401_v22 = vld [vmem:[#allocation12 + $0x2b] ss:$0 sm:$0xff] }
 0xac6   : > { %4317 = vrot.lane.b32.xlu1 %v5376_v43, %s9540_s7 }
 0xaca   : > { %4359 = vrot.lane.b32.xlu1 %v5378_v42, %s9369_s4  ;;  %v9550_v42 = vld [vmem:[#allocation65_spill] sm:$0xff] }
 0xace   : > { %4412 = vrot.lane.b32.xlu1 %v5381_v47, %s9539_s24  ;;  %v8675_v47 = vadd.f32 %v9550_v42, %v1346_v24  ;;  %v5406_v24 = vld [vmem:[#allocation12 + $0x30] ss:$0 sm:$0xff] }
 0xad2   : > { %4454 = vrot.lane.b32.xlu1 %v5383_v33, %s9540_s7 }
 0xb00   : > { %v3810_v40 = vpop.permute.xlu0 %3809 }
 0xb01   : > { %v3815_v50 = vadd.f32 %v3810_v40, %v3791_v61 }
 0xb04   : > { %v3842_v29 = vpop.permute.xlu0 %3841  ;;  %v3812_v45 = vpop.permute.xlu1 %3811 }
 0xb05   : > { %v3847_v19 = vadd.f32 %v3842_v29, %v3815_v50  ;;  %v3816_v4 = vadd.f32 %v3812_v45, %v3792_v36  ;;  %v1333_v29 = vadd.f32 %v9551_v5, %v1281_v15  ;;  %v9552_v45 = vld [vmem:[#allocation63_spill] sm:$0xff]  ;;  %v5403_v36 = vld [vmem:[#allocation12 + $0x2d] ss:$0 sm:$0xff] }
 0xb06   : > { %v1347_v25 = vadd.f32 %v9552_v45, %v1295_v31  ;;  %v5390_v50 = vld [vmem:[#allocation12 + $0x20] ss:$0 sm:$0xff]  ;;  %v5397_v15 = vld [vmem:[#allocation12 + $0x27] ss:$0 sm:$0xff]  ;;  %v5399_v31 = vld [vmem:[#allocation12 + $0x29] ss:$0 sm:$0xff] }
 0xb08   : > { %v3824_v28 = vpop.permute.xlu0 %3823  ;;  %v3844_v56 = vpop.permute.xlu1 %3843  ;;  %v8695_v8 = vadd.f32 %v9554_v54, %v1347_v25 }
 0xb09   : > { %v3829_v16 = vadd.f32 %v3824_v28, %v3797_v57  ;;  %v3848_v33 = vadd.f32 %v3844_v56, %v3816_v4  ;;  %v9553_v28 = vld [vmem:[#allocation72_spill] sm:$0xff]  ;;  %v5389_v57 = vld [vmem:[#allocation12 + $0x1f] ss:$0 sm:$0xff] }
 0xb0a   : > { %v8692_v56 = vadd.f32 %v9553_v28, %v1333_v29 }
 0xb0c   : > { %v3874_v7 = vpop.permute.xlu0 %3873  ;;  %v3826_v10 = vpop.permute.xlu1 %3825 }
 0xb0d   : > { %v8669_v26 = vadd.f32 %v3874_v7, %v3847_v19  ;;  %v3830_v40 = vadd.f32 %v3826_v10, %v3798_v20  ;;  %v5398_v19 = vld [vmem:[#allocation12 + $0x28] ss:$0 sm:$0xff] }
 0xb0f   : > { %v3895_v63 = vadd.f32 %v8669_v26, %v8672_v48  ;;  %v3897_v37 = vmax.f32 %v8672_v48, %v8669_v26 }
 0xb10   : > { %v3856_v9 = vpop.permute.xlu0 %3855  ;;  %v3876_v58 = vpop.permute.xlu1 %3875 }
 0xb11   : > { %v3861_v55 = vadd.f32 %v3856_v9, %v3829_v16  ;;  %v8687_v51 = vadd.f32 %v3876_v58, %v3848_v33  ;;  %v3899_v38 = vadd.f32 %v3895_v63, %v8675_v47  ;;  %v5404_v9 = vld [vmem:[#allocation12 + $0x2e] ss:$0 sm:$0xff] }
 0xb13   : > { %v3896_v49 = vadd.f32 %v8687_v51, %v8692_v56  ;;  %v3898_v53 = vmax.f32 %v8692_v56, %v8687_v51 }
 0xb14   : > { %v3888_v1 = vpop.permute.xlu0 %3887  ;;  %v3858_v43 = vpop.permute.xlu1 %3857 }
 0xb15   : > { %v8677_v12 = vadd.f32 %v3888_v1, %v3861_v55  ;;  %v3862_v60 = vadd.f32 %v3858_v43, %v3830_v40  ;;  %v3900_v61 = vadd.f32 %v3896_v49, %v8695_v8 }
 0xb17   : > { %v3903_v41 = vmax.f32 %v8675_v47, %v8677_v12  ;;  %v3901_v11 = vadd.f32 %v3899_v38, %v8677_v12 }
 0xb18   : > { %v3890_v44 = vpop.permute.xlu1 %3889  ;;  %v8740_v20 = vpop.permute.xlu0 %3980 }
 0xb19   : > { %v8697_v59 = vadd.f32 %v3890_v44, %v3862_v60  ;;  %v3905_v14 = vmax.f32 %v3897_v37, %v3903_v41  ;;  %v3907_v27 = vmul.f32 0.25, %v3901_v11 }
 0xb1b   : > { %v3904_v32 = vmax.f32 %v8695_v8, %v8697_v59  ;;  %3938 = vrot.lane.b32.xlu0 %v3905_v14, %s6093_s9  ;;  %v3902_v7 = vadd.f32 %v3900_v61, %v8697_v59 }
 0xb1c   : > { %v8730_v58 = vpop.permute.xlu1 %4001  ;;  %v8744_v34 = vpop.permute.xlu0 %4022 }
 0xb1d   : > { %v3906_v13 = vmax.f32 %v3898_v53, %v3904_v32  ;;  %v3908_v10 = vmul.f32 0.25, %v3902_v7 }
 0xb1f   : > { %3956 = vrot.lane.b32.xlu0 %v3905_v14, %s6094_s29  ;;  %3940 = vrot.lane.b32.xlu1 %v3906_v13, %s6093_s9  ;;  %s9088_s9 = sld [smem:[#allocation24 + $0x2]] }
 0xb20   : > { %v8734_v16 = vpop.permute.xlu1 %4043  ;;  %v8748_v43 = vpop.permute.xlu0 %4064 }
 0xb23   : > { %3927 = vrot.lane.b32.xlu0 %v3907_v27, %s9368_s16  ;;  %3958 = vrot.lane.b32.xlu1 %v3906_v13, %s6094_s29  ;;  %s9090_s29 = sld [smem:[#allocation24 + $0x3]] }
 0xb24   : > { %v8738_v4 = vpop.permute.xlu1 %4085  ;;  %v8752_v33 = vpop.permute.xlu0 %4117 }
 0xb27   : > { %3947 = vrot.lane.b32.xlu0 %v3907_v27, %s6095_s1  ;;  %3929 = vrot.lane.b32.xlu1 %v3908_v10, %s9368_s16 }
 0xb28   : > { %v8742_v55 = vpop.permute.xlu1 %4138  ;;  %v8756_v5 = vpop.permute.xlu0 %4159 }
 0xb2b   : > { %4338 = vrot.lane.b32.xlu0 %v5377_v0, %s9555_s17  ;;  %3949 = vrot.lane.b32.xlu1 %v3908_v10, %s6095_s1  ;;  %s9092_s1 = sld [smem:[#allocation24 + $0x4]] }
 0xb2c   : > { %v8746_v1 = vpop.permute.xlu1 %4180  ;;  %v8760_v45 = vpop.permute.xlu0 %4201 }
 0xb2f   : > { %4391 = vrot.lane.b32.xlu0 %v5380_v35, %s9538_s19  ;;  %4496 = vrot.lane.b32.xlu1 %v5385_v30, %s9369_s4 }
 0xb30   : > { %v8750_v42 = vpop.permute.xlu1 %4222  ;;  %v8764_v63 = vpop.permute.xlu0 %4254 }
 0xb33   : > { %4433 = vrot.lane.b32.xlu0 %v5382_v17, %s9368_s16  ;;  %4549 = vrot.lane.b32.xlu1 %v5388_v46, %s9539_s24 }
 0xb34   : > { %v8754_v40 = vpop.permute.xlu1 %4275  ;;  %v8768_v41 = vpop.permute.xlu0 %4296 }
 0xb37   : > { %4475 = vrot.lane.b32.xlu0 %v5384_v52, %s9555_s17  ;;  %4591 = vrot.lane.b32.xlu1 %v5390_v50, %s9540_s7 }
 0xb38   : > { %v8758_v29 = vpop.permute.xlu1 %4317 }
 0xb3b   : > { %4528 = vrot.lane.b32.xlu0 %v5387_v2, %s9538_s19  ;;  %4633 = vrot.lane.b32.xlu1 %v5392_v18, %s9369_s4 }
 0xb3c   : > { %v8762_v25 = vpop.permute.xlu1 %4359 }
 0xb3f   : > { %4570 = vrot.lane.b32.xlu0 %v5389_v57, %s9368_s16  ;;  %4686 = vrot.lane.b32.xlu1 %v5395_v6, %s9539_s24 }
 0xb40   : > { %v8766_v37 = vpop.permute.xlu1 %4412 }
 0xb43   : > { %4612 = vrot.lane.b32.xlu0 %v5391_v39, %s9555_s17  ;;  %4728 = vrot.lane.b32.xlu1 %v5397_v15, %s9540_s7 }
 0xb44   : > { %v8770_v60 = vpop.permute.xlu1 %4454 }
 0xb47   : > { %4665 = vrot.lane.b32.xlu0 %v5394_v62, %s9538_s19  ;;  %4770 = vrot.lane.b32.xlu1 %v5399_v31, %s9369_s4 }
 0xb4b   : > { %4707 = vrot.lane.b32.xlu0 %v5396_v23, %s9368_s16  ;;  %4823 = vrot.lane.b32.xlu1 %v5402_v21, %s9539_s24  ;;  %s6096_s24 = smov 123  }
 0xb4f   : > { %4749 = vrot.lane.b32.xlu0 %v5398_v19, %s9555_s17  ;;  %4865 = vrot.lane.b32.xlu1 %v5404_v9, %s9540_s7  ;;  %s6098_s7 = smov 84  }
 0xb53   : > { %4802 = vrot.lane.b32.xlu0 %v5401_v22, %s9538_s19  ;;  %4907 = vrot.lane.b32.xlu1 %v5406_v24, %s9369_s4  ;;  %s9556_s4 = smov 127   ;;  %s9558_s19 = smov 124  }
 0xb57   : > { %4844 = vrot.lane.b32.xlu0 %v5403_v36, %s9368_s16  ;;  %s9557_s16 = smov 126  }
 0xb5b   : > { %4886 = vrot.lane.b32.xlu0 %v5405_v3, %s9555_s17  ;;  %s9094_s17 = sld [smem:[#allocation24 + $0x6]] }
 0xb8d   : > { %v3939_v44 = vpop.permute.xlu0 %3938 }
 0xb91   : > { %v3957_v28 = vpop.permute.xlu0 %3956  ;;  %v3941_v54 = vpop.permute.xlu1 %3940 }
 0xb95   : > { %v3928_v14 = vpop.permute.xlu0 %3927  ;;  %v3959_v49 = vpop.permute.xlu1 %3958 }
 0xb96   : > { %3934 = vst.msk [vmem:[#allocation4 + $0x3] sm:$0xff] %vm3933_vm7, %v3928_v14 }
 0xb97   : > { %3945 = vst.msk [vmem:[#allocation4 + $0x3] sm:$0xff] %vm3944_vm15, %v3939_v44 }
 0xb99   : > { %v3948_v53 = vpop.permute.xlu0 %3947  ;;  %v3930_v38 = vpop.permute.xlu1 %3929 }
 0xb9a   : > { %3954 = vst.msk [vmem:[#allocation4 + $0x3] sm:$0xff] %vm3953_vm12, %v3948_v53 }
 0xb9b   : > { %3935 = vst.msk [vmem:[#allocation4 + $0xb] sm:$0xff] %vm3933_vm7, %v3930_v38 }
 0xb9c   : > { %3963 = vst.msk [vmem:[#allocation4 + $0x3] sm:$0xff] %vm3962_vm6, %v3957_v28 }
 0xb9d   : > { %3946 = vst.msk [vmem:[#allocation4 + $0xb] sm:$0xff] %vm3944_vm15, %v3941_v54  ;;  %v3950_v32 = vpop.permute.xlu1 %3949  ;;  %v4339_v22 = vpop.permute.xlu0 %4338 }
 0xb9e   : > { %3955 = vst.msk [vmem:[#allocation4 + $0xb] sm:$0xff] %vm3953_vm12, %v3950_v32 }
 0xb9f   : > { %3964 = vst.msk [vmem:[#allocation4 + $0xb] sm:$0xff] %vm3962_vm6, %v3959_v49 }
 0xba1   : > { %v4497_v53 = vpop.permute.xlu1 %4496 }
 0xba3   : > { %v8772_v11 = vld [vmem:[#allocation4] sm:$0xff] }
 0xba4   : > { %v3983_v13 = vmul.f32 %v8740_v20, %v8772_v11  ;;  %v4004_v61 = vmul.f32 %v8730_v58, %v8772_v11  ;;  %v4025_v27 = vmul.f32 %v8744_v34, %v8772_v11  ;;  %v4046_v7 = vmul.f32 %v8734_v16, %v8772_v11  ;;  %v8785_v10 = vld [vmem:[#allocation4 + $0x1] sm:$0xff] }
 0xba5   : > { %v4067_v0 = vmul.f32 %v8748_v43, %v8772_v11  ;;  %v4141_v35 = vmul.f32 %v8742_v55, %v8785_v10  ;;  %v4088_v30 = vmul.f32 %v8738_v4, %v8772_v11  ;;  %v4183_v17 = vmul.f32 %v8746_v1, %v8785_v10  ;;  %v8798_v46 = vld [vmem:[#allocation4 + $0x2] sm:$0xff] }
 0xba6   : > { %3987 = vrot.lane.b32.xlu0 %v3983_v13, %s9556_s4  ;;  %4008 = vrot.lane.b32.xlu1 %v4004_v61, %s9557_s16  ;;  %v4120_v52 = vmul.f32 %v8752_v33, %v8785_v10  ;;  %v4278_v50 = vmul.f32 %v8754_v40, %v8798_v46  ;;  %v4162_v2 = vmul.f32 %v8756_v5, %v8785_v10  ;;  %v8813_v57 = vld [vmem:[#allocation4 + $0x8] sm:$0xff]  ;;  %v4550_v13 = vpop.permute.xlu1 %4549 }
 0xba7   : > { %v4320_v18 = vmul.f32 %v8758_v29, %v8798_v46  ;;  %v4204_v6 = vmul.f32 %v8760_v45, %v8785_v10  ;;  %v3984_v39 = vmul.f32 %v8740_v20, %v8813_v57  ;;  %v4225_v15 = vmul.f32 %v8750_v42, %v8785_v10  ;;  %v8839_v9 = vld [vmem:[#allocation4 + $0x9] sm:$0xff]  ;;  %v4392_v20 = vpop.permute.xlu0 %4391 }
 0xba8   : > { %v4026_v62 = vmul.f32 %v8744_v34, %v8813_v57  ;;  %v4257_v31 = vmul.f32 %v8764_v63, %v8798_v46  ;;  %v4068_v23 = vmul.f32 %v8748_v43, %v8813_v57  ;;  %v4299_v21 = vmul.f32 %v8768_v41, %v8798_v46  ;;  %v8865_v54 = vld [vmem:[#allocation4 + $0xa] sm:$0xff] }
 0xba9   : > { %v4089_v19 = vmul.f32 %v8738_v4, %v8813_v57  ;;  %v4341_v24 = vmul.f32 %v4339_v22, %v8798_v46  ;;  %v4121_v36 = vmul.f32 %v8752_v33, %v8839_v9  ;;  %v4362_v3 = vmul.f32 %v8762_v25, %v8798_v46  ;;  %v8849_v4 = vld [vmem:[#allocation4 + $0x3] sm:$0xff] }
 0xbaa   : > { %4029 = vrot.lane.b32.xlu0 %v4025_v27, %s9380_s21  ;;  %4050 = vrot.lane.b32.xlu1 %v4046_v7, %s9558_s19  ;;  %v4163_v34 = vmul.f32 %v8756_v5, %v8839_v9  ;;  %v4394_v43 = vmul.f32 %v4392_v20, %v8849_v4  ;;  %v4205_v33 = vmul.f32 %v8760_v45, %v8839_v9  ;;  %v8888_v7 = vld [vmem:[#allocation4 + $0xb] sm:$0xff] }
 0xbab   : > { %v4434_v44 = vpop.permute.xlu0 %4433  ;;  %v4415_v28 = vmul.f32 %v8766_v37, %v8849_v4  ;;  %v4226_v5 = vmul.f32 %v8750_v42, %v8839_v9  ;;  %v4258_v45 = vmul.f32 %v8764_v63, %v8865_v54  ;;  %v4457_v42 = vmul.f32 %v8770_v60, %v8849_v4 }
 0xbac   : > { %v4436_v14 = vmul.f32 %v4434_v44, %v8849_v4  ;;  %v4300_v38 = vmul.f32 %v8768_v41, %v8865_v54  ;;  %v4005_v63 = vmul.f32 %v8730_v58, %v8813_v57  ;;  %v4342_v61 = vmul.f32 %v4339_v22, %v8865_v54 }
 0xbad   : > { %v4047_v27 = vmul.f32 %v8734_v16, %v8813_v57  ;;  %v4363_v41 = vmul.f32 %v8762_v25, %v8865_v54  ;;  %v4142_v58 = vmul.f32 %v8742_v55, %v8839_v9  ;;  %v4184_v25 = vmul.f32 %v8746_v1, %v8839_v9 }
 0xbae   : > { %4071 = vrot.lane.b32.xlu0 %v4067_v0, %s6096_s24  ;;  %4145 = vrot.lane.b32.xlu1 %v4141_v35, %s9557_s16  ;;  %v4592_v35 = vpop.permute.xlu1 %4591  ;;  %v4279_v55 = vmul.f32 %v8754_v40, %v8865_v54  ;;  %v4321_v1 = vmul.f32 %v8758_v29, %v8865_v54  ;;  %v4499_v29 = vmul.f32 %v4497_v53, %v8849_v4 }
 0xbaf   : > { %v4476_v49 = vpop.permute.xlu0 %4475 }
 0xbb0   : > { %v4478_v40 = vmul.f32 %v4476_v49, %v8849_v4 }
 0xbb2   : > { %4092 = vrot.lane.b32.xlu0 %v4088_v30, %s9383_s0  ;;  %4187 = vrot.lane.b32.xlu1 %v4183_v17, %s9558_s19  ;;  %v4395_v30 = vmul.f32 %v4392_v20, %v8888_v7  ;;  %v4634_v17 = vpop.permute.xlu1 %4633 }
 0xbb3   : > { %v4529_v32 = vpop.permute.xlu0 %4528 }
 0xbb6   : > { %4124 = vrot.lane.b32.xlu0 %v4120_v52, %s9556_s4  ;;  %4282 = vrot.lane.b32.xlu1 %v4278_v50, %s9557_s16  ;;  %v4416_v52 = vmul.f32 %v8766_v37, %v8888_v7  ;;  %v4437_v50 = vmul.f32 %v4434_v44, %v8888_v7  ;;  %v4458_v37 = vmul.f32 %v8770_v60, %v8888_v7 }
 0xbb7   : > { %v4571_v0 = vpop.permute.xlu0 %4570  ;;  %v4500_v60 = vmul.f32 %v4497_v53, %v8888_v7 }
 0xbba   : > { %4166 = vrot.lane.b32.xlu0 %v4162_v2, %s9380_s21  ;;  %4324 = vrot.lane.b32.xlu1 %v4320_v18, %s9558_s19  ;;  %v8907_v18 = vpop.permute.xlu1 %4686 }
 0xbbb   : > { %v4613_v16 = vpop.permute.xlu0 %4612 }
 0xbbe   : > { %4208 = vrot.lane.b32.xlu0 %v4204_v6, %s6096_s24  ;;  %3989 = vrot.lane.b32.xlu1 %v3984_v39, %s9556_s4  ;;  %v4479_v39 = vmul.f32 %v4476_v49, %v8888_v7  ;;  %v8963_v49 = vld [vmem:[#allocation12] ss:$0 sm:$0xff] }
 0xbbf   : > { %v4666_v2 = vpop.permute.xlu0 %4665 }
 0xbc2   : > { %4229 = vrot.lane.b32.xlu0 %v4225_v15, %s9383_s0  ;;  %4031 = vrot.lane.b32.xlu1 %v4026_v62, %s9380_s21  ;;  %v8920_v15 = vpop.permute.xlu1 %4728 }
 0xbc3   : > { %v8917_v6 = vpop.permute.xlu0 %4707 }
 0xbc6   : > { %4261 = vrot.lane.b32.xlu0 %v4257_v31, %s9556_s4  ;;  %4073 = vrot.lane.b32.xlu1 %v4068_v23, %s6096_s24  ;;  %v8929_v31 = vld [vmem:[#allocation4 + $0x4] sm:$0xff]  ;;  %v8931_v23 = vpop.permute.xlu1 %4770 }
 0xbc7   : > { %v8926_v62 = vpop.permute.xlu0 %4749 }
 0xbca   : > { %4303 = vrot.lane.b32.xlu0 %v4299_v21, %s9380_s21  ;;  %4094 = vrot.lane.b32.xlu1 %v4089_v19, %s9383_s0  ;;  %v8934_v21 = vld [vmem:[#allocation4 + $0xc] sm:$0xff]  ;;  %v4531_v19 = vmul.f32 %v4529_v32, %v8929_v31  ;;  %v8944_v20 = vpop.permute.xlu1 %4823 }
 0xbcb   : > { %v4532_v22 = vmul.f32 %v4529_v32, %v8934_v21  ;;  %v4616_v53 = vmul.f32 %v4613_v16, %v8934_v21  ;;  %v4636_v32 = vmul.f32 %v4634_v17, %v8929_v31 }
 0xbce   : > { %4345 = vrot.lane.b32.xlu0 %v4341_v24, %s6096_s24  ;;  %4126 = vrot.lane.b32.xlu1 %v4121_v36, %s9556_s4  ;;  %v4552_v24 = vmul.f32 %v4550_v13, %v8929_v31  ;;  %v8941_v36 = vpop.permute.xlu0 %4802  ;;  %v8953_v44 = vpop.permute.xlu1 %4865 }
 0xbd2   : > { %4366 = vrot.lane.b32.xlu0 %v4362_v3, %s9383_s0  ;;  %4168 = vrot.lane.b32.xlu1 %v4163_v34, %s9380_s21  ;;  %v4553_v3 = vmul.f32 %v4550_v13, %v8934_v21  ;;  %v4573_v34 = vmul.f32 %v4571_v0, %v8929_v31  ;;  %v4637_v13 = vmul.f32 %v4634_v17, %v8934_v21 }
 0xbd6   : > { %4398 = vrot.lane.b32.xlu0 %v4394_v43, %s9556_s4  ;;  %4210 = vrot.lane.b32.xlu1 %v4205_v33, %s6096_s24  ;;  %v4574_v43 = vmul.f32 %v4571_v0, %v8934_v21  ;;  %v8950_v33 = vpop.permute.xlu0 %4844 }
 0xbda   : > { %4419 = vrot.lane.b32.xlu0 %v4415_v28, %s9557_s16  ;;  %4231 = vrot.lane.b32.xlu1 %v4226_v5, %s9383_s0  ;;  %v4594_v28 = vmul.f32 %v4592_v35, %v8929_v31  ;;  %v4595_v5 = vmul.f32 %v4592_v35, %v8934_v21  ;;  %v8978_v35 = vld [vmem:[#allocation4 + $0xd] sm:$0xff] }
 0xbde   : > { %4440 = vrot.lane.b32.xlu0 %v4436_v14, %s9380_s21  ;;  %4263 = vrot.lane.b32.xlu1 %v4258_v45, %s9556_s4  ;;  %v4615_v14 = vmul.f32 %v4613_v16, %v8929_v31  ;;  %v8961_v45 = vpop.permute.xlu0 %4886 }
 0xbe2   : > { %4461 = vrot.lane.b32.xlu0 %v4457_v42, %s9558_s19  ;;  %4305 = vrot.lane.b32.xlu1 %v4300_v38, %s9380_s21  ;;  %v8966_v42 = vpop.permute.xlu1 %4907  ;;  %v3972_v38 = vmul.f32 %v8963_v49, %v8772_v11  ;;  %v4669_v11 = vmul.f32 %v4666_v2, %v8978_v35 }
 0xbe6   : > { %4010 = vrot.lane.b32.xlu0 %v4005_v63, %s9557_s16  ;;  %4347 = vrot.lane.b32.xlu1 %v4342_v61, %s6096_s24 }
 0xbea   : > { %4052 = vrot.lane.b32.xlu0 %v4047_v27, %s9558_s19  ;;  %4368 = vrot.lane.b32.xlu1 %v4363_v41, %s9383_s0  ;;  %v8975_v41 = vld [vmem:[#allocation4 + $0x5] sm:$0xff] }
 0xbee   : > { %4147 = vrot.lane.b32.xlu0 %v4142_v58, %s9557_s16  ;;  %4400 = vrot.lane.b32.xlu1 %v4395_v30, %s9556_s4  ;;  %v4668_v58 = vmul.f32 %v4666_v2, %v8975_v41  ;;  %v4710_v2 = vmul.f32 %v8917_v6, %v8975_v41 }
 0xbf2   : > { %4189 = vrot.lane.b32.xlu0 %v4184_v25, %s9558_s19  ;;  %4421 = vrot.lane.b32.xlu1 %v4416_v52, %s9557_s16  ;;  %v4689_v52 = vmul.f32 %v8907_v18, %v8975_v41 }
 0xbf6   : > { %4284 = vrot.lane.b32.xlu0 %v4279_v55, %s9557_s16  ;;  %4442 = vrot.lane.b32.xlu1 %v4437_v50, %s9380_s21  ;;  %v4690_v50 = vmul.f32 %v8907_v18, %v8978_v35 }
 0xbfa   : > { %4326 = vrot.lane.b32.xlu0 %v4321_v1, %s9558_s19  ;;  %4463 = vrot.lane.b32.xlu1 %v4458_v37, %s9558_s19 }
 0xbfe   : > { %4482 = vrot.lane.b32.xlu0 %v4478_v40, %s6096_s24  ;;  %4484 = vrot.lane.b32.xlu1 %v4479_v39, %s6096_s24  ;;  %v8989_v40 = vld [vmem:[#allocation12 + $0x7] ss:$0 sm:$0xff] }
 0xc02   : > { %4503 = vrot.lane.b32.xlu0 %v4499_v29, %s9383_s0  ;;  %4505 = vrot.lane.b32.xlu1 %v4500_v60, %s9383_s0  ;;  %v4711_v29 = vmul.f32 %v8917_v6, %v8978_v35  ;;  %v4107_v60 = vmul.f32 %v8989_v40, %v8785_v10  ;;  %v4752_v10 = vmul.f32 %v8926_v62, %v8975_v41 }
 0xc06   : > { %4535 = vrot.lane.b32.xlu0 %v4531_v19, %s9556_s4  ;;  %4537 = vrot.lane.b32.xlu1 %v4532_v22, %s9556_s4 }
 0xc0a   : > { %4556 = vrot.lane.b32.xlu0 %v4552_v24, %s9557_s16  ;;  %4558 = vrot.lane.b32.xlu1 %v4553_v3, %s9557_s16  ;;  %v4731_v24 = vmul.f32 %v8920_v15, %v8975_v41 }
 0xc0e   : > { %4577 = vrot.lane.b32.xlu0 %v4573_v34, %s9380_s21  ;;  %4579 = vrot.lane.b32.xlu1 %v4574_v43, %s9380_s21  ;;  %v4732_v34 = vmul.f32 %v8920_v15, %v8978_v35  ;;  %v4773_v15 = vmul.f32 %v8931_v23, %v8975_v41 }
 0xc12   : > { %4598 = vrot.lane.b32.xlu0 %v4594_v28, %s9558_s19  ;;  %4600 = vrot.lane.b32.xlu1 %v4595_v5, %s9558_s19 }
 0xc16   : > { %4619 = vrot.lane.b32.xlu0 %v4615_v14, %s6096_s24  ;;  %4621 = vrot.lane.b32.xlu1 %v4616_v53, %s6096_s24  ;;  %v4753_v14 = vmul.f32 %v8926_v62, %v8978_v35  ;;  %v9019_v62 = vld [vmem:[#allocation4 + $0x6] sm:$0xff] }
 0xc18   : > { %v3988_v63 = vpop.permute.xlu0 %3987  ;;  %v4009_v27 = vpop.permute.xlu1 %4008 }
 0xc19   : > { %v3993_v61 = vadd.f32 %v3988_v63, %v3972_v38 }
 0xc1a   : > { %4640 = vrot.lane.b32.xlu0 %v4636_v32, %s9383_s0  ;;  %4642 = vrot.lane.b32.xlu1 %v4637_v13, %s9383_s0  ;;  %v4774_v13 = vmul.f32 %v8931_v23, %v8978_v35 }
 0xc1b   : > { %v4014_v0 = vadd.f32 %v4009_v27, %v3993_v61 }
 0xc1c   : > { %v4030_v30 = vpop.permute.xlu0 %4029  ;;  %v4051_v25 = vpop.permute.xlu1 %4050 }
 0xc1d   : > { %v4035_v16 = vadd.f32 %v4030_v30, %v4014_v0  ;;  %v9017_v0 = vld [vmem:[#allocation12 + $0xe] ss:$0 sm:$0xff]  ;;  %v4805_v30 = vmul.f32 %v8941_v36, %v9019_v62 }
 0xc1e   : > { %4672 = vrot.lane.b32.xlu0 %v4668_v58, %s9556_s4  ;;  %4674 = vrot.lane.b32.xlu1 %v4669_v11, %s9556_s4  ;;  %v9022_v58 = vld [vmem:[#allocation4 + $0xe] sm:$0xff] }
 0xc1f   : > { %v4056_v17 = vadd.f32 %v4051_v25, %v4035_v16  ;;  %v4806_v16 = vmul.f32 %v8941_v36, %v9022_v58 }
 0xc20   : > { %v4072_v55 = vpop.permute.xlu0 %4071  ;;  %v4146_v37 = vpop.permute.xlu1 %4145 }
 0xc21   : > { %v4077_v1 = vadd.f32 %v4072_v55, %v4056_v17  ;;  %v4244_v17 = vmul.f32 %v9017_v0, %v8798_v46  ;;  %v4826_v55 = vmul.f32 %v8944_v20, %v9019_v62  ;;  %v4847_v46 = vmul.f32 %v8950_v33, %v9019_v62 }
 0xc22   : > { %4693 = vrot.lane.b32.xlu0 %v4689_v52, %s9557_s16  ;;  %4695 = vrot.lane.b32.xlu1 %v4690_v50, %s9557_s16 }
 0xc24   : > { %v4093_v39 = vpop.permute.xlu0 %4092  ;;  %v4188_v18 = vpop.permute.xlu1 %4187 }
 0xc25   : > { %v4098_v19 = vadd.f32 %v4093_v39, %v4077_v1  ;;  %v4827_v1 = vmul.f32 %v8944_v20, %v9022_v58 }
 0xc26   : > { %4714 = vrot.lane.b32.xlu0 %v4710_v2, %s9380_s21  ;;  %4716 = vrot.lane.b32.xlu1 %v4711_v29, %s9380_s21  ;;  %v4848_v29 = vmul.f32 %v8950_v33, %v9022_v58  ;;  %v4889_v33 = vmul.f32 %v8961_v45, %v9019_v62 }
 0xc27   : > { %v4109_v22 = vadd.f32 %v4107_v60, %v4098_v19 }
 0xc28   : > { %v4125_v3 = vpop.permute.xlu0 %4124  ;;  %v4283_v28 = vpop.permute.xlu1 %4282 }
 0xc29   : > { %v4130_v43 = vadd.f32 %v4125_v3, %v4109_v22 }
 0xc2a   : > { %4735 = vrot.lane.b32.xlu0 %v4731_v24, %s9558_s19  ;;  %4737 = vrot.lane.b32.xlu1 %v4732_v34, %s9558_s19  ;;  %v4869_v24 = vmul.f32 %v8953_v44, %v9022_v58 }
 0xc2b   : > { %v4151_v6 = vadd.f32 %v4146_v37, %v4130_v43  ;;  %v9049_v43 = vld [vmem:[#allocation12 + $0x15] ss:$0 sm:$0xff] }
 0xc2c   : > { %v4167_v5 = vpop.permute.xlu0 %4166  ;;  %v4325_v38 = vpop.permute.xlu1 %4324 }
 0xc2d   : > { %v4172_v53 = vadd.f32 %v4167_v5, %v4151_v6  ;;  %v4890_v6 = vmul.f32 %v8961_v45, %v9022_v58 }
 0xc2e   : > { %4756 = vrot.lane.b32.xlu0 %v4752_v10, %s6096_s24  ;;  %4758 = vrot.lane.b32.xlu1 %v4753_v14, %s6096_s24 }
 0xc2f   : > { %v4193_v32 = vadd.f32 %v4188_v18, %v4172_v53  ;;  %v4868_v18 = vmul.f32 %v8953_v44, %v9019_v62  ;;  %v4381_v44 = vmul.f32 %v9049_v43, %v8849_v4  ;;  %v4910_v53 = vmul.f32 %v8966_v42, %v9019_v62 }
 0xc30   : > { %v4209_v63 = vpop.permute.xlu0 %4208  ;;  %v3990_v27 = vpop.permute.xlu1 %3989 }
 0xc31   : > { %v4214_v61 = vadd.f32 %v4209_v63, %v4193_v32  ;;  %v4911_v32 = vmul.f32 %v8966_v42, %v9022_v58 }
 0xc32   : > { %4777 = vrot.lane.b32.xlu0 %v4773_v15, %s9383_s0  ;;  %4779 = vrot.lane.b32.xlu1 %v4774_v13, %s9383_s0 }
 0xc34   : > { %v4230_v11 = vpop.permute.xlu0 %4229  ;;  %v4032_v25 = vpop.permute.xlu1 %4031 }
 0xc35   : > { %v4235_v23 = vadd.f32 %v4230_v11, %v4214_v61  ;;  %v3973_v11 = vmul.f32 %v8963_v49, %v8813_v57 }
 0xc36   : > { %4809 = vrot.lane.b32.xlu0 %v4805_v30, %s9556_s4  ;;  %4811 = vrot.lane.b32.xlu1 %v4806_v16, %s9556_s4  ;;  %s9096_s4 = sld [smem:[#allocation26 + $0x2]] }
 0xc37   : > { %v4246_v52 = vadd.f32 %v4244_v17, %v4235_v23  ;;  %v3994_v23 = vadd.f32 %v3990_v27, %v3973_v11 }
 0xc38   : > { %v4262_v50 = vpop.permute.xlu0 %4261  ;;  %v4074_v2 = vpop.permute.xlu1 %4073 }
 0xc39   : > { %v4267_v37 = vadd.f32 %v4262_v50, %v4246_v52 }
 0xc3a   : > { %4830 = vrot.lane.b32.xlu0 %v4826_v55, %s9557_s16  ;;  %4832 = vrot.lane.b32.xlu1 %v4827_v1, %s9557_s16  ;;  %s9098_s16 = sld [smem:[#allocation24 + $0x5]] }
 0xc3b   : > { %v4288_v36 = vadd.f32 %v4283_v28, %v4267_v37 }
 0xc3c   : > { %v4304_v39 = vpop.permute.xlu0 %4303  ;;  %v4095_v19 = vpop.permute.xlu1 %4094 }
 0xc3d   : > { %v4309_v60 = vadd.f32 %v4304_v39, %v4288_v36 }
 0xc3e   : > { %4851 = vrot.lane.b32.xlu0 %v4847_v46, %s9380_s21  ;;  %4853 = vrot.lane.b32.xlu1 %v4848_v29, %s9380_s21  ;;  %v4108_v29 = vmul.f32 %v8989_v40, %v8839_v9  ;;  %s5409_s21 = sld [smem:[#allocation23 + $0x1]] }
 0xc3f   : > { %v4330_v20 = vadd.f32 %v4325_v38, %v4309_v60 }
 0xc40   : > { %v4346_v22 = vpop.permute.xlu0 %4345  ;;  %v4127_v34 = vpop.permute.xlu1 %4126 }
 0xc41   : > { %v4351_v3 = vadd.f32 %v4346_v22, %v4330_v20 }
 0xc42   : > { %4872 = vrot.lane.b32.xlu0 %v4868_v18, %s9558_s19  ;;  %4874 = vrot.lane.b32.xlu1 %v4869_v24, %s9558_s19  ;;  %s9100_s19 = sld [smem:[#allocation26 + $0x3]] }
 0xc44   : > { %v4367_v28 = vpop.permute.xlu0 %4366  ;;  %v4169_v5 = vpop.permute.xlu1 %4168 }
 0xc45   : > { %v4372_v10 = vadd.f32 %v4367_v28, %v4351_v3 }
 0xc46   : > { %4893 = vrot.lane.b32.xlu0 %v4889_v33, %s6096_s24  ;;  %4895 = vrot.lane.b32.xlu1 %v4890_v6, %s6096_s24  ;;  %s9102_s24 = sld [smem:[#allocation24 + $0x7]] }
 0xc47   : > { %v4383_v14 = vadd.f32 %v4381_v44, %v4372_v10 }
 0xc48   : > { %v4399_v38 = vpop.permute.xlu0 %4398  ;;  %v4211_v63 = vpop.permute.xlu1 %4210 }
 0xc49   : > { %v4404_v15 = vadd.f32 %v4399_v38, %v4383_v14 }
 0xc4a   : > { %4914 = vrot.lane.b32.xlu0 %v4910_v53, %s9383_s0  ;;  %4916 = vrot.lane.b32.xlu1 %v4911_v32, %s9383_s0  ;;  %s6097_s0 = smov 106  }
 0xc4c   : > { %v4420_v45 = vpop.permute.xlu0 %4419  ;;  %v4232_v4 = vpop.permute.xlu1 %4231 }
 0xc4d   : > { %v4425_v28 = vadd.f32 %v4420_v45, %v4404_v15 }
 0xc50   : > { %v4441_v13 = vpop.permute.xlu0 %4440  ;;  %v4264_v61 = vpop.permute.xlu1 %4263 }
 0xc54   : > { %v4462_v30 = vpop.permute.xlu0 %4461  ;;  %v4306_v16 = vpop.permute.xlu1 %4305 }
 0xc58   : > { %v4011_v17 = vpop.permute.xlu0 %4010  ;;  %v4348_v55 = vpop.permute.xlu1 %4347 }
 0xc59   : > { %v4015_v52 = vadd.f32 %v4011_v17, %v3994_v23 }
 0xc5b   : > { %v4036_v42 = vadd.f32 %v4032_v25, %v4015_v52 }
 0xc5c   : > { %v4053_v50 = vpop.permute.xlu0 %4052  ;;  %v4369_v37 = vpop.permute.xlu1 %4368 }
 0xc5d   : > { %v4057_v1 = vadd.f32 %v4053_v50, %v4036_v42 }
 0xc5f   : > { %v4078_v36 = vadd.f32 %v4074_v2, %v4057_v1  ;;  %v4446_v2 = vadd.f32 %v4441_v13, %v4425_v28 }
 0xc60   : > { %v4148_v46 = vpop.permute.xlu0 %4147  ;;  %v4401_v60 = vpop.permute.xlu1 %4400 }
 0xc61   : > { %v4099_v39 = vadd.f32 %v4095_v19, %v4078_v36  ;;  %v4245_v19 = vmul.f32 %v9017_v0, %v8865_v54  ;;  %v4467_v40 = vadd.f32 %v4462_v30, %v4446_v2  ;;  %v4382_v0 = vmul.f32 %v9049_v43, %v8888_v7 }
 0xc63   : > { %v4110_v20 = vadd.f32 %v4108_v29, %v4099_v39 }
 0xc64   : > { %v4190_v18 = vpop.permute.xlu0 %4189  ;;  %v4422_v57 = vpop.permute.xlu1 %4421 }
 0xc65   : > { %v4131_v22 = vadd.f32 %v4127_v34, %v4110_v20  ;;  %v5386_v34 = vld [vmem:[#allocation12 + $0x1c] ss:$0 sm:$0xff] }
 0xc66   : > { %v4518_v15 = vmul.f32 %v5386_v34, %v8929_v31  ;;  %v4519_v43 = vmul.f32 %v5386_v34, %v8934_v21 }
 0xc67   : > { %v4152_v49 = vadd.f32 %v4148_v46, %v4131_v22 }
 0xc68   : > { %v4285_v27 = vpop.permute.xlu0 %4284  ;;  %v4443_v3 = vpop.permute.xlu1 %4442 }
 0xc69   : > { %v4173_v24 = vadd.f32 %v4169_v5, %v4152_v49 }
 0xc6b   : > { %v4194_v33 = vadd.f32 %v4190_v18, %v4173_v24 }
 0xc6c   : > { %v4327_v25 = vpop.permute.xlu0 %4326  ;;  %v4464_v10 = vpop.permute.xlu1 %4463 }
 0xc6d   : > { %v4215_v6 = vadd.f32 %v4211_v63, %v4194_v33 }
 0xc6f   : > { %v4236_v44 = vadd.f32 %v4232_v4, %v4215_v6 }
 0xc70   : > { %v4483_v9 = vpop.permute.xlu0 %4482  ;;  %v4485_v53 = vpop.permute.xlu1 %4484 }
 0xc71   : > { %v4247_v14 = vadd.f32 %v4245_v19, %v4236_v44  ;;  %v4488_v32 = vadd.f32 %v4483_v9, %v4467_v40 }
 0xc73   : > { %v4268_v38 = vadd.f32 %v4264_v61, %v4247_v14 }
 0xc74   : > { %v4504_v11 = vpop.permute.xlu0 %4503  ;;  %v4506_v17 = vpop.permute.xlu1 %4505 }
 0xc75   : > { %v4289_v5 = vadd.f32 %v4285_v27, %v4268_v38  ;;  %v4509_v23 = vadd.f32 %v4504_v11, %v4488_v32 }
 0xc77   : > { %v4310_v63 = vadd.f32 %v4306_v16, %v4289_v5  ;;  %v4520_v45 = vadd.f32 %v4518_v15, %v4509_v23 }
 0xc78   : > { %v4536_v13 = vpop.permute.xlu0 %4535  ;;  %v4538_v52 = vpop.permute.xlu1 %4537 }
 0xc79   : > { %v4331_v4 = vadd.f32 %v4327_v25, %v4310_v63  ;;  %v4541_v29 = vadd.f32 %v4536_v13, %v4520_v45  ;;  %v5393_v25 = vld [vmem:[#allocation12 + $0x23] ss:$0 sm:$0xff] }
 0xc7a   : > { %v4655_v2 = vmul.f32 %v5393_v25, %v8975_v41  ;;  %v4656_v21 = vmul.f32 %v5393_v25, %v8978_v35 }
 0xc7b   : > { %v4352_v42 = vadd.f32 %v4348_v55, %v4331_v4 }
 0xc7c   : > { %v4557_v54 = vpop.permute.xlu0 %4556  ;;  %v4559_v50 = vpop.permute.xlu1 %4558 }
 0xc7d   : > { %v4373_v30 = vadd.f32 %v4369_v37, %v4352_v42  ;;  %v4562_v16 = vadd.f32 %v4557_v54, %v4541_v29 }
 0xc7f   : > { %v4384_v61 = vadd.f32 %v4382_v0, %v4373_v30  ;;  %v5400_v30 = vld [vmem:[#allocation12 + $0x2a] ss:$0 sm:$0xff] }
 0xc80   : > { %v4578_v1 = vpop.permute.xlu0 %4577  ;;  %v4580_v46 = vpop.permute.xlu1 %4579 }
 0xc81   : > { %v4405_v36 = vadd.f32 %v4401_v60, %v4384_v61  ;;  %v4583_v49 = vadd.f32 %v4578_v1, %v4562_v16 }
 0xc83   : > { %v4426_v39 = vadd.f32 %v4422_v57, %v4405_v36 }
 0xc84   : > { %v4599_v20 = vpop.permute.xlu0 %4598  ;;  %v4601_v18 = vpop.permute.xlu1 %4600 }
 0xc85   : > { %v4447_v31 = vadd.f32 %v4443_v3, %v4426_v39  ;;  %v4604_v24 = vadd.f32 %v4599_v20, %v4583_v49  ;;  %v4792_v39 = vmul.f32 %v5400_v30, %v9019_v62 }
 0xc87   : > { %v4468_v22 = vadd.f32 %v4464_v10, %v4447_v31  ;;  %v4793_v31 = vmul.f32 %v5400_v30, %v9022_v58 }
 0xc88   : > { %v4620_v27 = vpop.permute.xlu0 %4619  ;;  %v4622_v33 = vpop.permute.xlu1 %4621 }
 0xc89   : > { %v4489_v55 = vadd.f32 %v4485_v53, %v4468_v22  ;;  %v4625_v37 = vadd.f32 %v4620_v27, %v4604_v24 }
 0xc8b   : > { %v4510_v7 = vadd.f32 %v4506_v17, %v4489_v55 }
 0xc8c   : > { %v4641_v28 = vpop.permute.xlu0 %4640  ;;  %v4643_v57 = vpop.permute.xlu1 %4642 }
 0xc8d   : > { %v4521_v60 = vadd.f32 %v4519_v43, %v4510_v7  ;;  %v4646_v6 = vadd.f32 %v4641_v28, %v4625_v37 }
 0xc8f   : > { %v4542_v3 = vadd.f32 %v4538_v52, %v4521_v60  ;;  %v4657_v44 = vadd.f32 %v4655_v2, %v4646_v6 }
 0xc90   : > { %v4673_v19 = vpop.permute.xlu0 %4672  ;;  %v4675_v9 = vpop.permute.xlu1 %4674 }
 0xc91   : > { %v4563_v10 = vadd.f32 %v4559_v50, %v4542_v3  ;;  %v4678_v23 = vadd.f32 %v4673_v19, %v4657_v44 }
 0xc93   : > { %v4584_v40 = vadd.f32 %v4580_v46, %v4563_v10 }
 0xc94   : > { %v4694_v14 = vpop.permute.xlu0 %4693  ;;  %v4696_v38 = vpop.permute.xlu1 %4695 }
 0xc95   : > { %v4605_v53 = vadd.f32 %v4601_v18, %v4584_v40  ;;  %v4699_v41 = vadd.f32 %v4694_v14, %v4678_v23  ;;  %v4949_v14 = vstv %s5409_s21 }
 0xc97   : > { %v4626_v32 = vadd.f32 %v4622_v33, %v4605_v53 }
 0xc98   : > { %v4715_v11 = vpop.permute.xlu0 %4714  ;;  %v4717_v34 = vpop.permute.xlu1 %4716 }
 0xc99   : > { %v4647_v5 = vadd.f32 %v4643_v57, %v4626_v32  ;;  %v4720_v4 = vadd.f32 %v4715_v11, %v4699_v41 }
 0xc9b   : > { %v4658_v17 = vadd.f32 %v4656_v21, %v4647_v5 }
 0xc9c   : > { %v4736_v15 = vpop.permute.xlu0 %4735  ;;  %v4738_v45 = vpop.permute.xlu1 %4737 }
 0xc9d   : > { %v4679_v63 = vadd.f32 %v4675_v9, %v4658_v17  ;;  %v4741_v54 = vadd.f32 %v4736_v15, %v4720_v4  ;;  %v4933_v4 = vstv %s4932_s20 }
 0xc9f   : > { %v4700_v13 = vadd.f32 %v4696_v38, %v4679_v63 }
 0xca0   : > { %v4757_v52 = vpop.permute.xlu0 %4756  ;;  %v4759_v0 = vpop.permute.xlu1 %4758 }
 0xca1   : > { %v4721_v42 = vadd.f32 %v4717_v34, %v4700_v13  ;;  %v4762_v61 = vadd.f32 %v4757_v52, %v4741_v54 }
 0xca3   : > { %v4742_v50 = vadd.f32 %v4738_v45, %v4721_v42 }
 0xca4   : > { %v4778_v1 = vpop.permute.xlu0 %4777  ;;  %v4780_v35 = vpop.permute.xlu1 %4779 }
 0xca5   : > { %v4763_v36 = vadd.f32 %v4759_v0, %v4742_v50  ;;  %v4783_v46 = vadd.f32 %v4778_v1, %v4762_v61 }
 0xca7   : > { %v4784_v29 = vadd.f32 %v4780_v35, %v4763_v36  ;;  %v4794_v20 = vadd.f32 %v4792_v39, %v4783_v46  ;;  %v4985_v46 = vstv %s9080_s3  ;;  %v4987_v35 = vstv %s9082_s8 }
 0xca8   : > { %v4810_v16 = vpop.permute.xlu0 %4809  ;;  %v4812_v22 = vpop.permute.xlu1 %4811  ;;  %v4993_v39 = vstv %s9084_s13  ;;  %s9560_s13 = sld [smem:[#allocation107_spill]] }
 0xca9   : > { %v4795_v18 = vadd.f32 %v4793_v31, %v4784_v29  ;;  %v4815_v25 = vadd.f32 %v4810_v16, %v4794_v20  ;;  %v5006_v29 = vstv %s9086_s6 }
 0xcab   : > { %v4816_v33 = vadd.f32 %v4812_v22, %v4795_v18 }
 0xcac   : > { %v4831_v49 = vpop.permute.xlu0 %4830  ;;  %v4833_v27 = vpop.permute.xlu1 %4832 }
 0xcad   : > { %v4836_v43 = vadd.f32 %v4831_v49, %v4815_v25  ;;  %v4837_v28 = vadd.f32 %v4833_v27, %v4816_v33  ;;  %v5008_v27 = vstv %s9088_s9  ;;  %v5050_v33 = vstv %s9094_s17  ;;  %s6099_s9 = smov [#allocation27]  }
 0xcb0   : > { %v4852_v55 = vpop.permute.xlu0 %4851  ;;  %v4854_v24 = vpop.permute.xlu1 %4853 }
 0xcb1   : > { %v4857_v60 = vadd.f32 %v4852_v55, %v4836_v43  ;;  %v4858_v6 = vadd.f32 %v4854_v24, %v4837_v28  ;;  %v5014_v55 = vstv %s9090_s29  ;;  %v5029_v24 = vstv %s9092_s1  ;;  %s5952_s29 = sshll.u32 %s6099_s9, 4  ;;  %s5953_s29 = int_to_ptr.vmem [resolvable:$false] %s5952_s29 }
 0xcb2   : > { %v5027_v28 = vstv %s9096_s4  ;;  %s5954_s1 = scalar_lea.vmem %s5953_s29, 2048 }
 0xcb4   : > { %v4873_v7 = vpop.permute.xlu0 %4872  ;;  %v4875_v37 = vpop.permute.xlu1 %4874 }
 0xcb5   : > { %v4878_v57 = vadd.f32 %v4873_v7, %v4857_v60  ;;  %v4879_v3 = vadd.f32 %v4875_v37, %v4858_v6  ;;  %v5048_v60 = vstv %s9100_s19 }
 0xcb8   : > { %v4894_v62 = vpop.permute.xlu0 %4893  ;;  %v4896_v2 = vpop.permute.xlu1 %4895 }
 0xcb9   : > { %v4899_v58 = vadd.f32 %v4894_v62, %v4878_v57  ;;  %v4900_v44 = vadd.f32 %v4896_v2, %v4879_v3 }
 0xcbc   : > { %v4915_v19 = vpop.permute.xlu0 %4914  ;;  %v4917_v9 = vpop.permute.xlu1 %4916 }
 0xcbd   : > { %v4920_v10 = vadd.f32 %v4915_v19, %v4899_v58  ;;  %v4921_v40 = vadd.f32 %v4917_v9, %v4900_v44  ;;  %v4998_v9 = vld [vmem:[%s6462_s2] sm:$0xff] }
 0xcbf   : > { %4924 = vrot.lane.b32.xlu0 %v4920_v10, %s6097_s0  ;;  %4926 = vrot.lane.b32.xlu1 %v4921_v40, %s6097_s0  ;;  %s9559_s0 = sshll.u32 %s6456_s5, 6 }
 0xcc0   : > { %s616_s21 = scalar_lea.vmem [#allocation27], %s9559_s0 }
 0xcc1   : > { %s5082_s20 = sshll.u32 %s616_s21, 4  ;;  %s9146_s20 = int_to_ptr.vmem [resolvable:$true] %s5082_s20 }
 0xcc2   : > { %p5955_p4 = scmp.lt.s32.totalorder %s9146_s20, %s5953_s29 }
 0xd31   : > { %v4925_v53 = vpop.permute.xlu0 %4924  ;;  %v4927_v32 = vpop.permute.xlu1 %4926 }
 0xd32   : > { %v4930_v38 = vadd.f32 %v4925_v53, %v4920_v10  ;;  %v4931_v11 = vadd.f32 %v4927_v32, %v4921_v40  ;;  %v5416_v40 = vld [vmem:[%s6462_s2 + $0x10] sm:$0xff] }
 0xd34   : > { %v4950_v5 = vadd.f32 %v4949_v14, %v4930_v38  ;;  %v4951_v21 = vadd.f32 %v4949_v14, %v4931_v11  ;;  %v4934_v52 = vadd.f32 %v4933_v4, %v4930_v38  ;;  %v4935_v54 = vadd.f32 %v4933_v4, %v4931_v11 }
 0xd36   : > { %v5410_v34 = vmul.f32 -1.442695, %v4950_v5  ;;  %v5411_v23 = vmul.f32 -1.442695, %v4951_v21  ;;  %v5407_v42 = vmul.f32 -1.442695, %v4934_v52 }
 0xd37   : > { %v5408_v0 = vmul.f32 -1.442695, %v4935_v54 }
 0xd38   : > { %5652 = vpow2.f32 %v5410_v34 }
 0xd39   : > { %5654 = vpow2.f32 %v5411_v23 }
 0xd42   : > { %v5653_v17 = vpop.eup %5652 }
 0xd43   : > { %v4958_v15 = vadd.f32 1.0, %v5653_v17  ;;  %v5655_v63 = vpop.eup %5654 }
 0xd44   : > { %v4959_v41 = vadd.f32 1.0, %v5655_v63 }
 0xd45   : > { %5656 = vrcp.f32 %v4958_v15 }
 0xd46   : > { %5658 = vrcp.f32 %v4959_v41 }
 0xd47   : > { %5660 = vpow2.f32 %v5407_v42  ;;  %v4999_v42 = vld [vmem:[%s6462_s2 + $0x8] sm:$0xff] }
 0xd48   : > { %5662 = vpow2.f32 %v5408_v0 }
 0xd4f   : > { %v5657_v45 = vpop.eup %5656 }
 0xd50   : > { %4968 = vrot.lane.b32.xlu0 %v5657_v45, %s6098_s7  ;;  %v5659_v13 = vpop.eup %5658 }
 0xd51   : > { %4970 = vrot.lane.b32.xlu1 %v5659_v13, %s6098_s7  ;;  %v5661_v30 = vpop.eup %5660  ;;  %s5440_s7 = sshll.u32 %s6193_s14, 10  ;;  %s5069_s14 = scalar_lea.sflag [#allocation7], %s6456_s5 }
 0xd52   : > { %v4942_v50 = vadd.f32 1.0, %v5661_v30  ;;  %v5663_v61 = vpop.eup %5662  ;;  %v5417_v30 = vld [vmem:[%s6462_s2 + $0x18] sm:$0xff]  ;;  %s9144_s6 = scalar_lea.hbm %s9560_s13, %s5440_s7 }
 0xd53   : > { %v4943_v1 = vadd.f32 1.0, %v5663_v61 }
 0xd54   : > { %5664 = vrcp.f32 %v4942_v50 }
 0xd55   : > { %5666 = vrcp.f32 %v4943_v1 }
 0xd5e   : > { %v5665_v36 = vpop.eup %5664 }
 0xd5f   : > { %v4964_v31 = vmul.f32 %v5665_v36, %v8672_v48  ;;  %v4978_v18 = vmul.f32 %v5665_v36, %v8675_v47  ;;  %v5667_v49 = vpop.eup %5666  ;;  %v5056_v47 = vstv %s9102_s24 }
 0xd60   : > { %v4965_v62 = vmul.f32 %v5667_v49, %v8692_v56  ;;  %v4979_v57 = vmul.f32 %v5667_v49, %v8695_v8  ;;  %v5423_v56 = vld [vmem:[%s6462_s2 + $0x20] sm:$0xff]  ;;  %v5430_v8 = vld [vmem:[%s6462_s2 + $0x30] sm:$0xff] }
 0xdc2   : > { %v4969_v20 = vpop.permute.xlu0 %4968 }
 0xdc3   : > { %v4974_v16 = vmul.f32 %v4969_v20, %v8669_v26  ;;  %v4980_v22 = vmul.f32 %v4969_v20, %v8677_v12  ;;  %v4971_v25 = vpop.permute.xlu1 %4970  ;;  %v5035_v26 = vstv %s9098_s16 }
 0xdc4   : > { %v4975_v37 = vmul.f32 %v4971_v25, %v8687_v51  ;;  %v4981_v48 = vmul.f32 %v4971_v25, %v8697_v59 }
 0xdc5   : > { %v4976_v7 = vadd.f32 %v4974_v16, %v4964_v31  ;;  %v4982_v43 = vadd.f32 %v4980_v22, %v4978_v18  ;;  %v5431_v16 = vld [vmem:[%s6462_s2 + $0x38] sm:$0xff] }
 0xdc6   : > { %v4977_v19 = vadd.f32 %v4975_v37, %v4965_v62  ;;  %v4983_v10 = vadd.f32 %v4981_v48, %v4979_v57 }
 0xdc7   : > { %v4988_v6 = vmul.f32 %v4987_v35, %v4976_v7  ;;  %v5009_v12 = vmul.f32 %v5008_v27, %v4976_v7  ;;  %v4994_v2 = vmul.f32 %v4993_v39, %v4982_v43  ;;  %v5015_v3 = vmul.f32 %v5014_v55, %v4982_v43 }
 0xdc8   : > { %v5030_v58 = vmul.f32 %v5029_v24, %v4976_v7  ;;  %v5051_v51 = vmul.f32 %v5050_v33, %v4976_v7  ;;  %v5036_v53 = vmul.f32 %v5035_v26, %v4982_v43  ;;  %v5057_v32 = vmul.f32 %v5056_v47, %v4982_v43 }
 0xdc9   : > { %v4990_v44 = vadd.f32 %v4988_v6, %v4985_v46  ;;  %v5011_v59 = vadd.f32 %v5009_v12, %v5006_v29  ;;  %v4989_v21 = vmul.f32 %v4987_v35, %v4977_v19  ;;  %v4995_v17 = vmul.f32 %v4993_v39, %v4983_v10 }
 0xdca   : > { %v5032_v14 = vadd.f32 %v5030_v58, %v5027_v28  ;;  %v5053_v38 = vadd.f32 %v5051_v51, %v5048_v60  ;;  %v5010_v15 = vmul.f32 %v5008_v27, %v4977_v19  ;;  %v5031_v13 = vmul.f32 %v5029_v24, %v4977_v19 }
 0xdcb   : > { %v4996_v11 = vadd.f32 %v4994_v2, %v4990_v44  ;;  %v5017_v5 = vadd.f32 %v5015_v3, %v5011_v59  ;;  %v4991_v45 = vadd.f32 %v4989_v21, %v4985_v46  ;;  %v5016_v0 = vmul.f32 %v5014_v55, %v4983_v10  ;;  %v5424_v46 = vld [vmem:[%s6462_s2 + $0x28] sm:$0xff]  ;;  %s5948_s2 = scalar_lea.vmem %s9146_s20, 1024 }
 0xdcc   : > { %v5038_v34 = vadd.f32 %v5036_v53, %v5032_v14  ;;  %v5059_v23 = vadd.f32 %v5057_v32, %v5053_v38  ;;  %v5012_v54 = vadd.f32 %v5010_v15, %v5006_v29  ;;  %v5033_v61 = vadd.f32 %v5031_v13, %v5027_v28  ;;  %p5949_p11 = scmp.ne.s32.totalorder %s9146_s20, %s5948_s2  ;;  %p5956_p10 = scmp.lt.s32.totalorder %s5954_s1, %s5948_s2 }
 0xdcd   : > { %v5000_v63 = vmul.f32 %v4998_v9, %v4996_v11  ;;  %v5021_v41 = vmul.f32 %v5416_v40, %v5017_v5  ;;  %v4997_v50 = vadd.f32 %v4995_v17, %v4991_v45  ;;  %v5037_v1 = vmul.f32 %v5035_v26, %v4983_v10 }
 0xdce   : > { %v5042_v4 = vmul.f32 %v5423_v56, %v5038_v34  ;;  %v5063_v52 = vmul.f32 %v5430_v8, %v5059_v23  ;;  %v5052_v36 = vmul.f32 %v5050_v33, %v4977_v19  ;;  %v5018_v35 = vadd.f32 %v5016_v0, %v5012_v54  ;;  %p5950_p0 = pnand %p5949_p11, %p9561_p13  ;;  %p5957_p6 = por %p5956_p10, %p5955_p4 }
 0xdcf   : > { %5003 = vst.msk [vmem:[%s616_s21] sm:$0xff] %vm5002_vm0, %v5000_v63  ;;  %5418 = vst.msk [vmem:[%s616_s21 + $0x10] sm:$0xff] %vm5002_vm0, %v5021_v41  ;;  %v5001_v39 = vmul.f32 %v4999_v42, %v4997_v50  ;;  %v5039_v29 = vadd.f32 %v5037_v1, %v5033_v61  ;;  %v5058_v31 = vmul.f32 %v5056_v47, %v4983_v10 }
 0xdd0   : > { %5425 = vst.msk [vmem:[%s616_s21 + $0x20] sm:$0xff] %vm5002_vm0, %v5042_v4  ;;  %5432 = vst.msk [vmem:[%s616_s21 + $0x30] sm:$0xff] %vm5002_vm0, %v5063_v52  ;;  %v5054_v20 = vadd.f32 %v5052_v36, %v5048_v60  ;;  %v5022_v18 = vmul.f32 %v5417_v30, %v5018_v35  ;;  %p5951_p1 = pneg %p5950_p0 }
 0xdd1   : > { %5004 = vst.msk [vmem:[%s616_s21 + $0x8] sm:$0xff] %vm5002_vm0, %v5001_v39  ;;  %v5043_v22 = vmul.f32 %v5424_v46, %v5039_v29 }
 0xdd2   : > { %v5060_v49 = vadd.f32 %v5058_v31, %v5054_v20  ;;  %5419 = vst.msk [vmem:[%s616_s21 + $0x18] sm:$0xff] %vm5002_vm0, %v5022_v18  ;;  %p5958_p12 = pnand %p5957_p6, %p5951_p1 }
 0xdd3   : > { %5426 = vst.msk [vmem:[%s616_s21 + $0x28] sm:$0xff] %vm5002_vm0, %v5043_v22 }
 0xdd4   : > { %v5064_v27 = vmul.f32 %v5431_v16, %v5060_v49 }
 0xdd6   : > { %5433 = vst.msk [vmem:[%s616_s21 + $0x38] sm:$0xff] %vm5002_vm0, %v5064_v27 }
 0xdd7   : > { %5961 = shalt.err (!%p5958_p12)
}
 0xdd8   : > { %s5962_s17 = scalar_lea.hbm %s9144_s6, 1024  ;;  %s5966_s19 = scalar_lea.hbm %s9560_s13, 2048 }
 0xdd9   : > { %p5963_p5 = scmp.ne.s32.totalorder %s9144_s6, %s5962_s17  ;;  %p5967_p7 = scmp.lt.u32.totalorder %s9144_s6, %s9560_s13 }
 0xdda   : > { %p5968_p9 = scmp.lt.u32.totalorder %s5966_s19, %s5962_s17  ;;  %p5970_p11 = scmp.lt.u32.totalorder %s5962_s17, %s9144_s6 }
 0xddb   : > { %p5964_p2 = pnand %p5963_p5, %p9561_p13 }
 0xddc   : > { %p5969_p8 = por %p5968_p9, %p5967_p7 }
 0xddd   : > { %p5965_p3 = pneg %p5964_p2 }
 0xdde   : > { %p5971_p0 = por %p5970_p11, %p5969_p8 }
 0xde0   : > { %p5972_p1 = pnand %p5971_p0, %p5965_p3 }
 0xde2   : > { %5975 = shalt.err (!%p5972_p1)
}
 0xde3   : > { %s6100_s21 = smov 128   ;;  %s6101_s7 = smov 8  }
 0xde4   : > { %5491 = dma.vmem_to_hbm [thread:$0]  (%p9561_p13), %s9146_s20, 1024, %s9144_s6, %s5069_s14, %s6100_s21, %s6100_s21, %s6101_s7  }
 0xde5 PF: > { %s5097_s3 = sand.u32 1, %s6030_s25   ;;  %p9562_p4 = scmp.ne.s32.totalorder %s9339_s23, 0 }
 0xde6   : > { %p9563_p10 = scmp.ge.s32.totalorder %s6042_s28, 2  ;;  %s5098_s8 = scalar_lea.sflag [#allocation7], %s5097_s3 }
 0xde8   : > { %p5535_p6 = pnand %p9563_p10, %p9562_p4 }
 0xdea   : > { %6025 = dma.done.wait (!%p5535_p6), %s5098_s8, 1024  }
 0xdeb   : > { %6027 = vsyncadd (!%p5535_p6), %s5098_s8, 4294966272  ;;  %p33_p12 = scmp.ge.s32.totalorder %s6374_s22, 4   ;;  %s9564_s25 = smov %s6034_s26 }
 0xdec   : > { %s9565_s26 = smov %s6038_s27  ;;  %s9566_s27 = smov %s6385_s15 }
 0xded   : > { %s9567_s28 = smov %s6374_s22  ;;  %35 = sbr.rel (!%p33_p12) target bundleno = 24 (0x18), region = 220 }
 0xdf4   :  { %5103 = vsyncpa [#allocation6], 1 }
 0xdf5   :  { %5105 = vsyncpa [#allocation6 + $0x1], 1 }
 0xdf6   :  { %5106 = vsyncpa [#allocation10], 1 }
 0xdf7   :  { %5107 = vsyncpa [#allocation13], 1 }
 0xdf8   :  { %5108 = vsyncpa [#allocation7], 1 }
 0xdf9   :  { %5110 = vsyncpa [#allocation7 + $0x1], 1 }
 0xdfa   :  { %5111 = vsyncpa [#allocation8], 1 }
 0xdfb   :  { %5113 = vsyncpa [#allocation8 + $0x1], 1 }
 0xdfc   :  { %5114 = vsyncpa [#allocation16], 1 }
 0xdfd   :  { %5115 = vsyncpa [#allocation19], 1 }
 0xdfe   :  { %5116 = vsyncpa [#allocation22], 1 }
 0xdff   :  { %5117 = vsyncpa [#allocation25], 1 }

</bundles_post_ra>
